<compile_context>
chip_gen: v7x
topology: tpu7x:2x2x1
jax: 0.10.0
libtpu: 0.0.40
codegen_flags: <defaults>
</compile_context>

<pallas_src>
import math
import functools

import jax
import jax.numpy as jnp
from jax import lax
from jax.experimental import pallas as pl
from jax.experimental.pallas import tpu as pltpu  # noqa: F401  (TPU backend)

E = 16          # d_model
H = 4           # nhead
DH = E // H     # per-head dim
FF = 32         # dim_feedforward
EPS = 1e-5      # layer-norm eps
NEG_INF = -1e30
N_ENC = 3
N_DEC = 3


# ------------------------------------------------------------ fused kernel --

def _gene_kernel(B, S,
                 idx_ref, pe_ref, menc_ref, mdec_ref, emb_ref,
                 aw_ref, ab_ref, fw_ref, fb_ref, ln_ref, w2_ref, b2_ref,
                 o_ref):
    """Whole Gene forward for one (B, S) problem, fully VMEM-resident."""
    M = B * S
    scale = 1.0 / math.sqrt(DH)

    # --- embedding lookup (== one-hot @ linear1 + bias) + positional encoding
    idx = idx_ref[...]                      # (M, 1) int32 class ids in {0,1,2}
    emb = emb_ref[...]                      # (3, E), bias already folded in
    row0 = emb[0:1, :]
    row1 = emb[1:2, :]
    row2 = emb[2:3, :]
    h = jnp.where(idx == 0, row0, jnp.where(idx == 1, row1, row2))   # (M, E)
    h = h + pe_ref[...]                     # (M, E)

    mask_enc = menc_ref[...]                # (M, M) batch-block-diagonal
    mask_dec = mdec_ref[...]                # (M, M) block-diagonal + causal

    # ----------------------------------------------------------- helpers ---
    def layer_norm(x, i):
        g = ln_ref[i:i + 1, 0:E]            # (1, E)
        b = ln_ref[i:i + 1, E:2 * E]        # (1, E)
        mu = jnp.mean(x, axis=-1, keepdims=True)
        xc = x - mu
        var = jnp.mean(xc * xc, axis=-1, keepdims=True)   # biased (PyTorch LN)
        return xc * lax.rsqrt(var + EPS) * g + b

    def mha(x_q, x_kv, i, mask, fused_qkv):
        W = aw_ref[i * E:(i + 1) * E, :]    # (E, 4E): [wq | wk | wv | wo]
        bvec = ab_ref[i:i + 1, :]           # (1, 4E): [bq | bk | bv | bo]
        if fused_qkv:                       # self-attention: one QKV matmul
            qkv = jnp.dot(x_q, W[:, 0:3 * E],
                          preferred_element_type=jnp.float32) + bvec[:, 0:3 * E]
            q = qkv[:, 0:E]
            k = qkv[:, E:2 * E]
            v = qkv[:, 2 * E:3 * E]
        else:                               # cross-attention: q from x_q, kv from memory
            q = jnp.dot(x_q, W[:, 0:E],
                        preferred_element_type=jnp.float32) + bvec[:, 0:E]
            kv = jnp.dot(x_kv, W[:, E:3 * E],
                         preferred_element_type=jnp.float32) + bvec[:, E:3 * E]
            k = kv[:, 0:E]
            v = kv[:, E:2 * E]

        wo = W[:, 3 * E:4 * E]              # (E, E) output projection
        acc = jnp.zeros((M, E), jnp.float32)
        for hh in range(H):                 # static unroll over heads
            lo = hh * DH
            qh = q[:, lo:lo + DH]           # (M, DH)
            kh = k[:, lo:lo + DH]
            vh = v[:, lo:lo + DH]
            s = lax.dot_general(qh, kh, (((1,), (1,)), ((), ())),
                                preferred_element_type=jnp.float32)   # (M, M)
            s = s * scale + mask
            s = s - jnp.max(s, axis=-1, keepdims=True)
            p = jnp.exp(s)
            p = p * pl.reciprocal(jnp.sum(p, axis=-1, keepdims=True), approx=True)
            oh = jnp.dot(p, vh, preferred_element_type=jnp.float32)   # (M, DH)
            # fold the output projection per head: concat(o_h) @ Wo == sum_h o_h @ Wo_h
            acc = acc + jnp.dot(oh, wo[lo:lo + DH, :],
                                preferred_element_type=jnp.float32)
        return acc + bvec[:, 3 * E:4 * E]

    def ffn(x, i):
        Wf = fw_ref[i * E:(i + 1) * E, :]   # (E, 2*FF): [w1 | w2^T]
        bf = fb_ref[i:i + 1, :]             # (1, FF + E): [b1 | b2]
        h1 = jnp.dot(x, Wf[:, 0:FF],
                     preferred_element_type=jnp.float32) + bf[:, 0:FF]
        h1 = jnp.maximum(h1, 0.0)
        h2 = lax.dot_general(h1, Wf[:, FF:2 * FF], (((1,), (1,)), ((), ())),
                             preferred_element_type=jnp.float32) + bf[:, FF:FF + E]
        return h2

    # ----------------------------------------------------- encoder stack ---
    x = h
    for i in range(N_ENC):
        a = mha(x, x, i, mask_enc, True)
        x = layer_norm(x + a, 2 * i)
        f = ffn(x, i)
        x = layer_norm(x + f, 2 * i + 1)
    mem = layer_norm(x, 2 * N_ENC)          # encoder final norm

    # ----------------------------------------------------- decoder stack ---
    ln_base = 2 * N_ENC + 1
    y = h
    for j in range(N_DEC):
        a = mha(y, y, N_ENC + 2 * j, mask_dec, True)            # causal self-attn
        y = layer_norm(y + a, ln_base + 3 * j)
        a2 = mha(y, mem, N_ENC + 2 * j + 1, mask_enc, False)    # cross-attn
        y = layer_norm(y + a2, ln_base + 3 * j + 1)
        f = ffn(y, N_ENC + j)
        y = layer_norm(y + f, ln_base + 3 * j + 2)
    y = layer_norm(y, ln_base + 3 * N_DEC)  # decoder final norm

    # --------------------------------------------- head: linear2 + ReLU ----
    out = jnp.dot(y, w2_ref[...], preferred_element_type=jnp.float32) + b2_ref[...]
    o_ref[...] = jnp.maximum(out, 0.0)      # (M, 1)


# ------------------------------------------------------------ model pieces --

def positional_encoding(seq_len):
    position = jnp.arange(seq_len, dtype=jnp.float32)[:, None]
    div_term = jnp.exp(jnp.arange(0, E, 2, dtype=jnp.float32)
                       * (-math.log(10000.0) / E))
    pe = jnp.zeros((seq_len, E), dtype=jnp.float32)
    pe = pe.at[:, 0::2].set(jnp.sin(position * div_term))
    pe = pe.at[:, 1::2].set(jnp.cos(position * div_term))
    return pe


def gene_forward(packed, x):
    """x: (B, 1, S) float32 with integer values in {0,1,2}. Returns (B, 1, S)."""
    B = x.shape[0]
    S = x.shape[2]
    M = B * S

    # token ids, flattened batch-major: row m = b*S + s
    idx = jnp.transpose(x, (0, 2, 1)).astype(jnp.int32).reshape(M, 1)

    # positional encoding tiled over the batch (constant, XLA folds it)
    pe_tiled = jnp.tile(positional_encoding(S), (B, 1))            # (M, E)

    # additive masks over the flattened token axis (constants)
    tok = jnp.arange(M)
    same_batch = (tok[:, None] // S) == (tok[None, :] // S)
    causal = (tok[:, None] % S) >= (tok[None, :] % S)
    mask_enc = jnp.where(same_batch, 0.0, NEG_INF).astype(jnp.float32)
    mask_dec = jnp.where(same_batch & causal, 0.0, NEG_INF).astype(jnp.float32)

    out = pl.pallas_call(
        functools.partial(_gene_kernel, B, S),
        out_shape=jax.ShapeDtypeStruct((M, 1), jnp.float32),
    )(idx, pe_tiled, mask_enc, mask_dec,
      packed['emb'], packed['attn_w'], packed['attn_b'],
      packed['ff_w'], packed['ff_b'], packed['ln'],
      packed['lin2_w'], packed['lin2_b'])

    return jnp.transpose(out.reshape(B, S, 1), (0, 2, 1))          # (B, 1, S)


# ------------------------------------------------------------------- params --

def init_params(key):
    keys = iter(jax.random.split(key, 256))

    def w(shape, scale=0.1):
        return scale * jax.random.normal(next(keys), shape, dtype=jnp.float32)

    def mha_params():
        return {
            'wq': w((E, E)), 'bq': jnp.zeros((E,), jnp.float32),
            'wk': w((E, E)), 'bk': jnp.zeros((E,), jnp.float32),
            'wv': w((E, E)), 'bv': jnp.zeros((E,), jnp.float32),
            'wo': w((E, E)), 'bo': jnp.zeros((E,), jnp.float32),
        }

    def ln_params(prefix):
        return {prefix + '_g': jnp.ones((E,), jnp.float32),
                prefix + '_b': jnp.zeros((E,), jnp.float32)}

    def enc_layer_params():
        p = {'self_attn': mha_params(),
             'ff_w1': w((E, FF)), 'ff_b1': jnp.zeros((FF,), jnp.float32),
             'ff_w2': w((FF, E)), 'ff_b2': jnp.zeros((E,), jnp.float32)}
        p.update(ln_params('ln1')); p.update(ln_params('ln2'))
        return p

    def dec_layer_params():
        p = {'self_attn': mha_params(), 'cross_attn': mha_params(),
             'ff_w1': w((E, FF)), 'ff_b1': jnp.zeros((FF,), jnp.float32),
             'ff_w2': w((FF, E)), 'ff_b2': jnp.zeros((E,), jnp.float32)}
        p.update(ln_params('ln1')); p.update(ln_params('ln2'))
        p.update(ln_params('ln3'))
        return p

    return {
        'lin1_w': w((3, E)), 'lin1_b': jnp.zeros((E,), jnp.float32),
        'lin2_w': w((E, 1)), 'lin2_b': jnp.zeros((1,), jnp.float32),
        'enc_layers': [enc_layer_params() for _ in range(N_ENC)],
        'dec_layers': [dec_layer_params() for _ in range(N_DEC)],
        'enc_norm_g': jnp.ones((E,), jnp.float32),
        'enc_norm_b': jnp.zeros((E,), jnp.float32),
        'dec_norm_g': jnp.ones((E,), jnp.float32),
        'dec_norm_b': jnp.zeros((E,), jnp.float32),
    }


def pack_params(params):
    """Pack the nested parameter dict into a few 2-D slabs for the fused kernel."""
    def pack_mha(p):
        wmat = jnp.concatenate([p['wq'], p['wk'], p['wv'], p['wo']], axis=1)   # (E, 4E)
        bvec = jnp.concatenate([p['bq'], p['bk'], p['bv'], p['bo']])[None, :]  # (1, 4E)
        return wmat, bvec

    attn_w, attn_b, ff_w, ff_b, ln = [], [], [], [], []

    # MHA order: enc0, enc1, enc2 self ; then per decoder layer: self, cross
    for lp in params['enc_layers']:
        wmat, bvec = pack_mha(lp['self_attn'])
        attn_w.append(wmat); attn_b.append(bvec)
    for lp in params['dec_layers']:
        wmat, bvec = pack_mha(lp['self_attn'])
        attn_w.append(wmat); attn_b.append(bvec)
        wmat, bvec = pack_mha(lp['cross_attn'])
        attn_w.append(wmat); attn_b.append(bvec)

    # FFN order: enc0..2 then dec0..2; w2 stored transposed so rows stay = E
    for lp in params['enc_layers'] + params['dec_layers']:
        ff_w.append(jnp.concatenate([lp['ff_w1'], lp['ff_w2'].T], axis=1))     # (E, 2*FF)
        ff_b.append(jnp.concatenate([lp['ff_b1'], lp['ff_b2']])[None, :])      # (1, FF+E)

    # LN order: enc(ln1,ln2)x3, enc_norm, dec(ln1,ln2,ln3)x3, dec_norm
    for lp in params['enc_layers']:
        ln.append(jnp.concatenate([lp['ln1_g'], lp['ln1_b']])[None, :])
        ln.append(jnp.concatenate([lp['ln2_g'], lp['ln2_b']])[None, :])
    ln.append(jnp.concatenate([params['enc_norm_g'], params['enc_norm_b']])[None, :])
    for lp in params['dec_layers']:
        ln.append(jnp.concatenate([lp['ln1_g'], lp['ln1_b']])[None, :])
        ln.append(jnp.concatenate([lp['ln2_g'], lp['ln2_b']])[None, :])
        ln.append(jnp.concatenate([lp['ln3_g'], lp['ln3_b']])[None, :])
    ln.append(jnp.concatenate([params['dec_norm_g'], params['dec_norm_b']])[None, :])

    return {
        'emb': params['lin1_w'] + params['lin1_b'][None, :],        # (3, E), bias folded
        'attn_w': jnp.concatenate(attn_w, axis=0),                  # (9*E, 4E)
        'attn_b': jnp.concatenate(attn_b, axis=0),                  # (9, 4E)
        'ff_w': jnp.concatenate(ff_w, axis=0),                      # (6*E, 2*FF)
        'ff_b': jnp.concatenate(ff_b, axis=0),                      # (6, FF+E)
        'ln': jnp.concatenate(ln, axis=0),                          # (17, 2*E)
        'lin2_w': params['lin2_w'],                                 # (E, 1)
        'lin2_b': params['lin2_b'].reshape(1, 1),                   # (1, 1)
    }


# --------------------------------------------------------------------- main --

if __name__ == "__main__":
    B, S = 2, 8
    key = jax.random.PRNGKey(0)
    k_param, k_in = jax.random.split(key)

    params = init_params(k_param)
    packed = pack_params(params)   # pack once, outside jit

    # input: (B, 1, S) with integer class ids in {0, 1, 2}
    x = jax.random.randint(k_in, (B, 1, S), 0, 3).astype(jnp.float32)

    fwd = jax.jit(gene_forward)
    out = jax.block_until_ready(fwd(packed, x))

    assert out.shape == (B, 1, S), out.shape
    assert out.dtype == jnp.float32
    assert bool(jnp.all(jnp.isfinite(out)))
    assert bool(jnp.all(out >= 0.0))  # final ReLU
    print("KERNEL_OK")
</pallas_src>

<mosaic_0001>
module attributes {stable_mosaic.version = 11 : i64} {
  func.func @_gene_kernel(%arg0: memref<16x1xi32, #tpu.memory_space<vmem>>, %arg1: memref<16x16xf32, #tpu.memory_space<vmem>>, %arg2: memref<16x16xf32, #tpu.memory_space<vmem>>, %arg3: memref<16x16xf32, #tpu.memory_space<vmem>>, %arg4: memref<3x16xf32, #tpu.memory_space<vmem>>, %arg5: memref<144x64xf32, #tpu.memory_space<vmem>>, %arg6: memref<9x64xf32, #tpu.memory_space<vmem>>, %arg7: memref<96x64xf32, #tpu.memory_space<vmem>>, %arg8: memref<6x48xf32, #tpu.memory_space<vmem>>, %arg9: memref<17x32xf32, #tpu.memory_space<vmem>>, %arg10: memref<16x1xf32, #tpu.memory_space<vmem>>, %arg11: memref<1x1xf32, #tpu.memory_space<vmem>>, %arg12: memref<16x1xf32, #tpu.memory_space<vmem>>) attributes {dimension_semantics = [], scalar_prefetch = 0 : i64, scratch_operands = 0 : i64, tpu.core_type = #tpu.core_type<tc>} {
    %c0 = arith.constant 0 : index
    %c0_0 = arith.constant 0 : index
    %0 = vector.load %arg0[%c0, %c0_0] : memref<16x1xi32, #tpu.memory_space<vmem>>, vector<16x1xi32>
    %c0_1 = arith.constant 0 : index
    %c0_2 = arith.constant 0 : index
    %1 = vector.load %arg4[%c0_1, %c0_2] : memref<3x16xf32, #tpu.memory_space<vmem>>, vector<3x16xf32>
    %2 = vector.extract_strided_slice %1 {offsets = [0, 0], sizes = [1, 16], strides = [1, 1]} : vector<3x16xf32> to vector<1x16xf32>
    %3 = vector.extract_strided_slice %1 {offsets = [1, 0], sizes = [1, 16], strides = [1, 1]} : vector<3x16xf32> to vector<1x16xf32>
    %4 = vector.extract_strided_slice %1 {offsets = [2, 0], sizes = [1, 16], strides = [1, 1]} : vector<3x16xf32> to vector<1x16xf32>
    %c0_i32 = arith.constant 0 : i32
    %5 = vector.broadcast %c0_i32 : i32 to vector<16x1xi32>
    %6 = arith.cmpi eq, %0, %5 : vector<16x1xi32>
    %c1_i32 = arith.constant 1 : i32
    %7 = vector.broadcast %c1_i32 : i32 to vector<16x1xi32>
    %8 = arith.cmpi eq, %0, %7 : vector<16x1xi32>
    %9 = vector.shape_cast %8 : vector<16x1xi1> to vector<16x1xi1>
    %10 = vector.broadcast %9 : vector<16x1xi1> to vector<16x16xi1>
    %11 = vector.shape_cast %3 : vector<1x16xf32> to vector<1x16xf32>
    %12 = vector.broadcast %11 : vector<1x16xf32> to vector<16x16xf32>
    %13 = vector.shape_cast %4 : vector<1x16xf32> to vector<1x16xf32>
    %14 = vector.broadcast %13 : vector<1x16xf32> to vector<16x16xf32>
    %15 = arith.select %10, %12, %14 : vector<16x16xi1>, vector<16x16xf32>
    %16 = vector.shape_cast %6 : vector<16x1xi1> to vector<16x1xi1>
    %17 = vector.broadcast %16 : vector<16x1xi1> to vector<16x16xi1>
    %18 = vector.shape_cast %2 : vector<1x16xf32> to vector<1x16xf32>
    %19 = vector.broadcast %18 : vector<1x16xf32> to vector<16x16xf32>
    %20 = arith.select %17, %19, %15 : vector<16x16xi1>, vector<16x16xf32>
    %c0_3 = arith.constant 0 : index
    %c0_4 = arith.constant 0 : index
    %21 = vector.load %arg1[%c0_3, %c0_4] : memref<16x16xf32, #tpu.memory_space<vmem>>, vector<16x16xf32>
    %22 = arith.addf %20, %21 : vector<16x16xf32>
    %c0_5 = arith.constant 0 : index
    %c0_6 = arith.constant 0 : index
    %23 = vector.load %arg2[%c0_5, %c0_6] : memref<16x16xf32, #tpu.memory_space<vmem>>, vector<16x16xf32>
    %c0_7 = arith.constant 0 : index
    %c0_8 = arith.constant 0 : index
    %24 = vector.load %arg3[%c0_7, %c0_8] : memref<16x16xf32, #tpu.memory_space<vmem>>, vector<16x16xf32>
    %c0_9 = arith.constant 0 : index
    %c0_10 = arith.constant 0 : index
    %25 = vector.load %arg5[%c0_9, %c0_10] : memref<144x64xf32, #tpu.memory_space<vmem>>, vector<16x64xf32>
    %c0_11 = arith.constant 0 : index
    %c0_12 = arith.constant 0 : index
    %26 = vector.load %arg6[%c0_11, %c0_12] : memref<9x64xf32, #tpu.memory_space<vmem>>, vector<1x64xf32>
    %27 = vector.extract_strided_slice %25 {offsets = [0, 0], sizes = [16, 48], strides = [1, 1]} : vector<16x64xf32> to vector<16x48xf32>
    %cst = arith.constant dense<0.000000e+00> : vector<16x48xf32>
    %28 = tpu.matmul %22, %27, %cst {dimension_numbers = #tpu.dot_dimension_numbers<[1], [0], [0], [1], [0, 0, 1, 1], [], []>} : vector<16x16xf32>, vector<16x48xf32>, vector<16x48xf32> -> vector<16x48xf32>
    %29 = vector.extract_strided_slice %26 {offsets = [0, 0], sizes = [1, 48], strides = [1, 1]} : vector<1x64xf32> to vector<1x48xf32>
    %30 = vector.broadcast %29 : vector<1x48xf32> to vector<16x48xf32>
    %31 = arith.addf %28, %30 : vector<16x48xf32>
    %32 = vector.extract_strided_slice %31 {offsets = [0, 0], sizes = [16, 16], strides = [1, 1]} : vector<16x48xf32> to vector<16x16xf32>
    %33 = vector.extract_strided_slice %31 {offsets = [0, 16], sizes = [16, 16], strides = [1, 1]} : vector<16x48xf32> to vector<16x16xf32>
    %34 = vector.extract_strided_slice %31 {offsets = [0, 32], sizes = [16, 16], strides = [1, 1]} : vector<16x48xf32> to vector<16x16xf32>
    %35 = vector.extract_strided_slice %25 {offsets = [0, 48], sizes = [16, 16], strides = [1, 1]} : vector<16x64xf32> to vector<16x16xf32>
    %cst_13 = arith.constant 0.000000e+00 : f32
    %36 = vector.broadcast %cst_13 : f32 to vector<16x16xf32>
    %37 = vector.extract_strided_slice %32 {offsets = [0, 0], sizes = [16, 4], strides = [1, 1]} : vector<16x16xf32> to vector<16x4xf32>
    %38 = vector.extract_strided_slice %33 {offsets = [0, 0], sizes = [16, 4], strides = [1, 1]} : vector<16x16xf32> to vector<16x4xf32>
    %39 = vector.extract_strided_slice %34 {offsets = [0, 0], sizes = [16, 4], strides = [1, 1]} : vector<16x16xf32> to vector<16x4xf32>
    %cst_14 = arith.constant dense<0.000000e+00> : vector<16x16xf32>
    %40 = tpu.matmul %37, %38, %cst_14 {dimension_numbers = #tpu.dot_dimension_numbers<[1], [1], [0], [0], [0, 0, 1, 0], [], []>} : vector<16x4xf32>, vector<16x4xf32>, vector<16x16xf32> -> vector<16x16xf32>
    %cst_15 = arith.constant 5.000000e-01 : f32
    %41 = vector.broadcast %cst_15 : f32 to vector<16x16xf32>
    %42 = arith.mulf %40, %41 : vector<16x16xf32>
    %43 = arith.addf %42, %23 : vector<16x16xf32>
    %cst_16 = arith.constant dense<0xFF800000> : vector<16xf32>
    %44 = vector.multi_reduction <maximumf>, %43, %cst_16 [1] : vector<16x16xf32> to vector<16xf32>
    %45 = vector.shape_cast %44 : vector<16xf32> to vector<16x1xf32>
    %46 = vector.broadcast %45 : vector<16x1xf32> to vector<16x16xf32>
    %47 = arith.subf %43, %46 : vector<16x16xf32>
    %48 = math.exp %47 : vector<16x16xf32>
    %cst_17 = arith.constant dense<0.000000e+00> : vector<16xf32>
    %49 = vector.multi_reduction <add>, %48, %cst_17 [1] : vector<16x16xf32> to vector<16xf32>
    %50 = vector.shape_cast %49 : vector<16xf32> to vector<16x1xf32>
    %51 = tpu.reciprocal %50 {approx = true} : vector<16x1xf32> -> vector<16x1xf32>
    %52 = vector.broadcast %51 : vector<16x1xf32> to vector<16x16xf32>
    %53 = arith.mulf %48, %52 : vector<16x16xf32>
    %cst_18 = arith.constant dense<0.000000e+00> : vector<16x4xf32>
    %54 = tpu.matmul %53, %39, %cst_18 {dimension_numbers = #tpu.dot_dimension_numbers<[1], [0], [0], [1], [0, 0, 1, 1], [], []>} : vector<16x16xf32>, vector<16x4xf32>, vector<16x4xf32> -> vector<16x4xf32>
    %55 = vector.extract_strided_slice %35 {offsets = [0, 0], sizes = [4, 16], strides = [1, 1]} : vector<16x16xf32> to vector<4x16xf32>
    %cst_19 = arith.constant dense<0.000000e+00> : vector<16x16xf32>
    %56 = tpu.matmul %54, %55, %cst_19 {dimension_numbers = #tpu.dot_dimension_numbers<[1], [0], [0], [1], [0, 0, 1, 1], [], []>} : vector<16x4xf32>, vector<4x16xf32>, vector<16x16xf32> -> vector<16x16xf32>
    %57 = arith.addf %36, %56 : vector<16x16xf32>
    %58 = vector.extract_strided_slice %32 {offsets = [0, 4], sizes = [16, 4], strides = [1, 1]} : vector<16x16xf32> to vector<16x4xf32>
    %59 = vector.extract_strided_slice %33 {offsets = [0, 4], sizes = [16, 4], strides = [1, 1]} : vector<16x16xf32> to vector<16x4xf32>
    %60 = vector.extract_strided_slice %34 {offsets = [0, 4], sizes = [16, 4], strides = [1, 1]} : vector<16x16xf32> to vector<16x4xf32>
    %cst_20 = arith.constant dense<0.000000e+00> : vector<16x16xf32>
    %61 = tpu.matmul %58, %59, %cst_20 {dimension_numbers = #tpu.dot_dimension_numbers<[1], [1], [0], [0], [0, 0, 1, 0], [], []>} : vector<16x4xf32>, vector<16x4xf32>, vector<16x16xf32> -> vector<16x16xf32>
    %cst_21 = arith.constant 5.000000e-01 : f32
    %62 = vector.broadcast %cst_21 : f32 to vector<16x16xf32>
    %63 = arith.mulf %61, %62 : vector<16x16xf32>
    %64 = arith.addf %63, %23 : vector<16x16xf32>
    %cst_22 = arith.constant dense<0xFF800000> : vector<16xf32>
    %65 = vector.multi_reduction <maximumf>, %64, %cst_22 [1] : vector<16x16xf32> to vector<16xf32>
    %66 = vector.shape_cast %65 : vector<16xf32> to vector<16x1xf32>
    %67 = vector.broadcast %66 : vector<16x1xf32> to vector<16x16xf32>
    %68 = arith.subf %64, %67 : vector<16x16xf32>
    %69 = math.exp %68 : vector<16x16xf32>
    %cst_23 = arith.constant dense<0.000000e+00> : vector<16xf32>
    %70 = vector.multi_reduction <add>, %69, %cst_23 [1] : vector<16x16xf32> to vector<16xf32>
    %71 = vector.shape_cast %70 : vector<16xf32> to vector<16x1xf32>
    %72 = tpu.reciprocal %71 {approx = true} : vector<16x1xf32> -> vector<16x1xf32>
    %73 = vector.broadcast %72 : vector<16x1xf32> to vector<16x16xf32>
    %74 = arith.mulf %69, %73 : vector<16x16xf32>
    %cst_24 = arith.constant dense<0.000000e+00> : vector<16x4xf32>
    %75 = tpu.matmul %74, %60, %cst_24 {dimension_numbers = #tpu.dot_dimension_numbers<[1], [0], [0], [1], [0, 0, 1, 1], [], []>} : vector<16x16xf32>, vector<16x4xf32>, vector<16x4xf32> -> vector<16x4xf32>
    %76 = vector.extract_strided_slice %35 {offsets = [4, 0], sizes = [4, 16], strides = [1, 1]} : vector<16x16xf32> to vector<4x16xf32>
    %cst_25 = arith.constant dense<0.000000e+00> : vector<16x16xf32>
    %77 = tpu.matmul %75, %76, %cst_25 {dimension_numbers = #tpu.dot_dimension_numbers<[1], [0], [0], [1], [0, 0, 1, 1], [], []>} : vector<16x4xf32>, vector<4x16xf32>, vector<16x16xf32> -> vector<16x16xf32>
    %78 = arith.addf %57, %77 : vector<16x16xf32>
    %79 = vector.extract_strided_slice %32 {offsets = [0, 8], sizes = [16, 4], strides = [1, 1]} : vector<16x16xf32> to vector<16x4xf32>
    %80 = vector.extract_strided_slice %33 {offsets = [0, 8], sizes = [16, 4], strides = [1, 1]} : vector<16x16xf32> to vector<16x4xf32>
    %81 = vector.extract_strided_slice %34 {offsets = [0, 8], sizes = [16, 4], strides = [1, 1]} : vector<16x16xf32> to vector<16x4xf32>
    %cst_26 = arith.constant dense<0.000000e+00> : vector<16x16xf32>
    %82 = tpu.matmul %79, %80, %cst_26 {dimension_numbers = #tpu.dot_dimension_numbers<[1], [1], [0], [0], [0, 0, 1, 0], [], []>} : vector<16x4xf32>, vector<16x4xf32>, vector<16x16xf32> -> vector<16x16xf32>
    %cst_27 = arith.constant 5.000000e-01 : f32
    %83 = vector.broadcast %cst_27 : f32 to vector<16x16xf32>
    %84 = arith.mulf %82, %83 : vector<16x16xf32>
    %85 = arith.addf %84, %23 : vector<16x16xf32>
    %cst_28 = arith.constant dense<0xFF800000> : vector<16xf32>
    %86 = vector.multi_reduction <maximumf>, %85, %cst_28 [1] : vector<16x16xf32> to vector<16xf32>
    %87 = vector.shape_cast %86 : vector<16xf32> to vector<16x1xf32>
    %88 = vector.broadcast %87 : vector<16x1xf32> to vector<16x16xf32>
    %89 = arith.subf %85, %88 : vector<16x16xf32>
    %90 = math.exp %89 : vector<16x16xf32>
    %cst_29 = arith.constant dense<0.000000e+00> : vector<16xf32>
    %91 = vector.multi_reduction <add>, %90, %cst_29 [1] : vector<16x16xf32> to vector<16xf32>
    %92 = vector.shape_cast %91 : vector<16xf32> to vector<16x1xf32>
    %93 = tpu.reciprocal %92 {approx = true} : vector<16x1xf32> -> vector<16x1xf32>
    %94 = vector.broadcast %93 : vector<16x1xf32> to vector<16x16xf32>
    %95 = arith.mulf %90, %94 : vector<16x16xf32>
    %cst_30 = arith.constant dense<0.000000e+00> : vector<16x4xf32>
    %96 = tpu.matmul %95, %81, %cst_30 {dimension_numbers = #tpu.dot_dimension_numbers<[1], [0], [0], [1], [0, 0, 1, 1], [], []>} : vector<16x16xf32>, vector<16x4xf32>, vector<16x4xf32> -> vector<16x4xf32>
    %97 = vector.extract_strided_slice %35 {offsets = [8, 0], sizes = [4, 16], strides = [1, 1]} : vector<16x16xf32> to vector<4x16xf32>
    %cst_31 = arith.constant dense<0.000000e+00> : vector<16x16xf32>
    %98 = tpu.matmul %96, %97, %cst_31 {dimension_numbers = #tpu.dot_dimension_numbers<[1], [0], [0], [1], [0, 0, 1, 1], [], []>} : vector<16x4xf32>, vector<4x16xf32>, vector<16x16xf32> -> vector<16x16xf32>
    %99 = arith.addf %78, %98 : vector<16x16xf32>
    %100 = vector.extract_strided_slice %32 {offsets = [0, 12], sizes = [16, 4], strides = [1, 1]} : vector<16x16xf32> to vector<16x4xf32>
    %101 = vector.extract_strided_slice %33 {offsets = [0, 12], sizes = [16, 4], strides = [1, 1]} : vector<16x16xf32> to vector<16x4xf32>
    %102 = vector.extract_strided_slice %34 {offsets = [0, 12], sizes = [16, 4], strides = [1, 1]} : vector<16x16xf32> to vector<16x4xf32>
    %cst_32 = arith.constant dense<0.000000e+00> : vector<16x16xf32>
    %103 = tpu.matmul %100, %101, %cst_32 {dimension_numbers = #tpu.dot_dimension_numbers<[1], [1], [0], [0], [0, 0, 1, 0], [], []>} : vector<16x4xf32>, vector<16x4xf32>, vector<16x16xf32> -> vector<16x16xf32>
    %cst_33 = arith.constant 5.000000e-01 : f32
    %104 = vector.broadcast %cst_33 : f32 to vector<16x16xf32>
    %105 = arith.mulf %103, %104 : vector<16x16xf32>
    %106 = arith.addf %105, %23 : vector<16x16xf32>
    %cst_34 = arith.constant dense<0xFF800000> : vector<16xf32>
    %107 = vector.multi_reduction <maximumf>, %106, %cst_34 [1] : vector<16x16xf32> to vector<16xf32>
    %108 = vector.shape_cast %107 : vector<16xf32> to vector<16x1xf32>
    %109 = vector.broadcast %108 : vector<16x1xf32> to vector<16x16xf32>
    %110 = arith.subf %106, %109 : vector<16x16xf32>
    %111 = math.exp %110 : vector<16x16xf32>
    %cst_35 = arith.constant dense<0.000000e+00> : vector<16xf32>
    %112 = vector.multi_reduction <add>, %111, %cst_35 [1] : vector<16x16xf32> to vector<16xf32>
    %113 = vector.shape_cast %112 : vector<16xf32> to vector<16x1xf32>
    %114 = tpu.reciprocal %113 {approx = true} : vector<16x1xf32> -> vector<16x1xf32>
    %115 = vector.broadcast %114 : vector<16x1xf32> to vector<16x16xf32>
    %116 = arith.mulf %111, %115 : vector<16x16xf32>
    %cst_36 = arith.constant dense<0.000000e+00> : vector<16x4xf32>
    %117 = tpu.matmul %116, %102, %cst_36 {dimension_numbers = #tpu.dot_dimension_numbers<[1], [0], [0], [1], [0, 0, 1, 1], [], []>} : vector<16x16xf32>, vector<16x4xf32>, vector<16x4xf32> -> vector<16x4xf32>
    %118 = vector.extract_strided_slice %35 {offsets = [12, 0], sizes = [4, 16], strides = [1, 1]} : vector<16x16xf32> to vector<4x16xf32>
    %cst_37 = arith.constant dense<0.000000e+00> : vector<16x16xf32>
    %119 = tpu.matmul %117, %118, %cst_37 {dimension_numbers = #tpu.dot_dimension_numbers<[1], [0], [0], [1], [0, 0, 1, 1], [], []>} : vector<16x4xf32>, vector<4x16xf32>, vector<16x16xf32> -> vector<16x16xf32>
    %120 = arith.addf %99, %119 : vector<16x16xf32>
    %121 = vector.extract_strided_slice %26 {offsets = [0, 48], sizes = [1, 16], strides = [1, 1]} : vector<1x64xf32> to vector<1x16xf32>
    %122 = vector.broadcast %121 : vector<1x16xf32> to vector<16x16xf32>
    %123 = arith.addf %120, %122 : vector<16x16xf32>
    %124 = arith.addf %22, %123 : vector<16x16xf32>
    %c0_38 = arith.constant 0 : index
    %c0_39 = arith.constant 0 : index
    %125 = vector.load %arg9[%c0_38, %c0_39] : memref<17x32xf32, #tpu.memory_space<vmem>>, vector<1x16xf32>
    %c0_40 = arith.constant 0 : index
    %c16 = arith.constant 16 : index
    %126 = vector.load %arg9[%c0_40, %c16] : memref<17x32xf32, #tpu.memory_space<vmem>>, vector<1x16xf32>
    %cst_41 = arith.constant dense<0.000000e+00> : vector<16xf32>
    %127 = vector.multi_reduction <add>, %124, %cst_41 [1] : vector<16x16xf32> to vector<16xf32>
    %128 = vector.shape_cast %127 : vector<16xf32> to vector<16x1xf32>
    %cst_42 = arith.constant 1.600000e+01 : f32
    %129 = vector.broadcast %cst_42 : f32 to vector<16x1xf32>
    %130 = arith.divf %128, %129 : vector<16x1xf32>
    %131 = vector.broadcast %130 : vector<16x1xf32> to vector<16x16xf32>
    %132 = arith.subf %124, %131 : vector<16x16xf32>
    %133 = arith.mulf %132, %132 : vector<16x16xf32>
    %cst_43 = arith.constant dense<0.000000e+00> : vector<16xf32>
    %134 = vector.multi_reduction <add>, %133, %cst_43 [1] : vector<16x16xf32> to vector<16xf32>
    %135 = vector.shape_cast %134 : vector<16xf32> to vector<16x1xf32>
    %cst_44 = arith.constant 1.600000e+01 : f32
    %136 = vector.broadcast %cst_44 : f32 to vector<16x1xf32>
    %137 = arith.divf %135, %136 : vector<16x1xf32>
    %cst_45 = arith.constant 9.99999974E-6 : f32
    %138 = vector.broadcast %cst_45 : f32 to vector<16x1xf32>
    %139 = arith.addf %137, %138 : vector<16x1xf32>
    %140 = math.rsqrt %139 : vector<16x1xf32>
    %141 = vector.broadcast %140 : vector<16x1xf32> to vector<16x16xf32>
    %142 = arith.mulf %132, %141 : vector<16x16xf32>
    %143 = vector.broadcast %125 : vector<1x16xf32> to vector<16x16xf32>
    %144 = arith.mulf %142, %143 : vector<16x16xf32>
    %145 = vector.broadcast %126 : vector<1x16xf32> to vector<16x16xf32>
    %146 = arith.addf %144, %145 : vector<16x16xf32>
    %c0_46 = arith.constant 0 : index
    %c0_47 = arith.constant 0 : index
    %147 = vector.load %arg7[%c0_46, %c0_47] : memref<96x64xf32, #tpu.memory_space<vmem>>, vector<16x64xf32>
    %c0_48 = arith.constant 0 : index
    %c0_49 = arith.constant 0 : index
    %148 = vector.load %arg8[%c0_48, %c0_49] : memref<6x48xf32, #tpu.memory_space<vmem>>, vector<1x48xf32>
    %149 = vector.extract_strided_slice %147 {offsets = [0, 0], sizes = [16, 32], strides = [1, 1]} : vector<16x64xf32> to vector<16x32xf32>
    %cst_50 = arith.constant dense<0.000000e+00> : vector<16x32xf32>
    %150 = tpu.matmul %146, %149, %cst_50 {dimension_numbers = #tpu.dot_dimension_numbers<[1], [0], [0], [1], [0, 0, 1, 1], [], []>} : vector<16x16xf32>, vector<16x32xf32>, vector<16x32xf32> -> vector<16x32xf32>
    %151 = vector.extract_strided_slice %148 {offsets = [0, 0], sizes = [1, 32], strides = [1, 1]} : vector<1x48xf32> to vector<1x32xf32>
    %152 = vector.broadcast %151 : vector<1x32xf32> to vector<16x32xf32>
    %153 = arith.addf %150, %152 : vector<16x32xf32>
    %cst_51 = arith.constant 0.000000e+00 : f32
    %154 = vector.broadcast %cst_51 : f32 to vector<16x32xf32>
    %155 = arith.maximumf %153, %154 : vector<16x32xf32>
    %156 = vector.extract_strided_slice %147 {offsets = [0, 32], sizes = [16, 32], strides = [1, 1]} : vector<16x64xf32> to vector<16x32xf32>
    %cst_52 = arith.constant dense<0.000000e+00> : vector<16x16xf32>
    %157 = tpu.matmul %155, %156, %cst_52 {dimension_numbers = #tpu.dot_dimension_numbers<[1], [1], [0], [0], [0, 0, 1, 0], [], []>} : vector<16x32xf32>, vector<16x32xf32>, vector<16x16xf32> -> vector<16x16xf32>
    %158 = vector.extract_strided_slice %148 {offsets = [0, 32], sizes = [1, 16], strides = [1, 1]} : vector<1x48xf32> to vector<1x16xf32>
    %159 = vector.broadcast %158 : vector<1x16xf32> to vector<16x16xf32>
    %160 = arith.addf %157, %159 : vector<16x16xf32>
    %161 = arith.addf %146, %160 : vector<16x16xf32>
    %c1 = arith.constant 1 : index
    %c0_53 = arith.constant 0 : index
    %162 = vector.load %arg9[%c1, %c0_53] : memref<17x32xf32, #tpu.memory_space<vmem>>, vector<1x16xf32>
    %c1_54 = arith.constant 1 : index
    %c16_55 = arith.constant 16 : index
    %163 = vector.load %arg9[%c1_54, %c16_55] : memref<17x32xf32, #tpu.memory_space<vmem>>, vector<1x16xf32>
    %cst_56 = arith.constant dense<0.000000e+00> : vector<16xf32>
    %164 = vector.multi_reduction <add>, %161, %cst_56 [1] : vector<16x16xf32> to vector<16xf32>
    %165 = vector.shape_cast %164 : vector<16xf32> to vector<16x1xf32>
    %cst_57 = arith.constant 1.600000e+01 : f32
    %166 = vector.broadcast %cst_57 : f32 to vector<16x1xf32>
    %167 = arith.divf %165, %166 : vector<16x1xf32>
    %168 = vector.broadcast %167 : vector<16x1xf32> to vector<16x16xf32>
    %169 = arith.subf %161, %168 : vector<16x16xf32>
    %170 = arith.mulf %169, %169 : vector<16x16xf32>
    %cst_58 = arith.constant dense<0.000000e+00> : vector<16xf32>
    %171 = vector.multi_reduction <add>, %170, %cst_58 [1] : vector<16x16xf32> to vector<16xf32>
    %172 = vector.shape_cast %171 : vector<16xf32> to vector<16x1xf32>
    %cst_59 = arith.constant 1.600000e+01 : f32
    %173 = vector.broadcast %cst_59 : f32 to vector<16x1xf32>
    %174 = arith.divf %172, %173 : vector<16x1xf32>
    %cst_60 = arith.constant 9.99999974E-6 : f32
    %175 = vector.broadcast %cst_60 : f32 to vector<16x1xf32>
    %176 = arith.addf %174, %175 : vector<16x1xf32>
    %177 = math.rsqrt %176 : vector<16x1xf32>
    %178 = vector.broadcast %177 : vector<16x1xf32> to vector<16x16xf32>
    %179 = arith.mulf %169, %178 : vector<16x16xf32>
    %180 = vector.broadcast %162 : vector<1x16xf32> to vector<16x16xf32>
    %181 = arith.mulf %179, %180 : vector<16x16xf32>
    %182 = vector.broadcast %163 : vector<1x16xf32> to vector<16x16xf32>
    %183 = arith.addf %181, %182 : vector<16x16xf32>
    %c16_61 = arith.constant 16 : index
    %c0_62 = arith.constant 0 : index
    %184 = vector.load %arg5[%c16_61, %c0_62] : memref<144x64xf32, #tpu.memory_space<vmem>>, vector<16x64xf32>
    %c1_63 = arith.constant 1 : index
    %c0_64 = arith.constant 0 : index
    %185 = vector.load %arg6[%c1_63, %c0_64] : memref<9x64xf32, #tpu.memory_space<vmem>>, vector<1x64xf32>
    %186 = vector.extract_strided_slice %184 {offsets = [0, 0], sizes = [16, 48], strides = [1, 1]} : vector<16x64xf32> to vector<16x48xf32>
    %cst_65 = arith.constant dense<0.000000e+00> : vector<16x48xf32>
    %187 = tpu.matmul %183, %186, %cst_65 {dimension_numbers = #tpu.dot_dimension_numbers<[1], [0], [0], [1], [0, 0, 1, 1], [], []>} : vector<16x16xf32>, vector<16x48xf32>, vector<16x48xf32> -> vector<16x48xf32>
    %188 = vector.extract_strided_slice %185 {offsets = [0, 0], sizes = [1, 48], strides = [1, 1]} : vector<1x64xf32> to vector<1x48xf32>
    %189 = vector.broadcast %188 : vector<1x48xf32> to vector<16x48xf32>
    %190 = arith.addf %187, %189 : vector<16x48xf32>
    %191 = vector.extract_strided_slice %190 {offsets = [0, 0], sizes = [16, 16], strides = [1, 1]} : vector<16x48xf32> to vector<16x16xf32>
    %192 = vector.extract_strided_slice %190 {offsets = [0, 16], sizes = [16, 16], strides = [1, 1]} : vector<16x48xf32> to vector<16x16xf32>
    %193 = vector.extract_strided_slice %190 {offsets = [0, 32], sizes = [16, 16], strides = [1, 1]} : vector<16x48xf32> to vector<16x16xf32>
    %194 = vector.extract_strided_slice %184 {offsets = [0, 48], sizes = [16, 16], strides = [1, 1]} : vector<16x64xf32> to vector<16x16xf32>
    %cst_66 = arith.constant 0.000000e+00 : f32
    %195 = vector.broadcast %cst_66 : f32 to vector<16x16xf32>
    %196 = vector.extract_strided_slice %191 {offsets = [0, 0], sizes = [16, 4], strides = [1, 1]} : vector<16x16xf32> to vector<16x4xf32>
    %197 = vector.extract_strided_slice %192 {offsets = [0, 0], sizes = [16, 4], strides = [1, 1]} : vector<16x16xf32> to vector<16x4xf32>
    %198 = vector.extract_strided_slice %193 {offsets = [0, 0], sizes = [16, 4], strides = [1, 1]} : vector<16x16xf32> to vector<16x4xf32>
    %cst_67 = arith.constant dense<0.000000e+00> : vector<16x16xf32>
    %199 = tpu.matmul %196, %197, %cst_67 {dimension_numbers = #tpu.dot_dimension_numbers<[1], [1], [0], [0], [0, 0, 1, 0], [], []>} : vector<16x4xf32>, vector<16x4xf32>, vector<16x16xf32> -> vector<16x16xf32>
    %cst_68 = arith.constant 5.000000e-01 : f32
    %200 = vector.broadcast %cst_68 : f32 to vector<16x16xf32>
    %201 = arith.mulf %199, %200 : vector<16x16xf32>
    %202 = arith.addf %201, %23 : vector<16x16xf32>
    %cst_69 = arith.constant dense<0xFF800000> : vector<16xf32>
    %203 = vector.multi_reduction <maximumf>, %202, %cst_69 [1] : vector<16x16xf32> to vector<16xf32>
    %204 = vector.shape_cast %203 : vector<16xf32> to vector<16x1xf32>
    %205 = vector.broadcast %204 : vector<16x1xf32> to vector<16x16xf32>
    %206 = arith.subf %202, %205 : vector<16x16xf32>
    %207 = math.exp %206 : vector<16x16xf32>
    %cst_70 = arith.constant dense<0.000000e+00> : vector<16xf32>
    %208 = vector.multi_reduction <add>, %207, %cst_70 [1] : vector<16x16xf32> to vector<16xf32>
    %209 = vector.shape_cast %208 : vector<16xf32> to vector<16x1xf32>
    %210 = tpu.reciprocal %209 {approx = true} : vector<16x1xf32> -> vector<16x1xf32>
    %211 = vector.broadcast %210 : vector<16x1xf32> to vector<16x16xf32>
    %212 = arith.mulf %207, %211 : vector<16x16xf32>
    %cst_71 = arith.constant dense<0.000000e+00> : vector<16x4xf32>
    %213 = tpu.matmul %212, %198, %cst_71 {dimension_numbers = #tpu.dot_dimension_numbers<[1], [0], [0], [1], [0, 0, 1, 1], [], []>} : vector<16x16xf32>, vector<16x4xf32>, vector<16x4xf32> -> vector<16x4xf32>
    %214 = vector.extract_strided_slice %194 {offsets = [0, 0], sizes = [4, 16], strides = [1, 1]} : vector<16x16xf32> to vector<4x16xf32>
    %cst_72 = arith.constant dense<0.000000e+00> : vector<16x16xf32>
    %215 = tpu.matmul %213, %214, %cst_72 {dimension_numbers = #tpu.dot_dimension_numbers<[1], [0], [0], [1], [0, 0, 1, 1], [], []>} : vector<16x4xf32>, vector<4x16xf32>, vector<16x16xf32> -> vector<16x16xf32>
    %216 = arith.addf %195, %215 : vector<16x16xf32>
    %217 = vector.extract_strided_slice %191 {offsets = [0, 4], sizes = [16, 4], strides = [1, 1]} : vector<16x16xf32> to vector<16x4xf32>
    %218 = vector.extract_strided_slice %192 {offsets = [0, 4], sizes = [16, 4], strides = [1, 1]} : vector<16x16xf32> to vector<16x4xf32>
    %219 = vector.extract_strided_slice %193 {offsets = [0, 4], sizes = [16, 4], strides = [1, 1]} : vector<16x16xf32> to vector<16x4xf32>
    %cst_73 = arith.constant dense<0.000000e+00> : vector<16x16xf32>
    %220 = tpu.matmul %217, %218, %cst_73 {dimension_numbers = #tpu.dot_dimension_numbers<[1], [1], [0], [0], [0, 0, 1, 0], [], []>} : vector<16x4xf32>, vector<16x4xf32>, vector<16x16xf32> -> vector<16x16xf32>
    %cst_74 = arith.constant 5.000000e-01 : f32
    %221 = vector.broadcast %cst_74 : f32 to vector<16x16xf32>
    %222 = arith.mulf %220, %221 : vector<16x16xf32>
    %223 = arith.addf %222, %23 : vector<16x16xf32>
    %cst_75 = arith.constant dense<0xFF800000> : vector<16xf32>
    %224 = vector.multi_reduction <maximumf>, %223, %cst_75 [1] : vector<16x16xf32> to vector<16xf32>
    %225 = vector.shape_cast %224 : vector<16xf32> to vector<16x1xf32>
    %226 = vector.broadcast %225 : vector<16x1xf32> to vector<16x16xf32>
    %227 = arith.subf %223, %226 : vector<16x16xf32>
    %228 = math.exp %227 : vector<16x16xf32>
    %cst_76 = arith.constant dense<0.000000e+00> : vector<16xf32>
    %229 = vector.multi_reduction <add>, %228, %cst_76 [1] : vector<16x16xf32> to vector<16xf32>
    %230 = vector.shape_cast %229 : vector<16xf32> to vector<16x1xf32>
    %231 = tpu.reciprocal %230 {approx = true} : vector<16x1xf32> -> vector<16x1xf32>
    %232 = vector.broadcast %231 : vector<16x1xf32> to vector<16x16xf32>
    %233 = arith.mulf %228, %232 : vector<16x16xf32>
    %cst_77 = arith.constant dense<0.000000e+00> : vector<16x4xf32>
    %234 = tpu.matmul %233, %219, %cst_77 {dimension_numbers = #tpu.dot_dimension_numbers<[1], [0], [0], [1], [0, 0, 1, 1], [], []>} : vector<16x16xf32>, vector<16x4xf32>, vector<16x4xf32> -> vector<16x4xf32>
    %235 = vector.extract_strided_slice %194 {offsets = [4, 0], sizes = [4, 16], strides = [1, 1]} : vector<16x16xf32> to vector<4x16xf32>
    %cst_78 = arith.constant dense<0.000000e+00> : vector<16x16xf32>
    %236 = tpu.matmul %234, %235, %cst_78 {dimension_numbers = #tpu.dot_dimension_numbers<[1], [0], [0], [1], [0, 0, 1, 1], [], []>} : vector<16x4xf32>, vector<4x16xf32>, vector<16x16xf32> -> vector<16x16xf32>
    %237 = arith.addf %216, %236 : vector<16x16xf32>
    %238 = vector.extract_strided_slice %191 {offsets = [0, 8], sizes = [16, 4], strides = [1, 1]} : vector<16x16xf32> to vector<16x4xf32>
    %239 = vector.extract_strided_slice %192 {offsets = [0, 8], sizes = [16, 4], strides = [1, 1]} : vector<16x16xf32> to vector<16x4xf32>
    %240 = vector.extract_strided_slice %193 {offsets = [0, 8], sizes = [16, 4], strides = [1, 1]} : vector<16x16xf32> to vector<16x4xf32>
    %cst_79 = arith.constant dense<0.000000e+00> : vector<16x16xf32>
    %241 = tpu.matmul %238, %239, %cst_79 {dimension_numbers = #tpu.dot_dimension_numbers<[1], [1], [0], [0], [0, 0, 1, 0], [], []>} : vector<16x4xf32>, vector<16x4xf32>, vector<16x16xf32> -> vector<16x16xf32>
    %cst_80 = arith.constant 5.000000e-01 : f32
    %242 = vector.broadcast %cst_80 : f32 to vector<16x16xf32>
    %243 = arith.mulf %241, %242 : vector<16x16xf32>
    %244 = arith.addf %243, %23 : vector<16x16xf32>
    %cst_81 = arith.constant dense<0xFF800000> : vector<16xf32>
    %245 = vector.multi_reduction <maximumf>, %244, %cst_81 [1] : vector<16x16xf32> to vector<16xf32>
    %246 = vector.shape_cast %245 : vector<16xf32> to vector<16x1xf32>
    %247 = vector.broadcast %246 : vector<16x1xf32> to vector<16x16xf32>
    %248 = arith.subf %244, %247 : vector<16x16xf32>
    %249 = math.exp %248 : vector<16x16xf32>
    %cst_82 = arith.constant dense<0.000000e+00> : vector<16xf32>
    %250 = vector.multi_reduction <add>, %249, %cst_82 [1] : vector<16x16xf32> to vector<16xf32>
    %251 = vector.shape_cast %250 : vector<16xf32> to vector<16x1xf32>
    %252 = tpu.reciprocal %251 {approx = true} : vector<16x1xf32> -> vector<16x1xf32>
    %253 = vector.broadcast %252 : vector<16x1xf32> to vector<16x16xf32>
    %254 = arith.mulf %249, %253 : vector<16x16xf32>
    %cst_83 = arith.constant dense<0.000000e+00> : vector<16x4xf32>
    %255 = tpu.matmul %254, %240, %cst_83 {dimension_numbers = #tpu.dot_dimension_numbers<[1], [0], [0], [1], [0, 0, 1, 1], [], []>} : vector<16x16xf32>, vector<16x4xf32>, vector<16x4xf32> -> vector<16x4xf32>
    %256 = vector.extract_strided_slice %194 {offsets = [8, 0], sizes = [4, 16], strides = [1, 1]} : vector<16x16xf32> to vector<4x16xf32>
    %cst_84 = arith.constant dense<0.000000e+00> : vector<16x16xf32>
    %257 = tpu.matmul %255, %256, %cst_84 {dimension_numbers = #tpu.dot_dimension_numbers<[1], [0], [0], [1], [0, 0, 1, 1], [], []>} : vector<16x4xf32>, vector<4x16xf32>, vector<16x16xf32> -> vector<16x16xf32>
    %258 = arith.addf %237, %257 : vector<16x16xf32>
    %259 = vector.extract_strided_slice %191 {offsets = [0, 12], sizes = [16, 4], strides = [1, 1]} : vector<16x16xf32> to vector<16x4xf32>
    %260 = vector.extract_strided_slice %192 {offsets = [0, 12], sizes = [16, 4], strides = [1, 1]} : vector<16x16xf32> to vector<16x4xf32>
    %261 = vector.extract_strided_slice %193 {offsets = [0, 12], sizes = [16, 4], strides = [1, 1]} : vector<16x16xf32> to vector<16x4xf32>
    %cst_85 = arith.constant dense<0.000000e+00> : vector<16x16xf32>
    %262 = tpu.matmul %259, %260, %cst_85 {dimension_numbers = #tpu.dot_dimension_numbers<[1], [1], [0], [0], [0, 0, 1, 0], [], []>} : vector<16x4xf32>, vector<16x4xf32>, vector<16x16xf32> -> vector<16x16xf32>
    %cst_86 = arith.constant 5.000000e-01 : f32
    %263 = vector.broadcast %cst_86 : f32 to vector<16x16xf32>
    %264 = arith.mulf %262, %263 : vector<16x16xf32>
    %265 = arith.addf %264, %23 : vector<16x16xf32>
    %cst_87 = arith.constant dense<0xFF800000> : vector<16xf32>
    %266 = vector.multi_reduction <maximumf>, %265, %cst_87 [1] : vector<16x16xf32> to vector<16xf32>
    %267 = vector.shape_cast %266 : vector<16xf32> to vector<16x1xf32>
    %268 = vector.broadcast %267 : vector<16x1xf32> to vector<16x16xf32>
    %269 = arith.subf %265, %268 : vector<16x16xf32>
    %270 = math.exp %269 : vector<16x16xf32>
    %cst_88 = arith.constant dense<0.000000e+00> : vector<16xf32>
    %271 = vector.multi_reduction <add>, %270, %cst_88 [1] : vector<16x16xf32> to vector<16xf32>
    %272 = vector.shape_cast %271 : vector<16xf32> to vector<16x1xf32>
    %273 = tpu.reciprocal %272 {approx = true} : vector<16x1xf32> -> vector<16x1xf32>
    %274 = vector.broadcast %273 : vector<16x1xf32> to vector<16x16xf32>
    %275 = arith.mulf %270, %274 : vector<16x16xf32>
    %cst_89 = arith.constant dense<0.000000e+00> : vector<16x4xf32>
    %276 = tpu.matmul %275, %261, %cst_89 {dimension_numbers = #tpu.dot_dimension_numbers<[1], [0], [0], [1], [0, 0, 1, 1], [], []>} : vector<16x16xf32>, vector<16x4xf32>, vector<16x4xf32> -> vector<16x4xf32>
    %277 = vector.extract_strided_slice %194 {offsets = [12, 0], sizes = [4, 16], strides = [1, 1]} : vector<16x16xf32> to vector<4x16xf32>
    %cst_90 = arith.constant dense<0.000000e+00> : vector<16x16xf32>
    %278 = tpu.matmul %276, %277, %cst_90 {dimension_numbers = #tpu.dot_dimension_numbers<[1], [0], [0], [1], [0, 0, 1, 1], [], []>} : vector<16x4xf32>, vector<4x16xf32>, vector<16x16xf32> -> vector<16x16xf32>
    %279 = arith.addf %258, %278 : vector<16x16xf32>
    %280 = vector.extract_strided_slice %185 {offsets = [0, 48], sizes = [1, 16], strides = [1, 1]} : vector<1x64xf32> to vector<1x16xf32>
    %281 = vector.broadcast %280 : vector<1x16xf32> to vector<16x16xf32>
    %282 = arith.addf %279, %281 : vector<16x16xf32>
    %283 = arith.addf %183, %282 : vector<16x16xf32>
    %c2 = arith.constant 2 : index
    %c0_91 = arith.constant 0 : index
    %284 = vector.load %arg9[%c2, %c0_91] : memref<17x32xf32, #tpu.memory_space<vmem>>, vector<1x16xf32>
    %c2_92 = arith.constant 2 : index
    %c16_93 = arith.constant 16 : index
    %285 = vector.load %arg9[%c2_92, %c16_93] : memref<17x32xf32, #tpu.memory_space<vmem>>, vector<1x16xf32>
    %cst_94 = arith.constant dense<0.000000e+00> : vector<16xf32>
    %286 = vector.multi_reduction <add>, %283, %cst_94 [1] : vector<16x16xf32> to vector<16xf32>
    %287 = vector.shape_cast %286 : vector<16xf32> to vector<16x1xf32>
    %cst_95 = arith.constant 1.600000e+01 : f32
    %288 = vector.broadcast %cst_95 : f32 to vector<16x1xf32>
    %289 = arith.divf %287, %288 : vector<16x1xf32>
    %290 = vector.broadcast %289 : vector<16x1xf32> to vector<16x16xf32>
    %291 = arith.subf %283, %290 : vector<16x16xf32>
    %292 = arith.mulf %291, %291 : vector<16x16xf32>
    %cst_96 = arith.constant dense<0.000000e+00> : vector<16xf32>
    %293 = vector.multi_reduction <add>, %292, %cst_96 [1] : vector<16x16xf32> to vector<16xf32>
    %294 = vector.shape_cast %293 : vector<16xf32> to vector<16x1xf32>
    %cst_97 = arith.constant 1.600000e+01 : f32
    %295 = vector.broadcast %cst_97 : f32 to vector<16x1xf32>
    %296 = arith.divf %294, %295 : vector<16x1xf32>
    %cst_98 = arith.constant 9.99999974E-6 : f32
    %297 = vector.broadcast %cst_98 : f32 to vector<16x1xf32>
    %298 = arith.addf %296, %297 : vector<16x1xf32>
    %299 = math.rsqrt %298 : vector<16x1xf32>
    %300 = vector.broadcast %299 : vector<16x1xf32> to vector<16x16xf32>
    %301 = arith.mulf %291, %300 : vector<16x16xf32>
    %302 = vector.broadcast %284 : vector<1x16xf32> to vector<16x16xf32>
    %303 = arith.mulf %301, %302 : vector<16x16xf32>
    %304 = vector.broadcast %285 : vector<1x16xf32> to vector<16x16xf32>
    %305 = arith.addf %303, %304 : vector<16x16xf32>
    %c16_99 = arith.constant 16 : index
    %c0_100 = arith.constant 0 : index
    %306 = vector.load %arg7[%c16_99, %c0_100] : memref<96x64xf32, #tpu.memory_space<vmem>>, vector<16x64xf32>
    %c1_101 = arith.constant 1 : index
    %c0_102 = arith.constant 0 : index
    %307 = vector.load %arg8[%c1_101, %c0_102] : memref<6x48xf32, #tpu.memory_space<vmem>>, vector<1x48xf32>
    %308 = vector.extract_strided_slice %306 {offsets = [0, 0], sizes = [16, 32], strides = [1, 1]} : vector<16x64xf32> to vector<16x32xf32>
    %cst_103 = arith.constant dense<0.000000e+00> : vector<16x32xf32>
    %309 = tpu.matmul %305, %308, %cst_103 {dimension_numbers = #tpu.dot_dimension_numbers<[1], [0], [0], [1], [0, 0, 1, 1], [], []>} : vector<16x16xf32>, vector<16x32xf32>, vector<16x32xf32> -> vector<16x32xf32>
    %310 = vector.extract_strided_slice %307 {offsets = [0, 0], sizes = [1, 32], strides = [1, 1]} : vector<1x48xf32> to vector<1x32xf32>
    %311 = vector.broadcast %310 : vector<1x32xf32> to vector<16x32xf32>
    %312 = arith.addf %309, %311 : vector<16x32xf32>
    %cst_104 = arith.constant 0.000000e+00 : f32
    %313 = vector.broadcast %cst_104 : f32 to vector<16x32xf32>
    %314 = arith.maximumf %312, %313 : vector<16x32xf32>
    %315 = vector.extract_strided_slice %306 {offsets = [0, 32], sizes = [16, 32], strides = [1, 1]} : vector<16x64xf32> to vector<16x32xf32>
    %cst_105 = arith.constant dense<0.000000e+00> : vector<16x16xf32>
    %316 = tpu.matmul %314, %315, %cst_105 {dimension_numbers = #tpu.dot_dimension_numbers<[1], [1], [0], [0], [0, 0, 1, 0], [], []>} : vector<16x32xf32>, vector<16x32xf32>, vector<16x16xf32> -> vector<16x16xf32>
    %317 = vector.extract_strided_slice %307 {offsets = [0, 32], sizes = [1, 16], strides = [1, 1]} : vector<1x48xf32> to vector<1x16xf32>
    %318 = vector.broadcast %317 : vector<1x16xf32> to vector<16x16xf32>
    %319 = arith.addf %316, %318 : vector<16x16xf32>
    %320 = arith.addf %305, %319 : vector<16x16xf32>
    %c3 = arith.constant 3 : index
    %c0_106 = arith.constant 0 : index
    %321 = vector.load %arg9[%c3, %c0_106] : memref<17x32xf32, #tpu.memory_space<vmem>>, vector<1x16xf32>
    %c3_107 = arith.constant 3 : index
    %c16_108 = arith.constant 16 : index
    %322 = vector.load %arg9[%c3_107, %c16_108] : memref<17x32xf32, #tpu.memory_space<vmem>>, vector<1x16xf32>
    %cst_109 = arith.constant dense<0.000000e+00> : vector<16xf32>
    %323 = vector.multi_reduction <add>, %320, %cst_109 [1] : vector<16x16xf32> to vector<16xf32>
    %324 = vector.shape_cast %323 : vector<16xf32> to vector<16x1xf32>
    %cst_110 = arith.constant 1.600000e+01 : f32
    %325 = vector.broadcast %cst_110 : f32 to vector<16x1xf32>
    %326 = arith.divf %324, %325 : vector<16x1xf32>
    %327 = vector.broadcast %326 : vector<16x1xf32> to vector<16x16xf32>
    %328 = arith.subf %320, %327 : vector<16x16xf32>
    %329 = arith.mulf %328, %328 : vector<16x16xf32>
    %cst_111 = arith.constant dense<0.000000e+00> : vector<16xf32>
    %330 = vector.multi_reduction <add>, %329, %cst_111 [1] : vector<16x16xf32> to vector<16xf32>
    %331 = vector.shape_cast %330 : vector<16xf32> to vector<16x1xf32>
    %cst_112 = arith.constant 1.600000e+01 : f32
    %332 = vector.broadcast %cst_112 : f32 to vector<16x1xf32>
    %333 = arith.divf %331, %332 : vector<16x1xf32>
    %cst_113 = arith.constant 9.99999974E-6 : f32
    %334 = vector.broadcast %cst_113 : f32 to vector<16x1xf32>
    %335 = arith.addf %333, %334 : vector<16x1xf32>
    %336 = math.rsqrt %335 : vector<16x1xf32>
    %337 = vector.broadcast %336 : vector<16x1xf32> to vector<16x16xf32>
    %338 = arith.mulf %328, %337 : vector<16x16xf32>
    %339 = vector.broadcast %321 : vector<1x16xf32> to vector<16x16xf32>
    %340 = arith.mulf %338, %339 : vector<16x16xf32>
    %341 = vector.broadcast %322 : vector<1x16xf32> to vector<16x16xf32>
    %342 = arith.addf %340, %341 : vector<16x16xf32>
    %c32 = arith.constant 32 : index
    %c0_114 = arith.constant 0 : index
    %343 = vector.load %arg5[%c32, %c0_114] : memref<144x64xf32, #tpu.memory_space<vmem>>, vector<16x64xf32>
    %c2_115 = arith.constant 2 : index
    %c0_116 = arith.constant 0 : index
    %344 = vector.load %arg6[%c2_115, %c0_116] : memref<9x64xf32, #tpu.memory_space<vmem>>, vector<1x64xf32>
    %345 = vector.extract_strided_slice %343 {offsets = [0, 0], sizes = [16, 48], strides = [1, 1]} : vector<16x64xf32> to vector<16x48xf32>
    %cst_117 = arith.constant dense<0.000000e+00> : vector<16x48xf32>
    %346 = tpu.matmul %342, %345, %cst_117 {dimension_numbers = #tpu.dot_dimension_numbers<[1], [0], [0], [1], [0, 0, 1, 1], [], []>} : vector<16x16xf32>, vector<16x48xf32>, vector<16x48xf32> -> vector<16x48xf32>
    %347 = vector.extract_strided_slice %344 {offsets = [0, 0], sizes = [1, 48], strides = [1, 1]} : vector<1x64xf32> to vector<1x48xf32>
    %348 = vector.broadcast %347 : vector<1x48xf32> to vector<16x48xf32>
    %349 = arith.addf %346, %348 : vector<16x48xf32>
    %350 = vector.extract_strided_slice %349 {offsets = [0, 0], sizes = [16, 16], strides = [1, 1]} : vector<16x48xf32> to vector<16x16xf32>
    %351 = vector.extract_strided_slice %349 {offsets = [0, 16], sizes = [16, 16], strides = [1, 1]} : vector<16x48xf32> to vector<16x16xf32>
    %352 = vector.extract_strided_slice %349 {offsets = [0, 32], sizes = [16, 16], strides = [1, 1]} : vector<16x48xf32> to vector<16x16xf32>
    %353 = vector.extract_strided_slice %343 {offsets = [0, 48], sizes = [16, 16], strides = [1, 1]} : vector<16x64xf32> to vector<16x16xf32>
    %cst_118 = arith.constant 0.000000e+00 : f32
    %354 = vector.broadcast %cst_118 : f32 to vector<16x16xf32>
    %355 = vector.extract_strided_slice %350 {offsets = [0, 0], sizes = [16, 4], strides = [1, 1]} : vector<16x16xf32> to vector<16x4xf32>
    %356 = vector.extract_strided_slice %351 {offsets = [0, 0], sizes = [16, 4], strides = [1, 1]} : vector<16x16xf32> to vector<16x4xf32>
    %357 = vector.extract_strided_slice %352 {offsets = [0, 0], sizes = [16, 4], strides = [1, 1]} : vector<16x16xf32> to vector<16x4xf32>
    %cst_119 = arith.constant dense<0.000000e+00> : vector<16x16xf32>
    %358 = tpu.matmul %355, %356, %cst_119 {dimension_numbers = #tpu.dot_dimension_numbers<[1], [1], [0], [0], [0, 0, 1, 0], [], []>} : vector<16x4xf32>, vector<16x4xf32>, vector<16x16xf32> -> vector<16x16xf32>
    %cst_120 = arith.constant 5.000000e-01 : f32
    %359 = vector.broadcast %cst_120 : f32 to vector<16x16xf32>
    %360 = arith.mulf %358, %359 : vector<16x16xf32>
    %361 = arith.addf %360, %23 : vector<16x16xf32>
    %cst_121 = arith.constant dense<0xFF800000> : vector<16xf32>
    %362 = vector.multi_reduction <maximumf>, %361, %cst_121 [1] : vector<16x16xf32> to vector<16xf32>
    %363 = vector.shape_cast %362 : vector<16xf32> to vector<16x1xf32>
    %364 = vector.broadcast %363 : vector<16x1xf32> to vector<16x16xf32>
    %365 = arith.subf %361, %364 : vector<16x16xf32>
    %366 = math.exp %365 : vector<16x16xf32>
    %cst_122 = arith.constant dense<0.000000e+00> : vector<16xf32>
    %367 = vector.multi_reduction <add>, %366, %cst_122 [1] : vector<16x16xf32> to vector<16xf32>
    %368 = vector.shape_cast %367 : vector<16xf32> to vector<16x1xf32>
    %369 = tpu.reciprocal %368 {approx = true} : vector<16x1xf32> -> vector<16x1xf32>
    %370 = vector.broadcast %369 : vector<16x1xf32> to vector<16x16xf32>
    %371 = arith.mulf %366, %370 : vector<16x16xf32>
    %cst_123 = arith.constant dense<0.000000e+00> : vector<16x4xf32>
    %372 = tpu.matmul %371, %357, %cst_123 {dimension_numbers = #tpu.dot_dimension_numbers<[1], [0], [0], [1], [0, 0, 1, 1], [], []>} : vector<16x16xf32>, vector<16x4xf32>, vector<16x4xf32> -> vector<16x4xf32>
    %373 = vector.extract_strided_slice %353 {offsets = [0, 0], sizes = [4, 16], strides = [1, 1]} : vector<16x16xf32> to vector<4x16xf32>
    %cst_124 = arith.constant dense<0.000000e+00> : vector<16x16xf32>
    %374 = tpu.matmul %372, %373, %cst_124 {dimension_numbers = #tpu.dot_dimension_numbers<[1], [0], [0], [1], [0, 0, 1, 1], [], []>} : vector<16x4xf32>, vector<4x16xf32>, vector<16x16xf32> -> vector<16x16xf32>
    %375 = arith.addf %354, %374 : vector<16x16xf32>
    %376 = vector.extract_strided_slice %350 {offsets = [0, 4], sizes = [16, 4], strides = [1, 1]} : vector<16x16xf32> to vector<16x4xf32>
    %377 = vector.extract_strided_slice %351 {offsets = [0, 4], sizes = [16, 4], strides = [1, 1]} : vector<16x16xf32> to vector<16x4xf32>
    %378 = vector.extract_strided_slice %352 {offsets = [0, 4], sizes = [16, 4], strides = [1, 1]} : vector<16x16xf32> to vector<16x4xf32>
    %cst_125 = arith.constant dense<0.000000e+00> : vector<16x16xf32>
    %379 = tpu.matmul %376, %377, %cst_125 {dimension_numbers = #tpu.dot_dimension_numbers<[1], [1], [0], [0], [0, 0, 1, 0], [], []>} : vector<16x4xf32>, vector<16x4xf32>, vector<16x16xf32> -> vector<16x16xf32>
    %cst_126 = arith.constant 5.000000e-01 : f32
    %380 = vector.broadcast %cst_126 : f32 to vector<16x16xf32>
    %381 = arith.mulf %379, %380 : vector<16x16xf32>
    %382 = arith.addf %381, %23 : vector<16x16xf32>
    %cst_127 = arith.constant dense<0xFF800000> : vector<16xf32>
    %383 = vector.multi_reduction <maximumf>, %382, %cst_127 [1] : vector<16x16xf32> to vector<16xf32>
    %384 = vector.shape_cast %383 : vector<16xf32> to vector<16x1xf32>
    %385 = vector.broadcast %384 : vector<16x1xf32> to vector<16x16xf32>
    %386 = arith.subf %382, %385 : vector<16x16xf32>
    %387 = math.exp %386 : vector<16x16xf32>
    %cst_128 = arith.constant dense<0.000000e+00> : vector<16xf32>
    %388 = vector.multi_reduction <add>, %387, %cst_128 [1] : vector<16x16xf32> to vector<16xf32>
    %389 = vector.shape_cast %388 : vector<16xf32> to vector<16x1xf32>
    %390 = tpu.reciprocal %389 {approx = true} : vector<16x1xf32> -> vector<16x1xf32>
    %391 = vector.broadcast %390 : vector<16x1xf32> to vector<16x16xf32>
    %392 = arith.mulf %387, %391 : vector<16x16xf32>
    %cst_129 = arith.constant dense<0.000000e+00> : vector<16x4xf32>
    %393 = tpu.matmul %392, %378, %cst_129 {dimension_numbers = #tpu.dot_dimension_numbers<[1], [0], [0], [1], [0, 0, 1, 1], [], []>} : vector<16x16xf32>, vector<16x4xf32>, vector<16x4xf32> -> vector<16x4xf32>
    %394 = vector.extract_strided_slice %353 {offsets = [4, 0], sizes = [4, 16], strides = [1, 1]} : vector<16x16xf32> to vector<4x16xf32>
    %cst_130 = arith.constant dense<0.000000e+00> : vector<16x16xf32>
    %395 = tpu.matmul %393, %394, %cst_130 {dimension_numbers = #tpu.dot_dimension_numbers<[1], [0], [0], [1], [0, 0, 1, 1], [], []>} : vector<16x4xf32>, vector<4x16xf32>, vector<16x16xf32> -> vector<16x16xf32>
    %396 = arith.addf %375, %395 : vector<16x16xf32>
    %397 = vector.extract_strided_slice %350 {offsets = [0, 8], sizes = [16, 4], strides = [1, 1]} : vector<16x16xf32> to vector<16x4xf32>
    %398 = vector.extract_strided_slice %351 {offsets = [0, 8], sizes = [16, 4], strides = [1, 1]} : vector<16x16xf32> to vector<16x4xf32>
    %399 = vector.extract_strided_slice %352 {offsets = [0, 8], sizes = [16, 4], strides = [1, 1]} : vector<16x16xf32> to vector<16x4xf32>
    %cst_131 = arith.constant dense<0.000000e+00> : vector<16x16xf32>
    %400 = tpu.matmul %397, %398, %cst_131 {dimension_numbers = #tpu.dot_dimension_numbers<[1], [1], [0], [0], [0, 0, 1, 0], [], []>} : vector<16x4xf32>, vector<16x4xf32>, vector<16x16xf32> -> vector<16x16xf32>
    %cst_132 = arith.constant 5.000000e-01 : f32
    %401 = vector.broadcast %cst_132 : f32 to vector<16x16xf32>
    %402 = arith.mulf %400, %401 : vector<16x16xf32>
    %403 = arith.addf %402, %23 : vector<16x16xf32>
    %cst_133 = arith.constant dense<0xFF800000> : vector<16xf32>
    %404 = vector.multi_reduction <maximumf>, %403, %cst_133 [1] : vector<16x16xf32> to vector<16xf32>
    %405 = vector.shape_cast %404 : vector<16xf32> to vector<16x1xf32>
    %406 = vector.broadcast %405 : vector<16x1xf32> to vector<16x16xf32>
    %407 = arith.subf %403, %406 : vector<16x16xf32>
    %408 = math.exp %407 : vector<16x16xf32>
    %cst_134 = arith.constant dense<0.000000e+00> : vector<16xf32>
    %409 = vector.multi_reduction <add>, %408, %cst_134 [1] : vector<16x16xf32> to vector<16xf32>
    %410 = vector.shape_cast %409 : vector<16xf32> to vector<16x1xf32>
    %411 = tpu.reciprocal %410 {approx = true} : vector<16x1xf32> -> vector<16x1xf32>
    %412 = vector.broadcast %411 : vector<16x1xf32> to vector<16x16xf32>
    %413 = arith.mulf %408, %412 : vector<16x16xf32>
    %cst_135 = arith.constant dense<0.000000e+00> : vector<16x4xf32>
    %414 = tpu.matmul %413, %399, %cst_135 {dimension_numbers = #tpu.dot_dimension_numbers<[1], [0], [0], [1], [0, 0, 1, 1], [], []>} : vector<16x16xf32>, vector<16x4xf32>, vector<16x4xf32> -> vector<16x4xf32>
    %415 = vector.extract_strided_slice %353 {offsets = [8, 0], sizes = [4, 16], strides = [1, 1]} : vector<16x16xf32> to vector<4x16xf32>
    %cst_136 = arith.constant dense<0.000000e+00> : vector<16x16xf32>
    %416 = tpu.matmul %414, %415, %cst_136 {dimension_numbers = #tpu.dot_dimension_numbers<[1], [0], [0], [1], [0, 0, 1, 1], [], []>} : vector<16x4xf32>, vector<4x16xf32>, vector<16x16xf32> -> vector<16x16xf32>
    %417 = arith.addf %396, %416 : vector<16x16xf32>
    %418 = vector.extract_strided_slice %350 {offsets = [0, 12], sizes = [16, 4], strides = [1, 1]} : vector<16x16xf32> to vector<16x4xf32>
    %419 = vector.extract_strided_slice %351 {offsets = [0, 12], sizes = [16, 4], strides = [1, 1]} : vector<16x16xf32> to vector<16x4xf32>
    %420 = vector.extract_strided_slice %352 {offsets = [0, 12], sizes = [16, 4], strides = [1, 1]} : vector<16x16xf32> to vector<16x4xf32>
    %cst_137 = arith.constant dense<0.000000e+00> : vector<16x16xf32>
    %421 = tpu.matmul %418, %419, %cst_137 {dimension_numbers = #tpu.dot_dimension_numbers<[1], [1], [0], [0], [0, 0, 1, 0], [], []>} : vector<16x4xf32>, vector<16x4xf32>, vector<16x16xf32> -> vector<16x16xf32>
    %cst_138 = arith.constant 5.000000e-01 : f32
    %422 = vector.broadcast %cst_138 : f32 to vector<16x16xf32>
    %423 = arith.mulf %421, %422 : vector<16x16xf32>
    %424 = arith.addf %423, %23 : vector<16x16xf32>
    %cst_139 = arith.constant dense<0xFF800000> : vector<16xf32>
    %425 = vector.multi_reduction <maximumf>, %424, %cst_139 [1] : vector<16x16xf32> to vector<16xf32>
    %426 = vector.shape_cast %425 : vector<16xf32> to vector<16x1xf32>
    %427 = vector.broadcast %426 : vector<16x1xf32> to vector<16x16xf32>
    %428 = arith.subf %424, %427 : vector<16x16xf32>
    %429 = math.exp %428 : vector<16x16xf32>
    %cst_140 = arith.constant dense<0.000000e+00> : vector<16xf32>
    %430 = vector.multi_reduction <add>, %429, %cst_140 [1] : vector<16x16xf32> to vector<16xf32>
    %431 = vector.shape_cast %430 : vector<16xf32> to vector<16x1xf32>
    %432 = tpu.reciprocal %431 {approx = true} : vector<16x1xf32> -> vector<16x1xf32>
    %433 = vector.broadcast %432 : vector<16x1xf32> to vector<16x16xf32>
    %434 = arith.mulf %429, %433 : vector<16x16xf32>
    %cst_141 = arith.constant dense<0.000000e+00> : vector<16x4xf32>
    %435 = tpu.matmul %434, %420, %cst_141 {dimension_numbers = #tpu.dot_dimension_numbers<[1], [0], [0], [1], [0, 0, 1, 1], [], []>} : vector<16x16xf32>, vector<16x4xf32>, vector<16x4xf32> -> vector<16x4xf32>
    %436 = vector.extract_strided_slice %353 {offsets = [12, 0], sizes = [4, 16], strides = [1, 1]} : vector<16x16xf32> to vector<4x16xf32>
    %cst_142 = arith.constant dense<0.000000e+00> : vector<16x16xf32>
    %437 = tpu.matmul %435, %436, %cst_142 {dimension_numbers = #tpu.dot_dimension_numbers<[1], [0], [0], [1], [0, 0, 1, 1], [], []>} : vector<16x4xf32>, vector<4x16xf32>, vector<16x16xf32> -> vector<16x16xf32>
    %438 = arith.addf %417, %437 : vector<16x16xf32>
    %439 = vector.extract_strided_slice %344 {offsets = [0, 48], sizes = [1, 16], strides = [1, 1]} : vector<1x64xf32> to vector<1x16xf32>
    %440 = vector.broadcast %439 : vector<1x16xf32> to vector<16x16xf32>
    %441 = arith.addf %438, %440 : vector<16x16xf32>
    %442 = arith.addf %342, %441 : vector<16x16xf32>
    %c4 = arith.constant 4 : index
    %c0_143 = arith.constant 0 : index
    %443 = vector.load %arg9[%c4, %c0_143] : memref<17x32xf32, #tpu.memory_space<vmem>>, vector<1x16xf32>
    %c4_144 = arith.constant 4 : index
    %c16_145 = arith.constant 16 : index
    %444 = vector.load %arg9[%c4_144, %c16_145] : memref<17x32xf32, #tpu.memory_space<vmem>>, vector<1x16xf32>
    %cst_146 = arith.constant dense<0.000000e+00> : vector<16xf32>
    %445 = vector.multi_reduction <add>, %442, %cst_146 [1] : vector<16x16xf32> to vector<16xf32>
    %446 = vector.shape_cast %445 : vector<16xf32> to vector<16x1xf32>
    %cst_147 = arith.constant 1.600000e+01 : f32
    %447 = vector.broadcast %cst_147 : f32 to vector<16x1xf32>
    %448 = arith.divf %446, %447 : vector<16x1xf32>
    %449 = vector.broadcast %448 : vector<16x1xf32> to vector<16x16xf32>
    %450 = arith.subf %442, %449 : vector<16x16xf32>
    %451 = arith.mulf %450, %450 : vector<16x16xf32>
    %cst_148 = arith.constant dense<0.000000e+00> : vector<16xf32>
    %452 = vector.multi_reduction <add>, %451, %cst_148 [1] : vector<16x16xf32> to vector<16xf32>
    %453 = vector.shape_cast %452 : vector<16xf32> to vector<16x1xf32>
    %cst_149 = arith.constant 1.600000e+01 : f32
    %454 = vector.broadcast %cst_149 : f32 to vector<16x1xf32>
    %455 = arith.divf %453, %454 : vector<16x1xf32>
    %cst_150 = arith.constant 9.99999974E-6 : f32
    %456 = vector.broadcast %cst_150 : f32 to vector<16x1xf32>
    %457 = arith.addf %455, %456 : vector<16x1xf32>
    %458 = math.rsqrt %457 : vector<16x1xf32>
    %459 = vector.broadcast %458 : vector<16x1xf32> to vector<16x16xf32>
    %460 = arith.mulf %450, %459 : vector<16x16xf32>
    %461 = vector.broadcast %443 : vector<1x16xf32> to vector<16x16xf32>
    %462 = arith.mulf %460, %461 : vector<16x16xf32>
    %463 = vector.broadcast %444 : vector<1x16xf32> to vector<16x16xf32>
    %464 = arith.addf %462, %463 : vector<16x16xf32>
    %c32_151 = arith.constant 32 : index
    %c0_152 = arith.constant 0 : index
    %465 = vector.load %arg7[%c32_151, %c0_152] : memref<96x64xf32, #tpu.memory_space<vmem>>, vector<16x64xf32>
    %c2_153 = arith.constant 2 : index
    %c0_154 = arith.constant 0 : index
    %466 = vector.load %arg8[%c2_153, %c0_154] : memref<6x48xf32, #tpu.memory_space<vmem>>, vector<1x48xf32>
    %467 = vector.extract_strided_slice %465 {offsets = [0, 0], sizes = [16, 32], strides = [1, 1]} : vector<16x64xf32> to vector<16x32xf32>
    %cst_155 = arith.constant dense<0.000000e+00> : vector<16x32xf32>
    %468 = tpu.matmul %464, %467, %cst_155 {dimension_numbers = #tpu.dot_dimension_numbers<[1], [0], [0], [1], [0, 0, 1, 1], [], []>} : vector<16x16xf32>, vector<16x32xf32>, vector<16x32xf32> -> vector<16x32xf32>
    %469 = vector.extract_strided_slice %466 {offsets = [0, 0], sizes = [1, 32], strides = [1, 1]} : vector<1x48xf32> to vector<1x32xf32>
    %470 = vector.broadcast %469 : vector<1x32xf32> to vector<16x32xf32>
    %471 = arith.addf %468, %470 : vector<16x32xf32>
    %cst_156 = arith.constant 0.000000e+00 : f32
    %472 = vector.broadcast %cst_156 : f32 to vector<16x32xf32>
    %473 = arith.maximumf %471, %472 : vector<16x32xf32>
    %474 = vector.extract_strided_slice %465 {offsets = [0, 32], sizes = [16, 32], strides = [1, 1]} : vector<16x64xf32> to vector<16x32xf32>
    %cst_157 = arith.constant dense<0.000000e+00> : vector<16x16xf32>
    %475 = tpu.matmul %473, %474, %cst_157 {dimension_numbers = #tpu.dot_dimension_numbers<[1], [1], [0], [0], [0, 0, 1, 0], [], []>} : vector<16x32xf32>, vector<16x32xf32>, vector<16x16xf32> -> vector<16x16xf32>
    %476 = vector.extract_strided_slice %466 {offsets = [0, 32], sizes = [1, 16], strides = [1, 1]} : vector<1x48xf32> to vector<1x16xf32>
    %477 = vector.broadcast %476 : vector<1x16xf32> to vector<16x16xf32>
    %478 = arith.addf %475, %477 : vector<16x16xf32>
    %479 = arith.addf %464, %478 : vector<16x16xf32>
    %c5 = arith.constant 5 : index
    %c0_158 = arith.constant 0 : index
    %480 = vector.load %arg9[%c5, %c0_158] : memref<17x32xf32, #tpu.memory_space<vmem>>, vector<1x16xf32>
    %c5_159 = arith.constant 5 : index
    %c16_160 = arith.constant 16 : index
    %481 = vector.load %arg9[%c5_159, %c16_160] : memref<17x32xf32, #tpu.memory_space<vmem>>, vector<1x16xf32>
    %cst_161 = arith.constant dense<0.000000e+00> : vector<16xf32>
    %482 = vector.multi_reduction <add>, %479, %cst_161 [1] : vector<16x16xf32> to vector<16xf32>
    %483 = vector.shape_cast %482 : vector<16xf32> to vector<16x1xf32>
    %cst_162 = arith.constant 1.600000e+01 : f32
    %484 = vector.broadcast %cst_162 : f32 to vector<16x1xf32>
    %485 = arith.divf %483, %484 : vector<16x1xf32>
    %486 = vector.broadcast %485 : vector<16x1xf32> to vector<16x16xf32>
    %487 = arith.subf %479, %486 : vector<16x16xf32>
    %488 = arith.mulf %487, %487 : vector<16x16xf32>
    %cst_163 = arith.constant dense<0.000000e+00> : vector<16xf32>
    %489 = vector.multi_reduction <add>, %488, %cst_163 [1] : vector<16x16xf32> to vector<16xf32>
    %490 = vector.shape_cast %489 : vector<16xf32> to vector<16x1xf32>
    %cst_164 = arith.constant 1.600000e+01 : f32
    %491 = vector.broadcast %cst_164 : f32 to vector<16x1xf32>
    %492 = arith.divf %490, %491 : vector<16x1xf32>
    %cst_165 = arith.constant 9.99999974E-6 : f32
    %493 = vector.broadcast %cst_165 : f32 to vector<16x1xf32>
    %494 = arith.addf %492, %493 : vector<16x1xf32>
    %495 = math.rsqrt %494 : vector<16x1xf32>
    %496 = vector.broadcast %495 : vector<16x1xf32> to vector<16x16xf32>
    %497 = arith.mulf %487, %496 : vector<16x16xf32>
    %498 = vector.broadcast %480 : vector<1x16xf32> to vector<16x16xf32>
    %499 = arith.mulf %497, %498 : vector<16x16xf32>
    %500 = vector.broadcast %481 : vector<1x16xf32> to vector<16x16xf32>
    %501 = arith.addf %499, %500 : vector<16x16xf32>
    %c6 = arith.constant 6 : index
    %c0_166 = arith.constant 0 : index
    %502 = vector.load %arg9[%c6, %c0_166] : memref<17x32xf32, #tpu.memory_space<vmem>>, vector<1x16xf32>
    %c6_167 = arith.constant 6 : index
    %c16_168 = arith.constant 16 : index
    %503 = vector.load %arg9[%c6_167, %c16_168] : memref<17x32xf32, #tpu.memory_space<vmem>>, vector<1x16xf32>
    %cst_169 = arith.constant dense<0.000000e+00> : vector<16xf32>
    %504 = vector.multi_reduction <add>, %501, %cst_169 [1] : vector<16x16xf32> to vector<16xf32>
    %505 = vector.shape_cast %504 : vector<16xf32> to vector<16x1xf32>
    %cst_170 = arith.constant 1.600000e+01 : f32
    %506 = vector.broadcast %cst_170 : f32 to vector<16x1xf32>
    %507 = arith.divf %505, %506 : vector<16x1xf32>
    %508 = vector.broadcast %507 : vector<16x1xf32> to vector<16x16xf32>
    %509 = arith.subf %501, %508 : vector<16x16xf32>
    %510 = arith.mulf %509, %509 : vector<16x16xf32>
    %cst_171 = arith.constant dense<0.000000e+00> : vector<16xf32>
    %511 = vector.multi_reduction <add>, %510, %cst_171 [1] : vector<16x16xf32> to vector<16xf32>
    %512 = vector.shape_cast %511 : vector<16xf32> to vector<16x1xf32>
    %cst_172 = arith.constant 1.600000e+01 : f32
    %513 = vector.broadcast %cst_172 : f32 to vector<16x1xf32>
    %514 = arith.divf %512, %513 : vector<16x1xf32>
    %cst_173 = arith.constant 9.99999974E-6 : f32
    %515 = vector.broadcast %cst_173 : f32 to vector<16x1xf32>
    %516 = arith.addf %514, %515 : vector<16x1xf32>
    %517 = math.rsqrt %516 : vector<16x1xf32>
    %518 = vector.broadcast %517 : vector<16x1xf32> to vector<16x16xf32>
    %519 = arith.mulf %509, %518 : vector<16x16xf32>
    %520 = vector.broadcast %502 : vector<1x16xf32> to vector<16x16xf32>
    %521 = arith.mulf %519, %520 : vector<16x16xf32>
    %522 = vector.broadcast %503 : vector<1x16xf32> to vector<16x16xf32>
    %523 = arith.addf %521, %522 : vector<16x16xf32>
    %c48 = arith.constant 48 : index
    %c0_174 = arith.constant 0 : index
    %524 = vector.load %arg5[%c48, %c0_174] : memref<144x64xf32, #tpu.memory_space<vmem>>, vector<16x64xf32>
    %c3_175 = arith.constant 3 : index
    %c0_176 = arith.constant 0 : index
    %525 = vector.load %arg6[%c3_175, %c0_176] : memref<9x64xf32, #tpu.memory_space<vmem>>, vector<1x64xf32>
    %526 = vector.extract_strided_slice %524 {offsets = [0, 0], sizes = [16, 48], strides = [1, 1]} : vector<16x64xf32> to vector<16x48xf32>
    %cst_177 = arith.constant dense<0.000000e+00> : vector<16x48xf32>
    %527 = tpu.matmul %22, %526, %cst_177 {dimension_numbers = #tpu.dot_dimension_numbers<[1], [0], [0], [1], [0, 0, 1, 1], [], []>} : vector<16x16xf32>, vector<16x48xf32>, vector<16x48xf32> -> vector<16x48xf32>
    %528 = vector.extract_strided_slice %525 {offsets = [0, 0], sizes = [1, 48], strides = [1, 1]} : vector<1x64xf32> to vector<1x48xf32>
    %529 = vector.broadcast %528 : vector<1x48xf32> to vector<16x48xf32>
    %530 = arith.addf %527, %529 : vector<16x48xf32>
    %531 = vector.extract_strided_slice %530 {offsets = [0, 0], sizes = [16, 16], strides = [1, 1]} : vector<16x48xf32> to vector<16x16xf32>
    %532 = vector.extract_strided_slice %530 {offsets = [0, 16], sizes = [16, 16], strides = [1, 1]} : vector<16x48xf32> to vector<16x16xf32>
    %533 = vector.extract_strided_slice %530 {offsets = [0, 32], sizes = [16, 16], strides = [1, 1]} : vector<16x48xf32> to vector<16x16xf32>
    %534 = vector.extract_strided_slice %524 {offsets = [0, 48], sizes = [16, 16], strides = [1, 1]} : vector<16x64xf32> to vector<16x16xf32>
    %cst_178 = arith.constant 0.000000e+00 : f32
    %535 = vector.broadcast %cst_178 : f32 to vector<16x16xf32>
    %536 = vector.extract_strided_slice %531 {offsets = [0, 0], sizes = [16, 4], strides = [1, 1]} : vector<16x16xf32> to vector<16x4xf32>
    %537 = vector.extract_strided_slice %532 {offsets = [0, 0], sizes = [16, 4], strides = [1, 1]} : vector<16x16xf32> to vector<16x4xf32>
    %538 = vector.extract_strided_slice %533 {offsets = [0, 0], sizes = [16, 4], strides = [1, 1]} : vector<16x16xf32> to vector<16x4xf32>
    %cst_179 = arith.constant dense<0.000000e+00> : vector<16x16xf32>
    %539 = tpu.matmul %536, %537, %cst_179 {dimension_numbers = #tpu.dot_dimension_numbers<[1], [1], [0], [0], [0, 0, 1, 0], [], []>} : vector<16x4xf32>, vector<16x4xf32>, vector<16x16xf32> -> vector<16x16xf32>
    %cst_180 = arith.constant 5.000000e-01 : f32
    %540 = vector.broadcast %cst_180 : f32 to vector<16x16xf32>
    %541 = arith.mulf %539, %540 : vector<16x16xf32>
    %542 = arith.addf %541, %24 : vector<16x16xf32>
    %cst_181 = arith.constant dense<0xFF800000> : vector<16xf32>
    %543 = vector.multi_reduction <maximumf>, %542, %cst_181 [1] : vector<16x16xf32> to vector<16xf32>
    %544 = vector.shape_cast %543 : vector<16xf32> to vector<16x1xf32>
    %545 = vector.broadcast %544 : vector<16x1xf32> to vector<16x16xf32>
    %546 = arith.subf %542, %545 : vector<16x16xf32>
    %547 = math.exp %546 : vector<16x16xf32>
    %cst_182 = arith.constant dense<0.000000e+00> : vector<16xf32>
    %548 = vector.multi_reduction <add>, %547, %cst_182 [1] : vector<16x16xf32> to vector<16xf32>
    %549 = vector.shape_cast %548 : vector<16xf32> to vector<16x1xf32>
    %550 = tpu.reciprocal %549 {approx = true} : vector<16x1xf32> -> vector<16x1xf32>
    %551 = vector.broadcast %550 : vector<16x1xf32> to vector<16x16xf32>
    %552 = arith.mulf %547, %551 : vector<16x16xf32>
    %cst_183 = arith.constant dense<0.000000e+00> : vector<16x4xf32>
    %553 = tpu.matmul %552, %538, %cst_183 {dimension_numbers = #tpu.dot_dimension_numbers<[1], [0], [0], [1], [0, 0, 1, 1], [], []>} : vector<16x16xf32>, vector<16x4xf32>, vector<16x4xf32> -> vector<16x4xf32>
    %554 = vector.extract_strided_slice %534 {offsets = [0, 0], sizes = [4, 16], strides = [1, 1]} : vector<16x16xf32> to vector<4x16xf32>
    %cst_184 = arith.constant dense<0.000000e+00> : vector<16x16xf32>
    %555 = tpu.matmul %553, %554, %cst_184 {dimension_numbers = #tpu.dot_dimension_numbers<[1], [0], [0], [1], [0, 0, 1, 1], [], []>} : vector<16x4xf32>, vector<4x16xf32>, vector<16x16xf32> -> vector<16x16xf32>
    %556 = arith.addf %535, %555 : vector<16x16xf32>
    %557 = vector.extract_strided_slice %531 {offsets = [0, 4], sizes = [16, 4], strides = [1, 1]} : vector<16x16xf32> to vector<16x4xf32>
    %558 = vector.extract_strided_slice %532 {offsets = [0, 4], sizes = [16, 4], strides = [1, 1]} : vector<16x16xf32> to vector<16x4xf32>
    %559 = vector.extract_strided_slice %533 {offsets = [0, 4], sizes = [16, 4], strides = [1, 1]} : vector<16x16xf32> to vector<16x4xf32>
    %cst_185 = arith.constant dense<0.000000e+00> : vector<16x16xf32>
    %560 = tpu.matmul %557, %558, %cst_185 {dimension_numbers = #tpu.dot_dimension_numbers<[1], [1], [0], [0], [0, 0, 1, 0], [], []>} : vector<16x4xf32>, vector<16x4xf32>, vector<16x16xf32> -> vector<16x16xf32>
    %cst_186 = arith.constant 5.000000e-01 : f32
    %561 = vector.broadcast %cst_186 : f32 to vector<16x16xf32>
    %562 = arith.mulf %560, %561 : vector<16x16xf32>
    %563 = arith.addf %562, %24 : vector<16x16xf32>
    %cst_187 = arith.constant dense<0xFF800000> : vector<16xf32>
    %564 = vector.multi_reduction <maximumf>, %563, %cst_187 [1] : vector<16x16xf32> to vector<16xf32>
    %565 = vector.shape_cast %564 : vector<16xf32> to vector<16x1xf32>
    %566 = vector.broadcast %565 : vector<16x1xf32> to vector<16x16xf32>
    %567 = arith.subf %563, %566 : vector<16x16xf32>
    %568 = math.exp %567 : vector<16x16xf32>
    %cst_188 = arith.constant dense<0.000000e+00> : vector<16xf32>
    %569 = vector.multi_reduction <add>, %568, %cst_188 [1] : vector<16x16xf32> to vector<16xf32>
    %570 = vector.shape_cast %569 : vector<16xf32> to vector<16x1xf32>
    %571 = tpu.reciprocal %570 {approx = true} : vector<16x1xf32> -> vector<16x1xf32>
    %572 = vector.broadcast %571 : vector<16x1xf32> to vector<16x16xf32>
    %573 = arith.mulf %568, %572 : vector<16x16xf32>
    %cst_189 = arith.constant dense<0.000000e+00> : vector<16x4xf32>
    %574 = tpu.matmul %573, %559, %cst_189 {dimension_numbers = #tpu.dot_dimension_numbers<[1], [0], [0], [1], [0, 0, 1, 1], [], []>} : vector<16x16xf32>, vector<16x4xf32>, vector<16x4xf32> -> vector<16x4xf32>
    %575 = vector.extract_strided_slice %534 {offsets = [4, 0], sizes = [4, 16], strides = [1, 1]} : vector<16x16xf32> to vector<4x16xf32>
    %cst_190 = arith.constant dense<0.000000e+00> : vector<16x16xf32>
    %576 = tpu.matmul %574, %575, %cst_190 {dimension_numbers = #tpu.dot_dimension_numbers<[1], [0], [0], [1], [0, 0, 1, 1], [], []>} : vector<16x4xf32>, vector<4x16xf32>, vector<16x16xf32> -> vector<16x16xf32>
    %577 = arith.addf %556, %576 : vector<16x16xf32>
    %578 = vector.extract_strided_slice %531 {offsets = [0, 8], sizes = [16, 4], strides = [1, 1]} : vector<16x16xf32> to vector<16x4xf32>
    %579 = vector.extract_strided_slice %532 {offsets = [0, 8], sizes = [16, 4], strides = [1, 1]} : vector<16x16xf32> to vector<16x4xf32>
    %580 = vector.extract_strided_slice %533 {offsets = [0, 8], sizes = [16, 4], strides = [1, 1]} : vector<16x16xf32> to vector<16x4xf32>
    %cst_191 = arith.constant dense<0.000000e+00> : vector<16x16xf32>
    %581 = tpu.matmul %578, %579, %cst_191 {dimension_numbers = #tpu.dot_dimension_numbers<[1], [1], [0], [0], [0, 0, 1, 0], [], []>} : vector<16x4xf32>, vector<16x4xf32>, vector<16x16xf32> -> vector<16x16xf32>
    %cst_192 = arith.constant 5.000000e-01 : f32
    %582 = vector.broadcast %cst_192 : f32 to vector<16x16xf32>
    %583 = arith.mulf %581, %582 : vector<16x16xf32>
    %584 = arith.addf %583, %24 : vector<16x16xf32>
    %cst_193 = arith.constant dense<0xFF800000> : vector<16xf32>
    %585 = vector.multi_reduction <maximumf>, %584, %cst_193 [1] : vector<16x16xf32> to vector<16xf32>
    %586 = vector.shape_cast %585 : vector<16xf32> to vector<16x1xf32>
    %587 = vector.broadcast %586 : vector<16x1xf32> to vector<16x16xf32>
    %588 = arith.subf %584, %587 : vector<16x16xf32>
    %589 = math.exp %588 : vector<16x16xf32>
    %cst_194 = arith.constant dense<0.000000e+00> : vector<16xf32>
    %590 = vector.multi_reduction <add>, %589, %cst_194 [1] : vector<16x16xf32> to vector<16xf32>
    %591 = vector.shape_cast %590 : vector<16xf32> to vector<16x1xf32>
    %592 = tpu.reciprocal %591 {approx = true} : vector<16x1xf32> -> vector<16x1xf32>
    %593 = vector.broadcast %592 : vector<16x1xf32> to vector<16x16xf32>
    %594 = arith.mulf %589, %593 : vector<16x16xf32>
    %cst_195 = arith.constant dense<0.000000e+00> : vector<16x4xf32>
    %595 = tpu.matmul %594, %580, %cst_195 {dimension_numbers = #tpu.dot_dimension_numbers<[1], [0], [0], [1], [0, 0, 1, 1], [], []>} : vector<16x16xf32>, vector<16x4xf32>, vector<16x4xf32> -> vector<16x4xf32>
    %596 = vector.extract_strided_slice %534 {offsets = [8, 0], sizes = [4, 16], strides = [1, 1]} : vector<16x16xf32> to vector<4x16xf32>
    %cst_196 = arith.constant dense<0.000000e+00> : vector<16x16xf32>
    %597 = tpu.matmul %595, %596, %cst_196 {dimension_numbers = #tpu.dot_dimension_numbers<[1], [0], [0], [1], [0, 0, 1, 1], [], []>} : vector<16x4xf32>, vector<4x16xf32>, vector<16x16xf32> -> vector<16x16xf32>
    %598 = arith.addf %577, %597 : vector<16x16xf32>
    %599 = vector.extract_strided_slice %531 {offsets = [0, 12], sizes = [16, 4], strides = [1, 1]} : vector<16x16xf32> to vector<16x4xf32>
    %600 = vector.extract_strided_slice %532 {offsets = [0, 12], sizes = [16, 4], strides = [1, 1]} : vector<16x16xf32> to vector<16x4xf32>
    %601 = vector.extract_strided_slice %533 {offsets = [0, 12], sizes = [16, 4], strides = [1, 1]} : vector<16x16xf32> to vector<16x4xf32>
    %cst_197 = arith.constant dense<0.000000e+00> : vector<16x16xf32>
    %602 = tpu.matmul %599, %600, %cst_197 {dimension_numbers = #tpu.dot_dimension_numbers<[1], [1], [0], [0], [0, 0, 1, 0], [], []>} : vector<16x4xf32>, vector<16x4xf32>, vector<16x16xf32> -> vector<16x16xf32>
    %cst_198 = arith.constant 5.000000e-01 : f32
    %603 = vector.broadcast %cst_198 : f32 to vector<16x16xf32>
    %604 = arith.mulf %602, %603 : vector<16x16xf32>
    %605 = arith.addf %604, %24 : vector<16x16xf32>
    %cst_199 = arith.constant dense<0xFF800000> : vector<16xf32>
    %606 = vector.multi_reduction <maximumf>, %605, %cst_199 [1] : vector<16x16xf32> to vector<16xf32>
    %607 = vector.shape_cast %606 : vector<16xf32> to vector<16x1xf32>
    %608 = vector.broadcast %607 : vector<16x1xf32> to vector<16x16xf32>
    %609 = arith.subf %605, %608 : vector<16x16xf32>
    %610 = math.exp %609 : vector<16x16xf32>
    %cst_200 = arith.constant dense<0.000000e+00> : vector<16xf32>
    %611 = vector.multi_reduction <add>, %610, %cst_200 [1] : vector<16x16xf32> to vector<16xf32>
    %612 = vector.shape_cast %611 : vector<16xf32> to vector<16x1xf32>
    %613 = tpu.reciprocal %612 {approx = true} : vector<16x1xf32> -> vector<16x1xf32>
    %614 = vector.broadcast %613 : vector<16x1xf32> to vector<16x16xf32>
    %615 = arith.mulf %610, %614 : vector<16x16xf32>
    %cst_201 = arith.constant dense<0.000000e+00> : vector<16x4xf32>
    %616 = tpu.matmul %615, %601, %cst_201 {dimension_numbers = #tpu.dot_dimension_numbers<[1], [0], [0], [1], [0, 0, 1, 1], [], []>} : vector<16x16xf32>, vector<16x4xf32>, vector<16x4xf32> -> vector<16x4xf32>
    %617 = vector.extract_strided_slice %534 {offsets = [12, 0], sizes = [4, 16], strides = [1, 1]} : vector<16x16xf32> to vector<4x16xf32>
    %cst_202 = arith.constant dense<0.000000e+00> : vector<16x16xf32>
    %618 = tpu.matmul %616, %617, %cst_202 {dimension_numbers = #tpu.dot_dimension_numbers<[1], [0], [0], [1], [0, 0, 1, 1], [], []>} : vector<16x4xf32>, vector<4x16xf32>, vector<16x16xf32> -> vector<16x16xf32>
    %619 = arith.addf %598, %618 : vector<16x16xf32>
    %620 = vector.extract_strided_slice %525 {offsets = [0, 48], sizes = [1, 16], strides = [1, 1]} : vector<1x64xf32> to vector<1x16xf32>
    %621 = vector.broadcast %620 : vector<1x16xf32> to vector<16x16xf32>
    %622 = arith.addf %619, %621 : vector<16x16xf32>
    %623 = arith.addf %22, %622 : vector<16x16xf32>
    %c7 = arith.constant 7 : index
    %c0_203 = arith.constant 0 : index
    %624 = vector.load %arg9[%c7, %c0_203] : memref<17x32xf32, #tpu.memory_space<vmem>>, vector<1x16xf32>
    %c7_204 = arith.constant 7 : index
    %c16_205 = arith.constant 16 : index
    %625 = vector.load %arg9[%c7_204, %c16_205] : memref<17x32xf32, #tpu.memory_space<vmem>>, vector<1x16xf32>
    %cst_206 = arith.constant dense<0.000000e+00> : vector<16xf32>
    %626 = vector.multi_reduction <add>, %623, %cst_206 [1] : vector<16x16xf32> to vector<16xf32>
    %627 = vector.shape_cast %626 : vector<16xf32> to vector<16x1xf32>
    %cst_207 = arith.constant 1.600000e+01 : f32
    %628 = vector.broadcast %cst_207 : f32 to vector<16x1xf32>
    %629 = arith.divf %627, %628 : vector<16x1xf32>
    %630 = vector.broadcast %629 : vector<16x1xf32> to vector<16x16xf32>
    %631 = arith.subf %623, %630 : vector<16x16xf32>
    %632 = arith.mulf %631, %631 : vector<16x16xf32>
    %cst_208 = arith.constant dense<0.000000e+00> : vector<16xf32>
    %633 = vector.multi_reduction <add>, %632, %cst_208 [1] : vector<16x16xf32> to vector<16xf32>
    %634 = vector.shape_cast %633 : vector<16xf32> to vector<16x1xf32>
    %cst_209 = arith.constant 1.600000e+01 : f32
    %635 = vector.broadcast %cst_209 : f32 to vector<16x1xf32>
    %636 = arith.divf %634, %635 : vector<16x1xf32>
    %cst_210 = arith.constant 9.99999974E-6 : f32
    %637 = vector.broadcast %cst_210 : f32 to vector<16x1xf32>
    %638 = arith.addf %636, %637 : vector<16x1xf32>
    %639 = math.rsqrt %638 : vector<16x1xf32>
    %640 = vector.broadcast %639 : vector<16x1xf32> to vector<16x16xf32>
    %641 = arith.mulf %631, %640 : vector<16x16xf32>
    %642 = vector.broadcast %624 : vector<1x16xf32> to vector<16x16xf32>
    %643 = arith.mulf %641, %642 : vector<16x16xf32>
    %644 = vector.broadcast %625 : vector<1x16xf32> to vector<16x16xf32>
    %645 = arith.addf %643, %644 : vector<16x16xf32>
    %c64 = arith.constant 64 : index
    %c0_211 = arith.constant 0 : index
    %646 = vector.load %arg5[%c64, %c0_211] : memref<144x64xf32, #tpu.memory_space<vmem>>, vector<16x64xf32>
    %c4_212 = arith.constant 4 : index
    %c0_213 = arith.constant 0 : index
    %647 = vector.load %arg6[%c4_212, %c0_213] : memref<9x64xf32, #tpu.memory_space<vmem>>, vector<1x64xf32>
    %648 = vector.extract_strided_slice %646 {offsets = [0, 0], sizes = [16, 16], strides = [1, 1]} : vector<16x64xf32> to vector<16x16xf32>
    %cst_214 = arith.constant dense<0.000000e+00> : vector<16x16xf32>
    %649 = tpu.matmul %645, %648, %cst_214 {dimension_numbers = #tpu.dot_dimension_numbers<[1], [0], [0], [1], [0, 0, 1, 1], [], []>} : vector<16x16xf32>, vector<16x16xf32>, vector<16x16xf32> -> vector<16x16xf32>
    %650 = vector.extract_strided_slice %647 {offsets = [0, 0], sizes = [1, 16], strides = [1, 1]} : vector<1x64xf32> to vector<1x16xf32>
    %651 = vector.broadcast %650 : vector<1x16xf32> to vector<16x16xf32>
    %652 = arith.addf %649, %651 : vector<16x16xf32>
    %653 = vector.extract_strided_slice %646 {offsets = [0, 16], sizes = [16, 32], strides = [1, 1]} : vector<16x64xf32> to vector<16x32xf32>
    %cst_215 = arith.constant dense<0.000000e+00> : vector<16x32xf32>
    %654 = tpu.matmul %523, %653, %cst_215 {dimension_numbers = #tpu.dot_dimension_numbers<[1], [0], [0], [1], [0, 0, 1, 1], [], []>} : vector<16x16xf32>, vector<16x32xf32>, vector<16x32xf32> -> vector<16x32xf32>
    %655 = vector.extract_strided_slice %647 {offsets = [0, 16], sizes = [1, 32], strides = [1, 1]} : vector<1x64xf32> to vector<1x32xf32>
    %656 = vector.broadcast %655 : vector<1x32xf32> to vector<16x32xf32>
    %657 = arith.addf %654, %656 : vector<16x32xf32>
    %658 = vector.extract_strided_slice %657 {offsets = [0, 0], sizes = [16, 16], strides = [1, 1]} : vector<16x32xf32> to vector<16x16xf32>
    %659 = vector.extract_strided_slice %657 {offsets = [0, 16], sizes = [16, 16], strides = [1, 1]} : vector<16x32xf32> to vector<16x16xf32>
    %660 = vector.extract_strided_slice %646 {offsets = [0, 48], sizes = [16, 16], strides = [1, 1]} : vector<16x64xf32> to vector<16x16xf32>
    %cst_216 = arith.constant 0.000000e+00 : f32
    %661 = vector.broadcast %cst_216 : f32 to vector<16x16xf32>
    %662 = vector.extract_strided_slice %652 {offsets = [0, 0], sizes = [16, 4], strides = [1, 1]} : vector<16x16xf32> to vector<16x4xf32>
    %663 = vector.extract_strided_slice %658 {offsets = [0, 0], sizes = [16, 4], strides = [1, 1]} : vector<16x16xf32> to vector<16x4xf32>
    %664 = vector.extract_strided_slice %659 {offsets = [0, 0], sizes = [16, 4], strides = [1, 1]} : vector<16x16xf32> to vector<16x4xf32>
    %cst_217 = arith.constant dense<0.000000e+00> : vector<16x16xf32>
    %665 = tpu.matmul %662, %663, %cst_217 {dimension_numbers = #tpu.dot_dimension_numbers<[1], [1], [0], [0], [0, 0, 1, 0], [], []>} : vector<16x4xf32>, vector<16x4xf32>, vector<16x16xf32> -> vector<16x16xf32>
    %cst_218 = arith.constant 5.000000e-01 : f32
    %666 = vector.broadcast %cst_218 : f32 to vector<16x16xf32>
    %667 = arith.mulf %665, %666 : vector<16x16xf32>
    %668 = arith.addf %667, %23 : vector<16x16xf32>
    %cst_219 = arith.constant dense<0xFF800000> : vector<16xf32>
    %669 = vector.multi_reduction <maximumf>, %668, %cst_219 [1] : vector<16x16xf32> to vector<16xf32>
    %670 = vector.shape_cast %669 : vector<16xf32> to vector<16x1xf32>
    %671 = vector.broadcast %670 : vector<16x1xf32> to vector<16x16xf32>
    %672 = arith.subf %668, %671 : vector<16x16xf32>
    %673 = math.exp %672 : vector<16x16xf32>
    %cst_220 = arith.constant dense<0.000000e+00> : vector<16xf32>
    %674 = vector.multi_reduction <add>, %673, %cst_220 [1] : vector<16x16xf32> to vector<16xf32>
    %675 = vector.shape_cast %674 : vector<16xf32> to vector<16x1xf32>
    %676 = tpu.reciprocal %675 {approx = true} : vector<16x1xf32> -> vector<16x1xf32>
    %677 = vector.broadcast %676 : vector<16x1xf32> to vector<16x16xf32>
    %678 = arith.mulf %673, %677 : vector<16x16xf32>
    %cst_221 = arith.constant dense<0.000000e+00> : vector<16x4xf32>
    %679 = tpu.matmul %678, %664, %cst_221 {dimension_numbers = #tpu.dot_dimension_numbers<[1], [0], [0], [1], [0, 0, 1, 1], [], []>} : vector<16x16xf32>, vector<16x4xf32>, vector<16x4xf32> -> vector<16x4xf32>
    %680 = vector.extract_strided_slice %660 {offsets = [0, 0], sizes = [4, 16], strides = [1, 1]} : vector<16x16xf32> to vector<4x16xf32>
    %cst_222 = arith.constant dense<0.000000e+00> : vector<16x16xf32>
    %681 = tpu.matmul %679, %680, %cst_222 {dimension_numbers = #tpu.dot_dimension_numbers<[1], [0], [0], [1], [0, 0, 1, 1], [], []>} : vector<16x4xf32>, vector<4x16xf32>, vector<16x16xf32> -> vector<16x16xf32>
    %682 = arith.addf %661, %681 : vector<16x16xf32>
    %683 = vector.extract_strided_slice %652 {offsets = [0, 4], sizes = [16, 4], strides = [1, 1]} : vector<16x16xf32> to vector<16x4xf32>
    %684 = vector.extract_strided_slice %658 {offsets = [0, 4], sizes = [16, 4], strides = [1, 1]} : vector<16x16xf32> to vector<16x4xf32>
    %685 = vector.extract_strided_slice %659 {offsets = [0, 4], sizes = [16, 4], strides = [1, 1]} : vector<16x16xf32> to vector<16x4xf32>
    %cst_223 = arith.constant dense<0.000000e+00> : vector<16x16xf32>
    %686 = tpu.matmul %683, %684, %cst_223 {dimension_numbers = #tpu.dot_dimension_numbers<[1], [1], [0], [0], [0, 0, 1, 0], [], []>} : vector<16x4xf32>, vector<16x4xf32>, vector<16x16xf32> -> vector<16x16xf32>
    %cst_224 = arith.constant 5.000000e-01 : f32
    %687 = vector.broadcast %cst_224 : f32 to vector<16x16xf32>
    %688 = arith.mulf %686, %687 : vector<16x16xf32>
    %689 = arith.addf %688, %23 : vector<16x16xf32>
    %cst_225 = arith.constant dense<0xFF800000> : vector<16xf32>
    %690 = vector.multi_reduction <maximumf>, %689, %cst_225 [1] : vector<16x16xf32> to vector<16xf32>
    %691 = vector.shape_cast %690 : vector<16xf32> to vector<16x1xf32>
    %692 = vector.broadcast %691 : vector<16x1xf32> to vector<16x16xf32>
    %693 = arith.subf %689, %692 : vector<16x16xf32>
    %694 = math.exp %693 : vector<16x16xf32>
    %cst_226 = arith.constant dense<0.000000e+00> : vector<16xf32>
    %695 = vector.multi_reduction <add>, %694, %cst_226 [1] : vector<16x16xf32> to vector<16xf32>
    %696 = vector.shape_cast %695 : vector<16xf32> to vector<16x1xf32>
    %697 = tpu.reciprocal %696 {approx = true} : vector<16x1xf32> -> vector<16x1xf32>
    %698 = vector.broadcast %697 : vector<16x1xf32> to vector<16x16xf32>
    %699 = arith.mulf %694, %698 : vector<16x16xf32>
    %cst_227 = arith.constant dense<0.000000e+00> : vector<16x4xf32>
    %700 = tpu.matmul %699, %685, %cst_227 {dimension_numbers = #tpu.dot_dimension_numbers<[1], [0], [0], [1], [0, 0, 1, 1], [], []>} : vector<16x16xf32>, vector<16x4xf32>, vector<16x4xf32> -> vector<16x4xf32>
    %701 = vector.extract_strided_slice %660 {offsets = [4, 0], sizes = [4, 16], strides = [1, 1]} : vector<16x16xf32> to vector<4x16xf32>
    %cst_228 = arith.constant dense<0.000000e+00> : vector<16x16xf32>
    %702 = tpu.matmul %700, %701, %cst_228 {dimension_numbers = #tpu.dot_dimension_numbers<[1], [0], [0], [1], [0, 0, 1, 1], [], []>} : vector<16x4xf32>, vector<4x16xf32>, vector<16x16xf32> -> vector<16x16xf32>
    %703 = arith.addf %682, %702 : vector<16x16xf32>
    %704 = vector.extract_strided_slice %652 {offsets = [0, 8], sizes = [16, 4], strides = [1, 1]} : vector<16x16xf32> to vector<16x4xf32>
    %705 = vector.extract_strided_slice %658 {offsets = [0, 8], sizes = [16, 4], strides = [1, 1]} : vector<16x16xf32> to vector<16x4xf32>
    %706 = vector.extract_strided_slice %659 {offsets = [0, 8], sizes = [16, 4], strides = [1, 1]} : vector<16x16xf32> to vector<16x4xf32>
    %cst_229 = arith.constant dense<0.000000e+00> : vector<16x16xf32>
    %707 = tpu.matmul %704, %705, %cst_229 {dimension_numbers = #tpu.dot_dimension_numbers<[1], [1], [0], [0], [0, 0, 1, 0], [], []>} : vector<16x4xf32>, vector<16x4xf32>, vector<16x16xf32> -> vector<16x16xf32>
    %cst_230 = arith.constant 5.000000e-01 : f32
    %708 = vector.broadcast %cst_230 : f32 to vector<16x16xf32>
    %709 = arith.mulf %707, %708 : vector<16x16xf32>
    %710 = arith.addf %709, %23 : vector<16x16xf32>
    %cst_231 = arith.constant dense<0xFF800000> : vector<16xf32>
    %711 = vector.multi_reduction <maximumf>, %710, %cst_231 [1] : vector<16x16xf32> to vector<16xf32>
    %712 = vector.shape_cast %711 : vector<16xf32> to vector<16x1xf32>
    %713 = vector.broadcast %712 : vector<16x1xf32> to vector<16x16xf32>
    %714 = arith.subf %710, %713 : vector<16x16xf32>
    %715 = math.exp %714 : vector<16x16xf32>
    %cst_232 = arith.constant dense<0.000000e+00> : vector<16xf32>
    %716 = vector.multi_reduction <add>, %715, %cst_232 [1] : vector<16x16xf32> to vector<16xf32>
    %717 = vector.shape_cast %716 : vector<16xf32> to vector<16x1xf32>
    %718 = tpu.reciprocal %717 {approx = true} : vector<16x1xf32> -> vector<16x1xf32>
    %719 = vector.broadcast %718 : vector<16x1xf32> to vector<16x16xf32>
    %720 = arith.mulf %715, %719 : vector<16x16xf32>
    %cst_233 = arith.constant dense<0.000000e+00> : vector<16x4xf32>
    %721 = tpu.matmul %720, %706, %cst_233 {dimension_numbers = #tpu.dot_dimension_numbers<[1], [0], [0], [1], [0, 0, 1, 1], [], []>} : vector<16x16xf32>, vector<16x4xf32>, vector<16x4xf32> -> vector<16x4xf32>
    %722 = vector.extract_strided_slice %660 {offsets = [8, 0], sizes = [4, 16], strides = [1, 1]} : vector<16x16xf32> to vector<4x16xf32>
    %cst_234 = arith.constant dense<0.000000e+00> : vector<16x16xf32>
    %723 = tpu.matmul %721, %722, %cst_234 {dimension_numbers = #tpu.dot_dimension_numbers<[1], [0], [0], [1], [0, 0, 1, 1], [], []>} : vector<16x4xf32>, vector<4x16xf32>, vector<16x16xf32> -> vector<16x16xf32>
    %724 = arith.addf %703, %723 : vector<16x16xf32>
    %725 = vector.extract_strided_slice %652 {offsets = [0, 12], sizes = [16, 4], strides = [1, 1]} : vector<16x16xf32> to vector<16x4xf32>
    %726 = vector.extract_strided_slice %658 {offsets = [0, 12], sizes = [16, 4], strides = [1, 1]} : vector<16x16xf32> to vector<16x4xf32>
    %727 = vector.extract_strided_slice %659 {offsets = [0, 12], sizes = [16, 4], strides = [1, 1]} : vector<16x16xf32> to vector<16x4xf32>
    %cst_235 = arith.constant dense<0.000000e+00> : vector<16x16xf32>
    %728 = tpu.matmul %725, %726, %cst_235 {dimension_numbers = #tpu.dot_dimension_numbers<[1], [1], [0], [0], [0, 0, 1, 0], [], []>} : vector<16x4xf32>, vector<16x4xf32>, vector<16x16xf32> -> vector<16x16xf32>
    %cst_236 = arith.constant 5.000000e-01 : f32
    %729 = vector.broadcast %cst_236 : f32 to vector<16x16xf32>
    %730 = arith.mulf %728, %729 : vector<16x16xf32>
    %731 = arith.addf %730, %23 : vector<16x16xf32>
    %cst_237 = arith.constant dense<0xFF800000> : vector<16xf32>
    %732 = vector.multi_reduction <maximumf>, %731, %cst_237 [1] : vector<16x16xf32> to vector<16xf32>
    %733 = vector.shape_cast %732 : vector<16xf32> to vector<16x1xf32>
    %734 = vector.broadcast %733 : vector<16x1xf32> to vector<16x16xf32>
    %735 = arith.subf %731, %734 : vector<16x16xf32>
    %736 = math.exp %735 : vector<16x16xf32>
    %cst_238 = arith.constant dense<0.000000e+00> : vector<16xf32>
    %737 = vector.multi_reduction <add>, %736, %cst_238 [1] : vector<16x16xf32> to vector<16xf32>
    %738 = vector.shape_cast %737 : vector<16xf32> to vector<16x1xf32>
    %739 = tpu.reciprocal %738 {approx = true} : vector<16x1xf32> -> vector<16x1xf32>
    %740 = vector.broadcast %739 : vector<16x1xf32> to vector<16x16xf32>
    %741 = arith.mulf %736, %740 : vector<16x16xf32>
    %cst_239 = arith.constant dense<0.000000e+00> : vector<16x4xf32>
    %742 = tpu.matmul %741, %727, %cst_239 {dimension_numbers = #tpu.dot_dimension_numbers<[1], [0], [0], [1], [0, 0, 1, 1], [], []>} : vector<16x16xf32>, vector<16x4xf32>, vector<16x4xf32> -> vector<16x4xf32>
    %743 = vector.extract_strided_slice %660 {offsets = [12, 0], sizes = [4, 16], strides = [1, 1]} : vector<16x16xf32> to vector<4x16xf32>
    %cst_240 = arith.constant dense<0.000000e+00> : vector<16x16xf32>
    %744 = tpu.matmul %742, %743, %cst_240 {dimension_numbers = #tpu.dot_dimension_numbers<[1], [0], [0], [1], [0, 0, 1, 1], [], []>} : vector<16x4xf32>, vector<4x16xf32>, vector<16x16xf32> -> vector<16x16xf32>
    %745 = arith.addf %724, %744 : vector<16x16xf32>
    %746 = vector.extract_strided_slice %647 {offsets = [0, 48], sizes = [1, 16], strides = [1, 1]} : vector<1x64xf32> to vector<1x16xf32>
    %747 = vector.broadcast %746 : vector<1x16xf32> to vector<16x16xf32>
    %748 = arith.addf %745, %747 : vector<16x16xf32>
    %749 = arith.addf %645, %748 : vector<16x16xf32>
    %c8 = arith.constant 8 : index
    %c0_241 = arith.constant 0 : index
    %750 = vector.load %arg9[%c8, %c0_241] : memref<17x32xf32, #tpu.memory_space<vmem>>, vector<1x16xf32>
    %c8_242 = arith.constant 8 : index
    %c16_243 = arith.constant 16 : index
    %751 = vector.load %arg9[%c8_242, %c16_243] : memref<17x32xf32, #tpu.memory_space<vmem>>, vector<1x16xf32>
    %cst_244 = arith.constant dense<0.000000e+00> : vector<16xf32>
    %752 = vector.multi_reduction <add>, %749, %cst_244 [1] : vector<16x16xf32> to vector<16xf32>
    %753 = vector.shape_cast %752 : vector<16xf32> to vector<16x1xf32>
    %cst_245 = arith.constant 1.600000e+01 : f32
    %754 = vector.broadcast %cst_245 : f32 to vector<16x1xf32>
    %755 = arith.divf %753, %754 : vector<16x1xf32>
    %756 = vector.broadcast %755 : vector<16x1xf32> to vector<16x16xf32>
    %757 = arith.subf %749, %756 : vector<16x16xf32>
    %758 = arith.mulf %757, %757 : vector<16x16xf32>
    %cst_246 = arith.constant dense<0.000000e+00> : vector<16xf32>
    %759 = vector.multi_reduction <add>, %758, %cst_246 [1] : vector<16x16xf32> to vector<16xf32>
    %760 = vector.shape_cast %759 : vector<16xf32> to vector<16x1xf32>
    %cst_247 = arith.constant 1.600000e+01 : f32
    %761 = vector.broadcast %cst_247 : f32 to vector<16x1xf32>
    %762 = arith.divf %760, %761 : vector<16x1xf32>
    %cst_248 = arith.constant 9.99999974E-6 : f32
    %763 = vector.broadcast %cst_248 : f32 to vector<16x1xf32>
    %764 = arith.addf %762, %763 : vector<16x1xf32>
    %765 = math.rsqrt %764 : vector<16x1xf32>
    %766 = vector.broadcast %765 : vector<16x1xf32> to vector<16x16xf32>
    %767 = arith.mulf %757, %766 : vector<16x16xf32>
    %768 = vector.broadcast %750 : vector<1x16xf32> to vector<16x16xf32>
    %769 = arith.mulf %767, %768 : vector<16x16xf32>
    %770 = vector.broadcast %751 : vector<1x16xf32> to vector<16x16xf32>
    %771 = arith.addf %769, %770 : vector<16x16xf32>
    %c48_249 = arith.constant 48 : index
    %c0_250 = arith.constant 0 : index
    %772 = vector.load %arg7[%c48_249, %c0_250] : memref<96x64xf32, #tpu.memory_space<vmem>>, vector<16x64xf32>
    %c3_251 = arith.constant 3 : index
    %c0_252 = arith.constant 0 : index
    %773 = vector.load %arg8[%c3_251, %c0_252] : memref<6x48xf32, #tpu.memory_space<vmem>>, vector<1x48xf32>
    %774 = vector.extract_strided_slice %772 {offsets = [0, 0], sizes = [16, 32], strides = [1, 1]} : vector<16x64xf32> to vector<16x32xf32>
    %cst_253 = arith.constant dense<0.000000e+00> : vector<16x32xf32>
    %775 = tpu.matmul %771, %774, %cst_253 {dimension_numbers = #tpu.dot_dimension_numbers<[1], [0], [0], [1], [0, 0, 1, 1], [], []>} : vector<16x16xf32>, vector<16x32xf32>, vector<16x32xf32> -> vector<16x32xf32>
    %776 = vector.extract_strided_slice %773 {offsets = [0, 0], sizes = [1, 32], strides = [1, 1]} : vector<1x48xf32> to vector<1x32xf32>
    %777 = vector.broadcast %776 : vector<1x32xf32> to vector<16x32xf32>
    %778 = arith.addf %775, %777 : vector<16x32xf32>
    %cst_254 = arith.constant 0.000000e+00 : f32
    %779 = vector.broadcast %cst_254 : f32 to vector<16x32xf32>
    %780 = arith.maximumf %778, %779 : vector<16x32xf32>
    %781 = vector.extract_strided_slice %772 {offsets = [0, 32], sizes = [16, 32], strides = [1, 1]} : vector<16x64xf32> to vector<16x32xf32>
    %cst_255 = arith.constant dense<0.000000e+00> : vector<16x16xf32>
    %782 = tpu.matmul %780, %781, %cst_255 {dimension_numbers = #tpu.dot_dimension_numbers<[1], [1], [0], [0], [0, 0, 1, 0], [], []>} : vector<16x32xf32>, vector<16x32xf32>, vector<16x16xf32> -> vector<16x16xf32>
    %783 = vector.extract_strided_slice %773 {offsets = [0, 32], sizes = [1, 16], strides = [1, 1]} : vector<1x48xf32> to vector<1x16xf32>
    %784 = vector.broadcast %783 : vector<1x16xf32> to vector<16x16xf32>
    %785 = arith.addf %782, %784 : vector<16x16xf32>
    %786 = arith.addf %771, %785 : vector<16x16xf32>
    %c9 = arith.constant 9 : index
    %c0_256 = arith.constant 0 : index
    %787 = vector.load %arg9[%c9, %c0_256] : memref<17x32xf32, #tpu.memory_space<vmem>>, vector<1x16xf32>
    %c9_257 = arith.constant 9 : index
    %c16_258 = arith.constant 16 : index
    %788 = vector.load %arg9[%c9_257, %c16_258] : memref<17x32xf32, #tpu.memory_space<vmem>>, vector<1x16xf32>
    %cst_259 = arith.constant dense<0.000000e+00> : vector<16xf32>
    %789 = vector.multi_reduction <add>, %786, %cst_259 [1] : vector<16x16xf32> to vector<16xf32>
    %790 = vector.shape_cast %789 : vector<16xf32> to vector<16x1xf32>
    %cst_260 = arith.constant 1.600000e+01 : f32
    %791 = vector.broadcast %cst_260 : f32 to vector<16x1xf32>
    %792 = arith.divf %790, %791 : vector<16x1xf32>
    %793 = vector.broadcast %792 : vector<16x1xf32> to vector<16x16xf32>
    %794 = arith.subf %786, %793 : vector<16x16xf32>
    %795 = arith.mulf %794, %794 : vector<16x16xf32>
    %cst_261 = arith.constant dense<0.000000e+00> : vector<16xf32>
    %796 = vector.multi_reduction <add>, %795, %cst_261 [1] : vector<16x16xf32> to vector<16xf32>
    %797 = vector.shape_cast %796 : vector<16xf32> to vector<16x1xf32>
    %cst_262 = arith.constant 1.600000e+01 : f32
    %798 = vector.broadcast %cst_262 : f32 to vector<16x1xf32>
    %799 = arith.divf %797, %798 : vector<16x1xf32>
    %cst_263 = arith.constant 9.99999974E-6 : f32
    %800 = vector.broadcast %cst_263 : f32 to vector<16x1xf32>
    %801 = arith.addf %799, %800 : vector<16x1xf32>
    %802 = math.rsqrt %801 : vector<16x1xf32>
    %803 = vector.broadcast %802 : vector<16x1xf32> to vector<16x16xf32>
    %804 = arith.mulf %794, %803 : vector<16x16xf32>
    %805 = vector.broadcast %787 : vector<1x16xf32> to vector<16x16xf32>
    %806 = arith.mulf %804, %805 : vector<16x16xf32>
    %807 = vector.broadcast %788 : vector<1x16xf32> to vector<16x16xf32>
    %808 = arith.addf %806, %807 : vector<16x16xf32>
    %c80 = arith.constant 80 : index
    %c0_264 = arith.constant 0 : index
    %809 = vector.load %arg5[%c80, %c0_264] : memref<144x64xf32, #tpu.memory_space<vmem>>, vector<16x64xf32>
    %c5_265 = arith.constant 5 : index
    %c0_266 = arith.constant 0 : index
    %810 = vector.load %arg6[%c5_265, %c0_266] : memref<9x64xf32, #tpu.memory_space<vmem>>, vector<1x64xf32>
    %811 = vector.extract_strided_slice %809 {offsets = [0, 0], sizes = [16, 48], strides = [1, 1]} : vector<16x64xf32> to vector<16x48xf32>
    %cst_267 = arith.constant dense<0.000000e+00> : vector<16x48xf32>
    %812 = tpu.matmul %808, %811, %cst_267 {dimension_numbers = #tpu.dot_dimension_numbers<[1], [0], [0], [1], [0, 0, 1, 1], [], []>} : vector<16x16xf32>, vector<16x48xf32>, vector<16x48xf32> -> vector<16x48xf32>
    %813 = vector.extract_strided_slice %810 {offsets = [0, 0], sizes = [1, 48], strides = [1, 1]} : vector<1x64xf32> to vector<1x48xf32>
    %814 = vector.broadcast %813 : vector<1x48xf32> to vector<16x48xf32>
    %815 = arith.addf %812, %814 : vector<16x48xf32>
    %816 = vector.extract_strided_slice %815 {offsets = [0, 0], sizes = [16, 16], strides = [1, 1]} : vector<16x48xf32> to vector<16x16xf32>
    %817 = vector.extract_strided_slice %815 {offsets = [0, 16], sizes = [16, 16], strides = [1, 1]} : vector<16x48xf32> to vector<16x16xf32>
    %818 = vector.extract_strided_slice %815 {offsets = [0, 32], sizes = [16, 16], strides = [1, 1]} : vector<16x48xf32> to vector<16x16xf32>
    %819 = vector.extract_strided_slice %809 {offsets = [0, 48], sizes = [16, 16], strides = [1, 1]} : vector<16x64xf32> to vector<16x16xf32>
    %cst_268 = arith.constant 0.000000e+00 : f32
    %820 = vector.broadcast %cst_268 : f32 to vector<16x16xf32>
    %821 = vector.extract_strided_slice %816 {offsets = [0, 0], sizes = [16, 4], strides = [1, 1]} : vector<16x16xf32> to vector<16x4xf32>
    %822 = vector.extract_strided_slice %817 {offsets = [0, 0], sizes = [16, 4], strides = [1, 1]} : vector<16x16xf32> to vector<16x4xf32>
    %823 = vector.extract_strided_slice %818 {offsets = [0, 0], sizes = [16, 4], strides = [1, 1]} : vector<16x16xf32> to vector<16x4xf32>
    %cst_269 = arith.constant dense<0.000000e+00> : vector<16x16xf32>
    %824 = tpu.matmul %821, %822, %cst_269 {dimension_numbers = #tpu.dot_dimension_numbers<[1], [1], [0], [0], [0, 0, 1, 0], [], []>} : vector<16x4xf32>, vector<16x4xf32>, vector<16x16xf32> -> vector<16x16xf32>
    %cst_270 = arith.constant 5.000000e-01 : f32
    %825 = vector.broadcast %cst_270 : f32 to vector<16x16xf32>
    %826 = arith.mulf %824, %825 : vector<16x16xf32>
    %827 = arith.addf %826, %24 : vector<16x16xf32>
    %cst_271 = arith.constant dense<0xFF800000> : vector<16xf32>
    %828 = vector.multi_reduction <maximumf>, %827, %cst_271 [1] : vector<16x16xf32> to vector<16xf32>
    %829 = vector.shape_cast %828 : vector<16xf32> to vector<16x1xf32>
    %830 = vector.broadcast %829 : vector<16x1xf32> to vector<16x16xf32>
    %831 = arith.subf %827, %830 : vector<16x16xf32>
    %832 = math.exp %831 : vector<16x16xf32>
    %cst_272 = arith.constant dense<0.000000e+00> : vector<16xf32>
    %833 = vector.multi_reduction <add>, %832, %cst_272 [1] : vector<16x16xf32> to vector<16xf32>
    %834 = vector.shape_cast %833 : vector<16xf32> to vector<16x1xf32>
    %835 = tpu.reciprocal %834 {approx = true} : vector<16x1xf32> -> vector<16x1xf32>
    %836 = vector.broadcast %835 : vector<16x1xf32> to vector<16x16xf32>
    %837 = arith.mulf %832, %836 : vector<16x16xf32>
    %cst_273 = arith.constant dense<0.000000e+00> : vector<16x4xf32>
    %838 = tpu.matmul %837, %823, %cst_273 {dimension_numbers = #tpu.dot_dimension_numbers<[1], [0], [0], [1], [0, 0, 1, 1], [], []>} : vector<16x16xf32>, vector<16x4xf32>, vector<16x4xf32> -> vector<16x4xf32>
    %839 = vector.extract_strided_slice %819 {offsets = [0, 0], sizes = [4, 16], strides = [1, 1]} : vector<16x16xf32> to vector<4x16xf32>
    %cst_274 = arith.constant dense<0.000000e+00> : vector<16x16xf32>
    %840 = tpu.matmul %838, %839, %cst_274 {dimension_numbers = #tpu.dot_dimension_numbers<[1], [0], [0], [1], [0, 0, 1, 1], [], []>} : vector<16x4xf32>, vector<4x16xf32>, vector<16x16xf32> -> vector<16x16xf32>
    %841 = arith.addf %820, %840 : vector<16x16xf32>
    %842 = vector.extract_strided_slice %816 {offsets = [0, 4], sizes = [16, 4], strides = [1, 1]} : vector<16x16xf32> to vector<16x4xf32>
    %843 = vector.extract_strided_slice %817 {offsets = [0, 4], sizes = [16, 4], strides = [1, 1]} : vector<16x16xf32> to vector<16x4xf32>
    %844 = vector.extract_strided_slice %818 {offsets = [0, 4], sizes = [16, 4], strides = [1, 1]} : vector<16x16xf32> to vector<16x4xf32>
    %cst_275 = arith.constant dense<0.000000e+00> : vector<16x16xf32>
    %845 = tpu.matmul %842, %843, %cst_275 {dimension_numbers = #tpu.dot_dimension_numbers<[1], [1], [0], [0], [0, 0, 1, 0], [], []>} : vector<16x4xf32>, vector<16x4xf32>, vector<16x16xf32> -> vector<16x16xf32>
    %cst_276 = arith.constant 5.000000e-01 : f32
    %846 = vector.broadcast %cst_276 : f32 to vector<16x16xf32>
    %847 = arith.mulf %845, %846 : vector<16x16xf32>
    %848 = arith.addf %847, %24 : vector<16x16xf32>
    %cst_277 = arith.constant dense<0xFF800000> : vector<16xf32>
    %849 = vector.multi_reduction <maximumf>, %848, %cst_277 [1] : vector<16x16xf32> to vector<16xf32>
    %850 = vector.shape_cast %849 : vector<16xf32> to vector<16x1xf32>
    %851 = vector.broadcast %850 : vector<16x1xf32> to vector<16x16xf32>
    %852 = arith.subf %848, %851 : vector<16x16xf32>
    %853 = math.exp %852 : vector<16x16xf32>
    %cst_278 = arith.constant dense<0.000000e+00> : vector<16xf32>
    %854 = vector.multi_reduction <add>, %853, %cst_278 [1] : vector<16x16xf32> to vector<16xf32>
    %855 = vector.shape_cast %854 : vector<16xf32> to vector<16x1xf32>
    %856 = tpu.reciprocal %855 {approx = true} : vector<16x1xf32> -> vector<16x1xf32>
    %857 = vector.broadcast %856 : vector<16x1xf32> to vector<16x16xf32>
    %858 = arith.mulf %853, %857 : vector<16x16xf32>
    %cst_279 = arith.constant dense<0.000000e+00> : vector<16x4xf32>
    %859 = tpu.matmul %858, %844, %cst_279 {dimension_numbers = #tpu.dot_dimension_numbers<[1], [0], [0], [1], [0, 0, 1, 1], [], []>} : vector<16x16xf32>, vector<16x4xf32>, vector<16x4xf32> -> vector<16x4xf32>
    %860 = vector.extract_strided_slice %819 {offsets = [4, 0], sizes = [4, 16], strides = [1, 1]} : vector<16x16xf32> to vector<4x16xf32>
    %cst_280 = arith.constant dense<0.000000e+00> : vector<16x16xf32>
    %861 = tpu.matmul %859, %860, %cst_280 {dimension_numbers = #tpu.dot_dimension_numbers<[1], [0], [0], [1], [0, 0, 1, 1], [], []>} : vector<16x4xf32>, vector<4x16xf32>, vector<16x16xf32> -> vector<16x16xf32>
    %862 = arith.addf %841, %861 : vector<16x16xf32>
    %863 = vector.extract_strided_slice %816 {offsets = [0, 8], sizes = [16, 4], strides = [1, 1]} : vector<16x16xf32> to vector<16x4xf32>
    %864 = vector.extract_strided_slice %817 {offsets = [0, 8], sizes = [16, 4], strides = [1, 1]} : vector<16x16xf32> to vector<16x4xf32>
    %865 = vector.extract_strided_slice %818 {offsets = [0, 8], sizes = [16, 4], strides = [1, 1]} : vector<16x16xf32> to vector<16x4xf32>
    %cst_281 = arith.constant dense<0.000000e+00> : vector<16x16xf32>
    %866 = tpu.matmul %863, %864, %cst_281 {dimension_numbers = #tpu.dot_dimension_numbers<[1], [1], [0], [0], [0, 0, 1, 0], [], []>} : vector<16x4xf32>, vector<16x4xf32>, vector<16x16xf32> -> vector<16x16xf32>
    %cst_282 = arith.constant 5.000000e-01 : f32
    %867 = vector.broadcast %cst_282 : f32 to vector<16x16xf32>
    %868 = arith.mulf %866, %867 : vector<16x16xf32>
    %869 = arith.addf %868, %24 : vector<16x16xf32>
    %cst_283 = arith.constant dense<0xFF800000> : vector<16xf32>
    %870 = vector.multi_reduction <maximumf>, %869, %cst_283 [1] : vector<16x16xf32> to vector<16xf32>
    %871 = vector.shape_cast %870 : vector<16xf32> to vector<16x1xf32>
    %872 = vector.broadcast %871 : vector<16x1xf32> to vector<16x16xf32>
    %873 = arith.subf %869, %872 : vector<16x16xf32>
    %874 = math.exp %873 : vector<16x16xf32>
    %cst_284 = arith.constant dense<0.000000e+00> : vector<16xf32>
    %875 = vector.multi_reduction <add>, %874, %cst_284 [1] : vector<16x16xf32> to vector<16xf32>
    %876 = vector.shape_cast %875 : vector<16xf32> to vector<16x1xf32>
    %877 = tpu.reciprocal %876 {approx = true} : vector<16x1xf32> -> vector<16x1xf32>
    %878 = vector.broadcast %877 : vector<16x1xf32> to vector<16x16xf32>
    %879 = arith.mulf %874, %878 : vector<16x16xf32>
    %cst_285 = arith.constant dense<0.000000e+00> : vector<16x4xf32>
    %880 = tpu.matmul %879, %865, %cst_285 {dimension_numbers = #tpu.dot_dimension_numbers<[1], [0], [0], [1], [0, 0, 1, 1], [], []>} : vector<16x16xf32>, vector<16x4xf32>, vector<16x4xf32> -> vector<16x4xf32>
    %881 = vector.extract_strided_slice %819 {offsets = [8, 0], sizes = [4, 16], strides = [1, 1]} : vector<16x16xf32> to vector<4x16xf32>
    %cst_286 = arith.constant dense<0.000000e+00> : vector<16x16xf32>
    %882 = tpu.matmul %880, %881, %cst_286 {dimension_numbers = #tpu.dot_dimension_numbers<[1], [0], [0], [1], [0, 0, 1, 1], [], []>} : vector<16x4xf32>, vector<4x16xf32>, vector<16x16xf32> -> vector<16x16xf32>
    %883 = arith.addf %862, %882 : vector<16x16xf32>
    %884 = vector.extract_strided_slice %816 {offsets = [0, 12], sizes = [16, 4], strides = [1, 1]} : vector<16x16xf32> to vector<16x4xf32>
    %885 = vector.extract_strided_slice %817 {offsets = [0, 12], sizes = [16, 4], strides = [1, 1]} : vector<16x16xf32> to vector<16x4xf32>
    %886 = vector.extract_strided_slice %818 {offsets = [0, 12], sizes = [16, 4], strides = [1, 1]} : vector<16x16xf32> to vector<16x4xf32>
    %cst_287 = arith.constant dense<0.000000e+00> : vector<16x16xf32>
    %887 = tpu.matmul %884, %885, %cst_287 {dimension_numbers = #tpu.dot_dimension_numbers<[1], [1], [0], [0], [0, 0, 1, 0], [], []>} : vector<16x4xf32>, vector<16x4xf32>, vector<16x16xf32> -> vector<16x16xf32>
    %cst_288 = arith.constant 5.000000e-01 : f32
    %888 = vector.broadcast %cst_288 : f32 to vector<16x16xf32>
    %889 = arith.mulf %887, %888 : vector<16x16xf32>
    %890 = arith.addf %889, %24 : vector<16x16xf32>
    %cst_289 = arith.constant dense<0xFF800000> : vector<16xf32>
    %891 = vector.multi_reduction <maximumf>, %890, %cst_289 [1] : vector<16x16xf32> to vector<16xf32>
    %892 = vector.shape_cast %891 : vector<16xf32> to vector<16x1xf32>
    %893 = vector.broadcast %892 : vector<16x1xf32> to vector<16x16xf32>
    %894 = arith.subf %890, %893 : vector<16x16xf32>
    %895 = math.exp %894 : vector<16x16xf32>
    %cst_290 = arith.constant dense<0.000000e+00> : vector<16xf32>
    %896 = vector.multi_reduction <add>, %895, %cst_290 [1] : vector<16x16xf32> to vector<16xf32>
    %897 = vector.shape_cast %896 : vector<16xf32> to vector<16x1xf32>
    %898 = tpu.reciprocal %897 {approx = true} : vector<16x1xf32> -> vector<16x1xf32>
    %899 = vector.broadcast %898 : vector<16x1xf32> to vector<16x16xf32>
    %900 = arith.mulf %895, %899 : vector<16x16xf32>
    %cst_291 = arith.constant dense<0.000000e+00> : vector<16x4xf32>
    %901 = tpu.matmul %900, %886, %cst_291 {dimension_numbers = #tpu.dot_dimension_numbers<[1], [0], [0], [1], [0, 0, 1, 1], [], []>} : vector<16x16xf32>, vector<16x4xf32>, vector<16x4xf32> -> vector<16x4xf32>
    %902 = vector.extract_strided_slice %819 {offsets = [12, 0], sizes = [4, 16], strides = [1, 1]} : vector<16x16xf32> to vector<4x16xf32>
    %cst_292 = arith.constant dense<0.000000e+00> : vector<16x16xf32>
    %903 = tpu.matmul %901, %902, %cst_292 {dimension_numbers = #tpu.dot_dimension_numbers<[1], [0], [0], [1], [0, 0, 1, 1], [], []>} : vector<16x4xf32>, vector<4x16xf32>, vector<16x16xf32> -> vector<16x16xf32>
    %904 = arith.addf %883, %903 : vector<16x16xf32>
    %905 = vector.extract_strided_slice %810 {offsets = [0, 48], sizes = [1, 16], strides = [1, 1]} : vector<1x64xf32> to vector<1x16xf32>
    %906 = vector.broadcast %905 : vector<1x16xf32> to vector<16x16xf32>
    %907 = arith.addf %904, %906 : vector<16x16xf32>
    %908 = arith.addf %808, %907 : vector<16x16xf32>
    %c10 = arith.constant 10 : index
    %c0_293 = arith.constant 0 : index
    %909 = vector.load %arg9[%c10, %c0_293] : memref<17x32xf32, #tpu.memory_space<vmem>>, vector<1x16xf32>
    %c10_294 = arith.constant 10 : index
    %c16_295 = arith.constant 16 : index
    %910 = vector.load %arg9[%c10_294, %c16_295] : memref<17x32xf32, #tpu.memory_space<vmem>>, vector<1x16xf32>
    %cst_296 = arith.constant dense<0.000000e+00> : vector<16xf32>
    %911 = vector.multi_reduction <add>, %908, %cst_296 [1] : vector<16x16xf32> to vector<16xf32>
    %912 = vector.shape_cast %911 : vector<16xf32> to vector<16x1xf32>
    %cst_297 = arith.constant 1.600000e+01 : f32
    %913 = vector.broadcast %cst_297 : f32 to vector<16x1xf32>
    %914 = arith.divf %912, %913 : vector<16x1xf32>
    %915 = vector.broadcast %914 : vector<16x1xf32> to vector<16x16xf32>
    %916 = arith.subf %908, %915 : vector<16x16xf32>
    %917 = arith.mulf %916, %916 : vector<16x16xf32>
    %cst_298 = arith.constant dense<0.000000e+00> : vector<16xf32>
    %918 = vector.multi_reduction <add>, %917, %cst_298 [1] : vector<16x16xf32> to vector<16xf32>
    %919 = vector.shape_cast %918 : vector<16xf32> to vector<16x1xf32>
    %cst_299 = arith.constant 1.600000e+01 : f32
    %920 = vector.broadcast %cst_299 : f32 to vector<16x1xf32>
    %921 = arith.divf %919, %920 : vector<16x1xf32>
    %cst_300 = arith.constant 9.99999974E-6 : f32
    %922 = vector.broadcast %cst_300 : f32 to vector<16x1xf32>
    %923 = arith.addf %921, %922 : vector<16x1xf32>
    %924 = math.rsqrt %923 : vector<16x1xf32>
    %925 = vector.broadcast %924 : vector<16x1xf32> to vector<16x16xf32>
    %926 = arith.mulf %916, %925 : vector<16x16xf32>
    %927 = vector.broadcast %909 : vector<1x16xf32> to vector<16x16xf32>
    %928 = arith.mulf %926, %927 : vector<16x16xf32>
    %929 = vector.broadcast %910 : vector<1x16xf32> to vector<16x16xf32>
    %930 = arith.addf %928, %929 : vector<16x16xf32>
    %c96 = arith.constant 96 : index
    %c0_301 = arith.constant 0 : index
    %931 = vector.load %arg5[%c96, %c0_301] : memref<144x64xf32, #tpu.memory_space<vmem>>, vector<16x64xf32>
    %c6_302 = arith.constant 6 : index
    %c0_303 = arith.constant 0 : index
    %932 = vector.load %arg6[%c6_302, %c0_303] : memref<9x64xf32, #tpu.memory_space<vmem>>, vector<1x64xf32>
    %933 = vector.extract_strided_slice %931 {offsets = [0, 0], sizes = [16, 16], strides = [1, 1]} : vector<16x64xf32> to vector<16x16xf32>
    %cst_304 = arith.constant dense<0.000000e+00> : vector<16x16xf32>
    %934 = tpu.matmul %930, %933, %cst_304 {dimension_numbers = #tpu.dot_dimension_numbers<[1], [0], [0], [1], [0, 0, 1, 1], [], []>} : vector<16x16xf32>, vector<16x16xf32>, vector<16x16xf32> -> vector<16x16xf32>
    %935 = vector.extract_strided_slice %932 {offsets = [0, 0], sizes = [1, 16], strides = [1, 1]} : vector<1x64xf32> to vector<1x16xf32>
    %936 = vector.broadcast %935 : vector<1x16xf32> to vector<16x16xf32>
    %937 = arith.addf %934, %936 : vector<16x16xf32>
    %938 = vector.extract_strided_slice %931 {offsets = [0, 16], sizes = [16, 32], strides = [1, 1]} : vector<16x64xf32> to vector<16x32xf32>
    %cst_305 = arith.constant dense<0.000000e+00> : vector<16x32xf32>
    %939 = tpu.matmul %523, %938, %cst_305 {dimension_numbers = #tpu.dot_dimension_numbers<[1], [0], [0], [1], [0, 0, 1, 1], [], []>} : vector<16x16xf32>, vector<16x32xf32>, vector<16x32xf32> -> vector<16x32xf32>
    %940 = vector.extract_strided_slice %932 {offsets = [0, 16], sizes = [1, 32], strides = [1, 1]} : vector<1x64xf32> to vector<1x32xf32>
    %941 = vector.broadcast %940 : vector<1x32xf32> to vector<16x32xf32>
    %942 = arith.addf %939, %941 : vector<16x32xf32>
    %943 = vector.extract_strided_slice %942 {offsets = [0, 0], sizes = [16, 16], strides = [1, 1]} : vector<16x32xf32> to vector<16x16xf32>
    %944 = vector.extract_strided_slice %942 {offsets = [0, 16], sizes = [16, 16], strides = [1, 1]} : vector<16x32xf32> to vector<16x16xf32>
    %945 = vector.extract_strided_slice %931 {offsets = [0, 48], sizes = [16, 16], strides = [1, 1]} : vector<16x64xf32> to vector<16x16xf32>
    %cst_306 = arith.constant 0.000000e+00 : f32
    %946 = vector.broadcast %cst_306 : f32 to vector<16x16xf32>
    %947 = vector.extract_strided_slice %937 {offsets = [0, 0], sizes = [16, 4], strides = [1, 1]} : vector<16x16xf32> to vector<16x4xf32>
    %948 = vector.extract_strided_slice %943 {offsets = [0, 0], sizes = [16, 4], strides = [1, 1]} : vector<16x16xf32> to vector<16x4xf32>
    %949 = vector.extract_strided_slice %944 {offsets = [0, 0], sizes = [16, 4], strides = [1, 1]} : vector<16x16xf32> to vector<16x4xf32>
    %cst_307 = arith.constant dense<0.000000e+00> : vector<16x16xf32>
    %950 = tpu.matmul %947, %948, %cst_307 {dimension_numbers = #tpu.dot_dimension_numbers<[1], [1], [0], [0], [0, 0, 1, 0], [], []>} : vector<16x4xf32>, vector<16x4xf32>, vector<16x16xf32> -> vector<16x16xf32>
    %cst_308 = arith.constant 5.000000e-01 : f32
    %951 = vector.broadcast %cst_308 : f32 to vector<16x16xf32>
    %952 = arith.mulf %950, %951 : vector<16x16xf32>
    %953 = arith.addf %952, %23 : vector<16x16xf32>
    %cst_309 = arith.constant dense<0xFF800000> : vector<16xf32>
    %954 = vector.multi_reduction <maximumf>, %953, %cst_309 [1] : vector<16x16xf32> to vector<16xf32>
    %955 = vector.shape_cast %954 : vector<16xf32> to vector<16x1xf32>
    %956 = vector.broadcast %955 : vector<16x1xf32> to vector<16x16xf32>
    %957 = arith.subf %953, %956 : vector<16x16xf32>
    %958 = math.exp %957 : vector<16x16xf32>
    %cst_310 = arith.constant dense<0.000000e+00> : vector<16xf32>
    %959 = vector.multi_reduction <add>, %958, %cst_310 [1] : vector<16x16xf32> to vector<16xf32>
    %960 = vector.shape_cast %959 : vector<16xf32> to vector<16x1xf32>
    %961 = tpu.reciprocal %960 {approx = true} : vector<16x1xf32> -> vector<16x1xf32>
    %962 = vector.broadcast %961 : vector<16x1xf32> to vector<16x16xf32>
    %963 = arith.mulf %958, %962 : vector<16x16xf32>
    %cst_311 = arith.constant dense<0.000000e+00> : vector<16x4xf32>
    %964 = tpu.matmul %963, %949, %cst_311 {dimension_numbers = #tpu.dot_dimension_numbers<[1], [0], [0], [1], [0, 0, 1, 1], [], []>} : vector<16x16xf32>, vector<16x4xf32>, vector<16x4xf32> -> vector<16x4xf32>
    %965 = vector.extract_strided_slice %945 {offsets = [0, 0], sizes = [4, 16], strides = [1, 1]} : vector<16x16xf32> to vector<4x16xf32>
    %cst_312 = arith.constant dense<0.000000e+00> : vector<16x16xf32>
    %966 = tpu.matmul %964, %965, %cst_312 {dimension_numbers = #tpu.dot_dimension_numbers<[1], [0], [0], [1], [0, 0, 1, 1], [], []>} : vector<16x4xf32>, vector<4x16xf32>, vector<16x16xf32> -> vector<16x16xf32>
    %967 = arith.addf %946, %966 : vector<16x16xf32>
    %968 = vector.extract_strided_slice %937 {offsets = [0, 4], sizes = [16, 4], strides = [1, 1]} : vector<16x16xf32> to vector<16x4xf32>
    %969 = vector.extract_strided_slice %943 {offsets = [0, 4], sizes = [16, 4], strides = [1, 1]} : vector<16x16xf32> to vector<16x4xf32>
    %970 = vector.extract_strided_slice %944 {offsets = [0, 4], sizes = [16, 4], strides = [1, 1]} : vector<16x16xf32> to vector<16x4xf32>
    %cst_313 = arith.constant dense<0.000000e+00> : vector<16x16xf32>
    %971 = tpu.matmul %968, %969, %cst_313 {dimension_numbers = #tpu.dot_dimension_numbers<[1], [1], [0], [0], [0, 0, 1, 0], [], []>} : vector<16x4xf32>, vector<16x4xf32>, vector<16x16xf32> -> vector<16x16xf32>
    %cst_314 = arith.constant 5.000000e-01 : f32
    %972 = vector.broadcast %cst_314 : f32 to vector<16x16xf32>
    %973 = arith.mulf %971, %972 : vector<16x16xf32>
    %974 = arith.addf %973, %23 : vector<16x16xf32>
    %cst_315 = arith.constant dense<0xFF800000> : vector<16xf32>
    %975 = vector.multi_reduction <maximumf>, %974, %cst_315 [1] : vector<16x16xf32> to vector<16xf32>
    %976 = vector.shape_cast %975 : vector<16xf32> to vector<16x1xf32>
    %977 = vector.broadcast %976 : vector<16x1xf32> to vector<16x16xf32>
    %978 = arith.subf %974, %977 : vector<16x16xf32>
    %979 = math.exp %978 : vector<16x16xf32>
    %cst_316 = arith.constant dense<0.000000e+00> : vector<16xf32>
    %980 = vector.multi_reduction <add>, %979, %cst_316 [1] : vector<16x16xf32> to vector<16xf32>
    %981 = vector.shape_cast %980 : vector<16xf32> to vector<16x1xf32>
    %982 = tpu.reciprocal %981 {approx = true} : vector<16x1xf32> -> vector<16x1xf32>
    %983 = vector.broadcast %982 : vector<16x1xf32> to vector<16x16xf32>
    %984 = arith.mulf %979, %983 : vector<16x16xf32>
    %cst_317 = arith.constant dense<0.000000e+00> : vector<16x4xf32>
    %985 = tpu.matmul %984, %970, %cst_317 {dimension_numbers = #tpu.dot_dimension_numbers<[1], [0], [0], [1], [0, 0, 1, 1], [], []>} : vector<16x16xf32>, vector<16x4xf32>, vector<16x4xf32> -> vector<16x4xf32>
    %986 = vector.extract_strided_slice %945 {offsets = [4, 0], sizes = [4, 16], strides = [1, 1]} : vector<16x16xf32> to vector<4x16xf32>
    %cst_318 = arith.constant dense<0.000000e+00> : vector<16x16xf32>
    %987 = tpu.matmul %985, %986, %cst_318 {dimension_numbers = #tpu.dot_dimension_numbers<[1], [0], [0], [1], [0, 0, 1, 1], [], []>} : vector<16x4xf32>, vector<4x16xf32>, vector<16x16xf32> -> vector<16x16xf32>
    %988 = arith.addf %967, %987 : vector<16x16xf32>
    %989 = vector.extract_strided_slice %937 {offsets = [0, 8], sizes = [16, 4], strides = [1, 1]} : vector<16x16xf32> to vector<16x4xf32>
    %990 = vector.extract_strided_slice %943 {offsets = [0, 8], sizes = [16, 4], strides = [1, 1]} : vector<16x16xf32> to vector<16x4xf32>
    %991 = vector.extract_strided_slice %944 {offsets = [0, 8], sizes = [16, 4], strides = [1, 1]} : vector<16x16xf32> to vector<16x4xf32>
    %cst_319 = arith.constant dense<0.000000e+00> : vector<16x16xf32>
    %992 = tpu.matmul %989, %990, %cst_319 {dimension_numbers = #tpu.dot_dimension_numbers<[1], [1], [0], [0], [0, 0, 1, 0], [], []>} : vector<16x4xf32>, vector<16x4xf32>, vector<16x16xf32> -> vector<16x16xf32>
    %cst_320 = arith.constant 5.000000e-01 : f32
    %993 = vector.broadcast %cst_320 : f32 to vector<16x16xf32>
    %994 = arith.mulf %992, %993 : vector<16x16xf32>
    %995 = arith.addf %994, %23 : vector<16x16xf32>
    %cst_321 = arith.constant dense<0xFF800000> : vector<16xf32>
    %996 = vector.multi_reduction <maximumf>, %995, %cst_321 [1] : vector<16x16xf32> to vector<16xf32>
    %997 = vector.shape_cast %996 : vector<16xf32> to vector<16x1xf32>
    %998 = vector.broadcast %997 : vector<16x1xf32> to vector<16x16xf32>
    %999 = arith.subf %995, %998 : vector<16x16xf32>
    %1000 = math.exp %999 : vector<16x16xf32>
    %cst_322 = arith.constant dense<0.000000e+00> : vector<16xf32>
    %1001 = vector.multi_reduction <add>, %1000, %cst_322 [1] : vector<16x16xf32> to vector<16xf32>
    %1002 = vector.shape_cast %1001 : vector<16xf32> to vector<16x1xf32>
    %1003 = tpu.reciprocal %1002 {approx = true} : vector<16x1xf32> -> vector<16x1xf32>
    %1004 = vector.broadcast %1003 : vector<16x1xf32> to vector<16x16xf32>
    %1005 = arith.mulf %1000, %1004 : vector<16x16xf32>
    %cst_323 = arith.constant dense<0.000000e+00> : vector<16x4xf32>
    %1006 = tpu.matmul %1005, %991, %cst_323 {dimension_numbers = #tpu.dot_dimension_numbers<[1], [0], [0], [1], [0, 0, 1, 1], [], []>} : vector<16x16xf32>, vector<16x4xf32>, vector<16x4xf32> -> vector<16x4xf32>
    %1007 = vector.extract_strided_slice %945 {offsets = [8, 0], sizes = [4, 16], strides = [1, 1]} : vector<16x16xf32> to vector<4x16xf32>
    %cst_324 = arith.constant dense<0.000000e+00> : vector<16x16xf32>
    %1008 = tpu.matmul %1006, %1007, %cst_324 {dimension_numbers = #tpu.dot_dimension_numbers<[1], [0], [0], [1], [0, 0, 1, 1], [], []>} : vector<16x4xf32>, vector<4x16xf32>, vector<16x16xf32> -> vector<16x16xf32>
    %1009 = arith.addf %988, %1008 : vector<16x16xf32>
    %1010 = vector.extract_strided_slice %937 {offsets = [0, 12], sizes = [16, 4], strides = [1, 1]} : vector<16x16xf32> to vector<16x4xf32>
    %1011 = vector.extract_strided_slice %943 {offsets = [0, 12], sizes = [16, 4], strides = [1, 1]} : vector<16x16xf32> to vector<16x4xf32>
    %1012 = vector.extract_strided_slice %944 {offsets = [0, 12], sizes = [16, 4], strides = [1, 1]} : vector<16x16xf32> to vector<16x4xf32>
    %cst_325 = arith.constant dense<0.000000e+00> : vector<16x16xf32>
    %1013 = tpu.matmul %1010, %1011, %cst_325 {dimension_numbers = #tpu.dot_dimension_numbers<[1], [1], [0], [0], [0, 0, 1, 0], [], []>} : vector<16x4xf32>, vector<16x4xf32>, vector<16x16xf32> -> vector<16x16xf32>
    %cst_326 = arith.constant 5.000000e-01 : f32
    %1014 = vector.broadcast %cst_326 : f32 to vector<16x16xf32>
    %1015 = arith.mulf %1013, %1014 : vector<16x16xf32>
    %1016 = arith.addf %1015, %23 : vector<16x16xf32>
    %cst_327 = arith.constant dense<0xFF800000> : vector<16xf32>
    %1017 = vector.multi_reduction <maximumf>, %1016, %cst_327 [1] : vector<16x16xf32> to vector<16xf32>
    %1018 = vector.shape_cast %1017 : vector<16xf32> to vector<16x1xf32>
    %1019 = vector.broadcast %1018 : vector<16x1xf32> to vector<16x16xf32>
    %1020 = arith.subf %1016, %1019 : vector<16x16xf32>
    %1021 = math.exp %1020 : vector<16x16xf32>
    %cst_328 = arith.constant dense<0.000000e+00> : vector<16xf32>
    %1022 = vector.multi_reduction <add>, %1021, %cst_328 [1] : vector<16x16xf32> to vector<16xf32>
    %1023 = vector.shape_cast %1022 : vector<16xf32> to vector<16x1xf32>
    %1024 = tpu.reciprocal %1023 {approx = true} : vector<16x1xf32> -> vector<16x1xf32>
    %1025 = vector.broadcast %1024 : vector<16x1xf32> to vector<16x16xf32>
    %1026 = arith.mulf %1021, %1025 : vector<16x16xf32>
    %cst_329 = arith.constant dense<0.000000e+00> : vector<16x4xf32>
    %1027 = tpu.matmul %1026, %1012, %cst_329 {dimension_numbers = #tpu.dot_dimension_numbers<[1], [0], [0], [1], [0, 0, 1, 1], [], []>} : vector<16x16xf32>, vector<16x4xf32>, vector<16x4xf32> -> vector<16x4xf32>
    %1028 = vector.extract_strided_slice %945 {offsets = [12, 0], sizes = [4, 16], strides = [1, 1]} : vector<16x16xf32> to vector<4x16xf32>
    %cst_330 = arith.constant dense<0.000000e+00> : vector<16x16xf32>
    %1029 = tpu.matmul %1027, %1028, %cst_330 {dimension_numbers = #tpu.dot_dimension_numbers<[1], [0], [0], [1], [0, 0, 1, 1], [], []>} : vector<16x4xf32>, vector<4x16xf32>, vector<16x16xf32> -> vector<16x16xf32>
    %1030 = arith.addf %1009, %1029 : vector<16x16xf32>
    %1031 = vector.extract_strided_slice %932 {offsets = [0, 48], sizes = [1, 16], strides = [1, 1]} : vector<1x64xf32> to vector<1x16xf32>
    %1032 = vector.broadcast %1031 : vector<1x16xf32> to vector<16x16xf32>
    %1033 = arith.addf %1030, %1032 : vector<16x16xf32>
    %1034 = arith.addf %930, %1033 : vector<16x16xf32>
    %c11 = arith.constant 11 : index
    %c0_331 = arith.constant 0 : index
    %1035 = vector.load %arg9[%c11, %c0_331] : memref<17x32xf32, #tpu.memory_space<vmem>>, vector<1x16xf32>
    %c11_332 = arith.constant 11 : index
    %c16_333 = arith.constant 16 : index
    %1036 = vector.load %arg9[%c11_332, %c16_333] : memref<17x32xf32, #tpu.memory_space<vmem>>, vector<1x16xf32>
    %cst_334 = arith.constant dense<0.000000e+00> : vector<16xf32>
    %1037 = vector.multi_reduction <add>, %1034, %cst_334 [1] : vector<16x16xf32> to vector<16xf32>
    %1038 = vector.shape_cast %1037 : vector<16xf32> to vector<16x1xf32>
    %cst_335 = arith.constant 1.600000e+01 : f32
    %1039 = vector.broadcast %cst_335 : f32 to vector<16x1xf32>
    %1040 = arith.divf %1038, %1039 : vector<16x1xf32>
    %1041 = vector.broadcast %1040 : vector<16x1xf32> to vector<16x16xf32>
    %1042 = arith.subf %1034, %1041 : vector<16x16xf32>
    %1043 = arith.mulf %1042, %1042 : vector<16x16xf32>
    %cst_336 = arith.constant dense<0.000000e+00> : vector<16xf32>
    %1044 = vector.multi_reduction <add>, %1043, %cst_336 [1] : vector<16x16xf32> to vector<16xf32>
    %1045 = vector.shape_cast %1044 : vector<16xf32> to vector<16x1xf32>
    %cst_337 = arith.constant 1.600000e+01 : f32
    %1046 = vector.broadcast %cst_337 : f32 to vector<16x1xf32>
    %1047 = arith.divf %1045, %1046 : vector<16x1xf32>
    %cst_338 = arith.constant 9.99999974E-6 : f32
    %1048 = vector.broadcast %cst_338 : f32 to vector<16x1xf32>
    %1049 = arith.addf %1047, %1048 : vector<16x1xf32>
    %1050 = math.rsqrt %1049 : vector<16x1xf32>
    %1051 = vector.broadcast %1050 : vector<16x1xf32> to vector<16x16xf32>
    %1052 = arith.mulf %1042, %1051 : vector<16x16xf32>
    %1053 = vector.broadcast %1035 : vector<1x16xf32> to vector<16x16xf32>
    %1054 = arith.mulf %1052, %1053 : vector<16x16xf32>
    %1055 = vector.broadcast %1036 : vector<1x16xf32> to vector<16x16xf32>
    %1056 = arith.addf %1054, %1055 : vector<16x16xf32>
    %c64_339 = arith.constant 64 : index
    %c0_340 = arith.constant 0 : index
    %1057 = vector.load %arg7[%c64_339, %c0_340] : memref<96x64xf32, #tpu.memory_space<vmem>>, vector<16x64xf32>
    %c4_341 = arith.constant 4 : index
    %c0_342 = arith.constant 0 : index
    %1058 = vector.load %arg8[%c4_341, %c0_342] : memref<6x48xf32, #tpu.memory_space<vmem>>, vector<1x48xf32>
    %1059 = vector.extract_strided_slice %1057 {offsets = [0, 0], sizes = [16, 32], strides = [1, 1]} : vector<16x64xf32> to vector<16x32xf32>
    %cst_343 = arith.constant dense<0.000000e+00> : vector<16x32xf32>
    %1060 = tpu.matmul %1056, %1059, %cst_343 {dimension_numbers = #tpu.dot_dimension_numbers<[1], [0], [0], [1], [0, 0, 1, 1], [], []>} : vector<16x16xf32>, vector<16x32xf32>, vector<16x32xf32> -> vector<16x32xf32>
    %1061 = vector.extract_strided_slice %1058 {offsets = [0, 0], sizes = [1, 32], strides = [1, 1]} : vector<1x48xf32> to vector<1x32xf32>
    %1062 = vector.broadcast %1061 : vector<1x32xf32> to vector<16x32xf32>
    %1063 = arith.addf %1060, %1062 : vector<16x32xf32>
    %cst_344 = arith.constant 0.000000e+00 : f32
    %1064 = vector.broadcast %cst_344 : f32 to vector<16x32xf32>
    %1065 = arith.maximumf %1063, %1064 : vector<16x32xf32>
    %1066 = vector.extract_strided_slice %1057 {offsets = [0, 32], sizes = [16, 32], strides = [1, 1]} : vector<16x64xf32> to vector<16x32xf32>
    %cst_345 = arith.constant dense<0.000000e+00> : vector<16x16xf32>
    %1067 = tpu.matmul %1065, %1066, %cst_345 {dimension_numbers = #tpu.dot_dimension_numbers<[1], [1], [0], [0], [0, 0, 1, 0], [], []>} : vector<16x32xf32>, vector<16x32xf32>, vector<16x16xf32> -> vector<16x16xf32>
    %1068 = vector.extract_strided_slice %1058 {offsets = [0, 32], sizes = [1, 16], strides = [1, 1]} : vector<1x48xf32> to vector<1x16xf32>
    %1069 = vector.broadcast %1068 : vector<1x16xf32> to vector<16x16xf32>
    %1070 = arith.addf %1067, %1069 : vector<16x16xf32>
    %1071 = arith.addf %1056, %1070 : vector<16x16xf32>
    %c12 = arith.constant 12 : index
    %c0_346 = arith.constant 0 : index
    %1072 = vector.load %arg9[%c12, %c0_346] : memref<17x32xf32, #tpu.memory_space<vmem>>, vector<1x16xf32>
    %c12_347 = arith.constant 12 : index
    %c16_348 = arith.constant 16 : index
    %1073 = vector.load %arg9[%c12_347, %c16_348] : memref<17x32xf32, #tpu.memory_space<vmem>>, vector<1x16xf32>
    %cst_349 = arith.constant dense<0.000000e+00> : vector<16xf32>
    %1074 = vector.multi_reduction <add>, %1071, %cst_349 [1] : vector<16x16xf32> to vector<16xf32>
    %1075 = vector.shape_cast %1074 : vector<16xf32> to vector<16x1xf32>
    %cst_350 = arith.constant 1.600000e+01 : f32
    %1076 = vector.broadcast %cst_350 : f32 to vector<16x1xf32>
    %1077 = arith.divf %1075, %1076 : vector<16x1xf32>
    %1078 = vector.broadcast %1077 : vector<16x1xf32> to vector<16x16xf32>
    %1079 = arith.subf %1071, %1078 : vector<16x16xf32>
    %1080 = arith.mulf %1079, %1079 : vector<16x16xf32>
    %cst_351 = arith.constant dense<0.000000e+00> : vector<16xf32>
    %1081 = vector.multi_reduction <add>, %1080, %cst_351 [1] : vector<16x16xf32> to vector<16xf32>
    %1082 = vector.shape_cast %1081 : vector<16xf32> to vector<16x1xf32>
    %cst_352 = arith.constant 1.600000e+01 : f32
    %1083 = vector.broadcast %cst_352 : f32 to vector<16x1xf32>
    %1084 = arith.divf %1082, %1083 : vector<16x1xf32>
    %cst_353 = arith.constant 9.99999974E-6 : f32
    %1085 = vector.broadcast %cst_353 : f32 to vector<16x1xf32>
    %1086 = arith.addf %1084, %1085 : vector<16x1xf32>
    %1087 = math.rsqrt %1086 : vector<16x1xf32>
    %1088 = vector.broadcast %1087 : vector<16x1xf32> to vector<16x16xf32>
    %1089 = arith.mulf %1079, %1088 : vector<16x16xf32>
    %1090 = vector.broadcast %1072 : vector<1x16xf32> to vector<16x16xf32>
    %1091 = arith.mulf %1089, %1090 : vector<16x16xf32>
    %1092 = vector.broadcast %1073 : vector<1x16xf32> to vector<16x16xf32>
    %1093 = arith.addf %1091, %1092 : vector<16x16xf32>
    %c112 = arith.constant 112 : index
    %c0_354 = arith.constant 0 : index
    %1094 = vector.load %arg5[%c112, %c0_354] : memref<144x64xf32, #tpu.memory_space<vmem>>, vector<16x64xf32>
    %c7_355 = arith.constant 7 : index
    %c0_356 = arith.constant 0 : index
    %1095 = vector.load %arg6[%c7_355, %c0_356] : memref<9x64xf32, #tpu.memory_space<vmem>>, vector<1x64xf32>
    %1096 = vector.extract_strided_slice %1094 {offsets = [0, 0], sizes = [16, 48], strides = [1, 1]} : vector<16x64xf32> to vector<16x48xf32>
    %cst_357 = arith.constant dense<0.000000e+00> : vector<16x48xf32>
    %1097 = tpu.matmul %1093, %1096, %cst_357 {dimension_numbers = #tpu.dot_dimension_numbers<[1], [0], [0], [1], [0, 0, 1, 1], [], []>} : vector<16x16xf32>, vector<16x48xf32>, vector<16x48xf32> -> vector<16x48xf32>
    %1098 = vector.extract_strided_slice %1095 {offsets = [0, 0], sizes = [1, 48], strides = [1, 1]} : vector<1x64xf32> to vector<1x48xf32>
    %1099 = vector.broadcast %1098 : vector<1x48xf32> to vector<16x48xf32>
    %1100 = arith.addf %1097, %1099 : vector<16x48xf32>
    %1101 = vector.extract_strided_slice %1100 {offsets = [0, 0], sizes = [16, 16], strides = [1, 1]} : vector<16x48xf32> to vector<16x16xf32>
    %1102 = vector.extract_strided_slice %1100 {offsets = [0, 16], sizes = [16, 16], strides = [1, 1]} : vector<16x48xf32> to vector<16x16xf32>
    %1103 = vector.extract_strided_slice %1100 {offsets = [0, 32], sizes = [16, 16], strides = [1, 1]} : vector<16x48xf32> to vector<16x16xf32>
    %1104 = vector.extract_strided_slice %1094 {offsets = [0, 48], sizes = [16, 16], strides = [1, 1]} : vector<16x64xf32> to vector<16x16xf32>
    %cst_358 = arith.constant 0.000000e+00 : f32
    %1105 = vector.broadcast %cst_358 : f32 to vector<16x16xf32>
    %1106 = vector.extract_strided_slice %1101 {offsets = [0, 0], sizes = [16, 4], strides = [1, 1]} : vector<16x16xf32> to vector<16x4xf32>
    %1107 = vector.extract_strided_slice %1102 {offsets = [0, 0], sizes = [16, 4], strides = [1, 1]} : vector<16x16xf32> to vector<16x4xf32>
    %1108 = vector.extract_strided_slice %1103 {offsets = [0, 0], sizes = [16, 4], strides = [1, 1]} : vector<16x16xf32> to vector<16x4xf32>
    %cst_359 = arith.constant dense<0.000000e+00> : vector<16x16xf32>
    %1109 = tpu.matmul %1106, %1107, %cst_359 {dimension_numbers = #tpu.dot_dimension_numbers<[1], [1], [0], [0], [0, 0, 1, 0], [], []>} : vector<16x4xf32>, vector<16x4xf32>, vector<16x16xf32> -> vector<16x16xf32>
    %cst_360 = arith.constant 5.000000e-01 : f32
    %1110 = vector.broadcast %cst_360 : f32 to vector<16x16xf32>
    %1111 = arith.mulf %1109, %1110 : vector<16x16xf32>
    %1112 = arith.addf %1111, %24 : vector<16x16xf32>
    %cst_361 = arith.constant dense<0xFF800000> : vector<16xf32>
    %1113 = vector.multi_reduction <maximumf>, %1112, %cst_361 [1] : vector<16x16xf32> to vector<16xf32>
    %1114 = vector.shape_cast %1113 : vector<16xf32> to vector<16x1xf32>
    %1115 = vector.broadcast %1114 : vector<16x1xf32> to vector<16x16xf32>
    %1116 = arith.subf %1112, %1115 : vector<16x16xf32>
    %1117 = math.exp %1116 : vector<16x16xf32>
    %cst_362 = arith.constant dense<0.000000e+00> : vector<16xf32>
    %1118 = vector.multi_reduction <add>, %1117, %cst_362 [1] : vector<16x16xf32> to vector<16xf32>
    %1119 = vector.shape_cast %1118 : vector<16xf32> to vector<16x1xf32>
    %1120 = tpu.reciprocal %1119 {approx = true} : vector<16x1xf32> -> vector<16x1xf32>
    %1121 = vector.broadcast %1120 : vector<16x1xf32> to vector<16x16xf32>
    %1122 = arith.mulf %1117, %1121 : vector<16x16xf32>
    %cst_363 = arith.constant dense<0.000000e+00> : vector<16x4xf32>
    %1123 = tpu.matmul %1122, %1108, %cst_363 {dimension_numbers = #tpu.dot_dimension_numbers<[1], [0], [0], [1], [0, 0, 1, 1], [], []>} : vector<16x16xf32>, vector<16x4xf32>, vector<16x4xf32> -> vector<16x4xf32>
    %1124 = vector.extract_strided_slice %1104 {offsets = [0, 0], sizes = [4, 16], strides = [1, 1]} : vector<16x16xf32> to vector<4x16xf32>
    %cst_364 = arith.constant dense<0.000000e+00> : vector<16x16xf32>
    %1125 = tpu.matmul %1123, %1124, %cst_364 {dimension_numbers = #tpu.dot_dimension_numbers<[1], [0], [0], [1], [0, 0, 1, 1], [], []>} : vector<16x4xf32>, vector<4x16xf32>, vector<16x16xf32> -> vector<16x16xf32>
    %1126 = arith.addf %1105, %1125 : vector<16x16xf32>
    %1127 = vector.extract_strided_slice %1101 {offsets = [0, 4], sizes = [16, 4], strides = [1, 1]} : vector<16x16xf32> to vector<16x4xf32>
    %1128 = vector.extract_strided_slice %1102 {offsets = [0, 4], sizes = [16, 4], strides = [1, 1]} : vector<16x16xf32> to vector<16x4xf32>
    %1129 = vector.extract_strided_slice %1103 {offsets = [0, 4], sizes = [16, 4], strides = [1, 1]} : vector<16x16xf32> to vector<16x4xf32>
    %cst_365 = arith.constant dense<0.000000e+00> : vector<16x16xf32>
    %1130 = tpu.matmul %1127, %1128, %cst_365 {dimension_numbers = #tpu.dot_dimension_numbers<[1], [1], [0], [0], [0, 0, 1, 0], [], []>} : vector<16x4xf32>, vector<16x4xf32>, vector<16x16xf32> -> vector<16x16xf32>
    %cst_366 = arith.constant 5.000000e-01 : f32
    %1131 = vector.broadcast %cst_366 : f32 to vector<16x16xf32>
    %1132 = arith.mulf %1130, %1131 : vector<16x16xf32>
    %1133 = arith.addf %1132, %24 : vector<16x16xf32>
    %cst_367 = arith.constant dense<0xFF800000> : vector<16xf32>
    %1134 = vector.multi_reduction <maximumf>, %1133, %cst_367 [1] : vector<16x16xf32> to vector<16xf32>
    %1135 = vector.shape_cast %1134 : vector<16xf32> to vector<16x1xf32>
    %1136 = vector.broadcast %1135 : vector<16x1xf32> to vector<16x16xf32>
    %1137 = arith.subf %1133, %1136 : vector<16x16xf32>
    %1138 = math.exp %1137 : vector<16x16xf32>
    %cst_368 = arith.constant dense<0.000000e+00> : vector<16xf32>
    %1139 = vector.multi_reduction <add>, %1138, %cst_368 [1] : vector<16x16xf32> to vector<16xf32>
    %1140 = vector.shape_cast %1139 : vector<16xf32> to vector<16x1xf32>
    %1141 = tpu.reciprocal %1140 {approx = true} : vector<16x1xf32> -> vector<16x1xf32>
    %1142 = vector.broadcast %1141 : vector<16x1xf32> to vector<16x16xf32>
    %1143 = arith.mulf %1138, %1142 : vector<16x16xf32>
    %cst_369 = arith.constant dense<0.000000e+00> : vector<16x4xf32>
    %1144 = tpu.matmul %1143, %1129, %cst_369 {dimension_numbers = #tpu.dot_dimension_numbers<[1], [0], [0], [1], [0, 0, 1, 1], [], []>} : vector<16x16xf32>, vector<16x4xf32>, vector<16x4xf32> -> vector<16x4xf32>
    %1145 = vector.extract_strided_slice %1104 {offsets = [4, 0], sizes = [4, 16], strides = [1, 1]} : vector<16x16xf32> to vector<4x16xf32>
    %cst_370 = arith.constant dense<0.000000e+00> : vector<16x16xf32>
    %1146 = tpu.matmul %1144, %1145, %cst_370 {dimension_numbers = #tpu.dot_dimension_numbers<[1], [0], [0], [1], [0, 0, 1, 1], [], []>} : vector<16x4xf32>, vector<4x16xf32>, vector<16x16xf32> -> vector<16x16xf32>
    %1147 = arith.addf %1126, %1146 : vector<16x16xf32>
    %1148 = vector.extract_strided_slice %1101 {offsets = [0, 8], sizes = [16, 4], strides = [1, 1]} : vector<16x16xf32> to vector<16x4xf32>
    %1149 = vector.extract_strided_slice %1102 {offsets = [0, 8], sizes = [16, 4], strides = [1, 1]} : vector<16x16xf32> to vector<16x4xf32>
    %1150 = vector.extract_strided_slice %1103 {offsets = [0, 8], sizes = [16, 4], strides = [1, 1]} : vector<16x16xf32> to vector<16x4xf32>
    %cst_371 = arith.constant dense<0.000000e+00> : vector<16x16xf32>
    %1151 = tpu.matmul %1148, %1149, %cst_371 {dimension_numbers = #tpu.dot_dimension_numbers<[1], [1], [0], [0], [0, 0, 1, 0], [], []>} : vector<16x4xf32>, vector<16x4xf32>, vector<16x16xf32> -> vector<16x16xf32>
    %cst_372 = arith.constant 5.000000e-01 : f32
    %1152 = vector.broadcast %cst_372 : f32 to vector<16x16xf32>
    %1153 = arith.mulf %1151, %1152 : vector<16x16xf32>
    %1154 = arith.addf %1153, %24 : vector<16x16xf32>
    %cst_373 = arith.constant dense<0xFF800000> : vector<16xf32>
    %1155 = vector.multi_reduction <maximumf>, %1154, %cst_373 [1] : vector<16x16xf32> to vector<16xf32>
    %1156 = vector.shape_cast %1155 : vector<16xf32> to vector<16x1xf32>
    %1157 = vector.broadcast %1156 : vector<16x1xf32> to vector<16x16xf32>
    %1158 = arith.subf %1154, %1157 : vector<16x16xf32>
    %1159 = math.exp %1158 : vector<16x16xf32>
    %cst_374 = arith.constant dense<0.000000e+00> : vector<16xf32>
    %1160 = vector.multi_reduction <add>, %1159, %cst_374 [1] : vector<16x16xf32> to vector<16xf32>
    %1161 = vector.shape_cast %1160 : vector<16xf32> to vector<16x1xf32>
    %1162 = tpu.reciprocal %1161 {approx = true} : vector<16x1xf32> -> vector<16x1xf32>
    %1163 = vector.broadcast %1162 : vector<16x1xf32> to vector<16x16xf32>
    %1164 = arith.mulf %1159, %1163 : vector<16x16xf32>
    %cst_375 = arith.constant dense<0.000000e+00> : vector<16x4xf32>
    %1165 = tpu.matmul %1164, %1150, %cst_375 {dimension_numbers = #tpu.dot_dimension_numbers<[1], [0], [0], [1], [0, 0, 1, 1], [], []>} : vector<16x16xf32>, vector<16x4xf32>, vector<16x4xf32> -> vector<16x4xf32>
    %1166 = vector.extract_strided_slice %1104 {offsets = [8, 0], sizes = [4, 16], strides = [1, 1]} : vector<16x16xf32> to vector<4x16xf32>
    %cst_376 = arith.constant dense<0.000000e+00> : vector<16x16xf32>
    %1167 = tpu.matmul %1165, %1166, %cst_376 {dimension_numbers = #tpu.dot_dimension_numbers<[1], [0], [0], [1], [0, 0, 1, 1], [], []>} : vector<16x4xf32>, vector<4x16xf32>, vector<16x16xf32> -> vector<16x16xf32>
    %1168 = arith.addf %1147, %1167 : vector<16x16xf32>
    %1169 = vector.extract_strided_slice %1101 {offsets = [0, 12], sizes = [16, 4], strides = [1, 1]} : vector<16x16xf32> to vector<16x4xf32>
    %1170 = vector.extract_strided_slice %1102 {offsets = [0, 12], sizes = [16, 4], strides = [1, 1]} : vector<16x16xf32> to vector<16x4xf32>
    %1171 = vector.extract_strided_slice %1103 {offsets = [0, 12], sizes = [16, 4], strides = [1, 1]} : vector<16x16xf32> to vector<16x4xf32>
    %cst_377 = arith.constant dense<0.000000e+00> : vector<16x16xf32>
    %1172 = tpu.matmul %1169, %1170, %cst_377 {dimension_numbers = #tpu.dot_dimension_numbers<[1], [1], [0], [0], [0, 0, 1, 0], [], []>} : vector<16x4xf32>, vector<16x4xf32>, vector<16x16xf32> -> vector<16x16xf32>
    %cst_378 = arith.constant 5.000000e-01 : f32
    %1173 = vector.broadcast %cst_378 : f32 to vector<16x16xf32>
    %1174 = arith.mulf %1172, %1173 : vector<16x16xf32>
    %1175 = arith.addf %1174, %24 : vector<16x16xf32>
    %cst_379 = arith.constant dense<0xFF800000> : vector<16xf32>
    %1176 = vector.multi_reduction <maximumf>, %1175, %cst_379 [1] : vector<16x16xf32> to vector<16xf32>
    %1177 = vector.shape_cast %1176 : vector<16xf32> to vector<16x1xf32>
    %1178 = vector.broadcast %1177 : vector<16x1xf32> to vector<16x16xf32>
    %1179 = arith.subf %1175, %1178 : vector<16x16xf32>
    %1180 = math.exp %1179 : vector<16x16xf32>
    %cst_380 = arith.constant dense<0.000000e+00> : vector<16xf32>
    %1181 = vector.multi_reduction <add>, %1180, %cst_380 [1] : vector<16x16xf32> to vector<16xf32>
    %1182 = vector.shape_cast %1181 : vector<16xf32> to vector<16x1xf32>
    %1183 = tpu.reciprocal %1182 {approx = true} : vector<16x1xf32> -> vector<16x1xf32>
    %1184 = vector.broadcast %1183 : vector<16x1xf32> to vector<16x16xf32>
    %1185 = arith.mulf %1180, %1184 : vector<16x16xf32>
    %cst_381 = arith.constant dense<0.000000e+00> : vector<16x4xf32>
    %1186 = tpu.matmul %1185, %1171, %cst_381 {dimension_numbers = #tpu.dot_dimension_numbers<[1], [0], [0], [1], [0, 0, 1, 1], [], []>} : vector<16x16xf32>, vector<16x4xf32>, vector<16x4xf32> -> vector<16x4xf32>
    %1187 = vector.extract_strided_slice %1104 {offsets = [12, 0], sizes = [4, 16], strides = [1, 1]} : vector<16x16xf32> to vector<4x16xf32>
    %cst_382 = arith.constant dense<0.000000e+00> : vector<16x16xf32>
    %1188 = tpu.matmul %1186, %1187, %cst_382 {dimension_numbers = #tpu.dot_dimension_numbers<[1], [0], [0], [1], [0, 0, 1, 1], [], []>} : vector<16x4xf32>, vector<4x16xf32>, vector<16x16xf32> -> vector<16x16xf32>
    %1189 = arith.addf %1168, %1188 : vector<16x16xf32>
    %1190 = vector.extract_strided_slice %1095 {offsets = [0, 48], sizes = [1, 16], strides = [1, 1]} : vector<1x64xf32> to vector<1x16xf32>
    %1191 = vector.broadcast %1190 : vector<1x16xf32> to vector<16x16xf32>
    %1192 = arith.addf %1189, %1191 : vector<16x16xf32>
    %1193 = arith.addf %1093, %1192 : vector<16x16xf32>
    %c13 = arith.constant 13 : index
    %c0_383 = arith.constant 0 : index
    %1194 = vector.load %arg9[%c13, %c0_383] : memref<17x32xf32, #tpu.memory_space<vmem>>, vector<1x16xf32>
    %c13_384 = arith.constant 13 : index
    %c16_385 = arith.constant 16 : index
    %1195 = vector.load %arg9[%c13_384, %c16_385] : memref<17x32xf32, #tpu.memory_space<vmem>>, vector<1x16xf32>
    %cst_386 = arith.constant dense<0.000000e+00> : vector<16xf32>
    %1196 = vector.multi_reduction <add>, %1193, %cst_386 [1] : vector<16x16xf32> to vector<16xf32>
    %1197 = vector.shape_cast %1196 : vector<16xf32> to vector<16x1xf32>
    %cst_387 = arith.constant 1.600000e+01 : f32
    %1198 = vector.broadcast %cst_387 : f32 to vector<16x1xf32>
    %1199 = arith.divf %1197, %1198 : vector<16x1xf32>
    %1200 = vector.broadcast %1199 : vector<16x1xf32> to vector<16x16xf32>
    %1201 = arith.subf %1193, %1200 : vector<16x16xf32>
    %1202 = arith.mulf %1201, %1201 : vector<16x16xf32>
    %cst_388 = arith.constant dense<0.000000e+00> : vector<16xf32>
    %1203 = vector.multi_reduction <add>, %1202, %cst_388 [1] : vector<16x16xf32> to vector<16xf32>
    %1204 = vector.shape_cast %1203 : vector<16xf32> to vector<16x1xf32>
    %cst_389 = arith.constant 1.600000e+01 : f32
    %1205 = vector.broadcast %cst_389 : f32 to vector<16x1xf32>
    %1206 = arith.divf %1204, %1205 : vector<16x1xf32>
    %cst_390 = arith.constant 9.99999974E-6 : f32
    %1207 = vector.broadcast %cst_390 : f32 to vector<16x1xf32>
    %1208 = arith.addf %1206, %1207 : vector<16x1xf32>
    %1209 = math.rsqrt %1208 : vector<16x1xf32>
    %1210 = vector.broadcast %1209 : vector<16x1xf32> to vector<16x16xf32>
    %1211 = arith.mulf %1201, %1210 : vector<16x16xf32>
    %1212 = vector.broadcast %1194 : vector<1x16xf32> to vector<16x16xf32>
    %1213 = arith.mulf %1211, %1212 : vector<16x16xf32>
    %1214 = vector.broadcast %1195 : vector<1x16xf32> to vector<16x16xf32>
    %1215 = arith.addf %1213, %1214 : vector<16x16xf32>
    %c128 = arith.constant 128 : index
    %c0_391 = arith.constant 0 : index
    %1216 = vector.load %arg5[%c128, %c0_391] : memref<144x64xf32, #tpu.memory_space<vmem>>, vector<16x64xf32>
    %c8_392 = arith.constant 8 : index
    %c0_393 = arith.constant 0 : index
    %1217 = vector.load %arg6[%c8_392, %c0_393] : memref<9x64xf32, #tpu.memory_space<vmem>>, vector<1x64xf32>
    %1218 = vector.extract_strided_slice %1216 {offsets = [0, 0], sizes = [16, 16], strides = [1, 1]} : vector<16x64xf32> to vector<16x16xf32>
    %cst_394 = arith.constant dense<0.000000e+00> : vector<16x16xf32>
    %1219 = tpu.matmul %1215, %1218, %cst_394 {dimension_numbers = #tpu.dot_dimension_numbers<[1], [0], [0], [1], [0, 0, 1, 1], [], []>} : vector<16x16xf32>, vector<16x16xf32>, vector<16x16xf32> -> vector<16x16xf32>
    %1220 = vector.extract_strided_slice %1217 {offsets = [0, 0], sizes = [1, 16], strides = [1, 1]} : vector<1x64xf32> to vector<1x16xf32>
    %1221 = vector.broadcast %1220 : vector<1x16xf32> to vector<16x16xf32>
    %1222 = arith.addf %1219, %1221 : vector<16x16xf32>
    %1223 = vector.extract_strided_slice %1216 {offsets = [0, 16], sizes = [16, 32], strides = [1, 1]} : vector<16x64xf32> to vector<16x32xf32>
    %cst_395 = arith.constant dense<0.000000e+00> : vector<16x32xf32>
    %1224 = tpu.matmul %523, %1223, %cst_395 {dimension_numbers = #tpu.dot_dimension_numbers<[1], [0], [0], [1], [0, 0, 1, 1], [], []>} : vector<16x16xf32>, vector<16x32xf32>, vector<16x32xf32> -> vector<16x32xf32>
    %1225 = vector.extract_strided_slice %1217 {offsets = [0, 16], sizes = [1, 32], strides = [1, 1]} : vector<1x64xf32> to vector<1x32xf32>
    %1226 = vector.broadcast %1225 : vector<1x32xf32> to vector<16x32xf32>
    %1227 = arith.addf %1224, %1226 : vector<16x32xf32>
    %1228 = vector.extract_strided_slice %1227 {offsets = [0, 0], sizes = [16, 16], strides = [1, 1]} : vector<16x32xf32> to vector<16x16xf32>
    %1229 = vector.extract_strided_slice %1227 {offsets = [0, 16], sizes = [16, 16], strides = [1, 1]} : vector<16x32xf32> to vector<16x16xf32>
    %1230 = vector.extract_strided_slice %1216 {offsets = [0, 48], sizes = [16, 16], strides = [1, 1]} : vector<16x64xf32> to vector<16x16xf32>
    %cst_396 = arith.constant 0.000000e+00 : f32
    %1231 = vector.broadcast %cst_396 : f32 to vector<16x16xf32>
    %1232 = vector.extract_strided_slice %1222 {offsets = [0, 0], sizes = [16, 4], strides = [1, 1]} : vector<16x16xf32> to vector<16x4xf32>
    %1233 = vector.extract_strided_slice %1228 {offsets = [0, 0], sizes = [16, 4], strides = [1, 1]} : vector<16x16xf32> to vector<16x4xf32>
    %1234 = vector.extract_strided_slice %1229 {offsets = [0, 0], sizes = [16, 4], strides = [1, 1]} : vector<16x16xf32> to vector<16x4xf32>
    %cst_397 = arith.constant dense<0.000000e+00> : vector<16x16xf32>
    %1235 = tpu.matmul %1232, %1233, %cst_397 {dimension_numbers = #tpu.dot_dimension_numbers<[1], [1], [0], [0], [0, 0, 1, 0], [], []>} : vector<16x4xf32>, vector<16x4xf32>, vector<16x16xf32> -> vector<16x16xf32>
    %cst_398 = arith.constant 5.000000e-01 : f32
    %1236 = vector.broadcast %cst_398 : f32 to vector<16x16xf32>
    %1237 = arith.mulf %1235, %1236 : vector<16x16xf32>
    %1238 = arith.addf %1237, %23 : vector<16x16xf32>
    %cst_399 = arith.constant dense<0xFF800000> : vector<16xf32>
    %1239 = vector.multi_reduction <maximumf>, %1238, %cst_399 [1] : vector<16x16xf32> to vector<16xf32>
    %1240 = vector.shape_cast %1239 : vector<16xf32> to vector<16x1xf32>
    %1241 = vector.broadcast %1240 : vector<16x1xf32> to vector<16x16xf32>
    %1242 = arith.subf %1238, %1241 : vector<16x16xf32>
    %1243 = math.exp %1242 : vector<16x16xf32>
    %cst_400 = arith.constant dense<0.000000e+00> : vector<16xf32>
    %1244 = vector.multi_reduction <add>, %1243, %cst_400 [1] : vector<16x16xf32> to vector<16xf32>
    %1245 = vector.shape_cast %1244 : vector<16xf32> to vector<16x1xf32>
    %1246 = tpu.reciprocal %1245 {approx = true} : vector<16x1xf32> -> vector<16x1xf32>
    %1247 = vector.broadcast %1246 : vector<16x1xf32> to vector<16x16xf32>
    %1248 = arith.mulf %1243, %1247 : vector<16x16xf32>
    %cst_401 = arith.constant dense<0.000000e+00> : vector<16x4xf32>
    %1249 = tpu.matmul %1248, %1234, %cst_401 {dimension_numbers = #tpu.dot_dimension_numbers<[1], [0], [0], [1], [0, 0, 1, 1], [], []>} : vector<16x16xf32>, vector<16x4xf32>, vector<16x4xf32> -> vector<16x4xf32>
    %1250 = vector.extract_strided_slice %1230 {offsets = [0, 0], sizes = [4, 16], strides = [1, 1]} : vector<16x16xf32> to vector<4x16xf32>
    %cst_402 = arith.constant dense<0.000000e+00> : vector<16x16xf32>
    %1251 = tpu.matmul %1249, %1250, %cst_402 {dimension_numbers = #tpu.dot_dimension_numbers<[1], [0], [0], [1], [0, 0, 1, 1], [], []>} : vector<16x4xf32>, vector<4x16xf32>, vector<16x16xf32> -> vector<16x16xf32>
    %1252 = arith.addf %1231, %1251 : vector<16x16xf32>
    %1253 = vector.extract_strided_slice %1222 {offsets = [0, 4], sizes = [16, 4], strides = [1, 1]} : vector<16x16xf32> to vector<16x4xf32>
    %1254 = vector.extract_strided_slice %1228 {offsets = [0, 4], sizes = [16, 4], strides = [1, 1]} : vector<16x16xf32> to vector<16x4xf32>
    %1255 = vector.extract_strided_slice %1229 {offsets = [0, 4], sizes = [16, 4], strides = [1, 1]} : vector<16x16xf32> to vector<16x4xf32>
    %cst_403 = arith.constant dense<0.000000e+00> : vector<16x16xf32>
    %1256 = tpu.matmul %1253, %1254, %cst_403 {dimension_numbers = #tpu.dot_dimension_numbers<[1], [1], [0], [0], [0, 0, 1, 0], [], []>} : vector<16x4xf32>, vector<16x4xf32>, vector<16x16xf32> -> vector<16x16xf32>
    %cst_404 = arith.constant 5.000000e-01 : f32
    %1257 = vector.broadcast %cst_404 : f32 to vector<16x16xf32>
    %1258 = arith.mulf %1256, %1257 : vector<16x16xf32>
    %1259 = arith.addf %1258, %23 : vector<16x16xf32>
    %cst_405 = arith.constant dense<0xFF800000> : vector<16xf32>
    %1260 = vector.multi_reduction <maximumf>, %1259, %cst_405 [1] : vector<16x16xf32> to vector<16xf32>
    %1261 = vector.shape_cast %1260 : vector<16xf32> to vector<16x1xf32>
    %1262 = vector.broadcast %1261 : vector<16x1xf32> to vector<16x16xf32>
    %1263 = arith.subf %1259, %1262 : vector<16x16xf32>
    %1264 = math.exp %1263 : vector<16x16xf32>
    %cst_406 = arith.constant dense<0.000000e+00> : vector<16xf32>
    %1265 = vector.multi_reduction <add>, %1264, %cst_406 [1] : vector<16x16xf32> to vector<16xf32>
    %1266 = vector.shape_cast %1265 : vector<16xf32> to vector<16x1xf32>
    %1267 = tpu.reciprocal %1266 {approx = true} : vector<16x1xf32> -> vector<16x1xf32>
    %1268 = vector.broadcast %1267 : vector<16x1xf32> to vector<16x16xf32>
    %1269 = arith.mulf %1264, %1268 : vector<16x16xf32>
    %cst_407 = arith.constant dense<0.000000e+00> : vector<16x4xf32>
    %1270 = tpu.matmul %1269, %1255, %cst_407 {dimension_numbers = #tpu.dot_dimension_numbers<[1], [0], [0], [1], [0, 0, 1, 1], [], []>} : vector<16x16xf32>, vector<16x4xf32>, vector<16x4xf32> -> vector<16x4xf32>
    %1271 = vector.extract_strided_slice %1230 {offsets = [4, 0], sizes = [4, 16], strides = [1, 1]} : vector<16x16xf32> to vector<4x16xf32>
    %cst_408 = arith.constant dense<0.000000e+00> : vector<16x16xf32>
    %1272 = tpu.matmul %1270, %1271, %cst_408 {dimension_numbers = #tpu.dot_dimension_numbers<[1], [0], [0], [1], [0, 0, 1, 1], [], []>} : vector<16x4xf32>, vector<4x16xf32>, vector<16x16xf32> -> vector<16x16xf32>
    %1273 = arith.addf %1252, %1272 : vector<16x16xf32>
    %1274 = vector.extract_strided_slice %1222 {offsets = [0, 8], sizes = [16, 4], strides = [1, 1]} : vector<16x16xf32> to vector<16x4xf32>
    %1275 = vector.extract_strided_slice %1228 {offsets = [0, 8], sizes = [16, 4], strides = [1, 1]} : vector<16x16xf32> to vector<16x4xf32>
    %1276 = vector.extract_strided_slice %1229 {offsets = [0, 8], sizes = [16, 4], strides = [1, 1]} : vector<16x16xf32> to vector<16x4xf32>
    %cst_409 = arith.constant dense<0.000000e+00> : vector<16x16xf32>
    %1277 = tpu.matmul %1274, %1275, %cst_409 {dimension_numbers = #tpu.dot_dimension_numbers<[1], [1], [0], [0], [0, 0, 1, 0], [], []>} : vector<16x4xf32>, vector<16x4xf32>, vector<16x16xf32> -> vector<16x16xf32>
    %cst_410 = arith.constant 5.000000e-01 : f32
    %1278 = vector.broadcast %cst_410 : f32 to vector<16x16xf32>
    %1279 = arith.mulf %1277, %1278 : vector<16x16xf32>
    %1280 = arith.addf %1279, %23 : vector<16x16xf32>
    %cst_411 = arith.constant dense<0xFF800000> : vector<16xf32>
    %1281 = vector.multi_reduction <maximumf>, %1280, %cst_411 [1] : vector<16x16xf32> to vector<16xf32>
    %1282 = vector.shape_cast %1281 : vector<16xf32> to vector<16x1xf32>
    %1283 = vector.broadcast %1282 : vector<16x1xf32> to vector<16x16xf32>
    %1284 = arith.subf %1280, %1283 : vector<16x16xf32>
    %1285 = math.exp %1284 : vector<16x16xf32>
    %cst_412 = arith.constant dense<0.000000e+00> : vector<16xf32>
    %1286 = vector.multi_reduction <add>, %1285, %cst_412 [1] : vector<16x16xf32> to vector<16xf32>
    %1287 = vector.shape_cast %1286 : vector<16xf32> to vector<16x1xf32>
    %1288 = tpu.reciprocal %1287 {approx = true} : vector<16x1xf32> -> vector<16x1xf32>
    %1289 = vector.broadcast %1288 : vector<16x1xf32> to vector<16x16xf32>
    %1290 = arith.mulf %1285, %1289 : vector<16x16xf32>
    %cst_413 = arith.constant dense<0.000000e+00> : vector<16x4xf32>
    %1291 = tpu.matmul %1290, %1276, %cst_413 {dimension_numbers = #tpu.dot_dimension_numbers<[1], [0], [0], [1], [0, 0, 1, 1], [], []>} : vector<16x16xf32>, vector<16x4xf32>, vector<16x4xf32> -> vector<16x4xf32>
    %1292 = vector.extract_strided_slice %1230 {offsets = [8, 0], sizes = [4, 16], strides = [1, 1]} : vector<16x16xf32> to vector<4x16xf32>
    %cst_414 = arith.constant dense<0.000000e+00> : vector<16x16xf32>
    %1293 = tpu.matmul %1291, %1292, %cst_414 {dimension_numbers = #tpu.dot_dimension_numbers<[1], [0], [0], [1], [0, 0, 1, 1], [], []>} : vector<16x4xf32>, vector<4x16xf32>, vector<16x16xf32> -> vector<16x16xf32>
    %1294 = arith.addf %1273, %1293 : vector<16x16xf32>
    %1295 = vector.extract_strided_slice %1222 {offsets = [0, 12], sizes = [16, 4], strides = [1, 1]} : vector<16x16xf32> to vector<16x4xf32>
    %1296 = vector.extract_strided_slice %1228 {offsets = [0, 12], sizes = [16, 4], strides = [1, 1]} : vector<16x16xf32> to vector<16x4xf32>
    %1297 = vector.extract_strided_slice %1229 {offsets = [0, 12], sizes = [16, 4], strides = [1, 1]} : vector<16x16xf32> to vector<16x4xf32>
    %cst_415 = arith.constant dense<0.000000e+00> : vector<16x16xf32>
    %1298 = tpu.matmul %1295, %1296, %cst_415 {dimension_numbers = #tpu.dot_dimension_numbers<[1], [1], [0], [0], [0, 0, 1, 0], [], []>} : vector<16x4xf32>, vector<16x4xf32>, vector<16x16xf32> -> vector<16x16xf32>
    %cst_416 = arith.constant 5.000000e-01 : f32
    %1299 = vector.broadcast %cst_416 : f32 to vector<16x16xf32>
    %1300 = arith.mulf %1298, %1299 : vector<16x16xf32>
    %1301 = arith.addf %1300, %23 : vector<16x16xf32>
    %cst_417 = arith.constant dense<0xFF800000> : vector<16xf32>
    %1302 = vector.multi_reduction <maximumf>, %1301, %cst_417 [1] : vector<16x16xf32> to vector<16xf32>
    %1303 = vector.shape_cast %1302 : vector<16xf32> to vector<16x1xf32>
    %1304 = vector.broadcast %1303 : vector<16x1xf32> to vector<16x16xf32>
    %1305 = arith.subf %1301, %1304 : vector<16x16xf32>
    %1306 = math.exp %1305 : vector<16x16xf32>
    %cst_418 = arith.constant dense<0.000000e+00> : vector<16xf32>
    %1307 = vector.multi_reduction <add>, %1306, %cst_418 [1] : vector<16x16xf32> to vector<16xf32>
    %1308 = vector.shape_cast %1307 : vector<16xf32> to vector<16x1xf32>
    %1309 = tpu.reciprocal %1308 {approx = true} : vector<16x1xf32> -> vector<16x1xf32>
    %1310 = vector.broadcast %1309 : vector<16x1xf32> to vector<16x16xf32>
    %1311 = arith.mulf %1306, %1310 : vector<16x16xf32>
    %cst_419 = arith.constant dense<0.000000e+00> : vector<16x4xf32>
    %1312 = tpu.matmul %1311, %1297, %cst_419 {dimension_numbers = #tpu.dot_dimension_numbers<[1], [0], [0], [1], [0, 0, 1, 1], [], []>} : vector<16x16xf32>, vector<16x4xf32>, vector<16x4xf32> -> vector<16x4xf32>
    %1313 = vector.extract_strided_slice %1230 {offsets = [12, 0], sizes = [4, 16], strides = [1, 1]} : vector<16x16xf32> to vector<4x16xf32>
    %cst_420 = arith.constant dense<0.000000e+00> : vector<16x16xf32>
    %1314 = tpu.matmul %1312, %1313, %cst_420 {dimension_numbers = #tpu.dot_dimension_numbers<[1], [0], [0], [1], [0, 0, 1, 1], [], []>} : vector<16x4xf32>, vector<4x16xf32>, vector<16x16xf32> -> vector<16x16xf32>
    %1315 = arith.addf %1294, %1314 : vector<16x16xf32>
    %1316 = vector.extract_strided_slice %1217 {offsets = [0, 48], sizes = [1, 16], strides = [1, 1]} : vector<1x64xf32> to vector<1x16xf32>
    %1317 = vector.broadcast %1316 : vector<1x16xf32> to vector<16x16xf32>
    %1318 = arith.addf %1315, %1317 : vector<16x16xf32>
    %1319 = arith.addf %1215, %1318 : vector<16x16xf32>
    %c14 = arith.constant 14 : index
    %c0_421 = arith.constant 0 : index
    %1320 = vector.load %arg9[%c14, %c0_421] : memref<17x32xf32, #tpu.memory_space<vmem>>, vector<1x16xf32>
    %c14_422 = arith.constant 14 : index
    %c16_423 = arith.constant 16 : index
    %1321 = vector.load %arg9[%c14_422, %c16_423] : memref<17x32xf32, #tpu.memory_space<vmem>>, vector<1x16xf32>
    %cst_424 = arith.constant dense<0.000000e+00> : vector<16xf32>
    %1322 = vector.multi_reduction <add>, %1319, %cst_424 [1] : vector<16x16xf32> to vector<16xf32>
    %1323 = vector.shape_cast %1322 : vector<16xf32> to vector<16x1xf32>
    %cst_425 = arith.constant 1.600000e+01 : f32
    %1324 = vector.broadcast %cst_425 : f32 to vector<16x1xf32>
    %1325 = arith.divf %1323, %1324 : vector<16x1xf32>
    %1326 = vector.broadcast %1325 : vector<16x1xf32> to vector<16x16xf32>
    %1327 = arith.subf %1319, %1326 : vector<16x16xf32>
    %1328 = arith.mulf %1327, %1327 : vector<16x16xf32>
    %cst_426 = arith.constant dense<0.000000e+00> : vector<16xf32>
    %1329 = vector.multi_reduction <add>, %1328, %cst_426 [1] : vector<16x16xf32> to vector<16xf32>
    %1330 = vector.shape_cast %1329 : vector<16xf32> to vector<16x1xf32>
    %cst_427 = arith.constant 1.600000e+01 : f32
    %1331 = vector.broadcast %cst_427 : f32 to vector<16x1xf32>
    %1332 = arith.divf %1330, %1331 : vector<16x1xf32>
    %cst_428 = arith.constant 9.99999974E-6 : f32
    %1333 = vector.broadcast %cst_428 : f32 to vector<16x1xf32>
    %1334 = arith.addf %1332, %1333 : vector<16x1xf32>
    %1335 = math.rsqrt %1334 : vector<16x1xf32>
    %1336 = vector.broadcast %1335 : vector<16x1xf32> to vector<16x16xf32>
    %1337 = arith.mulf %1327, %1336 : vector<16x16xf32>
    %1338 = vector.broadcast %1320 : vector<1x16xf32> to vector<16x16xf32>
    %1339 = arith.mulf %1337, %1338 : vector<16x16xf32>
    %1340 = vector.broadcast %1321 : vector<1x16xf32> to vector<16x16xf32>
    %1341 = arith.addf %1339, %1340 : vector<16x16xf32>
    %c80_429 = arith.constant 80 : index
    %c0_430 = arith.constant 0 : index
    %1342 = vector.load %arg7[%c80_429, %c0_430] : memref<96x64xf32, #tpu.memory_space<vmem>>, vector<16x64xf32>
    %c5_431 = arith.constant 5 : index
    %c0_432 = arith.constant 0 : index
    %1343 = vector.load %arg8[%c5_431, %c0_432] : memref<6x48xf32, #tpu.memory_space<vmem>>, vector<1x48xf32>
    %1344 = vector.extract_strided_slice %1342 {offsets = [0, 0], sizes = [16, 32], strides = [1, 1]} : vector<16x64xf32> to vector<16x32xf32>
    %cst_433 = arith.constant dense<0.000000e+00> : vector<16x32xf32>
    %1345 = tpu.matmul %1341, %1344, %cst_433 {dimension_numbers = #tpu.dot_dimension_numbers<[1], [0], [0], [1], [0, 0, 1, 1], [], []>} : vector<16x16xf32>, vector<16x32xf32>, vector<16x32xf32> -> vector<16x32xf32>
    %1346 = vector.extract_strided_slice %1343 {offsets = [0, 0], sizes = [1, 32], strides = [1, 1]} : vector<1x48xf32> to vector<1x32xf32>
    %1347 = vector.broadcast %1346 : vector<1x32xf32> to vector<16x32xf32>
    %1348 = arith.addf %1345, %1347 : vector<16x32xf32>
    %cst_434 = arith.constant 0.000000e+00 : f32
    %1349 = vector.broadcast %cst_434 : f32 to vector<16x32xf32>
    %1350 = arith.maximumf %1348, %1349 : vector<16x32xf32>
    %1351 = vector.extract_strided_slice %1342 {offsets = [0, 32], sizes = [16, 32], strides = [1, 1]} : vector<16x64xf32> to vector<16x32xf32>
    %cst_435 = arith.constant dense<0.000000e+00> : vector<16x16xf32>
    %1352 = tpu.matmul %1350, %1351, %cst_435 {dimension_numbers = #tpu.dot_dimension_numbers<[1], [1], [0], [0], [0, 0, 1, 0], [], []>} : vector<16x32xf32>, vector<16x32xf32>, vector<16x16xf32> -> vector<16x16xf32>
    %1353 = vector.extract_strided_slice %1343 {offsets = [0, 32], sizes = [1, 16], strides = [1, 1]} : vector<1x48xf32> to vector<1x16xf32>
    %1354 = vector.broadcast %1353 : vector<1x16xf32> to vector<16x16xf32>
    %1355 = arith.addf %1352, %1354 : vector<16x16xf32>
    %1356 = arith.addf %1341, %1355 : vector<16x16xf32>
    %c15 = arith.constant 15 : index
    %c0_436 = arith.constant 0 : index
    %1357 = vector.load %arg9[%c15, %c0_436] : memref<17x32xf32, #tpu.memory_space<vmem>>, vector<1x16xf32>
    %c15_437 = arith.constant 15 : index
    %c16_438 = arith.constant 16 : index
    %1358 = vector.load %arg9[%c15_437, %c16_438] : memref<17x32xf32, #tpu.memory_space<vmem>>, vector<1x16xf32>
    %cst_439 = arith.constant dense<0.000000e+00> : vector<16xf32>
    %1359 = vector.multi_reduction <add>, %1356, %cst_439 [1] : vector<16x16xf32> to vector<16xf32>
    %1360 = vector.shape_cast %1359 : vector<16xf32> to vector<16x1xf32>
    %cst_440 = arith.constant 1.600000e+01 : f32
    %1361 = vector.broadcast %cst_440 : f32 to vector<16x1xf32>
    %1362 = arith.divf %1360, %1361 : vector<16x1xf32>
    %1363 = vector.broadcast %1362 : vector<16x1xf32> to vector<16x16xf32>
    %1364 = arith.subf %1356, %1363 : vector<16x16xf32>
    %1365 = arith.mulf %1364, %1364 : vector<16x16xf32>
    %cst_441 = arith.constant dense<0.000000e+00> : vector<16xf32>
    %1366 = vector.multi_reduction <add>, %1365, %cst_441 [1] : vector<16x16xf32> to vector<16xf32>
    %1367 = vector.shape_cast %1366 : vector<16xf32> to vector<16x1xf32>
    %cst_442 = arith.constant 1.600000e+01 : f32
    %1368 = vector.broadcast %cst_442 : f32 to vector<16x1xf32>
    %1369 = arith.divf %1367, %1368 : vector<16x1xf32>
    %cst_443 = arith.constant 9.99999974E-6 : f32
    %1370 = vector.broadcast %cst_443 : f32 to vector<16x1xf32>
    %1371 = arith.addf %1369, %1370 : vector<16x1xf32>
    %1372 = math.rsqrt %1371 : vector<16x1xf32>
    %1373 = vector.broadcast %1372 : vector<16x1xf32> to vector<16x16xf32>
    %1374 = arith.mulf %1364, %1373 : vector<16x16xf32>
    %1375 = vector.broadcast %1357 : vector<1x16xf32> to vector<16x16xf32>
    %1376 = arith.mulf %1374, %1375 : vector<16x16xf32>
    %1377 = vector.broadcast %1358 : vector<1x16xf32> to vector<16x16xf32>
    %1378 = arith.addf %1376, %1377 : vector<16x16xf32>
    %c16_444 = arith.constant 16 : index
    %c0_445 = arith.constant 0 : index
    %1379 = vector.load %arg9[%c16_444, %c0_445] : memref<17x32xf32, #tpu.memory_space<vmem>>, vector<1x16xf32>
    %c16_446 = arith.constant 16 : index
    %c16_447 = arith.constant 16 : index
    %1380 = vector.load %arg9[%c16_446, %c16_447] : memref<17x32xf32, #tpu.memory_space<vmem>>, vector<1x16xf32>
    %cst_448 = arith.constant dense<0.000000e+00> : vector<16xf32>
    %1381 = vector.multi_reduction <add>, %1378, %cst_448 [1] : vector<16x16xf32> to vector<16xf32>
    %1382 = vector.shape_cast %1381 : vector<16xf32> to vector<16x1xf32>
    %cst_449 = arith.constant 1.600000e+01 : f32
    %1383 = vector.broadcast %cst_449 : f32 to vector<16x1xf32>
    %1384 = arith.divf %1382, %1383 : vector<16x1xf32>
    %1385 = vector.broadcast %1384 : vector<16x1xf32> to vector<16x16xf32>
    %1386 = arith.subf %1378, %1385 : vector<16x16xf32>
    %1387 = arith.mulf %1386, %1386 : vector<16x16xf32>
    %cst_450 = arith.constant dense<0.000000e+00> : vector<16xf32>
    %1388 = vector.multi_reduction <add>, %1387, %cst_450 [1] : vector<16x16xf32> to vector<16xf32>
    %1389 = vector.shape_cast %1388 : vector<16xf32> to vector<16x1xf32>
    %cst_451 = arith.constant 1.600000e+01 : f32
    %1390 = vector.broadcast %cst_451 : f32 to vector<16x1xf32>
    %1391 = arith.divf %1389, %1390 : vector<16x1xf32>
    %cst_452 = arith.constant 9.99999974E-6 : f32
    %1392 = vector.broadcast %cst_452 : f32 to vector<16x1xf32>
    %1393 = arith.addf %1391, %1392 : vector<16x1xf32>
    %1394 = math.rsqrt %1393 : vector<16x1xf32>
    %1395 = vector.broadcast %1394 : vector<16x1xf32> to vector<16x16xf32>
    %1396 = arith.mulf %1386, %1395 : vector<16x16xf32>
    %1397 = vector.broadcast %1379 : vector<1x16xf32> to vector<16x16xf32>
    %1398 = arith.mulf %1396, %1397 : vector<16x16xf32>
    %1399 = vector.broadcast %1380 : vector<1x16xf32> to vector<16x16xf32>
    %1400 = arith.addf %1398, %1399 : vector<16x16xf32>
    %c0_453 = arith.constant 0 : index
    %c0_454 = arith.constant 0 : index
    %1401 = vector.load %arg10[%c0_453, %c0_454] : memref<16x1xf32, #tpu.memory_space<vmem>>, vector<16x1xf32>
    %cst_455 = arith.constant dense<0.000000e+00> : vector<16x1xf32>
    %1402 = tpu.matmul %1400, %1401, %cst_455 {dimension_numbers = #tpu.dot_dimension_numbers<[1], [0], [0], [1], [0, 0, 1, 1], [], []>} : vector<16x16xf32>, vector<16x1xf32>, vector<16x1xf32> -> vector<16x1xf32>
    %c0_456 = arith.constant 0 : index
    %c0_457 = arith.constant 0 : index
    %1403 = vector.load %arg11[%c0_456, %c0_457] : memref<1x1xf32, #tpu.memory_space<vmem>>, vector<1x1xf32>
    %1404 = vector.broadcast %1403 : vector<1x1xf32> to vector<16x1xf32>
    %1405 = arith.addf %1402, %1404 : vector<16x1xf32>
    %cst_458 = arith.constant 0.000000e+00 : f32
    %1406 = vector.broadcast %cst_458 : f32 to vector<16x1xf32>
    %1407 = arith.maximumf %1405, %1406 : vector<16x1xf32>
    %c0_459 = arith.constant 0 : index
    %c0_460 = arith.constant 0 : index
    %1408 = vector.load %arg12[%c0_459, %c0_460] : memref<16x1xf32, #tpu.memory_space<vmem>>, vector<16x1xf32>
    tpu.vector_store %arg12[%c0_459, %c0_460], %1407 {strides = array<i32>} : memref<16x1xf32, #tpu.memory_space<vmem>>, vector<16x1xf32>,
    return
  }
}

</mosaic_0001>

<bundles_post_ra>
// kernel: gene_forward.1
= control target key start
LH: loop header
LB: loop body
LE: loop exit
PB: predicated region body
PF: predicated region fallthrough
CT: control target
= control target key end

     0   :  { %v16624_v0 = vmov 0   ;;  %v60_v10 = vlaneseq  ;;  %vm101_vm6 = vcmask 130048   ;;  %vm189_vm9 = vcmask 31744   ;;  %s16626_s21 = smov 108   ;;  %s16627_s22 = smov 124   ;;  %s18514_s0 = inlined_call_operand.vmem [shape: s32[16,1], index: 0, kind: input, shape index: {}]   ;;  %s18515_s5 = inlined_call_operand.vmem [shape: f32[144,64], index: 5, kind: input, shape index: {}]   ;;  %s18516_s4 = inlined_call_operand.vmem [shape: f32[3,16], index: 4, kind: input, shape index: {}]   ;;  %s18517_s1 = inlined_call_operand.vmem [shape: f32[16,16], index: 1, kind: input, shape index: {}]   ;;  %s18518_s6 = inlined_call_operand.vmem [shape: f32[9,64], index: 6, kind: input, shape index: {}]   ;;  %s18519_s2 = inlined_call_operand.vmem [shape: f32[16,16], index: 2, kind: input, shape index: {}]   ;;  %s18520_s9 = inlined_call_operand.vmem [shape: f32[17,32], index: 9, kind: input, shape index: {}]   ;;  %s18521_s7 = inlined_call_operand.vmem [shape: f32[96,64], index: 7, kind: input, shape index: {}]   ;;  %s18522_s8 = inlined_call_operand.vmem [shape: f32[6,48], index: 8, kind: input, shape index: {}]   ;;  %s18523_s3 = inlined_call_operand.vmem [shape: f32[16,16], index: 3, kind: input, shape index: {}]   ;;  %s18524_s10 = inlined_call_operand.vmem [shape: f32[16,1], index: 10, kind: input, shape index: {}]   ;;  %s18525_s11 = inlined_call_operand.<no memory space> [shape: f32[1,1], index: 11, kind: input, shape index: {}]   ;;  %s18526_s12 = inlined_call_operand.vmem [shape: f32[16,1], index: 12, kind: output, shape index: {}]  }
   0x1   :  { %15865 = vset.pattern.permute.xlu1 %v16624_v0  ;;  %15864 = vset.pattern.permute.xlu0 %v16624_v0  ;;  %v43_v1 = vld [vmem:[%s18514_s0] sm:$0xff]  ;;  %v44_v2 = vld [vmem:[%s18514_s0 + $0x8] sm:$0xff]  ;;  %vm16758_vm10 = vmpackc.low %vm189_vm9, %vm189_vm9  ;;  %s16628_s23 = smov 96   ;;  %s16629_s24 = smov 104   ;;  %vm600_vm11 = vcmask 1043456   ;;  %vm1495_vm12 = vcmask 261120  }
   0x2   :  { %vm48_vm0 = vcmp.eq.s32.totalorder %v43_v1, 1  ;;  %vm46_vm1 = vcmp.eq.s32.totalorder %v43_v1, 0  ;;  %vm49_vm2 = vcmp.eq.s32.totalorder %v44_v2, 1  ;;  %vm47_vm3 = vcmp.eq.s32.totalorder %v44_v2, 0  ;;  %v16711_v7 = vld [vmem:[%s18515_s5] sm:$0xff]  ;;  %v16716_v8 = vld [vmem:[%s18515_s5 + $0x8] sm:$0xff]  ;;  %vm16909_vm13 = vmpackc.low %vm1495_vm12, %vm1495_vm12 }
   0x3   :  { %v50_v3 = vsel %vm48_vm0, 1, %v16624_v0  ;;  %v70_v4 = vsel %vm46_vm1, 1, %v16624_v0  ;;  %v51_v5 = vsel %vm49_vm2, 1, %v16624_v0  ;;  %v71_v6 = vsel %vm47_vm3, 1, %v16624_v0  ;;  %v45_v14 = vld [vmem:[%s18516_s4] sm:$0x7] }
   0x4   :  { %53 = vperm.xlu0 %15864, %v50_v3   ;;  %73 = vperm.xlu1 %15865, %v70_v4   ;;  %v15325_v9 = vpack.c.bf16 %v16716_v8, %v16711_v7  ;;  %v61_v11 = vshrl.u32 %v60_v10, 7  ;;  %v86_v21 = vld [vmem:[%s18517_s1] sm:$0xff]  ;;  %v87_v27 = vld [vmem:[%s18517_s1 + $0x8] sm:$0xff]  ;;  %s16625_s1 = smov 112   ;;  %s16630_s25 = smov 120   ;;  %vm13544_vm14 = vcmask 7168  }
   0x5   :  { %v16740_v31 = vld [vmem:[%s18518_s6] ss:$0 sm:$0xff]  ;;  %v16771_v43 = vld [vmem:[%s18519_s2 + $0x8] sm:$0xff]  ;;  %s16631_s26 = smov 92   ;;  %s16632_s27 = smov 116  }
   0x6   :  { %15326 = vmatprep.subr.bf16.mxu0 %v15325_v9  ;;  %v62_v12 = vsub.s32 1, %v61_v11  ;;  %v66_v13 = vsub.s32 2, %v61_v11  ;;  %v82_v15 = vsub.s32 0, %v61_v11  ;;  %v16776_v46 = vld [vmem:[%s18519_s2] sm:$0xff]  ;;  %s16633_s28 = smov 80   ;;  %s16634_s0 = smov 88  }
   0x7   :  { %15328 = vmatpush3.bf16.msra.mxu0 %v15325_v9  ;;  %s16635_s29 = smov 100   ;;  %s16636_s30 = smov 84  }
   0x8   :  { %56 = vperm.xlu0 %15864, %v51_v5   ;;  %76 = vperm.xlu1 %15865, %v71_v6   ;;  %v63_v16 = vrot.slane %v45_v14, %v62_v12  ;;  %v67_v17 = vrot.slane %v45_v14, %v66_v13  ;;  %v83_v18 = vrot.slane %v45_v14, %v82_v15 }
  0x83   :  { %v54_v19 = vpop.permute.xlu0 %53  ;;  %v74_v20 = vpop.permute.xlu1 %73 }
  0x84   :  { %vm58_vm4 = vcmp.eq.s32.totalorder %v54_v19, 1  ;;  %vm78_vm5 = vcmp.eq.s32.totalorder %v74_v20, 1 }
  0x85   :  { %v68_v22 = vsel %vm58_vm4, %v63_v16, %v67_v17 }
  0x86   :  { %v84_v23 = vsel %vm78_vm5, %v83_v18, %v68_v22 }
  0x87   :  { %v16726_v24 = vadd.f32 %v86_v21, %v84_v23  ;;  %v57_v25 = vpop.permute.xlu0 %56  ;;  %v77_v26 = vpop.permute.xlu1 %76 }
  0x88   :  { %vm59_vm7 = vcmp.eq.s32.totalorder %v57_v25, 1  ;;  %vm79_vm8 = vcmp.eq.s32.totalorder %v77_v26, 1 }
  0x89   :  { %v69_v28 = vsel %vm59_vm7, %v63_v16, %v67_v17  ;;  %14470 = vmatprep.mubr.msk.f32.mxu0 %vm101_vm6, %v16726_v24 }
  0x8a   :  { %v85_v29 = vsel %vm79_vm8, %v83_v18, %v69_v28 }
  0x8b   :  { %v16733_v30 = vadd.f32 %v87_v27, %v85_v29 }
  0x8d   :  { %14471 = vmatmul.mubr.msk.f32.vlgmr.msra.gmra.mrb[0].mxu0 %vm101_vm6, %v16733_v30 }
 0x160   :  { %v14472_v32 = vpop.f32.mrb[0].mxu0 }
 0x161   :  { %v16743_v33 = vadd.f32 %v14472_v32, %v16740_v31  ;;  %v174_v34 = vpop.f32.mrb[1].mxu0 }
 0x162   :  { %v16746_v35 = vadd.f32 %v16740_v31, %v174_v34 }
 0x164   :  { %14477 = vmatprep.mubr.msk.f32.mxu1 %vm189_vm9, %v16746_v35  ;;  %v16752_v36 = vpack.i.bf16 %v16743_v33, %v16746_v35 }
 0x166   :  { %15867 = vrot.lane.b32.xlu0 %v16752_v36, %s16625_s1 }
 0x1d8   :  { %v15868_v37 = vpop.permute.xlu0 %15867 }
 0x1d9   :  { %v15870_v38 = vunpack.i.h.bf16 %v15868_v37  ;;  %v15869_v39 = vunpack.i.l.bf16 %v15868_v37 }
 0x1db   :  { %v15329_v41 = vpack.c.bf16 %v15870_v38, %v15869_v39 }
 0x1dd   :  { %15331 = vmatprep.subr.msk.bf16.mxu1 %vm16758_vm10, %v15329_v41 }
 0x1de   :  { %15334 = vmatpush3.bf16.xpose.msk.msra.mxu1 %vm16758_vm10, %v15329_v41 }
 0x1e5   :  { %14478 = vmatmul.mubr.msk.f32.vlgmr.msra.gmra.mrb[0].mxu1 %vm189_vm9, %v16743_v33 }
 0x2b8   :  { %v14479_v42 = vpop.f32.mrb[0].mxu1 }
 0x2b9   :  { %v274_v44 = vmul.f32 0.5, %v14479_v42  ;;  %v264_v45 = vpop.f32.mrb[1].mxu1 }
 0x2ba   :  { %v273_v47 = vmul.f32 0.5, %v264_v45  ;;  %v591_v45 = vrot.slane %v16711_v7, 4 }
 0x2bb   :  { %v276_v48 = vadd.f32 %v274_v44, %v16771_v43 }
 0x2bc   :  { %v275_v49 = vadd.f32 %v273_v47, %v16776_v46 }
 0x2bd   :  { %v280_v50 = vsel %vm101_vm6, %v276_v48, -inf }
 0x2be   :  { %281 = vmax.xlane.f32.xlu0 %v280_v50  ;;  %v277_v51 = vsel %vm101_vm6, %v275_v49, -inf }
 0x2bf   :  { %278 = vmax.xlane.f32.xlu1 %v277_v51 }
 0x34b   :  { %v282_v52 = vpop.xlane.xlu0 %281 }
 0x34c   :  { %v284_v53 = vsub.f32 %v276_v48, %v282_v52  ;;  %v279_v54 = vpop.xlane.xlu1 %278 }
 0x34d   :  { %v283_v55 = vsub.f32 %v275_v49, %v279_v54 }
 0x34e   :  { %v287_v56 = vmul.f32 1.442695, %v284_v53 }
 0x34f   :  { %v285_v57 = vmul.f32 1.442695, %v283_v55 }
 0x350   :  { %16256 = vpow2.f32 %v287_v56 }
 0x351   :  { %16258 = vpow2.f32 %v285_v57 }
 0x35a   :  { %v16257_v58 = vpop.eup %16256 }
 0x35b   :  { %v16259_v59 = vpop.eup %16258  ;;  %v292_v60 = vsel %vm101_vm6, %v16257_v58, 0.0 }
 0x35c   :  { %293 = vadd.xlane.f32.xlu1 %v292_v60  ;;  %v289_v61 = vsel %vm101_vm6, %v16259_v59, 0.0 }
 0x35d   :  { %290 = vadd.xlane.f32.xlu0 %v289_v61 }
 0x36d   :  { %15877 = vrot.lane.b32.xlu1 %v16752_v36, %s16626_s21 }
 0x371   :  { %386 = vrot.lane.b32.xlu1 %v16746_v35, %s16627_s22 }
 0x373   :  { %15872 = vrot.lane.b32.xlu0 %v16752_v36, %s16628_s23 }
 0x375   :  { %15882 = vrot.lane.b32.xlu1 %v16752_v36, %s16629_s24 }
 0x377   :  { %388 = vrot.lane.b32.xlu0 %v16743_v33, %s16627_s22 }
 0x379   :  { %765 = vrot.lane.b32.xlu1 %v16743_v33, %s16630_s25 }
 0x37b   :  { %763 = vrot.lane.b32.xlu0 %v16746_v35, %s16630_s25 }
 0x3e9   :  { %v294_v62 = vpop.xlane.xlu1 %293 }
 0x3ea   :  { %16260 = vrcp.f32 %v294_v62  ;;  %v291_v63 = vpop.xlane.xlu0 %290 }
 0x3eb   :  { %16262 = vrcp.f32 %v291_v63 }
 0x3ed   :  { %v15878_v0 = vpop.permute.xlu1 %15877 }
 0x3ee   :  { %v15873_v1 = vpop.permute.xlu0 %15872  ;;  %v15880_v2 = vunpack.i.h.bf16 %v15878_v0  ;;  %v15879_v3 = vunpack.i.l.bf16 %v15878_v0 }
 0x3ef   :  { %v15875_v4 = vunpack.i.h.bf16 %v15873_v1  ;;  %v15874_v5 = vunpack.i.l.bf16 %v15873_v1 }
 0x3f0   :  { %v15339_v10 = vpack.c.bf16 %v15880_v2, %v15879_v3 }
 0x3f1   :  { %v387_v6 = vpop.permute.xlu1 %386  ;;  %v15335_v9 = vpack.c.bf16 %v15875_v4, %v15874_v5 }
 0x3f2   :  { %v389_v19 = vpop.permute.xlu0 %388 }
 0x3f3   :  { %15336 = vmatprep.subr.bf16.mxu0 %v15335_v9 }
 0x3f4   :  { %v16261_v11 = vpop.eup %16260  ;;  %15338 = vmatpush3.bf16.msra.mxu0 %v15335_v9 }
 0x3f5   :  { %v16263_v12 = vpop.eup %16262  ;;  %v15883_v13 = vpop.permute.xlu1 %15882  ;;  %15341 = vmatprep.subr.msk.bf16.mxu0 %vm16758_vm10, %v15339_v10  ;;  %v298_v15 = vmul.f32 %v16261_v11, %v16257_v58 }
 0x3f6   :  { %v297_v14 = vmul.f32 %v16263_v12, %v16259_v59  ;;  %v15885_v16 = vunpack.i.h.bf16 %v15883_v13  ;;  %v15884_v17 = vunpack.i.l.bf16 %v15883_v13  ;;  %v764_v20 = vpop.permute.xlu0 %763 }
 0x3f8   :  { %14484 = vmatprep.mubr.msk.f32.mxu0 %vm101_vm6, %v297_v14  ;;  %v15349_v18 = vpack.c.bf16 %v15885_v16, %v15884_v17 }
 0x3f9   :  { %14485 = vmatmul.mubr.msk.f32.vlgmr.msra.gmra.mrb[2].mxu0 %vm101_vm6, %v298_v15  ;;  %v766_v21 = vpop.permute.xlu1 %765 }
 0x3fa   :  { %14491 = vmatprep.mubr.msk.f32.mxu0 %vm189_vm9, %v387_v6 }
 0x3fd   :  { %15344 = vmatpush3.bf16.xpose.msk.msra.mxu0 %vm16758_vm10, %v15339_v10 }
 0x3fe   :  { %15351 = vmatprep.subr.msk.bf16.mxu0 %vm16758_vm10, %v15349_v18 }
 0x404   :  { %14492 = vmatmul.mubr.msk.f32.vlgmr.msra.gmra.mrb[4].mxu0 %vm189_vm9, %v389_v19 }
 0x405   :  { %15354 = vmatpush3.bf16.xpose.msk.msra.mxu0 %vm16758_vm10, %v15349_v18  ;;  %14515 = vmatprep.mubr.msk.f32.mxu0 %vm189_vm9, %v764_v20 }
 0x40c   :  { %14516 = vmatmul.mubr.msk.f32.vlgmr.msra.gmra.mrb[6].mxu0 %vm189_vm9, %v766_v21 }
 0x4cc   :  { %v16812_v22 = vpop.f32.mrb[2].mxu0 }
 0x4cd   :  { %v16814_v23 = vpop.f32.mrb[3].mxu0 }
 0x4d7   :  { %v14493_v25 = vpop.f32.mrb[4].mxu0 }
 0x4d8   :  { %v478_v26 = vmul.f32 0.5, %v14493_v25  ;;  %v468_v27 = vpop.f32.mrb[5].mxu0 }
 0x4d9   :  { %v477_v28 = vmul.f32 0.5, %v468_v27 }
 0x4da   :  { %v480_v29 = vadd.f32 %v478_v26, %v16771_v43 }
 0x4db   :  { %v479_v32 = vadd.f32 %v477_v28, %v16776_v46 }
 0x4dc   :  { %v484_v34 = vsel %vm101_vm6, %v480_v29, -inf }
 0x4dd   :  { %485 = vmax.xlane.f32.xlu1 %v484_v34  ;;  %v481_v37 = vsel %vm101_vm6, %v479_v32, -inf }
 0x4de   :  { %482 = vmax.xlane.f32.xlu0 %v481_v37 }
 0x4df   :  { %v14517_v38 = vpop.f32.mrb[6].mxu0 }
 0x4e0   :  { %v845_v39 = vpop.f32.mrb[7].mxu0  ;;  %v855_v41 = vmul.f32 0.5, %v14517_v38 }
 0x4e1   :  { %v854_v0 = vmul.f32 0.5, %v845_v39 }
 0x4e2   :  { %v857_v42 = vadd.f32 %v855_v41, %v16771_v43 }
 0x4e3   :  { %v856_v1 = vadd.f32 %v854_v0, %v16776_v46 }
 0x4e4   :  { %v861_v44 = vsel %vm101_vm6, %v857_v42, -inf }
 0x4e5   :  { %v858_v2 = vsel %vm101_vm6, %v856_v1, -inf }
 0x4ee   :  { %15887 = vrot.lane.b32.xlu1 %v16752_v36, %s16631_s26 }
 0x4f2   :  { %1055 = vrot.lane.b32.xlu1 %v16746_v35, %s16632_s27 }
 0x4f6   :  { %1057 = vrot.lane.b32.xlu1 %v16743_v33, %s16632_s27 }
 0x51a   :  { %862 = vmax.xlane.f32.xlu1 %v861_v44 }
 0x52b   :  { %592 = vrot.lane.b32.xlu1 %v591_v45, %s16633_s28 }
 0x52f   :  { %15897 = vrot.lane.b32.xlu1 %v16752_v36, %s16634_s0 }
 0x56a   :  { %v486_v47 = vpop.xlane.xlu1 %485 }
 0x56b   :  { %v488_v35 = vsub.f32 %v480_v29, %v486_v47  ;;  %v483_v48 = vpop.xlane.xlu0 %482 }
 0x56c   :  { %v487_v49 = vsub.f32 %v479_v32, %v483_v48 }
 0x56d   :  { %v491_v33 = vmul.f32 1.442695, %v488_v35 }
 0x56e   :  { %v489_v50 = vmul.f32 1.442695, %v487_v49  ;;  %v15888_v51 = vpop.permute.xlu1 %15887 }
 0x56f   :  { %v15890_v52 = vunpack.i.h.bf16 %v15888_v51  ;;  %v15889_v53 = vunpack.i.l.bf16 %v15888_v51 }
 0x570   :  { %16264 = vpow2.f32 %v489_v50 }
 0x571   :  { %v15345_v54 = vpack.c.bf16 %v15890_v52, %v15889_v53  ;;  %16266 = vpow2.f32 %v491_v33 }
 0x572   :  { %v1056_v55 = vpop.permute.xlu1 %1055 }
 0x573   :  { %15346 = vmatprep.subr.bf16.mxu1 %v15345_v54  ;;  %14534 = vmatprep.mubr.msk.f32.mxu0 %vm189_vm9, %v1056_v55 }
 0x574   :  { %15348 = vmatpush3.bf16.msra.mxu1 %v15345_v54 }
 0x576   :  { %v1058_v60 = vpop.permute.xlu1 %1057 }
 0x57a   :  { %v16265_v56 = vpop.eup %16264 }
 0x57b   :  { %v493_v57 = vsel %vm101_vm6, %v16265_v56, 0.0  ;;  %v16267_v58 = vpop.eup %16266 }
 0x57c   :  { %494 = vadd.xlane.f32.xlu0 %v493_v57  ;;  %v496_v59 = vsel %vm101_vm6, %v16267_v58, 0.0 }
 0x580   :  { %497 = vadd.xlane.f32.xlu0 %v496_v59 }
 0x596   :  { %15892 = vrot.lane.b32.xlu0 %v16752_v36, %s16635_s29 }
 0x5a7   :  { %v863_v61 = vpop.xlane.xlu1 %862 }
 0x5a8   :  { %v865_v62 = vsub.f32 %v857_v42, %v863_v61 }
 0x5aa   :  { %v868_v63 = vmul.f32 1.442695, %v865_v62 }
 0x5ab   :  { %v593_v25 = vpop.permute.xlu1 %592 }
 0x5ac   :  { %16268 = vpow2.f32 %v868_v63  ;;  %14501 = vmatprep.subr.msk.mxu1 %vm600_vm11, %v593_v25 }
 0x5af   :  { %v15898_v29 = vpop.permute.xlu1 %15897 }
 0x5b0   :  { %v15900_v32 = vunpack.i.h.bf16 %v15898_v29  ;;  %v15899_v34 = vunpack.i.l.bf16 %v15898_v29 }
 0x5b2   :  { %v15355_v39 = vpack.c.bf16 %v15900_v32, %v15899_v34 }
 0x5b5   :  { %859 = vmax.xlane.f32.xlu0 %v858_v2 }
 0x5b6   :  { %v16839_v3 = vpop.eup %16268 }
 0x5b7   :  { %v873_v4 = vsel %vm101_vm6, %v16839_v3, 0.0 }
 0x5b9   :  { %874 = vadd.xlane.f32.xlu0 %v873_v4 }
 0x609   :  { %v495_v5 = vpop.xlane.xlu0 %494 }
 0x60a   :  { %16270 = vrcp.f32 %v495_v5 }
 0x60d   :  { %v498_v6 = vpop.xlane.xlu0 %497 }
 0x60e   :  { %16272 = vrcp.f32 %v498_v6 }
 0x611   :  { %v15893_v9 = vpop.permute.xlu0 %15892 }
 0x612   :  { %v15895_v10 = vunpack.i.h.bf16 %v15893_v9  ;;  %v15894_v11 = vunpack.i.l.bf16 %v15893_v9 }
 0x614   :  { %v16271_v12 = vpop.eup %16270  ;;  %v15359_v13 = vpack.c.bf16 %v15895_v10, %v15894_v11 }
 0x615   :  { %v501_v14 = vmul.f32 %v16271_v12, %v16265_v56 }
 0x616   :  { %15361 = vmatprep.subr.msk.bf16.mxu0 %vm16758_vm10, %v15359_v13 }
 0x617   :  { %14498 = vmatprep.mubr.msk.f32.mxu1 %vm101_vm6, %v501_v14  ;;  %15364 = vmatpush3.bf16.xpose.msk.msra.mxu0 %vm16758_vm10, %v15359_v13 }
 0x618   :  { %v16273_v15 = vpop.eup %16272 }
 0x619   :  { %v502_v16 = vmul.f32 %v16273_v15, %v16267_v58 }
 0x61b   :  { %14499 = vmatmul.mubr.msk.f32.vlgmr.msra.gmra.mrb[2].mxu1 %vm101_vm6, %v502_v16 }
 0x61c   :  { %14502 = vmatpush3.msk.msra.mxu1 %vm600_vm11, %v593_v25 }
 0x61e   :  { %14535 = vmatmul.mubr.msk.f32.vlgmr.msra.gmra.mrb[8].mxu0 %vm189_vm9, %v1058_v60  ;;  %v1259_v60 = vrot.slane %v16716_v8, 4 }
 0x642   :  { %v860_v17 = vpop.xlane.xlu0 %859 }
 0x643   :  { %v864_v18 = vsub.f32 %v856_v1, %v860_v17 }
 0x645   :  { %v866_v19 = vmul.f32 1.442695, %v864_v18 }
 0x646   :  { %v875_v26 = vpop.xlane.xlu0 %874 }
 0x647   :  { %16274 = vpow2.f32 %v866_v19 }
 0x651   :  { %v16275_v20 = vpop.eup %16274 }
 0x652   :  { %v870_v21 = vsel %vm101_vm6, %v16275_v20, 0.0 }
 0x653   :  { %871 = vadd.xlane.f32.xlu0 %v870_v21 }
 0x669   :  { %678 = vrot.lane.b32.xlu0 %v16711_v7, %s16633_s28 }
 0x6e0   :  { %v872_v27 = vpop.xlane.xlu0 %871 }
 0x6e1   :  { %16276 = vrcp.f32 %v872_v27 }
 0x6e2   :  { %16278 = vrcp.f32 %v875_v26 }
 0x6e4   :  { %v679_v28 = vpop.permute.xlu0 %678 }
 0x6e5   :  { %14506 = vmatprep.subr.msk.mxu1 %vm600_vm11, %v679_v28 }
 0x6eb   :  { %v16277_v47 = vpop.eup %16276 }
 0x6ec   :  { %v16279_v33 = vpop.eup %16278  ;;  %v878_v50 = vmul.f32 %v16277_v47, %v16275_v20 }
 0x6ee   :  { %v14500_v37 = vpop.f32.mrb[2].mxu1 }
 0x6ef   :  { %v581_v38 = vpop.f32.mrb[3].mxu1 }
 0x6f0   :  { %14503 = vmatprep.mubr.msk.f32.mxu1 %vm189_vm9, %v581_v38 }
 0x6f1   :  { %14504 = vmatmul.mubr.msk.f32.vlgmr.msra.gmra.mrb[4].mxu1 %vm189_vm9, %v14500_v37  ;;  %v14536_v7 = vpop.f32.mrb[8].mxu0 }
 0x6f2   :  { %14507 = vmatpush3.msk.msra.mxu1 %vm600_vm11, %v679_v28  ;;  %v1147_v41 = vmul.f32 0.5, %v14536_v7  ;;  %14508 = vmatprep.mubr.msk.f32.mxu1 %vm189_vm9, %v16814_v23  ;;  %v1137_v42 = vpop.f32.mrb[9].mxu0  ;;  %v879_v23 = vmul.f32 %v16279_v33, %v16839_v3  ;;  %v13590_v7 = vld [vmem:[%s18520_s9] ss:$0 sm:$0xff] }
 0x6f3   :  { %15356 = vmatprep.subr.bf16.mxu1 %v15355_v39  ;;  %v1146_v44 = vmul.f32 0.5, %v1137_v42 }
 0x6f4   :  { %v1149_v45 = vadd.f32 %v1147_v41, %v16771_v43  ;;  %v1396_v41 = vld [vmem:[%s18521_s7 + $0x8] sm:$0xff] }
 0x6f5   :  { %v1148_v35 = vadd.f32 %v1146_v44, %v16776_v46 }
 0x6f6   :  { %v1153_v48 = vsel %vm101_vm6, %v1149_v45, -inf }
 0x6f7   :  { %1154 = vmax.xlane.f32.xlu0 %v1153_v48  ;;  %v1150_v49 = vsel %vm101_vm6, %v1148_v35, -inf }
 0x6f8   :  { %1151 = vmax.xlane.f32.xlu1 %v1150_v49 }
 0x6f9   :  { %14509 = vmatmul.mubr.msk.f32.vlgmr.msra.gmra.mrb[4].mxu1 %vm189_vm9, %v16812_v22 }
 0x6fa   :  { %15358 = vmatpush3.bf16.msra.mxu1 %v15355_v39  ;;  %14522 = vmatprep.mubr.msk.f32.mxu1 %vm101_vm6, %v878_v50  ;;  %v1395_v39 = vld [vmem:[%s18521_s7] sm:$0xff] }
 0x6fb   :  { %v15369_v42 = vpack.c.bf16 %v1396_v41, %v1395_v39  ;;  %v15906_v44 = vpack.i.bf16 %v1396_v41, %v1395_v39 }
 0x6fd   :  { %14523 = vmatmul.mubr.msk.f32.vlgmr.msra.gmra.mrb[6].mxu1 %vm101_vm6, %v879_v23  ;;  %15370 = vmatprep.subr.bf16.mxu0 %v15369_v42 }
 0x6fe   :  { %15372 = vmatpush3.bf16.msra.mxu0 %v15369_v42 }
 0x784   :  { %v1155_v51 = vpop.xlane.xlu0 %1154 }
 0x785   :  { %v1157_v52 = vsub.f32 %v1149_v45, %v1155_v51  ;;  %v1152_v53 = vpop.xlane.xlu1 %1151 }
 0x786   :  { %v1156_v54 = vsub.f32 %v1148_v35, %v1152_v53 }
 0x787   :  { %v1160_v55 = vmul.f32 1.442695, %v1157_v52 }
 0x788   :  { %v1158_v56 = vmul.f32 1.442695, %v1156_v54 }
 0x789   :  { %16280 = vpow2.f32 %v1160_v55 }
 0x78a   :  { %16282 = vpow2.f32 %v1158_v56 }
 0x793   :  { %v16281_v57 = vpop.eup %16280 }
 0x794   :  { %v16283_v58 = vpop.eup %16282  ;;  %v1165_v59 = vsel %vm101_vm6, %v16281_v57, 0.0 }
 0x795   :  { %1166 = vadd.xlane.f32.xlu1 %v1165_v59  ;;  %v1162_v22 = vsel %vm101_vm6, %v16283_v58, 0.0 }
 0x796   :  { %1163 = vadd.xlane.f32.xlu0 %v1162_v22 }
 0x7a6   :  { %15902 = vrot.lane.b32.xlu1 %v16752_v36, %s16636_s30 }
 0x7aa   :  { %1260 = vrot.lane.b32.xlu1 %v1259_v60, %s16633_s28 }
 0x7ac   :  { %968 = vrot.lane.b32.xlu0 %v16716_v8, %s16633_s28 }
 0x7b0   :  { %1348 = vrot.lane.b32.xlu0 %v16740_v31, %s16633_s28 }
 0x7d0   :  { %v14524_v61 = vpop.f32.mrb[6].mxu1 }
 0x7d1   :  { %v958_v62 = vpop.f32.mrb[7].mxu1 }
 0x7d2   :  { %14527 = vmatprep.mubr.msk.f32.mxu1 %vm189_vm9, %v958_v62  ;;  %v13591_v62 = vld [vmem:[%s18522_s8] ss:$0 sm:$0xff] }
 0x822   :  { %v1167_v63 = vpop.xlane.xlu1 %1166 }
 0x823   :  { %16284 = vrcp.f32 %v1167_v63  ;;  %v1164_v0 = vpop.xlane.xlu0 %1163 }
 0x824   :  { %16286 = vrcp.f32 %v1164_v0 }
 0x826   :  { %v15903_v1 = vpop.permute.xlu1 %15902 }
 0x827   :  { %v15905_v36 = vunpack.i.h.bf16 %v15903_v1  ;;  %v15904_v2 = vunpack.i.l.bf16 %v15903_v1  ;;  %v969_v3 = vpop.permute.xlu0 %968 }
 0x828   :  { %14525 = vmatprep.subr.msk.mxu1 %vm600_vm11, %v969_v3 }
 0x829   :  { %14526 = vmatpush3.msk.msra.mxu1 %vm600_vm11, %v969_v3  ;;  %v15365_v31 = vpack.c.bf16 %v15905_v36, %v15904_v2 }
 0x82a   :  { %14528 = vmatmul.mubr.msk.f32.vlgmr.msra.gmra.mrb[4].mxu1 %vm189_vm9, %v14524_v61  ;;  %v1261_v8 = vpop.permute.xlu1 %1260 }
 0x82b   :  { %15366 = vmatprep.subr.bf16.mxu1 %v15365_v31  ;;  %v1349_v12 = vpop.permute.xlu0 %1348 }
 0x82c   :  { %15368 = vmatpush3.bf16.msra.mxu1 %v15365_v31 }
 0x82d   :  { %v16285_v4 = vpop.eup %16284  ;;  %14544 = vmatprep.subr.msk.mxu1 %vm600_vm11, %v1261_v8 }
 0x82e   :  { %v16287_v5 = vpop.eup %16286  ;;  %v1171_v9 = vmul.f32 %v16285_v4, %v16281_v57 }
 0x82f   :  { %v1170_v6 = vmul.f32 %v16287_v5, %v16283_v58 }
 0x831   :  { %14541 = vmatprep.mubr.msk.f32.mxu1 %vm101_vm6, %v1170_v6 }
 0x832   :  { %14542 = vmatmul.mubr.msk.f32.vlgmr.msra.gmra.mrb[8].mxu1 %vm101_vm6, %v1171_v9 }
 0x833   :  { %14545 = vmatpush3.msk.msra.mxu1 %vm600_vm11, %v1261_v8 }
 0x905   :  { %v14543_v10 = vpop.f32.mrb[8].mxu1 }
 0x906   :  { %v1250_v11 = vpop.f32.mrb[9].mxu1 }
 0x907   :  { %14546 = vmatprep.mubr.msk.f32.mxu1 %vm189_vm9, %v1250_v11 }
 0x908   :  { %14547 = vmatmul.mubr.msk.f32.vlgmr.msra.gmra.mrb[4].mxu1 %vm189_vm9, %v14543_v10 }
 0x9db   :  { %v14548_v13 = vpop.f32.mrb[4].mxu1 }
 0x9dc   :  { %v1352_v14 = vadd.f32 %v14548_v13, %v1349_v12  ;;  %v1336_v15 = vpop.f32.mrb[5].mxu1  ;;  %v13598_v13 = vld [vmem:[%s18520_s9 + $0x1] ss:$0 sm:$0xff] }
 0x9dd   :  { %v1351_v16 = vadd.f32 %v1349_v12, %v1336_v15 }
 0x9de   :  { %v1354_v17 = vadd.f32 %v1352_v14, %v16733_v30 }
 0x9df   :  { %v1353_v18 = vadd.f32 %v1351_v16, %v16726_v24 }
 0x9e0   :  { %v1359_v19 = vsel %vm101_vm6, %v1354_v17, 0.0 }
 0x9e1   :  { %1360 = vadd.xlane.f32.xlu0 %v1359_v19  ;;  %v1356_v20 = vsel %vm101_vm6, %v1353_v18, 0.0 }
 0x9e2   :  { %1357 = vadd.xlane.f32.xlu1 %v1356_v20 }
 0xa6e   :  { %v1361_v21 = vpop.xlane.xlu0 %1360 }
 0xa6f   :  { %v1364_v25 = vmul.f32 0.0625, %v1361_v21  ;;  %v1358_v26 = vpop.xlane.xlu1 %1357 }
 0xa70   :  { %v1363_v27 = vmul.f32 0.0625, %v1358_v26 }
 0xa71   :  { %v1366_v28 = vsub.f32 %v1354_v17, %v1364_v25 }
 0xa72   :  { %v1365_v29 = vsub.f32 %v1353_v18, %v1363_v27  ;;  %v16936_v27 = vld [vmem:[%s18515_s5 + $0x10] sm:$0xff] }
 0xa73   :  { %v1368_v32 = vmul.f32 %v1366_v28, %v1366_v28 }
 0xa74   :  { %v1367_v34 = vmul.f32 %v1365_v29, %v1365_v29 }
 0xa75   :  { %v1372_v37 = vsel %vm101_vm6, %v1368_v32, 0.0 }
 0xa76   :  { %1373 = vadd.xlane.f32.xlu1 %v1372_v37  ;;  %v1369_v38 = vsel %vm101_vm6, %v1367_v34, 0.0 }
 0xa77   :  { %1370 = vadd.xlane.f32.xlu0 %v1369_v38 }
 0xa87   :  { %15907 = vrot.lane.b32.xlu1 %v15906_v44, %s16628_s23 }
 0xa8b   :  { %1492 = vrot.lane.b32.xlu1 %v13591_v62, %s16628_s23 }
 0xa8d   :  { %1390 = vrot.lane.b32.xlu0 %v13590_v7, %s16625_s1 }
 0xb03   :  { %v1374_v45 = vpop.xlane.xlu1 %1373 }
 0xb04   :  { %v1376_v47 = vmul.f32 0.0625, %v1374_v45  ;;  %v1371_v35 = vpop.xlane.xlu0 %1370 }
 0xb05   :  { %v1375_v48 = vmul.f32 0.0625, %v1371_v35 }
 0xb06   :  { %v1378_v49 = vadd.f32 1e-05, %v1376_v47 }
 0xb07   :  { %v1377_v33 = vadd.f32 1e-05, %v1375_v48  ;;  %v15908_v50 = vpop.permute.xlu1 %15907 }
 0xb08   :  { %16288 = vrsqrt.f32 %v1378_v49  ;;  %v15910_v23 = vunpack.i.h.bf16 %v15908_v50  ;;  %v15909_v51 = vunpack.i.l.bf16 %v15908_v50  ;;  %v1391_v58 = vpop.permute.xlu0 %1390  ;;  %v16956_v50 = vld [vmem:[%s18518_s6 + $0x1] ss:$0 sm:$0xff] }
 0xb09   :  { %16290 = vrsqrt.f32 %v1377_v33 }
 0xb0a   :  { %v15373_v54 = vpack.c.bf16 %v15910_v23, %v15909_v51 }
 0xb0b   :  { %v1493_v31 = vpop.permute.xlu1 %1492 }
 0xb0c   :  { %15375 = vmatprep.subr.msk.bf16.mxu0 %vm16909_vm13, %v15373_v54 }
 0xb12   :  { %v16289_v53 = vpop.eup %16288 }
 0xb13   :  { %v16291_v55 = vpop.eup %16290  ;;  %v1382_v56 = vmul.f32 %v16289_v53, %v1366_v28  ;;  %v16941_v28 = vld [vmem:[%s18515_s5 + $0x18] sm:$0xff] }
 0xb14   :  { %v1381_v57 = vmul.f32 %v16291_v55, %v1365_v29  ;;  %v15379_v29 = vpack.c.bf16 %v16941_v28, %v16936_v27 }
 0xb15   :  { %v1388_v59 = vmul.f32 %v13590_v7, %v1382_v56 }
 0xb16   :  { %v1387_v22 = vmul.f32 %v13590_v7, %v1381_v57  ;;  %15380 = vmatprep.subr.bf16.mxu1 %v15379_v29 }
 0xb17   :  { %v1394_v61 = vadd.f32 %v1391_v58, %v1388_v59  ;;  %15382 = vmatpush3.bf16.msra.mxu1 %v15379_v29 }
 0xb18   :  { %v1393_v60 = vadd.f32 %v1391_v58, %v1387_v22 }
 0xb1a   :  { %14553 = vmatprep.mubr.msk.f32.mxu0 %vm101_vm6, %v1393_v60 }
 0xb1b   :  { %14554 = vmatmul.mubr.msk.f32.vlgmr.msra.gmra.mrb[10].mxu0 %vm101_vm6, %v1394_v61 }
 0xb1c   :  { %15378 = vmatpush3.bf16.xpose.msk.msra.mxu0 %vm16909_vm13, %v15373_v54 }
 0xbee   :  { %v14555_v63 = vpop.f32.mrb[10].mxu0 }
 0xbef   :  { %v1480_v0 = vadd.f32 %v14555_v63, %v13591_v62  ;;  %v1474_v1 = vpop.f32.mrb[11].mxu0 }
 0xbf0   :  { %v1475_v36 = vadd.f32 %v13591_v62, %v1474_v1 }
 0xbf1   :  { %v1484_v3 = vmax.f32 %v1480_v0, 0.0 }
 0xbf2   :  { %v1483_v2 = vmax.f32 %v1475_v36, 0.0 }
 0xbf4   :  { %14560 = vmatprep.mubr.msk.f32.mxu0 %vm1495_vm12, %v1483_v2 }
 0xbf5   :  { %14561 = vmatmul.mubr.msk.f32.vlgmr.msra.gmra.mrb[12].mxu0 %vm1495_vm12, %v1484_v3 }
 0xcc8   :  { %v14562_v8 = vpop.f32.mrb[12].mxu0 }
 0xcc9   :  { %v1578_v4 = vadd.f32 %v14562_v8, %v1493_v31  ;;  %v1572_v5 = vpop.f32.mrb[13].mxu0 }
 0xcca   :  { %v1573_v6 = vadd.f32 %v1572_v5, %v1493_v31 }
 0xccb   :  { %v1582_v9 = vadd.f32 %v1578_v4, %v1394_v61 }
 0xccc   :  { %v1581_v10 = vadd.f32 %v1573_v6, %v1393_v60 }
 0xccd   :  { %v1587_v11 = vsel %vm101_vm6, %v1582_v9, 0.0 }
 0xcce   :  { %1588 = vadd.xlane.f32.xlu1 %v1587_v11  ;;  %v1584_v12 = vsel %vm101_vm6, %v1581_v10, 0.0 }
 0xccf   :  { %1585 = vadd.xlane.f32.xlu0 %v1584_v12 }
 0xcdf   :  { %1617 = vrot.lane.b32.xlu1 %v13598_v13, %s16625_s1 }
 0xd5b   :  { %v1589_v14 = vpop.xlane.xlu1 %1588 }
 0xd5c   :  { %v1591_v15 = vmul.f32 0.0625, %v1589_v14  ;;  %v1586_v16 = vpop.xlane.xlu0 %1585 }
 0xd5d   :  { %v1590_v17 = vmul.f32 0.0625, %v1586_v16 }
 0xd5e   :  { %v1593_v18 = vsub.f32 %v1582_v9, %v1591_v15 }
 0xd5f   :  { %v1592_v19 = vsub.f32 %v1581_v10, %v1590_v17  ;;  %v1618_v44 = vpop.permute.xlu1 %1617 }
 0xd60   :  { %v1595_v25 = vmul.f32 %v1593_v18, %v1593_v18 }
 0xd61   :  { %v1594_v20 = vmul.f32 %v1592_v19, %v1592_v19 }
 0xd62   :  { %v1599_v26 = vsel %vm101_vm6, %v1595_v25, 0.0 }
 0xd63   :  { %v1596_v21 = vsel %vm101_vm6, %v1594_v20, 0.0 }
 0xd64   :  { %1597 = vadd.xlane.f32.xlu0 %v1596_v21 }
 0xd68   :  { %1600 = vadd.xlane.f32.xlu0 %v1599_v26 }
 0xdf1   :  { %v1598_v32 = vpop.xlane.xlu0 %1597 }
 0xdf2   :  { %v1602_v34 = vmul.f32 0.0625, %v1598_v32 }
 0xdf4   :  { %v1604_v37 = vadd.f32 1e-05, %v1602_v34 }
 0xdf5   :  { %v1601_v38 = vpop.xlane.xlu0 %1600 }
 0xdf6   :  { %16292 = vrsqrt.f32 %v1604_v37  ;;  %v1603_v7 = vmul.f32 0.0625, %v1601_v38 }
 0xdf8   :  { %v1605_v39 = vadd.f32 1e-05, %v1603_v7 }
 0xdfa   :  { %16294 = vrsqrt.f32 %v1605_v39 }
 0xe00   :  { %v16293_v41 = vpop.eup %16292 }
 0xe01   :  { %v1608_v42 = vmul.f32 %v16293_v41, %v1592_v19 }
 0xe03   :  { %v1614_v45 = vmul.f32 %v13598_v13, %v1608_v42 }
 0xe04   :  { %v16295_v47 = vpop.eup %16294 }
 0xe05   :  { %v1609_v35 = vmul.f32 %v16295_v47, %v1593_v18  ;;  %v16945_v48 = vadd.f32 %v1618_v44, %v1614_v45 }
 0xe07   :  { %v1615_v49 = vmul.f32 %v13598_v13, %v1609_v35  ;;  %14567 = vmatprep.mubr.msk.f32.mxu1 %vm101_vm6, %v16945_v48 }
 0xe09   :  { %v16949_v33 = vadd.f32 %v1618_v44, %v1615_v49 }
 0xe0b   :  { %14568 = vmatmul.mubr.msk.f32.vlgmr.msra.gmra.mrb[10].mxu1 %vm101_vm6, %v16949_v33 }
 0xede   :  { %v14569_v23 = vpop.f32.mrb[10].mxu1 }
 0xedf   :  { %v16959_v51 = vadd.f32 %v14569_v23, %v16956_v50  ;;  %v1701_v53 = vpop.f32.mrb[11].mxu1 }
 0xee0   :  { %v16962_v54 = vadd.f32 %v16956_v50, %v1701_v53 }
 0xee2   :  { %14574 = vmatprep.mubr.msk.f32.mxu1 %vm189_vm9, %v16962_v54  ;;  %v16968_v55 = vpack.i.bf16 %v16959_v51, %v16962_v54 }
 0xee4   :  { %15912 = vrot.lane.b32.xlu0 %v16968_v55, %s16625_s1 }
 0xf56   :  { %v15913_v56 = vpop.permute.xlu0 %15912 }
 0xf57   :  { %v15915_v57 = vunpack.i.h.bf16 %v15913_v56  ;;  %v15914_v58 = vunpack.i.l.bf16 %v15913_v56 }
 0xf59   :  { %v15383_v59 = vpack.c.bf16 %v15915_v57, %v15914_v58 }
 0xf5b   :  { %15385 = vmatprep.subr.msk.bf16.mxu1 %vm16758_vm10, %v15383_v59 }
 0xf5c   :  { %15388 = vmatpush3.bf16.xpose.msk.msra.mxu1 %vm16758_vm10, %v15383_v59 }
 0xf63   :  { %14575 = vmatmul.mubr.msk.f32.vlgmr.msra.gmra.mrb[12].mxu1 %vm189_vm9, %v16959_v51 }
0x1036   :  { %v14576_v22 = vpop.f32.mrb[12].mxu1 }
0x1037   :  { %v1800_v60 = vmul.f32 0.5, %v14576_v22  ;;  %v1790_v61 = vpop.f32.mrb[13].mxu1 }
0x1038   :  { %v1799_v62 = vmul.f32 0.5, %v1790_v61 }
0x1039   :  { %v1802_v63 = vadd.f32 %v1800_v60, %v16771_v43 }
0x103a   :  { %v1801_v0 = vadd.f32 %v1799_v62, %v16776_v46 }
0x103b   :  { %v1806_v1 = vsel %vm101_vm6, %v1802_v63, -inf }
0x103c   :  { %1807 = vmax.xlane.f32.xlu0 %v1806_v1  ;;  %v1803_v36 = vsel %vm101_vm6, %v1801_v0, -inf }
0x103d   :  { %1804 = vmax.xlane.f32.xlu1 %v1803_v36 }
0x104e   :  { %15917 = vrot.lane.b32.xlu1 %v16968_v55, %s16628_s23 }
0x1052   :  { %1912 = vrot.lane.b32.xlu1 %v16962_v54, %s16627_s22 }
0x10c9   :  { %v1808_v2 = vpop.xlane.xlu0 %1807 }
0x10ca   :  { %v1810_v3 = vsub.f32 %v1802_v63, %v1808_v2  ;;  %v1805_v31 = vpop.xlane.xlu1 %1804 }
0x10cb   :  { %v1809_v8 = vsub.f32 %v1801_v0, %v1805_v31 }
0x10cc   :  { %v1813_v4 = vmul.f32 1.442695, %v1810_v3 }
0x10cd   :  { %v1811_v5 = vmul.f32 1.442695, %v1809_v8 }
0x10ce   :  { %16296 = vpow2.f32 %v1813_v4  ;;  %v15918_v6 = vpop.permute.xlu1 %15917 }
0x10cf   :  { %16298 = vpow2.f32 %v1811_v5  ;;  %v15920_v9 = vunpack.i.h.bf16 %v15918_v6  ;;  %v15919_v10 = vunpack.i.l.bf16 %v15918_v6 }
0x10d1   :  { %v15389_v11 = vpack.c.bf16 %v15920_v9, %v15919_v10 }
0x10d2   :  { %v1913_v16 = vpop.permute.xlu1 %1912 }
0x10d3   :  { %15390 = vmatprep.subr.bf16.mxu0 %v15389_v11 }
0x10d4   :  { %15392 = vmatpush3.bf16.msra.mxu0 %v15389_v11 }
0x10d8   :  { %v16297_v12 = vpop.eup %16296 }
0x10d9   :  { %v16299_v13 = vpop.eup %16298  ;;  %v1818_v14 = vsel %vm101_vm6, %v16297_v12, 0.0 }
0x10da   :  { %1819 = vadd.xlane.f32.xlu0 %v1818_v14  ;;  %v1815_v15 = vsel %vm101_vm6, %v16299_v13, 0.0 }
0x10db   :  { %1816 = vadd.xlane.f32.xlu1 %v1815_v15 }
0x10ec   :  { %1914 = vrot.lane.b32.xlu1 %v16959_v51, %s16627_s22 }
0x10f0   :  { %15922 = vrot.lane.b32.xlu0 %v16968_v55, %s16626_s21  ;;  %2288 = vrot.lane.b32.xlu1 %v16962_v54, %s16630_s25 }
0x10f4   :  { %15927 = vrot.lane.b32.xlu0 %v16968_v55, %s16629_s24 }
0x10f8   :  { %2290 = vrot.lane.b32.xlu0 %v16959_v51, %s16630_s25 }
0x1167   :  { %v1820_v17 = vpop.xlane.xlu0 %1819 }
0x1168   :  { %16300 = vrcp.f32 %v1820_v17  ;;  %v1817_v18 = vpop.xlane.xlu1 %1816 }
0x1169   :  { %16302 = vrcp.f32 %v1817_v18 }
0x116b   :  { %v15923_v19 = vpop.permute.xlu0 %15922 }
0x116c   :  { %v15925_v20 = vunpack.i.h.bf16 %v15923_v19  ;;  %v15924_v21 = vunpack.i.l.bf16 %v15923_v19  ;;  %v1915_v41 = vpop.permute.xlu1 %1914 }
0x116e   :  { %v15393_v25 = vpack.c.bf16 %v15925_v20, %v15924_v21 }
0x116f   :  { %v15928_v26 = vpop.permute.xlu0 %15927 }
0x1170   :  { %15395 = vmatprep.subr.msk.bf16.mxu0 %vm16758_vm10, %v15393_v25  ;;  %v15930_v34 = vunpack.i.h.bf16 %v15928_v26  ;;  %v15929_v37 = vunpack.i.l.bf16 %v15928_v26  ;;  %v2289_v42 = vpop.permute.xlu1 %2288 }
0x1172   :  { %v16301_v29 = vpop.eup %16300  ;;  %v15403_v39 = vpack.c.bf16 %v15930_v34, %v15929_v37 }
0x1173   :  { %v16303_v32 = vpop.eup %16302  ;;  %v1824_v7 = vmul.f32 %v16301_v29, %v16297_v12  ;;  %v2291_v44 = vpop.permute.xlu0 %2290 }
0x1174   :  { %v1823_v38 = vmul.f32 %v16303_v32, %v16299_v13 }
0x1176   :  { %14581 = vmatprep.mubr.msk.f32.mxu0 %vm101_vm6, %v1823_v38 }
0x1177   :  { %14582 = vmatmul.mubr.msk.f32.vlgmr.msra.gmra.mrb[14].mxu0 %vm101_vm6, %v1824_v7 }
0x1178   :  { %15398 = vmatpush3.bf16.xpose.msk.msra.mxu0 %vm16758_vm10, %v15393_v25  ;;  %14588 = vmatprep.mubr.msk.f32.mxu0 %vm189_vm9, %v1913_v16 }
0x1179   :  { %15405 = vmatprep.subr.msk.bf16.mxu0 %vm16758_vm10, %v15403_v39 }
0x117f   :  { %14589 = vmatmul.mubr.msk.f32.vlgmr.msra.gmra.mrb[16].mxu0 %vm189_vm9, %v1915_v41 }
0x1180   :  { %15408 = vmatpush3.bf16.xpose.msk.msra.mxu0 %vm16758_vm10, %v15403_v39  ;;  %14612 = vmatprep.mubr.msk.f32.mxu0 %vm189_vm9, %v2289_v42 }
0x1187   :  { %14613 = vmatmul.mubr.msk.f32.vlgmr.msra.gmra.mrb[18].mxu0 %vm189_vm9, %v2291_v44 }
0x124a   :  { %v17012_v45 = vpop.f32.mrb[14].mxu0 }
0x124b   :  { %v17014_v47 = vpop.f32.mrb[15].mxu0 }
0x1252   :  { %v14590_v35 = vpop.f32.mrb[16].mxu0 }
0x1253   :  { %v2004_v49 = vmul.f32 0.5, %v14590_v35  ;;  %v1994_v23 = vpop.f32.mrb[17].mxu0  ;;  %v2117_v35 = vrot.slane %v16936_v27, 4 }
0x1254   :  { %v2003_v53 = vmul.f32 0.5, %v1994_v23 }
0x1255   :  { %v2006_v56 = vadd.f32 %v2004_v49, %v16771_v43 }
0x1256   :  { %v2005_v57 = vadd.f32 %v2003_v53, %v16776_v46 }
0x1257   :  { %v2010_v58 = vsel %vm101_vm6, %v2006_v56, -inf }
0x1258   :  { %2011 = vmax.xlane.f32.xlu0 %v2010_v58  ;;  %v2007_v59 = vsel %vm101_vm6, %v2005_v57, -inf }
0x1259   :  { %2008 = vmax.xlane.f32.xlu1 %v2007_v59 }
0x125a   :  { %v14614_v22 = vpop.f32.mrb[18].mxu0 }
0x125b   :  { %v2370_v60 = vpop.f32.mrb[19].mxu0  ;;  %v2380_v5 = vmul.f32 0.5, %v14614_v22 }
0x125c   :  { %v2379_v4 = vmul.f32 0.5, %v2370_v60 }
0x125d   :  { %v2382_v9 = vadd.f32 %v2380_v5, %v16771_v43 }
0x125e   :  { %v2381_v6 = vadd.f32 %v2379_v4, %v16776_v46 }
0x125f   :  { %v2386_v11 = vsel %vm101_vm6, %v2382_v9, -inf }
0x1260   :  { %v2383_v10 = vsel %vm101_vm6, %v2381_v6, -inf }
0x12e5   :  { %v2012_v61 = vpop.xlane.xlu0 %2011 }
0x12e6   :  { %v2014_v62 = vsub.f32 %v2006_v56, %v2012_v61  ;;  %v2009_v63 = vpop.xlane.xlu1 %2008 }
0x12e7   :  { %v2013_v0 = vsub.f32 %v2005_v57, %v2009_v63 }
0x12e8   :  { %v2017_v1 = vmul.f32 1.442695, %v2014_v62 }
0x12e9   :  { %v2015_v36 = vmul.f32 1.442695, %v2013_v0 }
0x12ea   :  { %16304 = vpow2.f32 %v2017_v1  ;;  %v17061_v1 = vld [vmem:[%s18519_s2 + $0x8] sm:$0xff] }
0x12eb   :  { %16306 = vpow2.f32 %v2015_v36 }
0x12f4   :  { %v16305_v2 = vpop.eup %16304 }
0x12f5   :  { %v16307_v3 = vpop.eup %16306  ;;  %v2022_v31 = vsel %vm101_vm6, %v16305_v2, 0.0 }
0x12f6   :  { %2023 = vadd.xlane.f32.xlu1 %v2022_v31  ;;  %v2019_v8 = vsel %vm101_vm6, %v16307_v3, 0.0 }
0x12f7   :  { %2020 = vadd.xlane.f32.xlu0 %v2019_v8 }
0x1307   :  { %15937 = vrot.lane.b32.xlu1 %v16968_v55, %s16635_s29 }
0x130b   :  { %2580 = vrot.lane.b32.xlu1 %v16962_v54, %s16632_s27 }
0x130d   :  { %15932 = vrot.lane.b32.xlu0 %v16968_v55, %s16631_s26 }
0x1311   :  { %2582 = vrot.lane.b32.xlu0 %v16959_v51, %s16632_s27 }
0x132f   :  { %2384 = vmax.xlane.f32.xlu1 %v2383_v10 }
0x1330   :  { %2387 = vmax.xlane.f32.xlu0 %v2386_v11 }
0x1383   :  { %v2024_v12 = vpop.xlane.xlu1 %2023 }
0x1384   :  { %16308 = vrcp.f32 %v2024_v12  ;;  %v2021_v54 = vpop.xlane.xlu0 %2020 }
0x1385   :  { %16310 = vrcp.f32 %v2021_v54 }
0x1387   :  { %v15938_v13 = vpop.permute.xlu1 %15937 }
0x1388   :  { %v15940_v14 = vunpack.i.h.bf16 %v15938_v13  ;;  %v15939_v15 = vunpack.i.l.bf16 %v15938_v13  ;;  %v15933_v51 = vpop.permute.xlu0 %15932 }
0x1389   :  { %v15935_v16 = vunpack.i.h.bf16 %v15933_v51  ;;  %v15934_v17 = vunpack.i.l.bf16 %v15933_v51 }
0x138a   :  { %v15413_v18 = vpack.c.bf16 %v15940_v14, %v15939_v15 }
0x138b   :  { %v2581_v46 = vpop.permute.xlu1 %2580  ;;  %v15399_v19 = vpack.c.bf16 %v15935_v16, %v15934_v17  ;;  %v2784_v17 = vrot.slane %v16941_v28, 4 }
0x138c   :  { %15415 = vmatprep.subr.msk.bf16.mxu0 %vm16758_vm10, %v15413_v18  ;;  %14631 = vmatprep.mubr.msk.f32.mxu0 %vm189_vm9, %v2581_v46  ;;  %v2583_v26 = vpop.permute.xlu0 %2582 }
0x138d   :  { %15400 = vmatprep.subr.bf16.mxu1 %v15399_v19  ;;  %15418 = vmatpush3.bf16.xpose.msk.msra.mxu0 %vm16758_vm10, %v15413_v18 }
0x138e   :  { %v16309_v43 = vpop.eup %16308  ;;  %15402 = vmatpush3.bf16.msra.mxu1 %v15399_v19 }
0x138f   :  { %v16311_v20 = vpop.eup %16310  ;;  %v2028_v25 = vmul.f32 %v16309_v43, %v16305_v2  ;;  %v17067_v2 = vld [vmem:[%s18519_s2] sm:$0xff] }
0x1390   :  { %v2027_v21 = vmul.f32 %v16311_v20, %v16307_v3 }
0x1392   :  { %14595 = vmatprep.mubr.msk.f32.mxu1 %vm101_vm6, %v2027_v21 }
0x1393   :  { %14596 = vmatmul.mubr.msk.f32.vlgmr.msra.gmra.mrb[14].mxu1 %vm101_vm6, %v2028_v25 }
0x1394   :  { %14632 = vmatmul.mubr.msk.f32.vlgmr.msra.gmra.mrb[20].mxu0 %vm189_vm9, %v2583_v26 }
0x13bc   :  { %v2385_v29 = vpop.xlane.xlu1 %2384 }
0x13bd   :  { %v2389_v32 = vsub.f32 %v2381_v6, %v2385_v29  ;;  %v2388_v34 = vpop.xlane.xlu0 %2387 }
0x13be   :  { %v2390_v37 = vsub.f32 %v2382_v9, %v2388_v34 }
0x13bf   :  { %v2391_v38 = vmul.f32 1.442695, %v2389_v32 }
0x13c0   :  { %v2393_v7 = vmul.f32 1.442695, %v2390_v37 }
0x13c1   :  { %16312 = vpow2.f32 %v2391_v38 }
0x13c2   :  { %16314 = vpow2.f32 %v2393_v7 }
0x13cb   :  { %v16313_v39 = vpop.eup %16312 }
0x13cc   :  { %v16315_v41 = vpop.eup %16314  ;;  %v2395_v42 = vsel %vm101_vm6, %v16313_v39, 0.0 }
0x13cd   :  { %2396 = vadd.xlane.f32.xlu0 %v2395_v42  ;;  %v2398_v44 = vsel %vm101_vm6, %v16315_v41, 0.0 }
0x13ce   :  { %2399 = vadd.xlane.f32.xlu1 %v2398_v44 }
0x13df   :  { %2203 = vrot.lane.b32.xlu1 %v16936_v27, %s16633_s28 }
0x13e3   :  { %15942 = vrot.lane.b32.xlu1 %v16968_v55, %s16634_s0  ;;  %2118 = vrot.lane.b32.xlu0 %v2117_v35, %s16633_s28 }
0x145a   :  { %v2397_v49 = vpop.xlane.xlu0 %2396 }
0x145b   :  { %v2400_v23 = vpop.xlane.xlu1 %2399  ;;  %16316 = vrcp.f32 %v2397_v49 }
0x145c   :  { %16318 = vrcp.f32 %v2400_v23 }
0x145e   :  { %v2119_v53 = vpop.permute.xlu0 %2118 }
0x145f   :  { %v2204_v56 = vpop.permute.xlu1 %2203  ;;  %14598 = vmatprep.subr.msk.mxu1 %vm600_vm11, %v2119_v53 }
0x1460   :  { %14599 = vmatpush3.msk.msra.mxu1 %vm600_vm11, %v2119_v53  ;;  %v13638_v53 = vld [vmem:[%s18520_s9 + $0x2] ss:$0 sm:$0xff] }
0x1461   :  { %14603 = vmatprep.subr.msk.mxu1 %vm600_vm11, %v2204_v56 }
0x1463   :  { %v15943_v57 = vpop.permute.xlu1 %15942 }
0x1464   :  { %v15945_v58 = vunpack.i.h.bf16 %v15943_v57  ;;  %v15944_v59 = vunpack.i.l.bf16 %v15943_v57 }
0x1465   :  { %v16317_v8 = vpop.eup %16316 }
0x1466   :  { %v14597_v27 = vpop.f32.mrb[14].mxu1  ;;  %v15409_v0 = vpack.c.bf16 %v15945_v58, %v15944_v59  ;;  %v16319_v4 = vpop.eup %16318  ;;  %v2403_v5 = vmul.f32 %v16317_v8, %v16313_v39 }
0x1467   :  { %v2107_v22 = vpop.f32.mrb[15].mxu1  ;;  %v14633_v60 = vpop.f32.mrb[20].mxu0  ;;  %v2404_v6 = vmul.f32 %v16319_v4, %v16315_v41 }
0x1468   :  { %v2672_v61 = vmul.f32 0.5, %v14633_v60  ;;  %14600 = vmatprep.mubr.msk.f32.mxu1 %vm189_vm9, %v2107_v22  ;;  %v2662_v62 = vpop.f32.mrb[21].mxu0 }
0x1469   :  { %v2671_v63 = vmul.f32 0.5, %v2662_v62  ;;  %14601 = vmatmul.mubr.msk.f32.vlgmr.msra.gmra.mrb[16].mxu1 %vm189_vm9, %v14597_v27  ;;  %v2919_v62 = vld [vmem:[%s18521_s7 + $0x10] sm:$0xff] }
0x146a   :  { %14604 = vmatpush3.msk.msra.mxu1 %vm600_vm11, %v2204_v56  ;;  %14605 = vmatprep.mubr.msk.f32.mxu1 %vm189_vm9, %v17014_v47  ;;  %v2674_v36 = vadd.f32 %v17061_v1, %v2672_v61 }
0x146b   :  { %15410 = vmatprep.subr.bf16.mxu1 %v15409_v0  ;;  %v2673_v3 = vadd.f32 %v17067_v2, %v2671_v63  ;;  %v2920_v63 = vld [vmem:[%s18521_s7 + $0x18] sm:$0xff] }
0x146c   :  { %v2678_v31 = vsel %vm101_vm6, %v2674_v36, -inf }
0x146d   :  { %2679 = vmax.xlane.f32.xlu1 %v2678_v31  ;;  %v2675_v47 = vsel %vm101_vm6, %v2673_v3, -inf }
0x146e   :  { %2676 = vmax.xlane.f32.xlu0 %v2675_v47 }
0x1471   :  { %14606 = vmatmul.mubr.msk.f32.vlgmr.msra.gmra.mrb[16].mxu1 %vm189_vm9, %v17012_v45 }
0x1472   :  { %15412 = vmatpush3.bf16.msra.mxu1 %v15409_v0  ;;  %14619 = vmatprep.mubr.msk.f32.mxu1 %vm101_vm6, %v2403_v5  ;;  %v15423_v0 = vpack.c.bf16 %v2920_v63, %v2919_v62 }
0x1474   :  { %15424 = vmatprep.subr.bf16.mxu0 %v15423_v0 }
0x1475   :  { %14620 = vmatmul.mubr.msk.f32.vlgmr.msra.gmra.mrb[18].mxu1 %vm101_vm6, %v2404_v6  ;;  %15426 = vmatpush3.bf16.msra.mxu0 %v15423_v0 }
0x147e   :  { %2493 = vrot.lane.b32.xlu1 %v16941_v28, %s16633_s28 }
0x1482   :  { %2785 = vrot.lane.b32.xlu1 %v2784_v17, %s16633_s28 }
0x1486   :  { %2873 = vrot.lane.b32.xlu1 %v16956_v50, %s16633_s28 }
0x14fa   :  { %v2680_v9 = vpop.xlane.xlu1 %2679 }
0x14fb   :  { %v2682_v10 = vsub.f32 %v2674_v36, %v2680_v9  ;;  %v2677_v11 = vpop.xlane.xlu0 %2676  ;;  %v15951_v36 = vpack.i.bf16 %v2920_v63, %v2919_v62 }
0x14fc   :  { %v2681_v12 = vsub.f32 %v2673_v3, %v2677_v11 }
0x14fd   :  { %v2685_v54 = vmul.f32 1.442695, %v2682_v10 }
0x14fe   :  { %v2683_v13 = vmul.f32 1.442695, %v2681_v12  ;;  %v2494_v14 = vpop.permute.xlu1 %2493 }
0x14ff   :  { %16320 = vpow2.f32 %v2685_v54  ;;  %14622 = vmatprep.subr.msk.mxu1 %vm600_vm11, %v2494_v14 }
0x1500   :  { %14623 = vmatpush3.msk.msra.mxu1 %vm600_vm11, %v2494_v14  ;;  %16322 = vpow2.f32 %v2683_v13 }
0x1502   :  { %v2786_v28 = vpop.permute.xlu1 %2785 }
0x1506   :  { %v2874_v38 = vpop.permute.xlu1 %2873 }
0x1509   :  { %v16321_v45 = vpop.eup %16320 }
0x150a   :  { %v2690_v15 = vsel %vm101_vm6, %v16321_v45, 0.0  ;;  %v16323_v51 = vpop.eup %16322 }
0x150b   :  { %2691 = vadd.xlane.f32.xlu0 %v2690_v15  ;;  %v2687_v16 = vsel %vm101_vm6, %v16323_v51, 0.0 }
0x150f   :  { %2688 = vadd.xlane.f32.xlu0 %v2687_v16 }
0x1525   :  { %15947 = vrot.lane.b32.xlu0 %v16968_v55, %s16636_s30 }
0x1548   :  { %v14621_v18 = vpop.f32.mrb[18].mxu1 }
0x1549   :  { %v2483_v46 = vpop.f32.mrb[19].mxu1 }
0x154a   :  { %14624 = vmatprep.mubr.msk.f32.mxu1 %vm189_vm9, %v2483_v46 }
0x154b   :  { %14625 = vmatmul.mubr.msk.f32.vlgmr.msra.gmra.mrb[16].mxu1 %vm189_vm9, %v14621_v18  ;;  %v13639_v18 = vld [vmem:[%s18522_s8 + $0x1] ss:$0 sm:$0xff] }
0x1598   :  { %v2692_v19 = vpop.xlane.xlu0 %2691 }
0x1599   :  { %16324 = vrcp.f32 %v2692_v19 }
0x159c   :  { %v2689_v43 = vpop.xlane.xlu0 %2688 }
0x159d   :  { %16326 = vrcp.f32 %v2689_v43 }
0x15a0   :  { %v15948_v20 = vpop.permute.xlu0 %15947 }
0x15a1   :  { %v15950_v21 = vunpack.i.h.bf16 %v15948_v20  ;;  %v15949_v55 = vunpack.i.l.bf16 %v15948_v20 }
0x15a3   :  { %v15419_v25 = vpack.c.bf16 %v15950_v21, %v15949_v55  ;;  %v16325_v26 = vpop.eup %16324 }
0x15a4   :  { %v2696_v32 = vmul.f32 %v16325_v26, %v16321_v45 }
0x15a5   :  { %15420 = vmatprep.subr.bf16.mxu1 %v15419_v25 }
0x15a6   :  { %15422 = vmatpush3.bf16.msra.mxu1 %v15419_v25 }
0x15a7   :  { %v16327_v29 = vpop.eup %16326  ;;  %14641 = vmatprep.subr.msk.mxu1 %vm600_vm11, %v2786_v28 }
0x15a8   :  { %v2695_v50 = vmul.f32 %v16327_v29, %v16323_v51 }
0x15aa   :  { %14638 = vmatprep.mubr.msk.f32.mxu1 %vm101_vm6, %v2695_v50 }
0x15ab   :  { %14639 = vmatmul.mubr.msk.f32.vlgmr.msra.gmra.mrb[20].mxu1 %vm101_vm6, %v2696_v32 }
0x15ac   :  { %14642 = vmatpush3.msk.msra.mxu1 %vm600_vm11, %v2786_v28 }
0x167e   :  { %v14640_v34 = vpop.f32.mrb[20].mxu1 }
0x167f   :  { %v2775_v37 = vpop.f32.mrb[21].mxu1 }
0x1680   :  { %14643 = vmatprep.mubr.msk.f32.mxu1 %vm189_vm9, %v2775_v37 }
0x1681   :  { %14644 = vmatmul.mubr.msk.f32.vlgmr.msra.gmra.mrb[16].mxu1 %vm189_vm9, %v14640_v34 }
0x1754   :  { %v14645_v7 = vpop.f32.mrb[16].mxu1 }
0x1755   :  { %v2877_v39 = vadd.f32 %v14645_v7, %v2874_v38  ;;  %v2861_v41 = vpop.f32.mrb[17].mxu1 }
0x1756   :  { %v2876_v42 = vadd.f32 %v2874_v38, %v2861_v41 }
0x1757   :  { %v2879_v44 = vadd.f32 %v2877_v39, %v16949_v33 }
0x1758   :  { %v2878_v35 = vadd.f32 %v2876_v42, %v16945_v48 }
0x1759   :  { %v2884_v49 = vsel %vm101_vm6, %v2879_v44, 0.0 }
0x175a   :  { %2885 = vadd.xlane.f32.xlu1 %v2884_v49  ;;  %v2881_v23 = vsel %vm101_vm6, %v2878_v35, 0.0 }
0x175b   :  { %2882 = vadd.xlane.f32.xlu0 %v2881_v23 }
0x176b   :  { %2914 = vrot.lane.b32.xlu1 %v13638_v53, %s16625_s1 }
0x176f   :  { %3016 = vrot.lane.b32.xlu1 %v13639_v18, %s16628_s23 }
0x17e7   :  { %v2886_v56 = vpop.xlane.xlu1 %2885 }
0x17e8   :  { %v2888_v57 = vmul.f32 0.0625, %v2886_v56  ;;  %v2883_v58 = vpop.xlane.xlu0 %2882 }
0x17e9   :  { %v2887_v59 = vmul.f32 0.0625, %v2883_v58  ;;  %v17137_v58 = vld [vmem:[%s18515_s5 + $0x28] sm:$0xff] }
0x17ea   :  { %v2890_v27 = vsub.f32 %v2879_v44, %v2888_v57  ;;  %v17132_v57 = vld [vmem:[%s18515_s5 + $0x20] sm:$0xff] }
0x17eb   :  { %v2889_v33 = vsub.f32 %v2878_v35, %v2887_v59  ;;  %v2915_v54 = vpop.permute.xlu1 %2914  ;;  %v13646_v59 = vld [vmem:[%s18520_s9 + $0x3] ss:$0 sm:$0xff] }
0x17ec   :  { %v2892_v60 = vmul.f32 %v2890_v27, %v2890_v27 }
0x17ed   :  { %v2891_v22 = vmul.f32 %v2889_v33, %v2889_v33 }
0x17ee   :  { %v2896_v61 = vsel %vm101_vm6, %v2892_v60, 0.0 }
0x17ef   :  { %v2893_v48 = vsel %vm101_vm6, %v2891_v22, 0.0  ;;  %v3017_v25 = vpop.permute.xlu1 %3016 }
0x17f0   :  { %2894 = vadd.xlane.f32.xlu0 %v2893_v48 }
0x17f4   :  { %2897 = vadd.xlane.f32.xlu0 %v2896_v61 }
0x180a   :  { %15952 = vrot.lane.b32.xlu0 %v15951_v36, %s16628_s23 }
0x187d   :  { %v2895_v3 = vpop.xlane.xlu0 %2894 }
0x187e   :  { %v2899_v31 = vmul.f32 0.0625, %v2895_v3 }
0x1880   :  { %v2901_v8 = vadd.f32 1e-05, %v2899_v31 }
0x1881   :  { %v2898_v47 = vpop.xlane.xlu0 %2897 }
0x1882   :  { %16328 = vrsqrt.f32 %v2901_v8  ;;  %v2900_v4 = vmul.f32 0.0625, %v2898_v47 }
0x1884   :  { %v2902_v5 = vadd.f32 1e-05, %v2900_v4 }
0x1885   :  { %v15953_v6 = vpop.permute.xlu0 %15952 }
0x1886   :  { %16330 = vrsqrt.f32 %v2902_v5  ;;  %v15955_v10 = vunpack.i.h.bf16 %v15953_v6  ;;  %v15954_v11 = vunpack.i.l.bf16 %v15953_v6  ;;  %v17156_v6 = vld [vmem:[%s18518_s6 + $0x2] ss:$0 sm:$0xff] }
0x1888   :  { %v15427_v13 = vpack.c.bf16 %v15955_v10, %v15954_v11 }
0x188a   :  { %15429 = vmatprep.subr.msk.bf16.mxu0 %vm16909_vm13, %v15427_v13 }
0x188c   :  { %v16329_v9 = vpop.eup %16328 }
0x188d   :  { %v2905_v12 = vmul.f32 %v16329_v9, %v2889_v33 }
0x188f   :  { %v2911_v14 = vmul.f32 %v13638_v53, %v2905_v12 }
0x1890   :  { %v16331_v45 = vpop.eup %16330 }
0x1891   :  { %v2906_v15 = vmul.f32 %v16331_v45, %v2890_v27  ;;  %v2917_v51 = vadd.f32 %v2915_v54, %v2911_v14  ;;  %v15433_v27 = vpack.c.bf16 %v17137_v58, %v17132_v57 }
0x1893   :  { %v2912_v16 = vmul.f32 %v13638_v53, %v2906_v15  ;;  %14650 = vmatprep.mubr.msk.f32.mxu0 %vm101_vm6, %v2917_v51  ;;  %15434 = vmatprep.subr.bf16.mxu1 %v15433_v27 }
0x1894   :  { %15436 = vmatpush3.bf16.msra.mxu1 %v15433_v27 }
0x1895   :  { %v2918_v17 = vadd.f32 %v2915_v54, %v2912_v16 }
0x1897   :  { %14651 = vmatmul.mubr.msk.f32.vlgmr.msra.gmra.mrb[22].mxu0 %vm101_vm6, %v2918_v17 }
0x1898   :  { %15432 = vmatpush3.bf16.xpose.msk.msra.mxu0 %vm16909_vm13, %v15427_v13 }
0x196a   :  { %v14652_v46 = vpop.f32.mrb[22].mxu0 }
0x196b   :  { %v3004_v19 = vadd.f32 %v14652_v46, %v13639_v18  ;;  %v2998_v43 = vpop.f32.mrb[23].mxu0 }
0x196c   :  { %v2999_v20 = vadd.f32 %v13639_v18, %v2998_v43 }
0x196d   :  { %v3008_v55 = vmax.f32 %v3004_v19, 0.0 }
0x196e   :  { %v3007_v21 = vmax.f32 %v2999_v20, 0.0 }
0x1970   :  { %14657 = vmatprep.mubr.msk.f32.mxu0 %vm1495_vm12, %v3007_v21 }
0x1971   :  { %14658 = vmatmul.mubr.msk.f32.vlgmr.msra.gmra.mrb[24].mxu0 %vm1495_vm12, %v3008_v55 }
0x1a44   :  { %v14659_v28 = vpop.f32.mrb[24].mxu0 }
0x1a45   :  { %v3101_v26 = vadd.f32 %v14659_v28, %v3017_v25  ;;  %v3095_v29 = vpop.f32.mrb[25].mxu0 }
0x1a46   :  { %v3096_v50 = vadd.f32 %v3095_v29, %v3017_v25 }
0x1a47   :  { %v3105_v32 = vadd.f32 %v3101_v26, %v2918_v17 }
0x1a48   :  { %v3104_v34 = vadd.f32 %v3096_v50, %v2917_v51 }
0x1a49   :  { %v3110_v37 = vsel %vm101_vm6, %v3105_v32, 0.0 }
0x1a4a   :  { %3111 = vadd.xlane.f32.xlu0 %v3110_v37  ;;  %v3107_v38 = vsel %vm101_vm6, %v3104_v34, 0.0 }
0x1a4b   :  { %3108 = vadd.xlane.f32.xlu1 %v3107_v38 }
0x1ad7   :  { %v3112_v7 = vpop.xlane.xlu0 %3111 }
0x1ad8   :  { %v3114_v39 = vmul.f32 0.0625, %v3112_v7  ;;  %v3109_v41 = vpop.xlane.xlu1 %3108 }
0x1ad9   :  { %v3113_v42 = vmul.f32 0.0625, %v3109_v41 }
0x1ada   :  { %v3116_v44 = vsub.f32 %v3105_v32, %v3114_v39 }
0x1adb   :  { %v3115_v35 = vsub.f32 %v3104_v34, %v3113_v42 }
0x1adc   :  { %v3118_v49 = vmul.f32 %v3116_v44, %v3116_v44 }
0x1add   :  { %v3117_v23 = vmul.f32 %v3115_v35, %v3115_v35 }
0x1ade   :  { %v3122_v53 = vsel %vm101_vm6, %v3118_v49, 0.0 }
0x1adf   :  { %3123 = vadd.xlane.f32.xlu1 %v3122_v53  ;;  %v3119_v56 = vsel %vm101_vm6, %v3117_v23, 0.0 }
0x1ae0   :  { %3120 = vadd.xlane.f32.xlu0 %v3119_v56 }
0x1af6   :  { %3140 = vrot.lane.b32.xlu0 %v13646_v59, %s16625_s1 }
0x1b6c   :  { %v3124_v33 = vpop.xlane.xlu1 %3123 }
0x1b6d   :  { %v3126_v22 = vmul.f32 0.0625, %v3124_v33  ;;  %v3121_v48 = vpop.xlane.xlu0 %3120 }
0x1b6e   :  { %v3125_v60 = vmul.f32 0.0625, %v3121_v48 }
0x1b6f   :  { %v3128_v61 = vadd.f32 1e-05, %v3126_v22 }
0x1b70   :  { %v3127_v62 = vadd.f32 1e-05, %v3125_v60 }
0x1b71   :  { %16332 = vrsqrt.f32 %v3128_v61  ;;  %v3141_v31 = vpop.permute.xlu0 %3140 }
0x1b72   :  { %16334 = vrsqrt.f32 %v3127_v62 }
0x1b7b   :  { %v16333_v63 = vpop.eup %16332 }
0x1b7c   :  { %v16335_v0 = vpop.eup %16334  ;;  %v3132_v36 = vmul.f32 %v16333_v63, %v3116_v44 }
0x1b7d   :  { %v3131_v3 = vmul.f32 %v16335_v0, %v3115_v35 }
0x1b7e   :  { %v3138_v8 = vmul.f32 %v13646_v59, %v3132_v36 }
0x1b7f   :  { %v3137_v47 = vmul.f32 %v13646_v59, %v3131_v3 }
0x1b80   :  { %v17147_v5 = vadd.f32 %v3141_v31, %v3138_v8 }
0x1b81   :  { %v17145_v4 = vadd.f32 %v3141_v31, %v3137_v47 }
0x1b83   :  { %14664 = vmatprep.mubr.msk.f32.mxu1 %vm101_vm6, %v17145_v4 }
0x1b84   :  { %14665 = vmatmul.mubr.msk.f32.vlgmr.msra.gmra.mrb[22].mxu1 %vm101_vm6, %v17147_v5 }
0x1c57   :  { %v14666_v9 = vpop.f32.mrb[22].mxu1 }
0x1c58   :  { %v17159_v10 = vadd.f32 %v14666_v9, %v17156_v6  ;;  %v3224_v11 = vpop.f32.mrb[23].mxu1 }
0x1c59   :  { %v17162_v12 = vadd.f32 %v17156_v6, %v3224_v11 }
0x1c5b   :  { %14671 = vmatprep.mubr.msk.f32.mxu1 %vm189_vm9, %v17162_v12  ;;  %v17168_v54 = vpack.i.bf16 %v17159_v10, %v17162_v12 }
0x1c5d   :  { %15957 = vrot.lane.b32.xlu1 %v17168_v54, %s16625_s1 }
0x1ccf   :  { %v15958_v13 = vpop.permute.xlu1 %15957 }
0x1cd0   :  { %v15960_v14 = vunpack.i.h.bf16 %v15958_v13  ;;  %v15959_v45 = vunpack.i.l.bf16 %v15958_v13 }
0x1cd2   :  { %v15437_v15 = vpack.c.bf16 %v15960_v14, %v15959_v45 }
0x1cd4   :  { %15439 = vmatprep.subr.msk.bf16.mxu1 %vm16758_vm10, %v15437_v15 }
0x1cd5   :  { %15442 = vmatpush3.bf16.xpose.msk.msra.mxu1 %vm16758_vm10, %v15437_v15 }
0x1cdc   :  { %14672 = vmatmul.mubr.msk.f32.vlgmr.msra.gmra.mrb[24].mxu1 %vm189_vm9, %v17159_v10 }
0x1daf   :  { %v14673_v51 = vpop.f32.mrb[24].mxu1 }
0x1db0   :  { %v3323_v16 = vmul.f32 0.5, %v14673_v51  ;;  %v3313_v17 = vpop.f32.mrb[25].mxu1 }
0x1db1   :  { %v3322_v18 = vmul.f32 0.5, %v3313_v17 }
0x1db2   :  { %v3325_v46 = vadd.f32 %v17061_v1, %v3323_v16 }
0x1db3   :  { %v3324_v19 = vadd.f32 %v17067_v2, %v3322_v18 }
0x1db4   :  { %v3329_v43 = vsel %vm101_vm6, %v3325_v46, -inf }
0x1db5   :  { %3330 = vmax.xlane.f32.xlu0 %v3329_v43  ;;  %v3326_v20 = vsel %vm101_vm6, %v3324_v19, -inf }
0x1db6   :  { %3327 = vmax.xlane.f32.xlu1 %v3326_v20 }
0x1e42   :  { %v3331_v21 = vpop.xlane.xlu0 %3330 }
0x1e43   :  { %v3333_v55 = vsub.f32 %v3325_v46, %v3331_v21  ;;  %v3328_v25 = vpop.xlane.xlu1 %3327 }
0x1e44   :  { %v3332_v28 = vsub.f32 %v3324_v19, %v3328_v25  ;;  %v3640_v19 = vrot.slane %v17132_v57, 4 }
0x1e45   :  { %v3336_v26 = vmul.f32 1.442695, %v3333_v55 }
0x1e46   :  { %v3334_v29 = vmul.f32 1.442695, %v3332_v28 }
0x1e47   :  { %16336 = vpow2.f32 %v3336_v26 }
0x1e48   :  { %16338 = vpow2.f32 %v3334_v29 }
0x1e51   :  { %v16337_v50 = vpop.eup %16336 }
0x1e52   :  { %v16339_v32 = vpop.eup %16338  ;;  %v3341_v34 = vsel %vm101_vm6, %v16337_v50, 0.0 }
0x1e53   :  { %3342 = vadd.xlane.f32.xlu1 %v3341_v34  ;;  %v3338_v37 = vsel %vm101_vm6, %v16339_v32, 0.0 }
0x1e54   :  { %3339 = vadd.xlane.f32.xlu0 %v3338_v37 }
0x1e64   :  { %15967 = vrot.lane.b32.xlu1 %v17168_v54, %s16626_s21 }
0x1e68   :  { %3435 = vrot.lane.b32.xlu1 %v17162_v12, %s16627_s22 }
0x1e6a   :  { %15962 = vrot.lane.b32.xlu0 %v17168_v54, %s16628_s23 }
0x1e6c   :  { %15972 = vrot.lane.b32.xlu1 %v17168_v54, %s16629_s24 }
0x1e6e   :  { %3437 = vrot.lane.b32.xlu0 %v17159_v10, %s16627_s22 }
0x1e70   :  { %3813 = vrot.lane.b32.xlu1 %v17159_v10, %s16630_s25 }
0x1e72   :  { %3811 = vrot.lane.b32.xlu0 %v17162_v12, %s16630_s25 }
0x1ee0   :  { %v3343_v38 = vpop.xlane.xlu1 %3342 }
0x1ee1   :  { %16340 = vrcp.f32 %v3343_v38  ;;  %v3340_v7 = vpop.xlane.xlu0 %3339 }
0x1ee2   :  { %16342 = vrcp.f32 %v3340_v7 }
0x1ee4   :  { %v15968_v39 = vpop.permute.xlu1 %15967 }
0x1ee5   :  { %v15963_v41 = vpop.permute.xlu0 %15962  ;;  %v15970_v42 = vunpack.i.h.bf16 %v15968_v39  ;;  %v15969_v44 = vunpack.i.l.bf16 %v15968_v39 }
0x1ee6   :  { %v15965_v35 = vunpack.i.h.bf16 %v15963_v41  ;;  %v15964_v49 = vunpack.i.l.bf16 %v15963_v41 }
0x1ee7   :  { %v15447_v56 = vpack.c.bf16 %v15970_v42, %v15969_v44 }
0x1ee8   :  { %v3436_v23 = vpop.permute.xlu1 %3435  ;;  %v15443_v53 = vpack.c.bf16 %v15965_v35, %v15964_v49 }
0x1ee9   :  { %v3438_v63 = vpop.permute.xlu0 %3437 }
0x1eea   :  { %15444 = vmatprep.subr.bf16.mxu0 %v15443_v53 }
0x1eeb   :  { %v16341_v59 = vpop.eup %16340  ;;  %15446 = vmatpush3.bf16.msra.mxu0 %v15443_v53 }
0x1eec   :  { %v16343_v27 = vpop.eup %16342  ;;  %v15973_v33 = vpop.permute.xlu1 %15972  ;;  %15449 = vmatprep.subr.msk.bf16.mxu0 %vm16758_vm10, %v15447_v56  ;;  %v3347_v48 = vmul.f32 %v16341_v59, %v16337_v50 }
0x1eed   :  { %v3346_v22 = vmul.f32 %v16343_v27, %v16339_v32  ;;  %v15975_v60 = vunpack.i.h.bf16 %v15973_v33  ;;  %v15974_v61 = vunpack.i.l.bf16 %v15973_v33  ;;  %v3812_v0 = vpop.permute.xlu0 %3811 }
0x1eef   :  { %14678 = vmatprep.mubr.msk.f32.mxu0 %vm101_vm6, %v3346_v22  ;;  %v15457_v62 = vpack.c.bf16 %v15975_v60, %v15974_v61 }
0x1ef0   :  { %14679 = vmatmul.mubr.msk.f32.vlgmr.msra.gmra.mrb[26].mxu0 %vm101_vm6, %v3347_v48  ;;  %v3814_v36 = vpop.permute.xlu1 %3813 }
0x1ef1   :  { %14685 = vmatprep.mubr.msk.f32.mxu0 %vm189_vm9, %v3436_v23 }
0x1ef4   :  { %15452 = vmatpush3.bf16.xpose.msk.msra.mxu0 %vm16758_vm10, %v15447_v56 }
0x1ef5   :  { %15459 = vmatprep.subr.msk.bf16.mxu0 %vm16758_vm10, %v15457_v62 }
0x1efb   :  { %14686 = vmatmul.mubr.msk.f32.vlgmr.msra.gmra.mrb[28].mxu0 %vm189_vm9, %v3438_v63 }
0x1efc   :  { %15462 = vmatpush3.bf16.xpose.msk.msra.mxu0 %vm16758_vm10, %v15457_v62  ;;  %14709 = vmatprep.mubr.msk.f32.mxu0 %vm189_vm9, %v3812_v0 }
0x1f03   :  { %14710 = vmatmul.mubr.msk.f32.vlgmr.msra.gmra.mrb[30].mxu0 %vm189_vm9, %v3814_v36 }
0x1fc3   :  { %v17212_v3 = vpop.f32.mrb[26].mxu0 }
0x1fc4   :  { %v17214_v31 = vpop.f32.mrb[27].mxu0 }
0x1fce   :  { %v14687_v8 = vpop.f32.mrb[28].mxu0 }
0x1fcf   :  { %v3527_v47 = vmul.f32 0.5, %v14687_v8  ;;  %v3517_v9 = vpop.f32.mrb[29].mxu0 }
0x1fd0   :  { %v3526_v11 = vmul.f32 0.5, %v3517_v9 }
0x1fd1   :  { %v3529_v13 = vadd.f32 %v17061_v1, %v3527_v47 }
0x1fd2   :  { %v3528_v14 = vadd.f32 %v17067_v2, %v3526_v11 }
0x1fd3   :  { %v3533_v45 = vsel %vm101_vm6, %v3529_v13, -inf }
0x1fd4   :  { %3534 = vmax.xlane.f32.xlu1 %v3533_v45  ;;  %v3530_v15 = vsel %vm101_vm6, %v3528_v14, -inf }
0x1fd5   :  { %3531 = vmax.xlane.f32.xlu0 %v3530_v15 }
0x1fd6   :  { %v14711_v51 = vpop.f32.mrb[30].mxu0 }
0x1fd7   :  { %v3893_v16 = vpop.f32.mrb[31].mxu0  ;;  %v3903_v17 = vmul.f32 0.5, %v14711_v51 }
0x1fd8   :  { %v3902_v35 = vmul.f32 0.5, %v3893_v16 }
0x1fd9   :  { %v3905_v18 = vadd.f32 %v17061_v1, %v3903_v17 }
0x1fda   :  { %v3904_v49 = vadd.f32 %v17067_v2, %v3902_v35 }
0x1fdb   :  { %v3909_v46 = vsel %vm101_vm6, %v3905_v18, -inf }
0x1fdc   :  { %v3906_v23 = vsel %vm101_vm6, %v3904_v49, -inf }
0x1fe5   :  { %15977 = vrot.lane.b32.xlu1 %v17168_v54, %s16631_s26 }
0x1fe9   :  { %4103 = vrot.lane.b32.xlu1 %v17162_v12, %s16632_s27 }
0x1fed   :  { %4105 = vrot.lane.b32.xlu1 %v17159_v10, %s16632_s27 }
0x2011   :  { %3910 = vmax.xlane.f32.xlu1 %v3909_v46 }
0x2022   :  { %3641 = vrot.lane.b32.xlu1 %v3640_v19, %s16633_s28 }
0x2026   :  { %15987 = vrot.lane.b32.xlu1 %v17168_v54, %s16634_s0 }
0x2061   :  { %v3535_v43 = vpop.xlane.xlu1 %3534 }
0x2062   :  { %v3537_v20 = vsub.f32 %v3529_v13, %v3535_v43  ;;  %v3532_v21 = vpop.xlane.xlu0 %3531 }
0x2063   :  { %v3536_v12 = vsub.f32 %v3528_v14, %v3532_v21 }
0x2064   :  { %v3540_v55 = vmul.f32 1.442695, %v3537_v20 }
0x2065   :  { %v3538_v25 = vmul.f32 1.442695, %v3536_v12  ;;  %v15978_v10 = vpop.permute.xlu1 %15977 }
0x2066   :  { %v15980_v28 = vunpack.i.h.bf16 %v15978_v10  ;;  %v15979_v26 = vunpack.i.l.bf16 %v15978_v10 }
0x2067   :  { %16344 = vpow2.f32 %v3538_v25 }
0x2068   :  { %v15453_v29 = vpack.c.bf16 %v15980_v28, %v15979_v26  ;;  %16346 = vpow2.f32 %v3540_v55 }
0x2069   :  { %v4104_v50 = vpop.permute.xlu1 %4103 }
0x206a   :  { %15454 = vmatprep.subr.bf16.mxu1 %v15453_v29  ;;  %14728 = vmatprep.mubr.msk.f32.mxu0 %vm189_vm9, %v4104_v50 }
0x206b   :  { %15456 = vmatpush3.bf16.msra.mxu1 %v15453_v29 }
0x206d   :  { %v4106_v7 = vpop.permute.xlu1 %4105 }
0x2071   :  { %v16345_v32 = vpop.eup %16344 }
0x2072   :  { %v3542_v34 = vsel %vm101_vm6, %v16345_v32, 0.0  ;;  %v16347_v37 = vpop.eup %16346 }
0x2073   :  { %3543 = vadd.xlane.f32.xlu0 %v3542_v34  ;;  %v3545_v38 = vsel %vm101_vm6, %v16347_v37, 0.0 }
0x2077   :  { %3546 = vadd.xlane.f32.xlu0 %v3545_v38 }
0x208d   :  { %15982 = vrot.lane.b32.xlu0 %v17168_v54, %s16635_s29 }
0x209e   :  { %v3911_v39 = vpop.xlane.xlu1 %3910 }
0x209f   :  { %v3913_v41 = vsub.f32 %v3905_v18, %v3911_v39  ;;  %v4307_v39 = vrot.slane %v17137_v58, 4 }
0x20a1   :  { %v3916_v42 = vmul.f32 1.442695, %v3913_v41 }
0x20a2   :  { %v3642_v44 = vpop.permute.xlu1 %3641 }
0x20a3   :  { %16348 = vpow2.f32 %v3916_v42  ;;  %14695 = vmatprep.subr.msk.mxu1 %vm600_vm11, %v3642_v44 }
0x20a6   :  { %v15988_v15 = vpop.permute.xlu1 %15987 }
0x20a7   :  { %v15990_v51 = vunpack.i.h.bf16 %v15988_v15  ;;  %v15989_v16 = vunpack.i.l.bf16 %v15988_v15 }
0x20a9   :  { %v15463_v19 = vpack.c.bf16 %v15990_v51, %v15989_v16 }
0x20ac   :  { %3907 = vmax.xlane.f32.xlu0 %v3906_v23 }
0x20ad   :  { %v16349_v53 = vpop.eup %16348 }
0x20ae   :  { %v3921_v56 = vsel %vm101_vm6, %v16349_v53, 0.0 }
0x20b0   :  { %3922 = vadd.xlane.f32.xlu0 %v3921_v56 }
0x2100   :  { %v3544_v59 = vpop.xlane.xlu0 %3543 }
0x2101   :  { %16350 = vrcp.f32 %v3544_v59 }
0x2104   :  { %v3547_v27 = vpop.xlane.xlu0 %3546 }
0x2105   :  { %16352 = vrcp.f32 %v3547_v27 }
0x2108   :  { %v15983_v33 = vpop.permute.xlu0 %15982 }
0x2109   :  { %v15985_v22 = vunpack.i.h.bf16 %v15983_v33  ;;  %v15984_v48 = vunpack.i.l.bf16 %v15983_v33 }
0x210b   :  { %v16351_v60 = vpop.eup %16350  ;;  %v15467_v61 = vpack.c.bf16 %v15985_v22, %v15984_v48  ;;  %v17287_v22 = vld [vmem:[%s18515_s5 + $0x30] sm:$0xff]  ;;  %v17292_v48 = vld [vmem:[%s18515_s5 + $0x38] sm:$0xff] }
0x210c   :  { %v3550_v62 = vmul.f32 %v16351_v60, %v16345_v32  ;;  %v15487_v60 = vpack.c.bf16 %v17292_v48, %v17287_v22 }
0x210d   :  { %15469 = vmatprep.subr.msk.bf16.mxu0 %vm16758_vm10, %v15467_v61 }
0x210e   :  { %14692 = vmatprep.mubr.msk.f32.mxu1 %vm101_vm6, %v3550_v62  ;;  %15472 = vmatpush3.bf16.xpose.msk.msra.mxu0 %vm16758_vm10, %v15467_v61 }
0x210f   :  { %v16353_v63 = vpop.eup %16352 }
0x2110   :  { %v3551_v0 = vmul.f32 %v16353_v63, %v16347_v37 }
0x2112   :  { %14693 = vmatmul.mubr.msk.f32.vlgmr.msra.gmra.mrb[26].mxu1 %vm101_vm6, %v3551_v0 }
0x2113   :  { %14696 = vmatpush3.msk.msra.mxu1 %vm600_vm11, %v3642_v44 }
0x2115   :  { %14729 = vmatmul.mubr.msk.f32.vlgmr.msra.gmra.mrb[32].mxu0 %vm189_vm9, %v4106_v7 }
0x2139   :  { %v3908_v36 = vpop.xlane.xlu0 %3907 }
0x213a   :  { %v3912_v8 = vsub.f32 %v3904_v49, %v3908_v36 }
0x213c   :  { %v3914_v47 = vmul.f32 1.442695, %v3912_v8 }
0x213d   :  { %v3923_v13 = vpop.xlane.xlu0 %3922 }
0x213e   :  { %16354 = vpow2.f32 %v3914_v47  ;;  %v17305_v47 = vld [vmem:[%s18518_s6 + $0x3] ss:$0 sm:$0xff] }
0x2148   :  { %v16355_v9 = vpop.eup %16354 }
0x2149   :  { %v3918_v11 = vsel %vm101_vm6, %v16355_v9, 0.0 }
0x214a   :  { %3919 = vadd.xlane.f32.xlu0 %v3918_v11 }
0x2160   :  { %3726 = vrot.lane.b32.xlu0 %v17132_v57, %s16633_s28 }
0x21d7   :  { %v3920_v14 = vpop.xlane.xlu0 %3919 }
0x21d8   :  { %16356 = vrcp.f32 %v3920_v14 }
0x21d9   :  { %16358 = vrcp.f32 %v3923_v13 }
0x21db   :  { %v3727_v45 = vpop.permute.xlu0 %3726 }
0x21dc   :  { %14700 = vmatprep.subr.msk.mxu1 %vm600_vm11, %v3727_v45 }
0x21e2   :  { %v16357_v12 = vpop.eup %16356 }
0x21e3   :  { %v16359_v28 = vpop.eup %16358  ;;  %v3926_v26 = vmul.f32 %v16357_v12, %v16355_v9 }
0x21e5   :  { %v14694_v17 = vpop.f32.mrb[26].mxu1 }
0x21e6   :  { %v3630_v18 = vpop.f32.mrb[27].mxu1 }
0x21e7   :  { %14697 = vmatprep.mubr.msk.f32.mxu1 %vm189_vm9, %v3630_v18  ;;  %v17328_v18 = vld [vmem:[%s18520_s9 + $0x4] ss:$0 sm:$0xff] }
0x21e8   :  { %14698 = vmatmul.mubr.msk.f32.vlgmr.msra.gmra.mrb[28].mxu1 %vm189_vm9, %v14694_v17  ;;  %v14730_v46 = vpop.f32.mrb[32].mxu0 }
0x21e9   :  { %14701 = vmatpush3.msk.msra.mxu1 %vm600_vm11, %v3727_v45  ;;  %v4195_v57 = vmul.f32 0.5, %v14730_v46  ;;  %14702 = vmatprep.mubr.msk.f32.mxu1 %vm189_vm9, %v17214_v31  ;;  %v4185_v43 = vpop.f32.mrb[33].mxu0  ;;  %v3927_v31 = vmul.f32 %v16359_v28, %v16349_v53  ;;  %v4442_v46 = vld [vmem:[%s18521_s7 + $0x20] sm:$0xff] }
0x21ea   :  { %15464 = vmatprep.subr.bf16.mxu1 %v15463_v19  ;;  %v4194_v20 = vmul.f32 0.5, %v4185_v43 }
0x21eb   :  { %v4197_v21 = vadd.f32 %v17061_v1, %v4195_v57 }
0x21ec   :  { %v4196_v55 = vadd.f32 %v17067_v2, %v4194_v20 }
0x21ed   :  { %v4201_v25 = vsel %vm101_vm6, %v4197_v21, -inf }
0x21ee   :  { %4202 = vmax.xlane.f32.xlu0 %v4201_v25  ;;  %v4198_v10 = vsel %vm101_vm6, %v4196_v55, -inf }
0x21ef   :  { %4199 = vmax.xlane.f32.xlu1 %v4198_v10 }
0x21f0   :  { %14703 = vmatmul.mubr.msk.f32.vlgmr.msra.gmra.mrb[28].mxu1 %vm189_vm9, %v17212_v3 }
0x21f1   :  { %15466 = vmatpush3.bf16.msra.mxu1 %v15463_v19  ;;  %14716 = vmatprep.mubr.msk.f32.mxu1 %vm101_vm6, %v3926_v26  ;;  %v4443_v19 = vld [vmem:[%s18521_s7 + $0x28] sm:$0xff] }
0x21f4   :  { %14717 = vmatmul.mubr.msk.f32.vlgmr.msra.gmra.mrb[30].mxu1 %vm101_vm6, %v3927_v31 }
0x227b   :  { %v4203_v1 = vpop.xlane.xlu0 %4202 }
0x227c   :  { %v4205_v29 = vsub.f32 %v4197_v21, %v4203_v1  ;;  %v4200_v2 = vpop.xlane.xlu1 %4199 }
0x227d   :  { %v4204_v50 = vsub.f32 %v4196_v55, %v4200_v2 }
0x227e   :  { %v4208_v32 = vmul.f32 1.442695, %v4205_v29 }
0x227f   :  { %v4206_v34 = vmul.f32 1.442695, %v4204_v50 }
0x2280   :  { %16360 = vpow2.f32 %v4208_v32 }
0x2281   :  { %16362 = vpow2.f32 %v4206_v34 }
0x228a   :  { %v16361_v37 = vpop.eup %16360 }
0x228b   :  { %v16363_v38 = vpop.eup %16362  ;;  %v4213_v7 = vsel %vm101_vm6, %v16361_v37, 0.0 }
0x228c   :  { %4214 = vadd.xlane.f32.xlu1 %v4213_v7  ;;  %v4210_v3 = vsel %vm101_vm6, %v16363_v38, 0.0  ;;  %v15477_v7 = vpack.c.bf16 %v4443_v19, %v4442_v46 }
0x228d   :  { %4211 = vadd.xlane.f32.xlu0 %v4210_v3 }
0x228e   :  { %15478 = vmatprep.subr.bf16.mxu0 %v15477_v7 }
0x228f   :  { %15480 = vmatpush3.bf16.msra.mxu0 %v15477_v7 }
0x229d   :  { %15992 = vrot.lane.b32.xlu1 %v17168_v54, %s16636_s30 }
0x22a1   :  { %4308 = vrot.lane.b32.xlu1 %v4307_v39, %s16633_s28 }
0x22a3   :  { %4016 = vrot.lane.b32.xlu0 %v17137_v58, %s16633_s28 }
0x22a7   :  { %4396 = vrot.lane.b32.xlu0 %v17156_v6, %s16633_s28 }
0x22c7   :  { %v14718_v41 = vpop.f32.mrb[30].mxu1 }
0x22c8   :  { %v4006_v42 = vpop.f32.mrb[31].mxu1 }
0x22c9   :  { %14721 = vmatprep.mubr.msk.f32.mxu1 %vm189_vm9, %v4006_v42 }
0x2319   :  { %v4215_v44 = vpop.xlane.xlu1 %4214 }
0x231a   :  { %16364 = vrcp.f32 %v4215_v44  ;;  %v4212_v35 = vpop.xlane.xlu0 %4211 }
0x231b   :  { %16366 = vrcp.f32 %v4212_v35 }
0x231d   :  { %v15993_v49 = vpop.permute.xlu1 %15992 }
0x231e   :  { %v15995_v54 = vunpack.i.h.bf16 %v15993_v49  ;;  %v15994_v23 = vunpack.i.l.bf16 %v15993_v49  ;;  %v4017_v53 = vpop.permute.xlu0 %4016 }
0x231f   :  { %14719 = vmatprep.subr.msk.mxu1 %vm600_vm11, %v4017_v53 }
0x2320   :  { %14720 = vmatpush3.msk.msra.mxu1 %vm600_vm11, %v4017_v53  ;;  %v15473_v6 = vpack.c.bf16 %v15995_v54, %v15994_v23 }
0x2321   :  { %14722 = vmatmul.mubr.msk.f32.vlgmr.msra.gmra.mrb[28].mxu1 %vm189_vm9, %v14718_v41  ;;  %v4309_v58 = vpop.permute.xlu1 %4308 }
0x2322   :  { %15474 = vmatprep.subr.bf16.mxu1 %v15473_v6  ;;  %v4397_v63 = vpop.permute.xlu0 %4396 }
0x2323   :  { %15476 = vmatpush3.bf16.msra.mxu1 %v15473_v6 }
0x2324   :  { %v16365_v56 = vpop.eup %16364  ;;  %14738 = vmatprep.subr.msk.mxu1 %vm600_vm11, %v4309_v58 }
0x2325   :  { %v16367_v59 = vpop.eup %16366  ;;  %v4219_v33 = vmul.f32 %v16365_v56, %v16361_v37 }
0x2326   :  { %v4218_v27 = vmul.f32 %v16367_v59, %v16363_v38 }
0x2328   :  { %14735 = vmatprep.mubr.msk.f32.mxu1 %vm101_vm6, %v4218_v27 }
0x2329   :  { %14736 = vmatmul.mubr.msk.f32.vlgmr.msra.gmra.mrb[32].mxu1 %vm101_vm6, %v4219_v33 }
0x232a   :  { %14739 = vmatpush3.msk.msra.mxu1 %vm600_vm11, %v4309_v58  ;;  %v17367_v58 = vld [vmem:[%s18523_s3] sm:$0xff] }
0x232b   :  { %15488 = vmatprep.subr.bf16.mxu1 %v15487_v60 }
0x23fc   :  { %v14737_v61 = vpop.f32.mrb[32].mxu1 }
0x23fd   :  { %v4298_v62 = vpop.f32.mrb[33].mxu1 }
0x23fe   :  { %14740 = vmatprep.mubr.msk.f32.mxu1 %vm189_vm9, %v4298_v62 }
0x23ff   :  { %14741 = vmatmul.mubr.msk.f32.vlgmr.msra.gmra.mrb[28].mxu1 %vm189_vm9, %v14737_v61 }
0x2400   :  { %15490 = vmatpush3.bf16.msra.mxu1 %v15487_v60  ;;  %14761 = vmatprep.mubr.msk.f32.mxu1 %vm101_vm6, %v16726_v24  ;;  %v17372_v60 = vld [vmem:[%s18523_s3 + $0x8] sm:$0xff] }
0x2403   :  { %14762 = vmatmul.mubr.msk.f32.vlgmr.msra.gmra.mrb[34].mxu1 %vm101_vm6, %v16733_v30 }
0x24d2   :  { %v14742_v0 = vpop.f32.mrb[28].mxu1 }
0x24d3   :  { %v4384_v36 = vpop.f32.mrb[29].mxu1 }
0x24d4   :  { %v4399_v8 = vadd.f32 %v4397_v63, %v4384_v36 }
0x24d6   :  { %v4401_v9 = vadd.f32 %v4399_v8, %v17145_v4  ;;  %v14763_v11 = vpop.f32.mrb[34].mxu1  ;;  %v4400_v4 = vadd.f32 %v14742_v0, %v4397_v63 }
0x24d7   :  { %v17309_v13 = vadd.f32 %v14763_v11, %v17305_v47  ;;  %v4780_v14 = vpop.f32.mrb[35].mxu1 }
0x24d8   :  { %v17312_v45 = vadd.f32 %v17305_v47, %v4780_v14  ;;  %v4404_v15 = vsel %vm101_vm6, %v4401_v9, 0.0  ;;  %v4402_v16 = vadd.f32 %v4400_v4, %v17147_v5  ;;  %v16001_v5 = vpack.i.bf16 %v4443_v19, %v4442_v46 }
0x24d9   :  { %4405 = vadd.xlane.f32.xlu0 %v4404_v15 }
0x24da   :  { %14768 = vmatprep.mubr.msk.f32.mxu1 %vm189_vm9, %v17312_v45  ;;  %v17319_v51 = vpack.i.bf16 %v17309_v13, %v17312_v45  ;;  %v4407_v17 = vsel %vm101_vm6, %v4402_v16, 0.0 }
0x24dc   :  { %15997 = vrot.lane.b32.xlu1 %v17319_v51, %s16625_s1 }
0x2500   :  { %4408 = vadd.xlane.f32.xlu1 %v4407_v17 }
0x2511   :  { %4437 = vrot.lane.b32.xlu1 %v17328_v18, %s16625_s1 }
0x2515   :  { %16002 = vrot.lane.b32.xlu1 %v16001_v5, %s16628_s23 }
0x2519   :  { %16012 = vrot.lane.b32.xlu1 %v17319_v51, %s16626_s21 }
0x251d   :  { %4991 = vrot.lane.b32.xlu1 %v17312_v45, %s16627_s22 }
0x2521   :  { %4993 = vrot.lane.b32.xlu1 %v17309_v13, %s16627_s22 }
0x2525   :  { %16017 = vrot.lane.b32.xlu1 %v17319_v51, %s16629_s24 }
0x2529   :  { %5367 = vrot.lane.b32.xlu1 %v17312_v45, %s16630_s25 }
0x254e   :  { %v15998_v57 = vpop.permute.xlu1 %15997 }
0x254f   :  { %v16000_v43 = vunpack.i.h.bf16 %v15998_v57  ;;  %v15999_v20 = vunpack.i.l.bf16 %v15998_v57  ;;  %v17394_v57 = vld [vmem:[%s18522_s8 + $0x2] ss:$0 sm:$0xff] }
0x2551   :  { %v15491_v21 = vpack.c.bf16 %v16000_v43, %v15999_v20 }
0x2553   :  { %15493 = vmatprep.subr.msk.bf16.mxu1 %vm16758_vm10, %v15491_v21 }
0x2554   :  { %15496 = vmatpush3.bf16.xpose.msk.msra.mxu1 %vm16758_vm10, %v15491_v21 }
0x255b   :  { %14769 = vmatmul.mubr.msk.f32.vlgmr.msra.gmra.mrb[36].mxu1 %vm189_vm9, %v17309_v13 }
0x2566   :  { %v4406_v12 = vpop.xlane.xlu0 %4405 }
0x2567   :  { %v4410_v55 = vmul.f32 0.0625, %v4406_v12 }
0x2569   :  { %v4412_v25 = vsub.f32 %v4401_v9, %v4410_v55 }
0x256b   :  { %v4414_v10 = vmul.f32 %v4412_v25, %v4412_v25 }
0x256d   :  { %v4416_v28 = vsel %vm101_vm6, %v4414_v10, 0.0 }
0x256e   :  { %4417 = vadd.xlane.f32.xlu0 %v4416_v28 }
0x258d   :  { %v4409_v26 = vpop.xlane.xlu1 %4408 }
0x258e   :  { %v4411_v31 = vmul.f32 0.0625, %v4409_v26 }
0x2590   :  { %v4413_v1 = vsub.f32 %v4402_v16, %v4411_v31 }
0x2591   :  { %v4438_v50 = vpop.permute.xlu1 %4437 }
0x2592   :  { %v4415_v29 = vmul.f32 %v4413_v1, %v4413_v1 }
0x2594   :  { %v4419_v2 = vsel %vm101_vm6, %v4415_v29, 0.0 }
0x2595   :  { %4420 = vadd.xlane.f32.xlu0 %v4419_v2  ;;  %v16003_v32 = vpop.permute.xlu1 %16002 }
0x2596   :  { %v16005_v34 = vunpack.i.h.bf16 %v16003_v32  ;;  %v16004_v37 = vunpack.i.l.bf16 %v16003_v32 }
0x2598   :  { %v15481_v38 = vpack.c.bf16 %v16005_v34, %v16004_v37 }
0x2599   :  { %v16013_v10 = vpop.permute.xlu1 %16012 }
0x259a   :  { %15483 = vmatprep.subr.msk.bf16.mxu0 %vm16909_vm13, %v15481_v38  ;;  %v16015_v29 = vunpack.i.h.bf16 %v16013_v10  ;;  %v16014_v2 = vunpack.i.l.bf16 %v16013_v10 }
0x259d   :  { %v4992_v26 = vpop.permute.xlu1 %4991 }
0x25fb   :  { %v4418_v3 = vpop.xlane.xlu0 %4417 }
0x25fc   :  { %v4422_v39 = vmul.f32 0.0625, %v4418_v3 }
0x25fe   :  { %v4424_v41 = vadd.f32 1e-05, %v4422_v39 }
0x2600   :  { %16368 = vrsqrt.f32 %v4424_v41 }
0x260a   :  { %v16369_v42 = vpop.eup %16368 }
0x260b   :  { %v4428_v44 = vmul.f32 %v16369_v42, %v4412_v25 }
0x260d   :  { %v4434_v35 = vmul.f32 %v17328_v18, %v4428_v44 }
0x260f   :  { %v17360_v49 = vadd.f32 %v4438_v50, %v4434_v35 }
0x2611   :  { %14747 = vmatprep.mubr.msk.f32.mxu0 %vm101_vm6, %v17360_v49 }
0x2622   :  { %v4421_v54 = vpop.xlane.xlu0 %4420 }
0x2623   :  { %v4423_v23 = vmul.f32 0.0625, %v4421_v54 }
0x2625   :  { %v4425_v53 = vadd.f32 1e-05, %v4423_v23 }
0x2627   :  { %16370 = vrsqrt.f32 %v4425_v53 }
0x262e   :  { %v14770_v6 = vpop.f32.mrb[36].mxu1 }
0x262f   :  { %v4869_v56 = vpop.f32.mrb[37].mxu1  ;;  %v4879_v59 = vmul.f32 0.5, %v14770_v6 }
0x2630   :  { %v4878_v27 = vmul.f32 0.5, %v4869_v56 }
0x2631   :  { %v16371_v33 = vpop.eup %16370  ;;  %v4881_v63 = vadd.f32 %v4879_v59, %v17372_v60 }
0x2632   :  { %v4429_v61 = vmul.f32 %v16371_v33, %v4413_v1  ;;  %v4880_v62 = vadd.f32 %v4878_v27, %v17367_v58 }
0x2633   :  { %v4885_v9 = vsel %vm101_vm6, %v4881_v63, -inf }
0x2634   :  { %v4882_v0 = vsel %vm101_vm6, %v4880_v62, -inf  ;;  %v4435_v36 = vmul.f32 %v17328_v18, %v4429_v61 }
0x2635   :  { %4883 = vmax.xlane.f32.xlu0 %v4882_v0 }
0x2636   :  { %v17378_v8 = vadd.f32 %v4438_v50, %v4435_v36  ;;  %v4994_v50 = vpop.permute.xlu1 %4993 }
0x2638   :  { %14748 = vmatmul.mubr.msk.f32.vlgmr.msra.gmra.mrb[34].mxu0 %vm101_vm6, %v17378_v8 }
0x2639   :  { %4886 = vmax.xlane.f32.xlu0 %v4885_v9  ;;  %15486 = vmatpush3.bf16.xpose.msk.msra.mxu0 %vm16909_vm13, %v15481_v38  ;;  %v15501_v38 = vpack.c.bf16 %v16015_v29, %v16014_v2 }
0x263a   :  { %v16018_v39 = vpop.permute.xlu1 %16017 }
0x263b   :  { %v16020_v44 = vunpack.i.h.bf16 %v16018_v39  ;;  %v16019_v35 = vunpack.i.l.bf16 %v16018_v39 }
0x263d   :  { %v15511_v54 = vpack.c.bf16 %v16020_v44, %v16019_v35 }
0x263e   :  { %v5368_v23 = vpop.permute.xlu1 %5367 }
0x26c2   :  { %v4884_v11 = vpop.xlane.xlu0 %4883 }
0x26c3   :  { %v4888_v14 = vsub.f32 %v4880_v62, %v4884_v11 }
0x26c5   :  { %v4890_v16 = vmul.f32 1.442695, %v4888_v14 }
0x26c6   :  { %v4887_v15 = vpop.xlane.xlu0 %4886 }
0x26c7   :  { %v4889_v4 = vsub.f32 %v4881_v63, %v4887_v15 }
0x26c9   :  { %v4892_v17 = vmul.f32 1.442695, %v4889_v4 }
0x26cb   :  { %16372 = vpow2.f32 %v4892_v17 }
0x26cc   :  { %16374 = vpow2.f32 %v4890_v16 }
0x26d5   :  { %v16373_v18 = vpop.eup %16372 }
0x26d6   :  { %v4897_v46 = vsel %vm101_vm6, %v16373_v18, 0.0  ;;  %v16375_v19 = vpop.eup %16374 }
0x26d7   :  { %4898 = vadd.xlane.f32.xlu0 %v4897_v46  ;;  %v4894_v5 = vsel %vm101_vm6, %v16375_v19, 0.0 }
0x26db   :  { %4895 = vadd.xlane.f32.xlu0 %v4894_v5 }
0x26f1   :  { %16007 = vrot.lane.b32.xlu0 %v17319_v51, %s16628_s23 }
0x26f5   :  { %5369 = vrot.lane.b32.xlu0 %v17309_v13, %s16630_s25 }
0x270b   :  { %v14749_v43 = vpop.f32.mrb[34].mxu0 }
0x270c   :  { %v4527_v20 = vadd.f32 %v14749_v43, %v17394_v57  ;;  %v4521_v21 = vpop.f32.mrb[35].mxu0 }
0x270d   :  { %v4522_v12 = vadd.f32 %v17394_v57, %v4521_v21 }
0x270e   :  { %v4531_v25 = vmax.f32 %v4527_v20, 0.0 }
0x270f   :  { %v4530_v55 = vmax.f32 %v4522_v12, 0.0 }
0x2711   :  { %14754 = vmatprep.mubr.msk.f32.mxu0 %vm1495_vm12, %v4530_v55 }
0x2712   :  { %14755 = vmatmul.mubr.msk.f32.vlgmr.msra.gmra.mrb[36].mxu0 %vm1495_vm12, %v4531_v25 }
0x2764   :  { %v4899_v28 = vpop.xlane.xlu0 %4898 }
0x2765   :  { %16376 = vrcp.f32 %v4899_v28 }
0x2768   :  { %v4896_v31 = vpop.xlane.xlu0 %4895 }
0x2769   :  { %16378 = vrcp.f32 %v4896_v31 }
0x276c   :  { %v16008_v1 = vpop.permute.xlu0 %16007 }
0x276d   :  { %v16010_v32 = vunpack.i.h.bf16 %v16008_v1  ;;  %v16009_v34 = vunpack.i.l.bf16 %v16008_v1 }
0x276f   :  { %v15497_v37 = vpack.c.bf16 %v16010_v32, %v16009_v34  ;;  %v16377_v7 = vpop.eup %16376 }
0x2770   :  { %v4903_v42 = vmul.f32 %v16377_v7, %v16373_v18  ;;  %v5370_v53 = vpop.permute.xlu0 %5369 }
0x2771   :  { %15498 = vmatprep.subr.bf16.mxu0 %v15497_v37 }
0x2772   :  { %15500 = vmatpush3.bf16.msra.mxu0 %v15497_v37 }
0x2773   :  { %v16379_v3 = vpop.eup %16378  ;;  %15503 = vmatprep.subr.msk.bf16.mxu0 %vm16758_vm10, %v15501_v38 }
0x2774   :  { %v4902_v41 = vmul.f32 %v16379_v3, %v16375_v19 }
0x2776   :  { %14775 = vmatprep.mubr.msk.f32.mxu0 %vm101_vm6, %v4902_v41 }
0x2777   :  { %14776 = vmatmul.mubr.msk.f32.vlgmr.msra.gmra.mrb[38].mxu0 %vm101_vm6, %v4903_v42 }
0x2778   :  { %14782 = vmatprep.mubr.msk.f32.mxu0 %vm189_vm9, %v4992_v26 }
0x277b   :  { %15506 = vmatpush3.bf16.xpose.msk.msra.mxu0 %vm16758_vm10, %v15501_v38 }
0x277c   :  { %15513 = vmatprep.subr.msk.bf16.mxu0 %vm16758_vm10, %v15511_v54 }
0x2782   :  { %14783 = vmatmul.mubr.msk.f32.vlgmr.msra.gmra.mrb[40].mxu0 %vm189_vm9, %v4994_v50 }
0x2783   :  { %15516 = vmatpush3.bf16.xpose.msk.msra.mxu0 %vm16758_vm10, %v15511_v54  ;;  %14806 = vmatprep.mubr.msk.f32.mxu0 %vm189_vm9, %v5368_v23 }
0x278a   :  { %14807 = vmatmul.mubr.msk.f32.vlgmr.msra.gmra.mrb[42].mxu0 %vm189_vm9, %v5370_v53 }
0x27e5   :  { %v17414_v6 = vpop.f32.mrb[36].mxu0 }
0x27e6   :  { %v17416_v56 = vpop.f32.mrb[37].mxu0 }
0x284a   :  { %v17418_v59 = vpop.f32.mrb[38].mxu0 }
0x284b   :  { %v17420_v27 = vpop.f32.mrb[39].mxu0 }
0x2855   :  { %v14784_v33 = vpop.f32.mrb[40].mxu0 }
0x2856   :  { %v5083_v61 = vmul.f32 0.5, %v14784_v33  ;;  %v5073_v62 = vpop.f32.mrb[41].mxu0 }
0x2857   :  { %v5082_v63 = vmul.f32 0.5, %v5073_v62 }
0x2858   :  { %v5085_v0 = vadd.f32 %v5083_v61, %v17372_v60 }
0x2859   :  { %v5084_v36 = vadd.f32 %v5082_v63, %v17367_v58 }
0x285a   :  { %v5089_v9 = vsel %vm101_vm6, %v5085_v0, -inf }
0x285b   :  { %5090 = vmax.xlane.f32.xlu0 %v5089_v9  ;;  %v5086_v11 = vsel %vm101_vm6, %v5084_v36, -inf }
0x285c   :  { %5087 = vmax.xlane.f32.xlu1 %v5086_v11 }
0x285d   :  { %v14808_v14 = vpop.f32.mrb[42].mxu0 }
0x285e   :  { %v5449_v15 = vpop.f32.mrb[43].mxu0  ;;  %v5459_v55 = vmul.f32 0.5, %v14808_v14 }
0x285f   :  { %v5458_v12 = vmul.f32 0.5, %v5449_v15 }
0x2860   :  { %v5461_v10 = vadd.f32 %v5459_v55, %v17372_v60 }
0x2861   :  { %v5460_v25 = vadd.f32 %v5458_v12, %v17367_v58 }
0x2862   :  { %v5465_v26 = vsel %vm101_vm6, %v5461_v10, -inf }
0x2863   :  { %v5462_v28 = vsel %vm101_vm6, %v5460_v25, -inf }
0x28e8   :  { %v5091_v4 = vpop.xlane.xlu0 %5090 }
0x28e9   :  { %v5093_v16 = vsub.f32 %v5085_v0, %v5091_v4  ;;  %v5088_v17 = vpop.xlane.xlu1 %5087 }
0x28ea   :  { %v5092_v18 = vsub.f32 %v5084_v36, %v5088_v17  ;;  %v5196_v36 = vrot.slane %v17287_v22, 4 }
0x28eb   :  { %v5096_v46 = vmul.f32 1.442695, %v5093_v16 }
0x28ec   :  { %v5094_v19 = vmul.f32 1.442695, %v5092_v18 }
0x28ed   :  { %16380 = vpow2.f32 %v5096_v46 }
0x28ee   :  { %16382 = vpow2.f32 %v5094_v19 }
0x28f7   :  { %v16381_v5 = vpop.eup %16380 }
0x28f8   :  { %v16383_v43 = vpop.eup %16382  ;;  %v5101_v20 = vsel %vm101_vm6, %v16381_v5, 0.0 }
0x28f9   :  { %5102 = vadd.xlane.f32.xlu1 %v5101_v20  ;;  %v5098_v21 = vsel %vm101_vm6, %v16383_v43, 0.0 }
0x28fa   :  { %5099 = vadd.xlane.f32.xlu0 %v5098_v21 }
0x290a   :  { %16027 = vrot.lane.b32.xlu1 %v17319_v51, %s16635_s29 }
0x290e   :  { %5659 = vrot.lane.b32.xlu1 %v17312_v45, %s16632_s27 }
0x2910   :  { %16022 = vrot.lane.b32.xlu0 %v17319_v51, %s16631_s26 }
0x2914   :  { %5661 = vrot.lane.b32.xlu0 %v17309_v13, %s16632_s27 }
0x2932   :  { %5463 = vmax.xlane.f32.xlu1 %v5462_v28 }
0x2933   :  { %5466 = vmax.xlane.f32.xlu0 %v5465_v26 }
0x2986   :  { %v5103_v31 = vpop.xlane.xlu1 %5102 }
0x2987   :  { %16384 = vrcp.f32 %v5103_v31  ;;  %v5100_v45 = vpop.xlane.xlu0 %5099 }
0x2988   :  { %16386 = vrcp.f32 %v5100_v45 }
0x298a   :  { %v16028_v1 = vpop.permute.xlu1 %16027 }
0x298b   :  { %v16030_v29 = vunpack.i.h.bf16 %v16028_v1  ;;  %v16029_v2 = vunpack.i.l.bf16 %v16028_v1  ;;  %v16023_v13 = vpop.permute.xlu0 %16022 }
0x298c   :  { %v16025_v50 = vunpack.i.h.bf16 %v16023_v13  ;;  %v16024_v32 = vunpack.i.l.bf16 %v16023_v13 }
0x298d   :  { %v15521_v34 = vpack.c.bf16 %v16030_v29, %v16029_v2 }
0x298e   :  { %v5660_v37 = vpop.permute.xlu1 %5659  ;;  %v15507_v38 = vpack.c.bf16 %v16025_v50, %v16024_v32 }
0x298f   :  { %15523 = vmatprep.subr.msk.bf16.mxu0 %vm16758_vm10, %v15521_v34  ;;  %14825 = vmatprep.mubr.msk.f32.mxu0 %vm189_vm9, %v5660_v37  ;;  %v5662_v42 = vpop.permute.xlu0 %5661 }
0x2990   :  { %15508 = vmatprep.subr.bf16.mxu1 %v15507_v38  ;;  %15526 = vmatpush3.bf16.xpose.msk.msra.mxu0 %vm16758_vm10, %v15521_v34 }
0x2991   :  { %v16385_v7 = vpop.eup %16384  ;;  %15510 = vmatpush3.bf16.msra.mxu1 %v15507_v38 }
0x2992   :  { %v16387_v3 = vpop.eup %16386  ;;  %v5107_v41 = vmul.f32 %v16385_v7, %v16381_v5 }
0x2993   :  { %v5106_v39 = vmul.f32 %v16387_v3, %v16383_v43 }
0x2995   :  { %14789 = vmatprep.mubr.msk.f32.mxu1 %vm101_vm6, %v5106_v39 }
0x2996   :  { %14790 = vmatmul.mubr.msk.f32.vlgmr.msra.gmra.mrb[38].mxu1 %vm101_vm6, %v5107_v41 }
0x2997   :  { %14826 = vmatmul.mubr.msk.f32.vlgmr.msra.gmra.mrb[44].mxu0 %vm189_vm9, %v5662_v42 }
0x29bf   :  { %v5464_v44 = vpop.xlane.xlu1 %5463 }
0x29c0   :  { %v5468_v35 = vsub.f32 %v5460_v25, %v5464_v44  ;;  %v5467_v54 = vpop.xlane.xlu0 %5466 }
0x29c1   :  { %v5469_v23 = vsub.f32 %v5461_v10, %v5467_v54 }
0x29c2   :  { %v5470_v53 = vmul.f32 1.442695, %v5468_v35 }
0x29c3   :  { %v5472_v33 = vmul.f32 1.442695, %v5469_v23 }
0x29c4   :  { %16388 = vpow2.f32 %v5470_v53 }
0x29c5   :  { %16390 = vpow2.f32 %v5472_v33 }
0x29ce   :  { %v16389_v61 = vpop.eup %16388 }
0x29cf   :  { %v16391_v62 = vpop.eup %16390  ;;  %v5474_v63 = vsel %vm101_vm6, %v16389_v61, 0.0 }
0x29d0   :  { %5475 = vadd.xlane.f32.xlu0 %v5474_v63  ;;  %v5477_v0 = vsel %vm101_vm6, %v16391_v62, 0.0 }
0x29d1   :  { %5478 = vadd.xlane.f32.xlu1 %v5477_v0 }
0x29e2   :  { %5282 = vrot.lane.b32.xlu1 %v17287_v22, %s16633_s28 }
0x29e6   :  { %16032 = vrot.lane.b32.xlu1 %v17319_v51, %s16634_s0  ;;  %5197 = vrot.lane.b32.xlu0 %v5196_v36, %s16633_s28 }
0x2a5d   :  { %v5476_v9 = vpop.xlane.xlu0 %5475 }
0x2a5e   :  { %v5479_v11 = vpop.xlane.xlu1 %5478  ;;  %16392 = vrcp.f32 %v5476_v9 }
0x2a5f   :  { %16394 = vrcp.f32 %v5479_v11 }
0x2a61   :  { %v5198_v14 = vpop.permute.xlu0 %5197 }
0x2a62   :  { %v5283_v15 = vpop.permute.xlu1 %5282  ;;  %14792 = vmatprep.subr.msk.mxu1 %vm600_vm11, %v5198_v14 }
0x2a63   :  { %14793 = vmatpush3.msk.msra.mxu1 %vm600_vm11, %v5198_v14 }
0x2a64   :  { %14797 = vmatprep.subr.msk.mxu1 %vm600_vm11, %v5283_v15 }
0x2a66   :  { %v16033_v4 = vpop.permute.xlu1 %16032 }
0x2a67   :  { %v16035_v16 = vunpack.i.h.bf16 %v16033_v4  ;;  %v16034_v17 = vunpack.i.l.bf16 %v16033_v4  ;;  %v13694_v4 = vld [vmem:[%s18520_s9 + $0x5] ss:$0 sm:$0xff] }
0x2a68   :  { %v16393_v25 = vpop.eup %16392 }
0x2a69   :  { %v14791_v22 = vpop.f32.mrb[38].mxu1  ;;  %v15517_v20 = vpack.c.bf16 %v16035_v16, %v16034_v17  ;;  %v16395_v28 = vpop.eup %16394  ;;  %v5482_v26 = vmul.f32 %v16393_v25, %v16389_v61 }
0x2a6a   :  { %v5186_v18 = vpop.f32.mrb[39].mxu1  ;;  %v14827_v46 = vpop.f32.mrb[44].mxu0 }
0x2a6b   :  { %v5751_v19 = vmul.f32 0.5, %v14827_v46  ;;  %14794 = vmatprep.mubr.msk.f32.mxu1 %vm189_vm9, %v5186_v18  ;;  %v5741_v5 = vpop.f32.mrb[45].mxu0 }
0x2a6c   :  { %v5750_v43 = vmul.f32 0.5, %v5741_v5  ;;  %14795 = vmatmul.mubr.msk.f32.vlgmr.msra.gmra.mrb[40].mxu1 %vm189_vm9, %v14791_v22 }
0x2a6d   :  { %v5753_v21 = vadd.f32 %v5751_v19, %v17372_v60  ;;  %14798 = vmatpush3.msk.msra.mxu1 %vm600_vm11, %v5283_v15  ;;  %14799 = vmatprep.mubr.msk.f32.mxu1 %vm189_vm9, %v17420_v27  ;;  %v5483_v60 = vmul.f32 %v16395_v28, %v16391_v62 }
0x2a6e   :  { %v5752_v12 = vadd.f32 %v5750_v43, %v17367_v58  ;;  %15518 = vmatprep.subr.bf16.mxu1 %v15517_v20  ;;  %v5863_v58 = vrot.slane %v17292_v48, 4 }
0x2a6f   :  { %v5757_v55 = vsel %vm101_vm6, %v5753_v21, -inf }
0x2a70   :  { %5758 = vmax.xlane.f32.xlu1 %v5757_v55  ;;  %v5754_v10 = vsel %vm101_vm6, %v5752_v12, -inf }
0x2a71   :  { %5755 = vmax.xlane.f32.xlu0 %v5754_v10 }
0x2a74   :  { %14800 = vmatmul.mubr.msk.f32.vlgmr.msra.gmra.mrb[40].mxu1 %vm189_vm9, %v17418_v59 }
0x2a75   :  { %15520 = vmatpush3.bf16.msra.mxu1 %v15517_v20  ;;  %14813 = vmatprep.mubr.msk.f32.mxu1 %vm101_vm6, %v5482_v26 }
0x2a78   :  { %14814 = vmatmul.mubr.msk.f32.vlgmr.msra.gmra.mrb[42].mxu1 %vm101_vm6, %v5483_v60 }
0x2a81   :  { %5572 = vrot.lane.b32.xlu1 %v17292_v48, %s16633_s28 }
0x2a85   :  { %5864 = vrot.lane.b32.xlu1 %v5863_v58, %s16633_s28 }
0x2a89   :  { %4539 = vrot.lane.b32.xlu1 %v17394_v57, %s16628_s23 }
0x2afd   :  { %v5759_v27 = vpop.xlane.xlu1 %5758 }
0x2afe   :  { %v5761_v31 = vsub.f32 %v5753_v21, %v5759_v27  ;;  %v5756_v45 = vpop.xlane.xlu0 %5755 }
0x2aff   :  { %v5760_v59 = vsub.f32 %v5752_v12, %v5756_v45 }
0x2b00   :  { %v5764_v1 = vmul.f32 1.442695, %v5761_v31 }
0x2b01   :  { %v5762_v29 = vmul.f32 1.442695, %v5760_v59  ;;  %v5573_v2 = vpop.permute.xlu1 %5572 }
0x2b02   :  { %16396 = vpow2.f32 %v5764_v1  ;;  %14816 = vmatprep.subr.msk.mxu1 %vm600_vm11, %v5573_v2 }
0x2b03   :  { %14817 = vmatpush3.msk.msra.mxu1 %vm600_vm11, %v5573_v2  ;;  %16398 = vpow2.f32 %v5762_v29 }
0x2b05   :  { %v5865_v13 = vpop.permute.xlu1 %5864 }
0x2b09   :  { %v4540_v48 = vpop.permute.xlu1 %4539 }
0x2b0a   :  { %v4624_v50 = vadd.f32 %v17414_v6, %v4540_v48  ;;  %v4619_v6 = vadd.f32 %v17416_v56, %v4540_v48 }
0x2b0c   :  { %v16397_v32 = vpop.eup %16396  ;;  %v4628_v57 = vadd.f32 %v4624_v50, %v17378_v8  ;;  %v4627_v8 = vadd.f32 %v4619_v6, %v17360_v49 }
0x2b0d   :  { %v5769_v34 = vsel %vm101_vm6, %v16397_v32, 0.0  ;;  %v16399_v37 = vpop.eup %16398 }
0x2b0e   :  { %5770 = vadd.xlane.f32.xlu0 %v5769_v34  ;;  %v4633_v38 = vsel %vm101_vm6, %v4628_v57, 0.0  ;;  %v5766_v7 = vsel %vm101_vm6, %v16399_v37, 0.0  ;;  %v4630_v3 = vsel %vm101_vm6, %v4627_v8, 0.0 }
0x2b0f   :  { %4634 = vadd.xlane.f32.xlu1 %v4633_v38 }
0x2b12   :  { %5767 = vadd.xlane.f32.xlu0 %v5766_v7 }
0x2b20   :  { %5952 = vrot.lane.b32.xlu1 %v17305_v47, %s16633_s28 }
0x2b28   :  { %16037 = vrot.lane.b32.xlu0 %v17319_v51, %s16636_s30 }
0x2b47   :  { %4631 = vadd.xlane.f32.xlu0 %v4630_v3 }
0x2b4b   :  { %v14815_v39 = vpop.f32.mrb[42].mxu1 }
0x2b4c   :  { %v5562_v41 = vpop.f32.mrb[43].mxu1 }
0x2b4d   :  { %14818 = vmatprep.mubr.msk.f32.mxu1 %vm189_vm9, %v5562_v41 }
0x2b4e   :  { %14819 = vmatmul.mubr.msk.f32.vlgmr.msra.gmra.mrb[40].mxu1 %vm189_vm9, %v14815_v39 }
0x2b9b   :  { %v5771_v42 = vpop.xlane.xlu0 %5770 }
0x2b9c   :  { %16400 = vrcp.f32 %v5771_v42  ;;  %v4635_v33 = vpop.xlane.xlu1 %4634 }
0x2b9d   :  { %v4637_v61 = vmul.f32 0.0625, %v4635_v33  ;;  %v13735_v33 = vld [vmem:[%s18520_s9 + $0x7] ss:$0 sm:$0xff] }
0x2b9f   :  { %v5768_v44 = vpop.xlane.xlu0 %5767  ;;  %v4639_v0 = vsub.f32 %v4628_v57, %v4637_v61  ;;  %v13695_v61 = vld [vmem:[%s18520_s9 + $0x6] ss:$0 sm:$0xff] }
0x2ba0   :  { %16402 = vrcp.f32 %v5768_v44  ;;  %v5953_v25 = vpop.permute.xlu1 %5952 }
0x2ba1   :  { %v4641_v14 = vmul.f32 %v4639_v0, %v4639_v0 }
0x2ba3   :  { %v16038_v47 = vpop.permute.xlu0 %16037  ;;  %v4645_v15 = vsel %vm101_vm6, %v4641_v14, 0.0 }
0x2ba4   :  { %v16040_v35 = vunpack.i.h.bf16 %v16038_v47  ;;  %v16039_v51 = vunpack.i.l.bf16 %v16038_v47 }
0x2ba6   :  { %v15527_v54 = vpack.c.bf16 %v16040_v35, %v16039_v51  ;;  %v16401_v56 = vpop.eup %16400 }
0x2ba7   :  { %v5775_v53 = vmul.f32 %v16401_v56, %v16397_v32 }
0x2ba8   :  { %15528 = vmatprep.subr.bf16.mxu1 %v15527_v54 }
0x2ba9   :  { %15530 = vmatpush3.bf16.msra.mxu1 %v15527_v54 }
0x2baa   :  { %v16403_v49 = vpop.eup %16402  ;;  %14835 = vmatprep.subr.msk.mxu1 %vm600_vm11, %v5865_v13 }
0x2bab   :  { %v5774_v23 = vmul.f32 %v16403_v49, %v16399_v37  ;;  %v17519_v49 = vld [vmem:[%s18515_s5 + $0x40] sm:$0xff] }
0x2bad   :  { %14832 = vmatprep.mubr.msk.f32.mxu1 %vm101_vm6, %v5774_v23  ;;  %v17524_v23 = vld [vmem:[%s18515_s5 + $0x48] sm:$0xff] }
0x2bae   :  { %14833 = vmatmul.mubr.msk.f32.vlgmr.msra.gmra.mrb[44].mxu1 %vm101_vm6, %v5775_v53  ;;  %v16041_v53 = vpack.i.bf16 %v17524_v23, %v17519_v49 }
0x2baf   :  { %14836 = vmatpush3.msk.msra.mxu1 %vm600_vm11, %v5865_v13 }
0x2bd4   :  { %v4632_v62 = vpop.xlane.xlu0 %4631 }
0x2bd5   :  { %v4636_v63 = vmul.f32 0.0625, %v4632_v62  ;;  %v15531_v62 = vpack.c.bf16 %v17524_v23, %v17519_v49 }
0x2bd7   :  { %v4638_v36 = vsub.f32 %v4627_v8, %v4636_v63  ;;  %15532 = vmatprep.subr.bf16.mxu0 %v15531_v62  ;;  %v17542_v63 = vld [vmem:[%s18518_s6 + $0x4] ss:$0 sm:$0xff] }
0x2bd8   :  { %15534 = vmatpush3.bf16.msra.mxu0 %v15531_v62 }
0x2bd9   :  { %v4640_v9 = vmul.f32 %v4638_v36, %v4638_v36 }
0x2bdb   :  { %v4642_v11 = vsel %vm101_vm6, %v4640_v9, 0.0 }
0x2bdc   :  { %4643 = vadd.xlane.f32.xlu0 %v4642_v11 }
0x2be0   :  { %4646 = vadd.xlane.f32.xlu0 %v4645_v15 }
0x2bf6   :  { %4663 = vrot.lane.b32.xlu0 %v13694_v4, %s16625_s1 }
0x2c69   :  { %v4644_v22 = vpop.xlane.xlu0 %4643 }
0x2c6a   :  { %v4648_v19 = vmul.f32 0.0625, %v4644_v22 }
0x2c6c   :  { %v4650_v43 = vadd.f32 1e-05, %v4648_v19 }
0x2c6d   :  { %v4647_v18 = vpop.xlane.xlu0 %4646 }
0x2c6e   :  { %v4649_v46 = vmul.f32 0.0625, %v4647_v18 }
0x2c70   :  { %v4651_v5 = vadd.f32 1e-05, %v4649_v46 }
0x2c71   :  { %v4664_v31 = vpop.permute.xlu0 %4663 }
0x2c72   :  { %16404 = vrsqrt.f32 %v4651_v5 }
0x2c73   :  { %16406 = vrsqrt.f32 %v4650_v43 }
0x2c7c   :  { %v16405_v20 = vpop.eup %16404 }
0x2c7d   :  { %v16407_v21 = vpop.eup %16406  ;;  %v4655_v12 = vmul.f32 %v16405_v20, %v4639_v0 }
0x2c7e   :  { %v4654_v55 = vmul.f32 %v16407_v21, %v4638_v36 }
0x2c7f   :  { %v4661_v28 = vmul.f32 %v13694_v4, %v4655_v12 }
0x2c80   :  { %v4660_v58 = vmul.f32 %v13694_v4, %v4654_v55 }
0x2c81   :  { %v14834_v16 = vpop.f32.mrb[44].mxu1  ;;  %v4667_v1 = vadd.f32 %v4664_v31, %v4661_v28 }
0x2c82   :  { %v5854_v17 = vpop.f32.mrb[45].mxu1  ;;  %v4666_v2 = vadd.f32 %v4664_v31, %v4660_v58 }
0x2c83   :  { %14837 = vmatprep.mubr.msk.f32.mxu1 %vm189_vm9, %v5854_v17  ;;  %v4672_v48 = vsel %vm101_vm6, %v4667_v1, 0.0 }
0x2c84   :  { %14838 = vmatmul.mubr.msk.f32.vlgmr.msra.gmra.mrb[40].mxu1 %vm189_vm9, %v14834_v16  ;;  %v4669_v50 = vsel %vm101_vm6, %v4666_v2, 0.0 }
0x2d57   :  { %v14839_v10 = vpop.f32.mrb[40].mxu1 }
0x2d58   :  { %v5956_v26 = vadd.f32 %v14839_v10, %v5953_v25  ;;  %v5940_v60 = vpop.f32.mrb[41].mxu1 }
0x2d59   :  { %v5955_v27 = vadd.f32 %v5953_v25, %v5940_v60 }
0x2d5a   :  { %v5958_v45 = vadd.f32 %v5956_v26, %v16733_v30 }
0x2d5b   :  { %v5957_v59 = vadd.f32 %v5955_v27, %v16726_v24 }
0x2d5c   :  { %v5963_v29 = vsel %vm101_vm6, %v5958_v45, 0.0 }
0x2d5d   :  { %5964 = vadd.xlane.f32.xlu0 %v5963_v29  ;;  %v5960_v13 = vsel %vm101_vm6, %v5957_v59, 0.0 }
0x2d5e   :  { %5961 = vadd.xlane.f32.xlu1 %v5960_v13 }
0x2d61   :  { %4673 = vadd.xlane.f32.xlu0 %v4672_v48 }
0x2d62   :  { %4670 = vadd.xlane.f32.xlu1 %v4669_v50 }
0x2dea   :  { %v5965_v32 = vpop.xlane.xlu0 %5964 }
0x2deb   :  { %v5967_v57 = vmul.f32 0.0625, %v5965_v32  ;;  %v5962_v34 = vpop.xlane.xlu1 %5961 }
0x2dec   :  { %v5966_v37 = vmul.f32 0.0625, %v5962_v34 }
0x2ded   :  { %v5969_v30 = vsub.f32 %v5958_v45, %v5967_v57 }
0x2dee   :  { %v4674_v24 = vpop.xlane.xlu0 %4673  ;;  %v5968_v41 = vsub.f32 %v5957_v59, %v5966_v37 }
0x2def   :  { %v4676_v38 = vmul.f32 0.0625, %v4674_v24  ;;  %v4671_v7 = vpop.xlane.xlu1 %4670  ;;  %v5971_v6 = vmul.f32 %v5969_v30, %v5969_v30 }
0x2df0   :  { %v4675_v8 = vmul.f32 0.0625, %v4671_v7  ;;  %v5970_v54 = vmul.f32 %v5968_v41, %v5968_v41 }
0x2df1   :  { %v4678_v3 = vsub.f32 %v4667_v1, %v4676_v38  ;;  %v5975_v39 = vsel %vm101_vm6, %v5971_v6, 0.0 }
0x2df2   :  { %v4677_v42 = vsub.f32 %v4666_v2, %v4675_v8  ;;  %5976 = vadd.xlane.f32.xlu0 %v5975_v39  ;;  %v5972_v56 = vsel %vm101_vm6, %v5970_v54, 0.0 }
0x2df3   :  { %v4680_v44 = vmul.f32 %v4678_v3, %v4678_v3 }
0x2df4   :  { %v4679_v47 = vmul.f32 %v4677_v42, %v4677_v42 }
0x2df5   :  { %v4684_v35 = vsel %vm101_vm6, %v4680_v44, 0.0  ;;  %v17581_v44 = vld [vmem:[%s18519_s2 + $0x8] sm:$0xff] }
0x2df6   :  { %4685 = vadd.xlane.f32.xlu0 %v4684_v35  ;;  %v4681_v51 = vsel %vm101_vm6, %v4679_v47, 0.0  ;;  %v17587_v35 = vld [vmem:[%s18519_s2] sm:$0xff] }
0x2df7   :  { %4682 = vadd.xlane.f32.xlu1 %v4681_v51 }
0x2dfb   :  { %5973 = vadd.xlane.f32.xlu1 %v5972_v56 }
0x2e0c   :  { %5993 = vrot.lane.b32.xlu1 %v13735_v33, %s16625_s1  ;;  %16042 = vrot.lane.b32.xlu0 %v16041_v53, %s16625_s1 }
0x2e10   :  { %4702 = vrot.lane.b32.xlu1 %v13695_v61, %s16625_s1 }
0x2e14   :  { %6095 = vrot.lane.b32.xlu1 %v17542_v63, %s16625_s1 }
0x2e7f   :  { %v5977_v0 = vpop.xlane.xlu0 %5976 }
0x2e80   :  { %v5979_v36 = vmul.f32 0.0625, %v5977_v0 }
0x2e82   :  { %v5981_v11 = vadd.f32 1e-05, %v5979_v36 }
0x2e83   :  { %v4686_v9 = vpop.xlane.xlu0 %4685 }
0x2e84   :  { %v4688_v14 = vmul.f32 0.0625, %v4686_v9  ;;  %v4683_v15 = vpop.xlane.xlu1 %4682  ;;  %16408 = vrsqrt.f32 %v5981_v11 }
0x2e85   :  { %v4687_v4 = vmul.f32 0.0625, %v4683_v15 }
0x2e86   :  { %v4690_v22 = vadd.f32 1e-05, %v4688_v14 }
0x2e87   :  { %v4689_v16 = vadd.f32 1e-05, %v4687_v4  ;;  %v16043_v17 = vpop.permute.xlu0 %16042 }
0x2e88   :  { %v5974_v18 = vpop.xlane.xlu1 %5973  ;;  %v16045_v46 = vunpack.i.h.bf16 %v16043_v17  ;;  %v16044_v19 = vunpack.i.l.bf16 %v16043_v17 }
0x2e89   :  { %16410 = vrsqrt.f32 %v4689_v16  ;;  %v5978_v5 = vmul.f32 0.0625, %v5974_v18 }
0x2e8a   :  { %v15535_v43 = vpack.c.bf16 %v16045_v46, %v16044_v19  ;;  %16412 = vrsqrt.f32 %v4690_v22 }
0x2e8b   :  { %v5980_v20 = vadd.f32 1e-05, %v5978_v5 }
0x2e8c   :  { %15536 = vmatprep.subr.bf16.mxu0 %v15535_v43  ;;  %v5994_v25 = vpop.permute.xlu1 %5993 }
0x2e8d   :  { %16414 = vrsqrt.f32 %v5980_v20 }
0x2e8e   :  { %v16409_v21 = vpop.eup %16408 }
0x2e8f   :  { %v5985_v55 = vmul.f32 %v16409_v21, %v5969_v30 }
0x2e90   :  { %v4703_v59 = vpop.permute.xlu1 %4702 }
0x2e91   :  { %v5991_v58 = vmul.f32 %v13735_v33, %v5985_v55 }
0x2e93   :  { %v16411_v12 = vpop.eup %16410  ;;  %v17548_v29 = vadd.f32 %v5994_v25, %v5991_v58 }
0x2e94   :  { %v16413_v10 = vpop.eup %16412  ;;  %v4693_v28 = vmul.f32 %v16411_v12, %v4677_v42  ;;  %v6096_v34 = vpop.permute.xlu1 %6095 }
0x2e95   :  { %v4694_v27 = vmul.f32 %v16413_v10, %v4678_v3 }
0x2e96   :  { %v4699_v45 = vmul.f32 %v13695_v61, %v4693_v28 }
0x2e97   :  { %v16415_v26 = vpop.eup %16414  ;;  %v4700_v2 = vmul.f32 %v13695_v61, %v4694_v27 }
0x2e98   :  { %v5984_v60 = vmul.f32 %v16415_v26, %v5968_v41  ;;  %v17550_v13 = vadd.f32 %v4703_v59, %v4699_v45 }
0x2e99   :  { %v17558_v48 = vadd.f32 %v4703_v59, %v4700_v2 }
0x2e9a   :  { %v5990_v31 = vmul.f32 %v13735_v33, %v5984_v60 }
0x2e9c   :  { %v17546_v1 = vadd.f32 %v5994_v25, %v5990_v31 }
0x2e9e   :  { %14844 = vmatprep.mubr.msk.f32.mxu0 %vm101_vm6, %v17546_v1 }
0x2e9f   :  { %14845 = vmatmul.mubr.msk.f32.vlgmr.msra.gmra.mrb[46].mxu0 %vm101_vm6, %v17548_v29 }
0x2ea0   :  { %15538 = vmatpush3.bf16.msra.mxu0 %v15535_v43  ;;  %14851 = vmatprep.mubr.msk.f32.mxu0 %vm101_vm6, %v17550_v13 }
0x2ea3   :  { %14852 = vmatmul.mubr.msk.f32.vlgmr.msra.gmra.mrb[48].mxu0 %vm101_vm6, %v17558_v48 }
0x2f72   :  { %v14846_v50 = vpop.f32.mrb[46].mxu0 }
0x2f73   :  { %v6077_v32 = vpop.f32.mrb[47].mxu0  ;;  %v17574_v8 = vadd.f32 %v14846_v50, %v17542_v63 }
0x2f74   :  { %v17563_v57 = vadd.f32 %v17542_v63, %v6077_v32 }
0x2f76   :  { %v14853_v30 = vpop.f32.mrb[48].mxu0  ;;  %14858 = vmatprep.mubr.msk.f32.mxu1 %vm189_vm9, %v17563_v57 }
0x2f77   :  { %v6176_v37 = vadd.f32 %v14853_v30, %v6096_v34  ;;  %v6170_v24 = vpop.f32.mrb[49].mxu0 }
0x2f78   :  { %v6171_v38 = vadd.f32 %v6170_v24, %v6096_v34 }
0x2f7a   :  { %v15539_v7 = vpack.c.bf16 %v6176_v37, %v6171_v38  ;;  %v17567_v6 = vpack.i.bf16 %v6176_v37, %v6171_v38 }
0x2f7c   :  { %15541 = vmatprep.subr.msk.bf16.mxu1 %vm16758_vm10, %v15539_v7 }
0x2f7d   :  { %15544 = vmatpush3.bf16.xpose.msk.msra.mxu1 %vm16758_vm10, %v15539_v7 }
0x2f84   :  { %14859 = vmatmul.mubr.msk.f32.vlgmr.msra.gmra.mrb[46].mxu1 %vm189_vm9, %v17574_v8 }
0x3057   :  { %v14860_v3 = vpop.f32.mrb[46].mxu1 }
0x3058   :  { %v6267_v39 = vmul.f32 0.5, %v14860_v3  ;;  %v6257_v41 = vpop.f32.mrb[47].mxu1 }
0x3059   :  { %v6266_v42 = vmul.f32 0.5, %v6257_v41 }
0x305a   :  { %v6269_v47 = vadd.f32 %v17581_v44, %v6267_v39 }
0x305b   :  { %v6268_v51 = vadd.f32 %v17587_v35, %v6266_v42 }
0x305c   :  { %v6273_v54 = vsel %vm101_vm6, %v6269_v47, -inf }
0x305d   :  { %6274 = vmax.xlane.f32.xlu1 %v6273_v54  ;;  %v6270_v56 = vsel %vm101_vm6, %v6268_v51, -inf }
0x305e   :  { %6271 = vmax.xlane.f32.xlu0 %v6270_v56 }
0x306e   :  { %16047 = vrot.lane.b32.xlu1 %v17567_v6, %s16625_s1 }
0x3072   :  { %6379 = vrot.lane.b32.xlu1 %v17563_v57, %s16627_s22 }
0x3076   :  { %6381 = vrot.lane.b32.xlu1 %v17574_v8, %s16627_s22 }
0x307a   :  { %6754 = vrot.lane.b32.xlu1 %v17563_v57, %s16630_s25 }
0x30ea   :  { %v6275_v53 = vpop.xlane.xlu1 %6274 }
0x30eb   :  { %v6277_v33 = vsub.f32 %v6269_v47, %v6275_v53  ;;  %v6272_v61 = vpop.xlane.xlu0 %6271 }
0x30ec   :  { %v6276_v62 = vsub.f32 %v6268_v51, %v6272_v61 }
0x30ed   :  { %v6280_v0 = vmul.f32 1.442695, %v6277_v33 }
0x30ee   :  { %v6278_v36 = vmul.f32 1.442695, %v6276_v62  ;;  %v16048_v9 = vpop.permute.xlu1 %16047 }
0x30ef   :  { %16416 = vpow2.f32 %v6280_v0  ;;  %v16050_v11 = vunpack.i.h.bf16 %v16048_v9  ;;  %v16049_v14 = vunpack.i.l.bf16 %v16048_v9 }
0x30f0   :  { %16418 = vpow2.f32 %v6278_v36 }
0x30f1   :  { %v15545_v15 = vpack.c.bf16 %v16050_v11, %v16049_v14 }
0x30f2   :  { %v6380_v25 = vpop.permute.xlu1 %6379 }
0x30f3   :  { %15546 = vmatprep.subr.bf16.mxu0 %v15545_v15 }
0x30f4   :  { %15548 = vmatpush3.bf16.msra.mxu0 %v15545_v15 }
0x30f6   :  { %v6382_v27 = vpop.permute.xlu1 %6381 }
0x30f9   :  { %v16417_v4 = vpop.eup %16416 }
0x30fa   :  { %v6285_v16 = vsel %vm101_vm6, %v16417_v4, 0.0  ;;  %v16419_v17 = vpop.eup %16418  ;;  %v6755_v31 = vpop.permute.xlu1 %6754 }
0x30fb   :  { %6286 = vadd.xlane.f32.xlu0 %v6285_v16  ;;  %v6282_v22 = vsel %vm101_vm6, %v16419_v17, 0.0 }
0x30ff   :  { %6283 = vadd.xlane.f32.xlu0 %v6282_v22 }
0x3115   :  { %16052 = vrot.lane.b32.xlu0 %v17567_v6, %s16627_s22 }
0x3119   :  { %16057 = vrot.lane.b32.xlu0 %v17567_v6, %s16630_s25 }
0x311d   :  { %6756 = vrot.lane.b32.xlu0 %v17574_v8, %s16630_s25 }
0x3188   :  { %v6287_v18 = vpop.xlane.xlu0 %6286 }
0x3189   :  { %16420 = vrcp.f32 %v6287_v18 }
0x318c   :  { %v6284_v46 = vpop.xlane.xlu0 %6283 }
0x318d   :  { %16422 = vrcp.f32 %v6284_v46 }
0x3190   :  { %v16053_v19 = vpop.permute.xlu0 %16052 }
0x3191   :  { %v16055_v5 = vunpack.i.h.bf16 %v16053_v19  ;;  %v16054_v43 = vunpack.i.l.bf16 %v16053_v19 }
0x3193   :  { %v15549_v20 = vpack.c.bf16 %v16055_v5, %v16054_v43  ;;  %v16421_v12 = vpop.eup %16420 }
0x3194   :  { %v16058_v21 = vpop.permute.xlu0 %16057  ;;  %v6291_v60 = vmul.f32 %v16421_v12, %v16417_v4 }
0x3195   :  { %15551 = vmatprep.subr.msk.bf16.mxu0 %vm16758_vm10, %v15549_v20  ;;  %v16060_v10 = vunpack.i.h.bf16 %v16058_v21  ;;  %v16059_v28 = vunpack.i.l.bf16 %v16058_v21 }
0x3197   :  { %v16423_v55 = vpop.eup %16422  ;;  %v15559_v58 = vpack.c.bf16 %v16060_v10, %v16059_v28 }
0x3198   :  { %v6290_v26 = vmul.f32 %v16423_v55, %v16419_v17  ;;  %v6757_v45 = vpop.permute.xlu0 %6756 }
0x319a   :  { %14865 = vmatprep.mubr.msk.f32.mxu0 %vm101_vm6, %v6290_v26 }
0x319b   :  { %14866 = vmatmul.mubr.msk.f32.vlgmr.msra.gmra.mrb[50].mxu0 %vm101_vm6, %v6291_v60 }
0x319c   :  { %15554 = vmatpush3.bf16.xpose.msk.msra.mxu0 %vm16758_vm10, %v15549_v20  ;;  %14872 = vmatprep.mubr.msk.f32.mxu0 %vm189_vm9, %v6380_v25 }
0x319d   :  { %15561 = vmatprep.subr.msk.bf16.mxu0 %vm16758_vm10, %v15559_v58 }
0x31a3   :  { %14873 = vmatmul.mubr.msk.f32.vlgmr.msra.gmra.mrb[52].mxu0 %vm189_vm9, %v6382_v27 }
0x31a4   :  { %15564 = vmatpush3.bf16.xpose.msk.msra.mxu0 %vm16758_vm10, %v15559_v58  ;;  %14896 = vmatprep.mubr.msk.f32.mxu0 %vm189_vm9, %v6755_v31 }
0x31ab   :  { %14897 = vmatmul.mubr.msk.f32.vlgmr.msra.gmra.mrb[54].mxu0 %vm189_vm9, %v6757_v45 }
0x326e   :  { %v17622_v59 = vpop.f32.mrb[50].mxu0 }
0x326f   :  { %v17624_v2 = vpop.f32.mrb[51].mxu0 }
0x3276   :  { %v14874_v50 = vpop.f32.mrb[52].mxu0 }
0x3277   :  { %v6471_v32 = vmul.f32 0.5, %v14874_v50  ;;  %v6461_v34 = vpop.f32.mrb[53].mxu0 }
0x3278   :  { %v6470_v30 = vmul.f32 0.5, %v6461_v34  ;;  %v6583_v34 = vrot.slane %v17519_v49, 4 }
0x3279   :  { %v6473_v37 = vadd.f32 %v17581_v44, %v6471_v32 }
0x327a   :  { %v6472_v24 = vadd.f32 %v17587_v35, %v6470_v30 }
0x327b   :  { %v6477_v38 = vsel %vm101_vm6, %v6473_v37, -inf }
0x327c   :  { %6478 = vmax.xlane.f32.xlu0 %v6477_v38  ;;  %v6474_v7 = vsel %vm101_vm6, %v6472_v24, -inf }
0x327d   :  { %6475 = vmax.xlane.f32.xlu1 %v6474_v7 }
0x327e   :  { %v14898_v3 = vpop.f32.mrb[54].mxu0 }
0x327f   :  { %v6836_v39 = vpop.f32.mrb[55].mxu0  ;;  %v6846_v36 = vmul.f32 0.5, %v14898_v3 }
0x3280   :  { %v6845_v0 = vmul.f32 0.5, %v6836_v39 }
0x3281   :  { %v6848_v11 = vadd.f32 %v17581_v44, %v6846_v36 }
0x3282   :  { %v6847_v9 = vadd.f32 %v17587_v35, %v6845_v0 }
0x3283   :  { %v6852_v15 = vsel %vm101_vm6, %v6848_v11, -inf }
0x3284   :  { %v6849_v14 = vsel %vm101_vm6, %v6847_v9, -inf }
0x3309   :  { %v6479_v41 = vpop.xlane.xlu0 %6478 }
0x330a   :  { %v6481_v42 = vsub.f32 %v6473_v37, %v6479_v41  ;;  %v6476_v47 = vpop.xlane.xlu1 %6475 }
0x330b   :  { %v6480_v51 = vsub.f32 %v6472_v24, %v6476_v47 }
0x330c   :  { %v6484_v54 = vmul.f32 1.442695, %v6481_v42 }
0x330d   :  { %v6482_v56 = vmul.f32 1.442695, %v6480_v51 }
0x330e   :  { %16424 = vpow2.f32 %v6484_v54 }
0x330f   :  { %16426 = vpow2.f32 %v6482_v56 }
0x3318   :  { %v16425_v53 = vpop.eup %16424 }
0x3319   :  { %v16427_v33 = vpop.eup %16426  ;;  %v6489_v61 = vsel %vm101_vm6, %v16425_v53, 0.0 }
0x331a   :  { %6490 = vadd.xlane.f32.xlu1 %v6489_v61  ;;  %v6486_v62 = vsel %vm101_vm6, %v16427_v33, 0.0 }
0x331b   :  { %6487 = vadd.xlane.f32.xlu0 %v6486_v62 }
0x332b   :  { %16067 = vrot.lane.b32.xlu1 %v17567_v6, %s16632_s27 }
0x332f   :  { %7045 = vrot.lane.b32.xlu1 %v17563_v57, %s16632_s27 }
0x3331   :  { %16062 = vrot.lane.b32.xlu0 %v17567_v6, %s16626_s21 }
0x3335   :  { %7047 = vrot.lane.b32.xlu0 %v17574_v8, %s16632_s27 }
0x3353   :  { %6850 = vmax.xlane.f32.xlu1 %v6849_v14 }
0x3354   :  { %6853 = vmax.xlane.f32.xlu0 %v6852_v15 }
0x33a7   :  { %v6491_v4 = vpop.xlane.xlu1 %6490 }
0x33a8   :  { %16428 = vrcp.f32 %v6491_v4  ;;  %v6488_v57 = vpop.xlane.xlu0 %6487 }
0x33a9   :  { %16430 = vrcp.f32 %v6488_v57 }
0x33ab   :  { %v16068_v16 = vpop.permute.xlu1 %16067 }
0x33ac   :  { %v16070_v17 = vunpack.i.h.bf16 %v16068_v16  ;;  %v16069_v22 = vunpack.i.l.bf16 %v16068_v16  ;;  %v16063_v8 = vpop.permute.xlu0 %16062 }
0x33ad   :  { %v16065_v18 = vunpack.i.h.bf16 %v16063_v8  ;;  %v16064_v46 = vunpack.i.l.bf16 %v16063_v8  ;;  %v7249_v8 = vrot.slane %v17524_v23, 4 }
0x33ae   :  { %v15569_v19 = vpack.c.bf16 %v16070_v17, %v16069_v22 }
0x33af   :  { %v7046_v5 = vpop.permute.xlu1 %7045  ;;  %v15555_v43 = vpack.c.bf16 %v16065_v18, %v16064_v46 }
0x33b0   :  { %15571 = vmatprep.subr.msk.bf16.mxu0 %vm16758_vm10, %v15569_v19  ;;  %14915 = vmatprep.mubr.msk.f32.mxu0 %vm189_vm9, %v7046_v5  ;;  %v7048_v25 = vpop.permute.xlu0 %7047 }
0x33b1   :  { %15556 = vmatprep.subr.bf16.mxu1 %v15555_v43  ;;  %15574 = vmatpush3.bf16.xpose.msk.msra.mxu0 %vm16758_vm10, %v15569_v19 }
0x33b2   :  { %v16429_v20 = vpop.eup %16428  ;;  %15558 = vmatpush3.bf16.msra.mxu1 %v15555_v43 }
0x33b3   :  { %v16431_v21 = vpop.eup %16430  ;;  %v6495_v55 = vmul.f32 %v16429_v20, %v16425_v53 }
0x33b4   :  { %v6494_v12 = vmul.f32 %v16431_v21, %v16427_v33 }
0x33b6   :  { %14879 = vmatprep.mubr.msk.f32.mxu1 %vm101_vm6, %v6494_v12 }
0x33b7   :  { %14880 = vmatmul.mubr.msk.f32.vlgmr.msra.gmra.mrb[48].mxu1 %vm101_vm6, %v6495_v55 }
0x33b8   :  { %14916 = vmatmul.mubr.msk.f32.vlgmr.msra.gmra.mrb[56].mxu0 %vm189_vm9, %v7048_v25 }
0x33e0   :  { %v6851_v10 = vpop.xlane.xlu1 %6850 }
0x33e1   :  { %v6855_v28 = vsub.f32 %v6847_v9, %v6851_v10  ;;  %v6854_v26 = vpop.xlane.xlu0 %6853 }
0x33e2   :  { %v6856_v60 = vsub.f32 %v6848_v11, %v6854_v26 }
0x33e3   :  { %v6857_v58 = vmul.f32 1.442695, %v6855_v28 }
0x33e4   :  { %v6859_v27 = vmul.f32 1.442695, %v6856_v60 }
0x33e5   :  { %16432 = vpow2.f32 %v6857_v58 }
0x33e6   :  { %16434 = vpow2.f32 %v6859_v27 }
0x33ef   :  { %v16433_v31 = vpop.eup %16432 }
0x33f0   :  { %v16435_v45 = vpop.eup %16434  ;;  %v6861_v50 = vsel %vm101_vm6, %v16433_v31, 0.0 }
0x33f1   :  { %6862 = vadd.xlane.f32.xlu0 %v6861_v50  ;;  %v6864_v32 = vsel %vm101_vm6, %v16435_v45, 0.0 }
0x33f2   :  { %6865 = vadd.xlane.f32.xlu1 %v6864_v32 }
0x3403   :  { %6669 = vrot.lane.b32.xlu1 %v17519_v49, %s16633_s28 }
0x3407   :  { %16072 = vrot.lane.b32.xlu1 %v17567_v6, %s16629_s24  ;;  %6584 = vrot.lane.b32.xlu0 %v6583_v34, %s16633_s28 }
0x347e   :  { %v6863_v30 = vpop.xlane.xlu0 %6862 }
0x347f   :  { %v6866_v37 = vpop.xlane.xlu1 %6865  ;;  %16436 = vrcp.f32 %v6863_v30  ;;  %v13777_v30 = vld [vmem:[%s18520_s9 + $0x8] ss:$0 sm:$0xff] }
0x3480   :  { %16438 = vrcp.f32 %v6866_v37 }
0x3482   :  { %v6585_v24 = vpop.permute.xlu0 %6584 }
0x3483   :  { %v6670_v38 = vpop.permute.xlu1 %6669  ;;  %14882 = vmatprep.subr.msk.mxu1 %vm600_vm11, %v6585_v24 }
0x3484   :  { %14883 = vmatpush3.msk.msra.mxu1 %vm600_vm11, %v6585_v24 }
0x3485   :  { %14887 = vmatprep.subr.msk.mxu1 %vm600_vm11, %v6670_v38 }
0x3487   :  { %v16073_v7 = vpop.permute.xlu1 %16072 }
0x3488   :  { %v16075_v3 = vunpack.i.h.bf16 %v16073_v7  ;;  %v16074_v39 = vunpack.i.l.bf16 %v16073_v7 }
0x3489   :  { %v16437_v62 = vpop.eup %16436 }
0x348a   :  { %v14881_v49 = vpop.f32.mrb[48].mxu1  ;;  %v15565_v56 = vpack.c.bf16 %v16075_v3, %v16074_v39  ;;  %v16439_v36 = vpop.eup %16438  ;;  %v6869_v9 = vmul.f32 %v16437_v62, %v16433_v31 }
0x348b   :  { %v6574_v41 = vpop.f32.mrb[49].mxu1  ;;  %v14917_v42 = vpop.f32.mrb[56].mxu0 }
0x348c   :  { %v7137_v47 = vmul.f32 0.5, %v14917_v42  ;;  %14884 = vmatprep.mubr.msk.f32.mxu1 %vm189_vm9, %v6574_v41  ;;  %v7127_v51 = vpop.f32.mrb[57].mxu0  ;;  %v7383_v42 = vld [vmem:[%s18521_s7 + $0x30] sm:$0xff] }
0x348d   :  { %v7136_v54 = vmul.f32 0.5, %v7127_v51  ;;  %14885 = vmatmul.mubr.msk.f32.vlgmr.msra.gmra.mrb[50].mxu1 %vm189_vm9, %v14881_v49 }
0x348e   :  { %v7139_v53 = vadd.f32 %v17581_v44, %v7137_v47  ;;  %14888 = vmatpush3.msk.msra.mxu1 %vm600_vm11, %v6670_v38  ;;  %14889 = vmatprep.mubr.msk.f32.mxu1 %vm189_vm9, %v17624_v2  ;;  %v6870_v44 = vmul.f32 %v16439_v36, %v16435_v45  ;;  %v7384_v47 = vld [vmem:[%s18521_s7 + $0x38] sm:$0xff] }
0x348f   :  { %v7138_v33 = vadd.f32 %v17587_v35, %v7136_v54  ;;  %15566 = vmatprep.subr.bf16.mxu1 %v15565_v56  ;;  %v15579_v51 = vpack.c.bf16 %v7384_v47, %v7383_v42  ;;  %v16081_v54 = vpack.i.bf16 %v7384_v47, %v7383_v42 }
0x3490   :  { %v7143_v61 = vsel %vm101_vm6, %v7139_v53, -inf }
0x3491   :  { %7144 = vmax.xlane.f32.xlu1 %v7143_v61  ;;  %v7140_v0 = vsel %vm101_vm6, %v7138_v33, -inf  ;;  %15580 = vmatprep.subr.bf16.mxu0 %v15579_v51 }
0x3492   :  { %7141 = vmax.xlane.f32.xlu0 %v7140_v0  ;;  %15582 = vmatpush3.bf16.msra.mxu0 %v15579_v51 }
0x3495   :  { %14890 = vmatmul.mubr.msk.f32.vlgmr.msra.gmra.mrb[50].mxu1 %vm189_vm9, %v17622_v59 }
0x3496   :  { %15568 = vmatpush3.bf16.msra.mxu1 %v15565_v56  ;;  %14903 = vmatprep.mubr.msk.f32.mxu1 %vm101_vm6, %v6869_v9 }
0x3499   :  { %14904 = vmatmul.mubr.msk.f32.vlgmr.msra.gmra.mrb[52].mxu1 %vm101_vm6, %v6870_v44 }
0x34a2   :  { %6958 = vrot.lane.b32.xlu1 %v17524_v23, %s16633_s28 }
0x34a6   :  { %7250 = vrot.lane.b32.xlu1 %v7249_v8, %s16633_s28 }
0x34aa   :  { %7337 = vrot.lane.b32.xlu1 %v17542_v63, %s16633_s28 }
0x351e   :  { %v7145_v35 = vpop.xlane.xlu1 %7144 }
0x351f   :  { %v7147_v2 = vsub.f32 %v7139_v53, %v7145_v35  ;;  %v7142_v11 = vpop.xlane.xlu0 %7141 }
0x3520   :  { %v7146_v14 = vsub.f32 %v7138_v33, %v7142_v11 }
0x3521   :  { %v7150_v15 = vmul.f32 1.442695, %v7147_v2 }
0x3522   :  { %v7148_v4 = vmul.f32 1.442695, %v7146_v14  ;;  %v6959_v57 = vpop.permute.xlu1 %6958 }
0x3523   :  { %16440 = vpow2.f32 %v7150_v15  ;;  %14906 = vmatprep.subr.msk.mxu1 %vm600_vm11, %v6959_v57 }
0x3524   :  { %14907 = vmatpush3.msk.msra.mxu1 %vm600_vm11, %v6959_v57  ;;  %16442 = vpow2.f32 %v7148_v4 }
0x3526   :  { %v7251_v23 = vpop.permute.xlu1 %7250 }
0x352a   :  { %v7338_v26 = vpop.permute.xlu1 %7337 }
0x352d   :  { %v16441_v59 = vpop.eup %16440 }
0x352e   :  { %v7155_v16 = vsel %vm101_vm6, %v16441_v59, 0.0  ;;  %v16443_v17 = vpop.eup %16442 }
0x352f   :  { %7156 = vadd.xlane.f32.xlu0 %v7155_v16  ;;  %v7152_v22 = vsel %vm101_vm6, %v16443_v17, 0.0 }
0x3533   :  { %7153 = vadd.xlane.f32.xlu0 %v7152_v22  ;;  %v13778_v22 = vld [vmem:[%s18522_s8 + $0x3] ss:$0 sm:$0xff] }
0x3549   :  { %16077 = vrot.lane.b32.xlu0 %v17567_v6, %s16635_s29 }
0x356c   :  { %v14905_v18 = vpop.f32.mrb[52].mxu1 }
0x356d   :  { %v6949_v46 = vpop.f32.mrb[53].mxu1 }
0x356e   :  { %14908 = vmatprep.mubr.msk.f32.mxu1 %vm189_vm9, %v6949_v46 }
0x356f   :  { %14909 = vmatmul.mubr.msk.f32.vlgmr.msra.gmra.mrb[50].mxu1 %vm189_vm9, %v14905_v18 }
0x35bc   :  { %v7157_v19 = vpop.xlane.xlu0 %7156 }
0x35bd   :  { %16444 = vrcp.f32 %v7157_v19 }
0x35c0   :  { %v7154_v5 = vpop.xlane.xlu0 %7153 }
0x35c1   :  { %16446 = vrcp.f32 %v7154_v5 }
0x35c4   :  { %v16078_v43 = vpop.permute.xlu0 %16077 }
0x35c5   :  { %v16080_v20 = vunpack.i.h.bf16 %v16078_v43  ;;  %v16079_v6 = vunpack.i.l.bf16 %v16078_v43 }
0x35c7   :  { %v15575_v21 = vpack.c.bf16 %v16080_v20, %v16079_v6  ;;  %v16445_v12 = vpop.eup %16444 }
0x35c8   :  { %v7161_v25 = vmul.f32 %v16445_v12, %v16441_v59 }
0x35c9   :  { %15576 = vmatprep.subr.bf16.mxu1 %v15575_v21 }
0x35ca   :  { %15578 = vmatpush3.bf16.msra.mxu1 %v15575_v21 }
0x35cb   :  { %v16447_v55 = vpop.eup %16446  ;;  %14925 = vmatprep.subr.msk.mxu1 %vm600_vm11, %v7251_v23 }
0x35cc   :  { %v7160_v63 = vmul.f32 %v16447_v55, %v16443_v17 }
0x35ce   :  { %14922 = vmatprep.mubr.msk.f32.mxu1 %vm101_vm6, %v7160_v63 }
0x35cf   :  { %14923 = vmatmul.mubr.msk.f32.vlgmr.msra.gmra.mrb[54].mxu1 %vm101_vm6, %v7161_v25 }
0x35d0   :  { %14926 = vmatpush3.msk.msra.mxu1 %vm600_vm11, %v7251_v23 }
0x36a2   :  { %v14924_v10 = vpop.f32.mrb[54].mxu1 }
0x36a3   :  { %v7240_v28 = vpop.f32.mrb[55].mxu1 }
0x36a4   :  { %14927 = vmatprep.mubr.msk.f32.mxu1 %vm189_vm9, %v7240_v28 }
0x36a5   :  { %14928 = vmatmul.mubr.msk.f32.vlgmr.msra.gmra.mrb[50].mxu1 %vm189_vm9, %v14924_v10 }
0x3778   :  { %v14929_v60 = vpop.f32.mrb[50].mxu1 }
0x3779   :  { %v7341_v58 = vadd.f32 %v14929_v60, %v7338_v26  ;;  %v7326_v27 = vpop.f32.mrb[51].mxu1 }
0x377a   :  { %v7340_v31 = vadd.f32 %v7338_v26, %v7326_v27 }
0x377b   :  { %v7343_v45 = vadd.f32 %v7341_v58, %v17548_v29 }
0x377c   :  { %v7342_v50 = vadd.f32 %v7340_v31, %v17546_v1 }
0x377d   :  { %v7348_v32 = vsel %vm101_vm6, %v7343_v45, 0.0 }
0x377e   :  { %7349 = vadd.xlane.f32.xlu1 %v7348_v32  ;;  %v7345_v34 = vsel %vm101_vm6, %v7342_v50, 0.0 }
0x377f   :  { %7346 = vadd.xlane.f32.xlu0 %v7345_v34 }
0x378f   :  { %7378 = vrot.lane.b32.xlu1 %v13777_v30, %s16625_s1 }
0x3793   :  { %7480 = vrot.lane.b32.xlu1 %v13778_v22, %s16628_s23 }
0x380b   :  { %v7350_v37 = vpop.xlane.xlu1 %7349 }
0x380c   :  { %v7352_v24 = vmul.f32 0.0625, %v7350_v37  ;;  %v7347_v38 = vpop.xlane.xlu0 %7346  ;;  %v17737_v37 = vld [vmem:[%s18515_s5 + $0x58] sm:$0xff] }
0x380d   :  { %v7351_v7 = vmul.f32 0.0625, %v7347_v38 }
0x380e   :  { %v7354_v3 = vsub.f32 %v7343_v45, %v7352_v24  ;;  %v13785_v24 = vld [vmem:[%s18520_s9 + $0x9] ss:$0 sm:$0xff] }
0x380f   :  { %v7353_v29 = vsub.f32 %v7342_v50, %v7351_v7  ;;  %v7379_v14 = vpop.permute.xlu1 %7378 }
0x3810   :  { %v7356_v49 = vmul.f32 %v7354_v3, %v7354_v3 }
0x3811   :  { %v7355_v39 = vmul.f32 %v7353_v29, %v7353_v29 }
0x3812   :  { %v7360_v41 = vsel %vm101_vm6, %v7356_v49, 0.0 }
0x3813   :  { %v7357_v1 = vsel %vm101_vm6, %v7355_v39, 0.0  ;;  %v7481_v20 = vpop.permute.xlu1 %7480 }
0x3814   :  { %7358 = vadd.xlane.f32.xlu0 %v7357_v1 }
0x3818   :  { %7361 = vadd.xlane.f32.xlu0 %v7360_v41 }
0x382e   :  { %16082 = vrot.lane.b32.xlu0 %v16081_v54, %s16628_s23 }
0x38a1   :  { %v7359_v56 = vpop.xlane.xlu0 %7358 }
0x38a2   :  { %v7363_v53 = vmul.f32 0.0625, %v7359_v56 }
0x38a4   :  { %v7365_v33 = vadd.f32 1e-05, %v7363_v53 }
0x38a5   :  { %v7362_v61 = vpop.xlane.xlu0 %7361 }
0x38a6   :  { %16448 = vrsqrt.f32 %v7365_v33  ;;  %v7364_v62 = vmul.f32 0.0625, %v7362_v61 }
0x38a8   :  { %v7366_v0 = vadd.f32 1e-05, %v7364_v62  ;;  %v17756_v62 = vld [vmem:[%s18518_s6 + $0x5] ss:$0 sm:$0xff] }
0x38a9   :  { %v16083_v36 = vpop.permute.xlu0 %16082 }
0x38aa   :  { %16450 = vrsqrt.f32 %v7366_v0  ;;  %v16085_v9 = vunpack.i.h.bf16 %v16083_v36  ;;  %v16084_v44 = vunpack.i.l.bf16 %v16083_v36 }
0x38ac   :  { %v15583_v2 = vpack.c.bf16 %v16085_v9, %v16084_v44 }
0x38ae   :  { %15585 = vmatprep.subr.msk.bf16.mxu0 %vm16909_vm13, %v15583_v2 }
0x38b0   :  { %v16449_v35 = vpop.eup %16448 }
0x38b1   :  { %v7369_v11 = vmul.f32 %v16449_v35, %v7353_v29 }
0x38b3   :  { %v7375_v15 = vmul.f32 %v13777_v30, %v7369_v11 }
0x38b4   :  { %v16451_v4 = vpop.eup %16450 }
0x38b5   :  { %v7370_v57 = vmul.f32 %v16451_v4, %v7354_v3  ;;  %v7381_v59 = vadd.f32 %v7379_v14, %v7375_v15 }
0x38b7   :  { %v7376_v16 = vmul.f32 %v13777_v30, %v7370_v57  ;;  %14934 = vmatprep.mubr.msk.f32.mxu0 %vm101_vm6, %v7381_v59  ;;  %v17732_v30 = vld [vmem:[%s18515_s5 + $0x50] sm:$0xff] }
0x38b8   :  { %v15589_v38 = vpack.c.bf16 %v17737_v37, %v17732_v30 }
0x38b9   :  { %v7382_v17 = vadd.f32 %v7379_v14, %v7376_v16 }
0x38ba   :  { %15590 = vmatprep.subr.bf16.mxu1 %v15589_v38 }
0x38bb   :  { %14935 = vmatmul.mubr.msk.f32.vlgmr.msra.gmra.mrb[58].mxu0 %vm101_vm6, %v7382_v17  ;;  %15592 = vmatpush3.bf16.msra.mxu1 %v15589_v38 }
0x38bc   :  { %15588 = vmatpush3.bf16.xpose.msk.msra.mxu0 %vm16909_vm13, %v15583_v2 }
0x398e   :  { %v14936_v8 = vpop.f32.mrb[58].mxu0 }
0x398f   :  { %v7468_v18 = vadd.f32 %v14936_v8, %v13778_v22  ;;  %v7462_v46 = vpop.f32.mrb[59].mxu0  ;;  %v17787_v8 = vld [vmem:[%s18523_s3] sm:$0xff] }
0x3990   :  { %v7463_v19 = vadd.f32 %v13778_v22, %v7462_v46 }
0x3991   :  { %v7472_v43 = vmax.f32 %v7468_v18, 0.0 }
0x3992   :  { %v7471_v5 = vmax.f32 %v7463_v19, 0.0 }
0x3994   :  { %14941 = vmatprep.mubr.msk.f32.mxu0 %vm1495_vm12, %v7471_v5 }
0x3995   :  { %14942 = vmatmul.mubr.msk.f32.vlgmr.msra.gmra.mrb[60].mxu0 %vm1495_vm12, %v7472_v43 }
0x3a68   :  { %v14943_v6 = vpop.f32.mrb[60].mxu0 }
0x3a69   :  { %v7565_v21 = vadd.f32 %v14943_v6, %v7481_v20  ;;  %v7559_v23 = vpop.f32.mrb[61].mxu0 }
0x3a6a   :  { %v7560_v12 = vadd.f32 %v7559_v23, %v7481_v20 }
0x3a6b   :  { %v7569_v55 = vadd.f32 %v7565_v21, %v7382_v17  ;;  %v17781_v17 = vld [vmem:[%s18523_s3 + $0x8] sm:$0xff] }
0x3a6c   :  { %v7568_v63 = vadd.f32 %v7560_v12, %v7381_v59 }
0x3a6d   :  { %v7574_v25 = vsel %vm101_vm6, %v7569_v55, 0.0 }
0x3a6e   :  { %7575 = vadd.xlane.f32.xlu0 %v7574_v25  ;;  %v7571_v10 = vsel %vm101_vm6, %v7568_v63, 0.0 }
0x3a6f   :  { %7572 = vadd.xlane.f32.xlu1 %v7571_v10 }
0x3afb   :  { %v7576_v28 = vpop.xlane.xlu0 %7575 }
0x3afc   :  { %v7578_v26 = vmul.f32 0.0625, %v7576_v28  ;;  %v7573_v60 = vpop.xlane.xlu1 %7572 }
0x3afd   :  { %v7577_v58 = vmul.f32 0.0625, %v7573_v60 }
0x3afe   :  { %v7580_v27 = vsub.f32 %v7569_v55, %v7578_v26 }
0x3aff   :  { %v7579_v31 = vsub.f32 %v7568_v63, %v7577_v58 }
0x3b00   :  { %v7582_v45 = vmul.f32 %v7580_v27, %v7580_v27 }
0x3b01   :  { %v7581_v50 = vmul.f32 %v7579_v31, %v7579_v31 }
0x3b02   :  { %v7586_v32 = vsel %vm101_vm6, %v7582_v45, 0.0 }
0x3b03   :  { %7587 = vadd.xlane.f32.xlu1 %v7586_v32  ;;  %v7583_v34 = vsel %vm101_vm6, %v7581_v50, 0.0 }
0x3b04   :  { %7584 = vadd.xlane.f32.xlu0 %v7583_v34 }
0x3b1a   :  { %7604 = vrot.lane.b32.xlu0 %v13785_v24, %s16625_s1 }
0x3b90   :  { %v7588_v7 = vpop.xlane.xlu1 %7587 }
0x3b91   :  { %v7590_v3 = vmul.f32 0.0625, %v7588_v7  ;;  %v7585_v29 = vpop.xlane.xlu0 %7584 }
0x3b92   :  { %v7589_v39 = vmul.f32 0.0625, %v7585_v29 }
0x3b93   :  { %v7592_v1 = vadd.f32 1e-05, %v7590_v3 }
0x3b94   :  { %v7591_v49 = vadd.f32 1e-05, %v7589_v39 }
0x3b95   :  { %16452 = vrsqrt.f32 %v7592_v1  ;;  %v7605_v54 = vpop.permute.xlu0 %7604 }
0x3b96   :  { %16454 = vrsqrt.f32 %v7591_v49 }
0x3b9f   :  { %v16453_v41 = vpop.eup %16452 }
0x3ba0   :  { %v16455_v42 = vpop.eup %16454  ;;  %v7596_v47 = vmul.f32 %v16453_v41, %v7580_v27 }
0x3ba1   :  { %v7595_v51 = vmul.f32 %v16455_v42, %v7579_v31 }
0x3ba2   :  { %v7602_v56 = vmul.f32 %v13785_v24, %v7596_v47 }
0x3ba3   :  { %v7601_v53 = vmul.f32 %v13785_v24, %v7595_v51 }
0x3ba4   :  { %v17747_v61 = vadd.f32 %v7605_v54, %v7602_v56 }
0x3ba5   :  { %v17745_v33 = vadd.f32 %v7605_v54, %v7601_v53 }
0x3ba7   :  { %14948 = vmatprep.mubr.msk.f32.mxu1 %vm101_vm6, %v17745_v33 }
0x3ba8   :  { %14949 = vmatmul.mubr.msk.f32.vlgmr.msra.gmra.mrb[56].mxu1 %vm101_vm6, %v17747_v61 }
0x3c7b   :  { %v14950_v0 = vpop.f32.mrb[56].mxu1 }
0x3c7c   :  { %v17759_v36 = vadd.f32 %v14950_v0, %v17756_v62  ;;  %v7688_v9 = vpop.f32.mrb[57].mxu1 }
0x3c7d   :  { %v17762_v44 = vadd.f32 %v17756_v62, %v7688_v9 }
0x3c7f   :  { %14955 = vmatprep.mubr.msk.f32.mxu1 %vm189_vm9, %v17762_v44  ;;  %v17768_v35 = vpack.i.bf16 %v17759_v36, %v17762_v44 }
0x3c81   :  { %16087 = vrot.lane.b32.xlu1 %v17768_v35, %s16625_s1 }
0x3cf3   :  { %v16088_v2 = vpop.permute.xlu1 %16087 }
0x3cf4   :  { %v16090_v11 = vunpack.i.h.bf16 %v16088_v2  ;;  %v16089_v14 = vunpack.i.l.bf16 %v16088_v2 }
0x3cf6   :  { %v15593_v15 = vpack.c.bf16 %v16090_v11, %v16089_v14 }
0x3cf8   :  { %15595 = vmatprep.subr.msk.bf16.mxu1 %vm16758_vm10, %v15593_v15 }
0x3cf9   :  { %15598 = vmatpush3.bf16.xpose.msk.msra.mxu1 %vm16758_vm10, %v15593_v15 }
0x3d00   :  { %14956 = vmatmul.mubr.msk.f32.vlgmr.msra.gmra.mrb[58].mxu1 %vm189_vm9, %v17759_v36 }
0x3dd3   :  { %v14957_v4 = vpop.f32.mrb[58].mxu1 }
0x3dd4   :  { %v7787_v57 = vmul.f32 0.5, %v14957_v4  ;;  %v7777_v59 = vpop.f32.mrb[59].mxu1 }
0x3dd5   :  { %v7786_v16 = vmul.f32 0.5, %v7777_v59 }
0x3dd6   :  { %v7789_v22 = vadd.f32 %v17781_v17, %v7787_v57 }
0x3dd7   :  { %v7788_v18 = vadd.f32 %v17787_v8, %v7786_v16 }
0x3dd8   :  { %v7793_v46 = vsel %vm101_vm6, %v7789_v22, -inf }
0x3dd9   :  { %7794 = vmax.xlane.f32.xlu0 %v7793_v46  ;;  %v7790_v19 = vsel %vm101_vm6, %v7788_v18, -inf }
0x3dda   :  { %7791 = vmax.xlane.f32.xlu1 %v7790_v19 }
0x3e66   :  { %v7795_v5 = vpop.xlane.xlu0 %7794 }
0x3e67   :  { %v7797_v43 = vsub.f32 %v7789_v22, %v7795_v5  ;;  %v7792_v20 = vpop.xlane.xlu1 %7791 }
0x3e68   :  { %v7796_v6 = vsub.f32 %v7788_v18, %v7792_v20  ;;  %v8104_v18 = vrot.slane %v17732_v30, 4 }
0x3e69   :  { %v7800_v21 = vmul.f32 1.442695, %v7797_v43 }
0x3e6a   :  { %v7798_v23 = vmul.f32 1.442695, %v7796_v6 }
0x3e6b   :  { %16456 = vpow2.f32 %v7800_v21 }
0x3e6c   :  { %16458 = vpow2.f32 %v7798_v23 }
0x3e75   :  { %v16457_v12 = vpop.eup %16456 }
0x3e76   :  { %v16459_v55 = vpop.eup %16458  ;;  %v7805_v63 = vsel %vm101_vm6, %v16457_v12, 0.0 }
0x3e77   :  { %7806 = vadd.xlane.f32.xlu1 %v7805_v63  ;;  %v7802_v25 = vsel %vm101_vm6, %v16459_v55, 0.0 }
0x3e78   :  { %7803 = vadd.xlane.f32.xlu0 %v7802_v25 }
0x3e88   :  { %16097 = vrot.lane.b32.xlu1 %v17768_v35, %s16626_s21 }
0x3e8c   :  { %7899 = vrot.lane.b32.xlu1 %v17762_v44, %s16627_s22 }
0x3e8e   :  { %16092 = vrot.lane.b32.xlu0 %v17768_v35, %s16628_s23 }
0x3e90   :  { %16102 = vrot.lane.b32.xlu1 %v17768_v35, %s16629_s24 }
0x3e92   :  { %7901 = vrot.lane.b32.xlu0 %v17759_v36, %s16627_s22 }
0x3e94   :  { %8277 = vrot.lane.b32.xlu1 %v17759_v36, %s16630_s25 }
0x3e96   :  { %8275 = vrot.lane.b32.xlu0 %v17762_v44, %s16630_s25 }
0x3f04   :  { %v7807_v10 = vpop.xlane.xlu1 %7806 }
0x3f05   :  { %16460 = vrcp.f32 %v7807_v10  ;;  %v7804_v28 = vpop.xlane.xlu0 %7803 }
0x3f06   :  { %16462 = vrcp.f32 %v7804_v28 }
0x3f08   :  { %v16098_v26 = vpop.permute.xlu1 %16097 }
0x3f09   :  { %v16093_v60 = vpop.permute.xlu0 %16092  ;;  %v16100_v58 = vunpack.i.h.bf16 %v16098_v26  ;;  %v16099_v27 = vunpack.i.l.bf16 %v16098_v26 }
0x3f0a   :  { %v16095_v31 = vunpack.i.h.bf16 %v16093_v60  ;;  %v16094_v45 = vunpack.i.l.bf16 %v16093_v60 }
0x3f0b   :  { %v15603_v34 = vpack.c.bf16 %v16100_v58, %v16099_v27 }
0x3f0c   :  { %v7900_v50 = vpop.permute.xlu1 %7899  ;;  %v15599_v32 = vpack.c.bf16 %v16095_v31, %v16094_v45 }
0x3f0d   :  { %v7902_v41 = vpop.permute.xlu0 %7901 }
0x3f0e   :  { %15600 = vmatprep.subr.bf16.mxu0 %v15599_v32 }
0x3f0f   :  { %v16461_v24 = vpop.eup %16460  ;;  %15602 = vmatpush3.bf16.msra.mxu0 %v15599_v32 }
0x3f10   :  { %v16463_v38 = vpop.eup %16462  ;;  %v16103_v7 = vpop.permute.xlu1 %16102  ;;  %15605 = vmatprep.subr.msk.bf16.mxu0 %vm16758_vm10, %v15603_v34  ;;  %v7811_v29 = vmul.f32 %v16461_v24, %v16457_v12 }
0x3f11   :  { %v7810_v3 = vmul.f32 %v16463_v38, %v16459_v55  ;;  %v16105_v39 = vunpack.i.h.bf16 %v16103_v7  ;;  %v16104_v1 = vunpack.i.l.bf16 %v16103_v7  ;;  %v8276_v42 = vpop.permute.xlu0 %8275 }
0x3f13   :  { %14962 = vmatprep.mubr.msk.f32.mxu0 %vm101_vm6, %v7810_v3  ;;  %v15613_v49 = vpack.c.bf16 %v16105_v39, %v16104_v1 }
0x3f14   :  { %14963 = vmatmul.mubr.msk.f32.vlgmr.msra.gmra.mrb[62].mxu0 %vm101_vm6, %v7811_v29  ;;  %v8278_v47 = vpop.permute.xlu1 %8277 }
0x3f15   :  { %14969 = vmatprep.mubr.msk.f32.mxu0 %vm189_vm9, %v7900_v50 }
0x3f18   :  { %15608 = vmatpush3.bf16.xpose.msk.msra.mxu0 %vm16758_vm10, %v15603_v34 }
0x3f19   :  { %15615 = vmatprep.subr.msk.bf16.mxu0 %vm16758_vm10, %v15613_v49 }
0x3f1f   :  { %14970 = vmatmul.mubr.msk.f32.vlgmr.msra.gmra.mrb[64].mxu0 %vm189_vm9, %v7902_v41 }
0x3f20   :  { %15618 = vmatpush3.bf16.xpose.msk.msra.mxu0 %vm16758_vm10, %v15613_v49  ;;  %14993 = vmatprep.mubr.msk.f32.mxu0 %vm189_vm9, %v8276_v42 }
0x3f27   :  { %14994 = vmatmul.mubr.msk.f32.vlgmr.msra.gmra.mrb[66].mxu0 %vm189_vm9, %v8278_v47 }
0x3fe7   :  { %v17822_v51 = vpop.f32.mrb[62].mxu0 }
0x3fe8   :  { %v17824_v54 = vpop.f32.mrb[63].mxu0 }
0x3ff2   :  { %v14971_v56 = vpop.f32.mrb[64].mxu0 }
0x3ff3   :  { %v7991_v53 = vmul.f32 0.5, %v14971_v56  ;;  %v7981_v0 = vpop.f32.mrb[65].mxu0 }
0x3ff4   :  { %v7990_v9 = vmul.f32 0.5, %v7981_v0 }
0x3ff5   :  { %v7993_v2 = vadd.f32 %v17781_v17, %v7991_v53 }
0x3ff6   :  { %v7992_v11 = vadd.f32 %v17787_v8, %v7990_v9 }
0x3ff7   :  { %v7997_v14 = vsel %vm101_vm6, %v7993_v2, -inf }
0x3ff8   :  { %7998 = vmax.xlane.f32.xlu1 %v7997_v14  ;;  %v7994_v15 = vsel %vm101_vm6, %v7992_v11, -inf }
0x3ff9   :  { %7995 = vmax.xlane.f32.xlu0 %v7994_v15 }
0x3ffa   :  { %v14995_v4 = vpop.f32.mrb[66].mxu0 }
0x3ffb   :  { %v8357_v57 = vpop.f32.mrb[67].mxu0  ;;  %v8367_v59 = vmul.f32 0.5, %v14995_v4 }
0x3ffc   :  { %v8366_v31 = vmul.f32 0.5, %v8357_v57 }
0x3ffd   :  { %v8369_v16 = vadd.f32 %v17781_v17, %v8367_v59 }
0x3ffe   :  { %v8368_v45 = vadd.f32 %v17787_v8, %v8366_v31 }
0x3fff   :  { %v8373_v22 = vsel %vm101_vm6, %v8369_v16, -inf }
0x4000   :  { %v8370_v50 = vsel %vm101_vm6, %v8368_v45, -inf }
0x4009   :  { %16107 = vrot.lane.b32.xlu1 %v17768_v35, %s16631_s26 }
0x400d   :  { %8567 = vrot.lane.b32.xlu1 %v17762_v44, %s16632_s27 }
0x4011   :  { %8569 = vrot.lane.b32.xlu1 %v17759_v36, %s16632_s27 }
0x4035   :  { %8374 = vmax.xlane.f32.xlu1 %v8373_v22 }
0x4046   :  { %8105 = vrot.lane.b32.xlu1 %v8104_v18, %s16633_s28 }
0x404a   :  { %16117 = vrot.lane.b32.xlu1 %v17768_v35, %s16634_s0 }
0x4085   :  { %v7999_v46 = vpop.xlane.xlu1 %7998 }
0x4086   :  { %v8001_v19 = vsub.f32 %v7993_v2, %v7999_v46  ;;  %v7996_v5 = vpop.xlane.xlu0 %7995 }
0x4087   :  { %v8000_v44 = vsub.f32 %v7992_v11, %v7996_v5 }
0x4088   :  { %v8004_v43 = vmul.f32 1.442695, %v8001_v19 }
0x4089   :  { %v8002_v20 = vmul.f32 1.442695, %v8000_v44  ;;  %v16108_v36 = vpop.permute.xlu1 %16107 }
0x408a   :  { %v16110_v6 = vunpack.i.h.bf16 %v16108_v36  ;;  %v16109_v21 = vunpack.i.l.bf16 %v16108_v36 }
0x408b   :  { %16464 = vpow2.f32 %v8002_v20 }
0x408c   :  { %v15609_v23 = vpack.c.bf16 %v16110_v6, %v16109_v21  ;;  %16466 = vpow2.f32 %v8004_v43 }
0x408d   :  { %v8568_v12 = vpop.permute.xlu1 %8567 }
0x408e   :  { %15610 = vmatprep.subr.bf16.mxu1 %v15609_v23  ;;  %15012 = vmatprep.mubr.msk.f32.mxu0 %vm189_vm9, %v8568_v12 }
0x408f   :  { %15612 = vmatpush3.bf16.msra.mxu1 %v15609_v23 }
0x4091   :  { %v8570_v28 = vpop.permute.xlu1 %8569 }
0x4095   :  { %v16465_v55 = vpop.eup %16464 }
0x4096   :  { %v8006_v63 = vsel %vm101_vm6, %v16465_v55, 0.0  ;;  %v16467_v25 = vpop.eup %16466 }
0x4097   :  { %8007 = vadd.xlane.f32.xlu0 %v8006_v63  ;;  %v8009_v10 = vsel %vm101_vm6, %v16467_v25, 0.0 }
0x409b   :  { %8010 = vadd.xlane.f32.xlu0 %v8009_v10 }
0x40b1   :  { %16112 = vrot.lane.b32.xlu0 %v17768_v35, %s16635_s29 }
0x40c2   :  { %v8375_v26 = vpop.xlane.xlu1 %8374 }
0x40c3   :  { %v8377_v60 = vsub.f32 %v8369_v16, %v8375_v26  ;;  %v8771_v26 = vrot.slane %v17737_v37, 4 }
0x40c5   :  { %v8380_v58 = vmul.f32 1.442695, %v8377_v60 }
0x40c6   :  { %v8106_v27 = vpop.permute.xlu1 %8105 }
0x40c7   :  { %16468 = vpow2.f32 %v8380_v58  ;;  %14979 = vmatprep.subr.msk.mxu1 %vm600_vm11, %v8106_v27 }
0x40ca   :  { %v16118_v15 = vpop.permute.xlu1 %16117 }
0x40cb   :  { %v16120_v4 = vunpack.i.h.bf16 %v16118_v15  ;;  %v16119_v57 = vunpack.i.l.bf16 %v16118_v15 }
0x40cd   :  { %v15619_v18 = vpack.c.bf16 %v16120_v4, %v16119_v57 }
0x40d0   :  { %8371 = vmax.xlane.f32.xlu0 %v8370_v50 }
0x40d1   :  { %v16469_v32 = vpop.eup %16468 }
0x40d2   :  { %v8385_v34 = vsel %vm101_vm6, %v16469_v32, 0.0 }
0x40d4   :  { %8386 = vadd.xlane.f32.xlu0 %v8385_v34 }
0x4124   :  { %v8008_v24 = vpop.xlane.xlu0 %8007 }
0x4125   :  { %16470 = vrcp.f32 %v8008_v24 }
0x4128   :  { %v8011_v38 = vpop.xlane.xlu0 %8010 }
0x4129   :  { %16472 = vrcp.f32 %v8011_v38 }
0x412c   :  { %v16113_v7 = vpop.permute.xlu0 %16112 }
0x412d   :  { %v16115_v3 = vunpack.i.h.bf16 %v16113_v7  ;;  %v16114_v29 = vunpack.i.l.bf16 %v16113_v7 }
0x412f   :  { %v16471_v39 = vpop.eup %16470  ;;  %v15623_v1 = vpack.c.bf16 %v16115_v3, %v16114_v29 }
0x4130   :  { %v8014_v49 = vmul.f32 %v16471_v39, %v16465_v55 }
0x4131   :  { %15625 = vmatprep.subr.msk.bf16.mxu0 %vm16758_vm10, %v15623_v1 }
0x4132   :  { %14976 = vmatprep.mubr.msk.f32.mxu1 %vm101_vm6, %v8014_v49  ;;  %15628 = vmatpush3.bf16.xpose.msk.msra.mxu0 %vm16758_vm10, %v15623_v1 }
0x4133   :  { %v16473_v41 = vpop.eup %16472 }
0x4134   :  { %v8015_v42 = vmul.f32 %v16473_v41, %v16467_v25 }
0x4136   :  { %14977 = vmatmul.mubr.msk.f32.vlgmr.msra.gmra.mrb[60].mxu1 %vm101_vm6, %v8015_v42 }
0x4137   :  { %14980 = vmatpush3.msk.msra.mxu1 %vm600_vm11, %v8106_v27 }
0x4139   :  { %15013 = vmatmul.mubr.msk.f32.vlgmr.msra.gmra.mrb[68].mxu0 %vm189_vm9, %v8570_v28 }
0x415d   :  { %v8372_v47 = vpop.xlane.xlu0 %8371 }
0x415e   :  { %v8376_v56 = vsub.f32 %v8368_v45, %v8372_v47 }
0x4160   :  { %v8378_v53 = vmul.f32 1.442695, %v8376_v56 }
0x4161   :  { %v8387_v2 = vpop.xlane.xlu0 %8386 }
0x4162   :  { %16474 = vpow2.f32 %v8378_v53 }
0x416c   :  { %v16475_v0 = vpop.eup %16474 }
0x416d   :  { %v8382_v9 = vsel %vm101_vm6, %v16475_v0, 0.0 }
0x416e   :  { %8383 = vadd.xlane.f32.xlu0 %v8382_v9 }
0x4184   :  { %8190 = vrot.lane.b32.xlu0 %v17732_v30, %s16633_s28 }
0x41fb   :  { %v8384_v11 = vpop.xlane.xlu0 %8383 }
0x41fc   :  { %16476 = vrcp.f32 %v8384_v11 }
0x41fd   :  { %16478 = vrcp.f32 %v8387_v2 }
0x41ff   :  { %v8191_v14 = vpop.permute.xlu0 %8190 }
0x4200   :  { %14984 = vmatprep.subr.msk.mxu1 %vm600_vm11, %v8191_v14 }
0x4206   :  { %v16477_v44 = vpop.eup %16476 }
0x4207   :  { %v16479_v6 = vpop.eup %16478  ;;  %v8390_v21 = vmul.f32 %v16477_v44, %v16475_v0 }
0x4209   :  { %v14978_v59 = vpop.f32.mrb[60].mxu1 }
0x420a   :  { %v8094_v16 = vpop.f32.mrb[61].mxu1 }
0x420b   :  { %14981 = vmatprep.mubr.msk.f32.mxu1 %vm189_vm9, %v8094_v16 }
0x420c   :  { %14982 = vmatmul.mubr.msk.f32.vlgmr.msra.gmra.mrb[62].mxu1 %vm189_vm9, %v14978_v59  ;;  %v15014_v22 = vpop.f32.mrb[68].mxu0 }
0x420d   :  { %14985 = vmatpush3.msk.msra.mxu1 %vm600_vm11, %v8191_v14  ;;  %v8659_v30 = vmul.f32 0.5, %v15014_v22  ;;  %14986 = vmatprep.mubr.msk.f32.mxu1 %vm189_vm9, %v17824_v54  ;;  %v8649_v46 = vpop.f32.mrb[69].mxu0  ;;  %v8391_v54 = vmul.f32 %v16479_v6, %v16469_v32  ;;  %v17910_v22 = vld [vmem:[%s18515_s5 + $0x68] sm:$0xff] }
0x420e   :  { %15620 = vmatprep.subr.bf16.mxu1 %v15619_v18  ;;  %v8658_v19 = vmul.f32 0.5, %v8649_v46  ;;  %v13825_v46 = vld [vmem:[%s18520_s9 + $0xa] ss:$0 sm:$0xff] }
0x420f   :  { %v8661_v5 = vadd.f32 %v17781_v17, %v8659_v30 }
0x4210   :  { %v8660_v43 = vadd.f32 %v17787_v8, %v8658_v19  ;;  %v17924_v19 = vld [vmem:[%s18518_s6 + $0x6] ss:$0 sm:$0xff] }
0x4211   :  { %v8665_v20 = vsel %vm101_vm6, %v8661_v5, -inf }
0x4212   :  { %8666 = vmax.xlane.f32.xlu0 %v8665_v20  ;;  %v8662_v36 = vsel %vm101_vm6, %v8660_v43, -inf }
0x4213   :  { %8663 = vmax.xlane.f32.xlu1 %v8662_v36 }
0x4214   :  { %14987 = vmatmul.mubr.msk.f32.vlgmr.msra.gmra.mrb[62].mxu1 %vm189_vm9, %v17822_v51 }
0x4215   :  { %15622 = vmatpush3.bf16.msra.mxu1 %v15619_v18  ;;  %15000 = vmatprep.mubr.msk.f32.mxu1 %vm101_vm6, %v8390_v21 }
0x4218   :  { %15001 = vmatmul.mubr.msk.f32.vlgmr.msra.gmra.mrb[64].mxu1 %vm101_vm6, %v8391_v54 }
0x429f   :  { %v8667_v17 = vpop.xlane.xlu0 %8666 }
0x42a0   :  { %v8669_v23 = vsub.f32 %v8661_v5, %v8667_v17  ;;  %v8664_v8 = vpop.xlane.xlu1 %8663 }
0x42a1   :  { %v8668_v12 = vsub.f32 %v8660_v43, %v8664_v8 }
0x42a2   :  { %v8672_v55 = vmul.f32 1.442695, %v8669_v23 }
0x42a3   :  { %v8670_v63 = vmul.f32 1.442695, %v8668_v12 }
0x42a4   :  { %16480 = vpow2.f32 %v8672_v55 }
0x42a5   :  { %16482 = vpow2.f32 %v8670_v63 }
0x42ae   :  { %v16481_v25 = vpop.eup %16480 }
0x42af   :  { %v16483_v10 = vpop.eup %16482  ;;  %v8677_v28 = vsel %vm101_vm6, %v16481_v25, 0.0 }
0x42b0   :  { %8678 = vadd.xlane.f32.xlu1 %v8677_v28  ;;  %v8674_v51 = vsel %vm101_vm6, %v16483_v10, 0.0 }
0x42b1   :  { %8675 = vadd.xlane.f32.xlu0 %v8674_v51 }
0x42c1   :  { %16122 = vrot.lane.b32.xlu1 %v17768_v35, %s16636_s30 }
0x42c5   :  { %8772 = vrot.lane.b32.xlu1 %v8771_v26, %s16633_s28 }
0x42c7   :  { %8480 = vrot.lane.b32.xlu0 %v17737_v37, %s16633_s28 }
0x42cb   :  { %8860 = vrot.lane.b32.xlu0 %v17756_v62, %s16633_s28 }
0x42eb   :  { %v15002_v60 = vpop.f32.mrb[64].mxu1 }
0x42ec   :  { %v8470_v58 = vpop.f32.mrb[65].mxu1 }
0x42ed   :  { %15005 = vmatprep.mubr.msk.f32.mxu1 %vm189_vm9, %v8470_v58 }
0x433d   :  { %v8679_v27 = vpop.xlane.xlu1 %8678 }
0x433e   :  { %16484 = vrcp.f32 %v8679_v27  ;;  %v8676_v31 = vpop.xlane.xlu0 %8675 }
0x433f   :  { %16486 = vrcp.f32 %v8676_v31 }
0x4341   :  { %v16123_v45 = vpop.permute.xlu1 %16122 }
0x4342   :  { %v16125_v35 = vunpack.i.h.bf16 %v16123_v45  ;;  %v16124_v50 = vunpack.i.l.bf16 %v16123_v45  ;;  %v8481_v32 = vpop.permute.xlu0 %8480 }
0x4343   :  { %15003 = vmatprep.subr.msk.mxu1 %vm600_vm11, %v8481_v32 }
0x4344   :  { %15004 = vmatpush3.msk.msra.mxu1 %vm600_vm11, %v8481_v32  ;;  %v15629_v62 = vpack.c.bf16 %v16125_v35, %v16124_v50 }
0x4345   :  { %15006 = vmatmul.mubr.msk.f32.vlgmr.msra.gmra.mrb[62].mxu1 %vm189_vm9, %v15002_v60  ;;  %v8773_v37 = vpop.permute.xlu1 %8772 }
0x4346   :  { %15630 = vmatprep.subr.bf16.mxu1 %v15629_v62  ;;  %v8861_v39 = vpop.permute.xlu0 %8860 }
0x4347   :  { %15632 = vmatpush3.bf16.msra.mxu1 %v15629_v62 }
0x4348   :  { %v16485_v34 = vpop.eup %16484  ;;  %15022 = vmatprep.subr.msk.mxu1 %vm600_vm11, %v8773_v37 }
0x4349   :  { %v16487_v24 = vpop.eup %16486  ;;  %v8683_v7 = vmul.f32 %v16485_v34, %v16481_v25 }
0x434a   :  { %v8682_v38 = vmul.f32 %v16487_v24, %v16483_v10 }
0x434c   :  { %15019 = vmatprep.mubr.msk.f32.mxu1 %vm101_vm6, %v8682_v38 }
0x434d   :  { %15020 = vmatmul.mubr.msk.f32.vlgmr.msra.gmra.mrb[66].mxu1 %vm101_vm6, %v8683_v7 }
0x434e   :  { %15023 = vmatpush3.msk.msra.mxu1 %vm600_vm11, %v8773_v37 }
0x4420   :  { %v15021_v3 = vpop.f32.mrb[66].mxu1 }
0x4421   :  { %v8762_v29 = vpop.f32.mrb[67].mxu1 }
0x4422   :  { %15024 = vmatprep.mubr.msk.f32.mxu1 %vm189_vm9, %v8762_v29  ;;  %v17959_v29 = vld [vmem:[%s18519_s2 + $0x8] sm:$0xff] }
0x4423   :  { %15025 = vmatmul.mubr.msk.f32.vlgmr.msra.gmra.mrb[62].mxu1 %vm189_vm9, %v15021_v3 }
0x44f6   :  { %v15026_v1 = vpop.f32.mrb[62].mxu1 }
0x44f7   :  { %v8864_v49 = vadd.f32 %v15026_v1, %v8861_v39  ;;  %v8848_v41 = vpop.f32.mrb[63].mxu1  ;;  %v17965_v1 = vld [vmem:[%s18519_s2] sm:$0xff] }
0x44f8   :  { %v8863_v42 = vadd.f32 %v8861_v39, %v8848_v41 }
0x44f9   :  { %v8866_v47 = vadd.f32 %v8864_v49, %v17747_v61 }
0x44fa   :  { %v8865_v56 = vadd.f32 %v8863_v42, %v17745_v33  ;;  %v17905_v33 = vld [vmem:[%s18515_s5 + $0x60] sm:$0xff] }
0x44fb   :  { %v8871_v53 = vsel %vm101_vm6, %v8866_v47, 0.0  ;;  %v16126_v18 = vpack.i.bf16 %v17910_v22, %v17905_v33  ;;  %v15633_v30 = vpack.c.bf16 %v17910_v22, %v17905_v33 }
0x44fc   :  { %8872 = vadd.xlane.f32.xlu0 %v8871_v53  ;;  %v8868_v0 = vsel %vm101_vm6, %v8865_v56, 0.0 }
0x44fd   :  { %8869 = vadd.xlane.f32.xlu1 %v8868_v0  ;;  %15634 = vmatprep.subr.bf16.mxu0 %v15633_v30 }
0x44fe   :  { %15636 = vmatpush3.bf16.msra.mxu0 %v15633_v30 }
0x4589   :  { %v8873_v9 = vpop.xlane.xlu0 %8872 }
0x458a   :  { %v8875_v2 = vmul.f32 0.0625, %v8873_v9  ;;  %v8870_v11 = vpop.xlane.xlu1 %8869 }
0x458b   :  { %v8874_v14 = vmul.f32 0.0625, %v8870_v11 }
0x458c   :  { %v8877_v15 = vsub.f32 %v8866_v47, %v8875_v2 }
0x458d   :  { %v8876_v4 = vsub.f32 %v8865_v56, %v8874_v14 }
0x458e   :  { %v8879_v57 = vmul.f32 %v8877_v15, %v8877_v15 }
0x458f   :  { %v8878_v59 = vmul.f32 %v8876_v4, %v8876_v4 }
0x4590   :  { %v8883_v16 = vsel %vm101_vm6, %v8879_v57, 0.0 }
0x4591   :  { %8884 = vadd.xlane.f32.xlu1 %v8883_v16  ;;  %v8880_v61 = vsel %vm101_vm6, %v8878_v59, 0.0 }
0x4592   :  { %8881 = vadd.xlane.f32.xlu0 %v8880_v61 }
0x45a2   :  { %16127 = vrot.lane.b32.xlu1 %v16126_v18, %s16625_s1 }
0x45a6   :  { %9003 = vrot.lane.b32.xlu1 %v17924_v19, %s16625_s1 }
0x45a8   :  { %8901 = vrot.lane.b32.xlu0 %v13825_v46, %s16625_s1 }
0x461e   :  { %v8885_v5 = vpop.xlane.xlu1 %8884 }
0x461f   :  { %v8887_v44 = vmul.f32 0.0625, %v8885_v5  ;;  %v8882_v43 = vpop.xlane.xlu0 %8881 }
0x4620   :  { %v8886_v20 = vmul.f32 0.0625, %v8882_v43 }
0x4621   :  { %v8889_v36 = vadd.f32 1e-05, %v8887_v44 }
0x4622   :  { %v8888_v6 = vadd.f32 1e-05, %v8886_v20  ;;  %v16128_v21 = vpop.permute.xlu1 %16127 }
0x4623   :  { %16488 = vrsqrt.f32 %v8889_v36  ;;  %v16130_v54 = vunpack.i.h.bf16 %v16128_v21  ;;  %v16129_v17 = vunpack.i.l.bf16 %v16128_v21  ;;  %v8902_v25 = vpop.permute.xlu0 %8901 }
0x4624   :  { %16490 = vrsqrt.f32 %v8888_v6 }
0x4625   :  { %v15637_v23 = vpack.c.bf16 %v16130_v54, %v16129_v17 }
0x4626   :  { %v9004_v31 = vpop.permute.xlu1 %9003 }
0x4627   :  { %15638 = vmatprep.subr.bf16.mxu0 %v15637_v23 }
0x462d   :  { %v16489_v8 = vpop.eup %16488 }
0x462e   :  { %v16491_v12 = vpop.eup %16490  ;;  %v8893_v55 = vmul.f32 %v16489_v8, %v8877_v15 }
0x462f   :  { %v8892_v63 = vmul.f32 %v16491_v12, %v8876_v4 }
0x4630   :  { %v8899_v10 = vmul.f32 %v13825_v46, %v8893_v55 }
0x4631   :  { %v8898_v28 = vmul.f32 %v13825_v46, %v8892_v63 }
0x4632   :  { %v17930_v26 = vadd.f32 %v8902_v25, %v8899_v10 }
0x4633   :  { %v17928_v51 = vadd.f32 %v8902_v25, %v8898_v28 }
0x4635   :  { %15031 = vmatprep.mubr.msk.f32.mxu0 %vm101_vm6, %v17928_v51 }
0x4636   :  { %15032 = vmatmul.mubr.msk.f32.vlgmr.msra.gmra.mrb[70].mxu0 %vm101_vm6, %v17930_v26 }
0x4637   :  { %15640 = vmatpush3.bf16.msra.mxu0 %v15637_v23  ;;  %15038 = vmatprep.mubr.msk.f32.mxu0 %vm101_vm6, %v17550_v13 }
0x463a   :  { %15039 = vmatmul.mubr.msk.f32.vlgmr.msra.gmra.mrb[72].mxu0 %vm101_vm6, %v17558_v48 }
0x4709   :  { %v15033_v60 = vpop.f32.mrb[70].mxu0 }
0x470a   :  { %v8985_v58 = vpop.f32.mrb[71].mxu0  ;;  %v17952_v34 = vadd.f32 %v15033_v60, %v17924_v19 }
0x470b   :  { %v17941_v27 = vadd.f32 %v17924_v19, %v8985_v58 }
0x470d   :  { %15045 = vmatprep.mubr.msk.f32.mxu1 %vm189_vm9, %v17941_v27  ;;  %v15040_v45 = vpop.f32.mrb[72].mxu0 }
0x470e   :  { %v9078_v35 = vadd.f32 %v15040_v45, %v9004_v31  ;;  %v9072_v50 = vpop.f32.mrb[73].mxu0 }
0x470f   :  { %v9073_v32 = vadd.f32 %v9072_v50, %v9004_v31 }
0x4711   :  { %v15641_v62 = vpack.c.bf16 %v9078_v35, %v9073_v32  ;;  %v17945_v37 = vpack.i.bf16 %v9078_v35, %v9073_v32 }
0x4713   :  { %15643 = vmatprep.subr.msk.bf16.mxu1 %vm16758_vm10, %v15641_v62 }
0x4714   :  { %15646 = vmatpush3.bf16.xpose.msk.msra.mxu1 %vm16758_vm10, %v15641_v62 }
0x471b   :  { %15046 = vmatmul.mubr.msk.f32.vlgmr.msra.gmra.mrb[68].mxu1 %vm189_vm9, %v17952_v34 }
0x47ee   :  { %v15047_v24 = vpop.f32.mrb[68].mxu1 }
0x47ef   :  { %v9169_v38 = vmul.f32 0.5, %v15047_v24  ;;  %v9159_v7 = vpop.f32.mrb[69].mxu1 }
0x47f0   :  { %v9168_v3 = vmul.f32 0.5, %v9159_v7 }
0x47f1   :  { %v9171_v39 = vadd.f32 %v17959_v29, %v9169_v38 }
0x47f2   :  { %v9170_v49 = vadd.f32 %v17965_v1, %v9168_v3 }
0x47f3   :  { %v9175_v41 = vsel %vm101_vm6, %v9171_v39, -inf }
0x47f4   :  { %9176 = vmax.xlane.f32.xlu1 %v9175_v41  ;;  %v9172_v42 = vsel %vm101_vm6, %v9170_v49, -inf }
0x47f5   :  { %9173 = vmax.xlane.f32.xlu0 %v9172_v42 }
0x4805   :  { %16132 = vrot.lane.b32.xlu1 %v17945_v37, %s16625_s1 }
0x4809   :  { %9281 = vrot.lane.b32.xlu1 %v17941_v27, %s16627_s22 }
0x480d   :  { %9283 = vrot.lane.b32.xlu1 %v17952_v34, %s16627_s22 }
0x4811   :  { %9656 = vrot.lane.b32.xlu1 %v17941_v27, %s16630_s25 }
0x4881   :  { %v9177_v47 = vpop.xlane.xlu1 %9176 }
0x4882   :  { %v9179_v56 = vsub.f32 %v9171_v39, %v9177_v47  ;;  %v9174_v53 = vpop.xlane.xlu0 %9173 }
0x4883   :  { %v9178_v0 = vsub.f32 %v9170_v49, %v9174_v53 }
0x4884   :  { %v9182_v9 = vmul.f32 1.442695, %v9179_v56 }
0x4885   :  { %v9180_v2 = vmul.f32 1.442695, %v9178_v0  ;;  %v16133_v11 = vpop.permute.xlu1 %16132 }
0x4886   :  { %16492 = vpow2.f32 %v9182_v9  ;;  %v16135_v14 = vunpack.i.h.bf16 %v16133_v11  ;;  %v16134_v15 = vunpack.i.l.bf16 %v16133_v11 }
0x4887   :  { %16494 = vpow2.f32 %v9180_v2 }
0x4888   :  { %v15647_v4 = vpack.c.bf16 %v16135_v14, %v16134_v15 }
0x4889   :  { %v9282_v21 = vpop.permute.xlu1 %9281 }
0x488a   :  { %15648 = vmatprep.subr.bf16.mxu0 %v15647_v4 }
0x488b   :  { %15650 = vmatpush3.bf16.msra.mxu0 %v15647_v4 }
0x488d   :  { %v9284_v55 = vpop.permute.xlu1 %9283 }
0x4890   :  { %v16493_v57 = vpop.eup %16492 }
0x4891   :  { %v9187_v59 = vsel %vm101_vm6, %v16493_v57, 0.0  ;;  %v16495_v16 = vpop.eup %16494  ;;  %v9657_v63 = vpop.permute.xlu1 %9656 }
0x4892   :  { %9188 = vadd.xlane.f32.xlu0 %v9187_v59  ;;  %v9184_v61 = vsel %vm101_vm6, %v16495_v16, 0.0 }
0x4896   :  { %9185 = vadd.xlane.f32.xlu0 %v9184_v61 }
0x48ac   :  { %16137 = vrot.lane.b32.xlu0 %v17945_v37, %s16627_s22 }
0x48b0   :  { %16142 = vrot.lane.b32.xlu0 %v17945_v37, %s16630_s25 }
0x48b4   :  { %9658 = vrot.lane.b32.xlu0 %v17952_v34, %s16630_s25 }
0x491f   :  { %v9189_v18 = vpop.xlane.xlu0 %9188 }
0x4920   :  { %16496 = vrcp.f32 %v9189_v18 }
0x4923   :  { %v9186_v30 = vpop.xlane.xlu0 %9185 }
0x4924   :  { %16498 = vrcp.f32 %v9186_v30 }
0x4927   :  { %v16138_v46 = vpop.permute.xlu0 %16137 }
0x4928   :  { %v16140_v5 = vunpack.i.h.bf16 %v16138_v46  ;;  %v16139_v44 = vunpack.i.l.bf16 %v16138_v46 }
0x492a   :  { %v15651_v43 = vpack.c.bf16 %v16140_v5, %v16139_v44  ;;  %v16497_v36 = vpop.eup %16496 }
0x492b   :  { %v16143_v20 = vpop.permute.xlu0 %16142  ;;  %v9193_v8 = vmul.f32 %v16497_v36, %v16493_v57 }
0x492c   :  { %15653 = vmatprep.subr.msk.bf16.mxu0 %vm16758_vm10, %v15651_v43  ;;  %v16145_v54 = vunpack.i.h.bf16 %v16143_v20  ;;  %v16144_v17 = vunpack.i.l.bf16 %v16143_v20 }
0x492e   :  { %v16499_v6 = vpop.eup %16498  ;;  %v15661_v12 = vpack.c.bf16 %v16145_v54, %v16144_v17 }
0x492f   :  { %v9192_v23 = vmul.f32 %v16499_v6, %v16495_v16  ;;  %v9659_v25 = vpop.permute.xlu0 %9658 }
0x4931   :  { %15052 = vmatprep.mubr.msk.f32.mxu0 %vm101_vm6, %v9192_v23 }
0x4932   :  { %15053 = vmatmul.mubr.msk.f32.vlgmr.msra.gmra.mrb[74].mxu0 %vm101_vm6, %v9193_v8 }
0x4933   :  { %15656 = vmatpush3.bf16.xpose.msk.msra.mxu0 %vm16758_vm10, %v15651_v43  ;;  %15059 = vmatprep.mubr.msk.f32.mxu0 %vm189_vm9, %v9282_v21 }
0x4934   :  { %15663 = vmatprep.subr.msk.bf16.mxu0 %vm16758_vm10, %v15661_v12 }
0x493a   :  { %15060 = vmatmul.mubr.msk.f32.vlgmr.msra.gmra.mrb[76].mxu0 %vm189_vm9, %v9284_v55 }
0x493b   :  { %15666 = vmatpush3.bf16.xpose.msk.msra.mxu0 %vm16758_vm10, %v15661_v12  ;;  %15083 = vmatprep.mubr.msk.f32.mxu0 %vm189_vm9, %v9657_v63 }
0x4942   :  { %15084 = vmatmul.mubr.msk.f32.vlgmr.msra.gmra.mrb[78].mxu0 %vm189_vm9, %v9659_v25 }
0x4a05   :  { %v18000_v10 = vpop.f32.mrb[74].mxu0 }
0x4a06   :  { %v18002_v28 = vpop.f32.mrb[75].mxu0 }
0x4a0d   :  { %v15061_v60 = vpop.f32.mrb[76].mxu0 }
0x4a0e   :  { %v9373_v58 = vmul.f32 0.5, %v15061_v60  ;;  %v9363_v31 = vpop.f32.mrb[77].mxu0 }
0x4a0f   :  { %v9372_v45 = vmul.f32 0.5, %v9363_v31  ;;  %v9485_v31 = vrot.slane %v17905_v33, 4 }
0x4a10   :  { %v9375_v35 = vadd.f32 %v17959_v29, %v9373_v58 }
0x4a11   :  { %v9374_v50 = vadd.f32 %v17965_v1, %v9372_v45 }
0x4a12   :  { %v9379_v32 = vsel %vm101_vm6, %v9375_v35, -inf }
0x4a13   :  { %9380 = vmax.xlane.f32.xlu0 %v9379_v32  ;;  %v9376_v62 = vsel %vm101_vm6, %v9374_v50, -inf }
0x4a14   :  { %9377 = vmax.xlane.f32.xlu1 %v9376_v62 }
0x4a15   :  { %v15085_v24 = vpop.f32.mrb[78].mxu0 }
0x4a16   :  { %v9738_v38 = vpop.f32.mrb[79].mxu0  ;;  %v9748_v2 = vmul.f32 0.5, %v15085_v24 }
0x4a17   :  { %v9747_v9 = vmul.f32 0.5, %v9738_v38 }
0x4a18   :  { %v9750_v14 = vadd.f32 %v17959_v29, %v9748_v2 }
0x4a19   :  { %v9749_v11 = vadd.f32 %v17965_v1, %v9747_v9 }
0x4a1a   :  { %v9754_v4 = vsel %vm101_vm6, %v9750_v14, -inf }
0x4a1b   :  { %v9751_v15 = vsel %vm101_vm6, %v9749_v11, -inf }
0x4aa0   :  { %v9381_v7 = vpop.xlane.xlu0 %9380 }
0x4aa1   :  { %v9383_v3 = vsub.f32 %v9375_v35, %v9381_v7  ;;  %v9378_v39 = vpop.xlane.xlu1 %9377 }
0x4aa2   :  { %v9382_v49 = vsub.f32 %v9374_v50, %v9378_v39 }
0x4aa3   :  { %v9386_v41 = vmul.f32 1.442695, %v9383_v3 }
0x4aa4   :  { %v9384_v42 = vmul.f32 1.442695, %v9382_v49 }
0x4aa5   :  { %16500 = vpow2.f32 %v9386_v41 }
0x4aa6   :  { %16502 = vpow2.f32 %v9384_v42 }
0x4aaf   :  { %v16501_v47 = vpop.eup %16500 }
0x4ab0   :  { %v16503_v56 = vpop.eup %16502  ;;  %v9391_v53 = vsel %vm101_vm6, %v16501_v47, 0.0 }
0x4ab1   :  { %9392 = vadd.xlane.f32.xlu1 %v9391_v53  ;;  %v9388_v0 = vsel %vm101_vm6, %v16503_v56, 0.0 }
0x4ab2   :  { %9389 = vadd.xlane.f32.xlu0 %v9388_v0 }
0x4ac2   :  { %16152 = vrot.lane.b32.xlu1 %v17945_v37, %s16632_s27 }
0x4ac6   :  { %9947 = vrot.lane.b32.xlu1 %v17941_v27, %s16632_s27 }
0x4ac8   :  { %16147 = vrot.lane.b32.xlu0 %v17945_v37, %s16626_s21 }
0x4acc   :  { %9949 = vrot.lane.b32.xlu0 %v17952_v34, %s16632_s27 }
0x4aea   :  { %9752 = vmax.xlane.f32.xlu1 %v9751_v15 }
0x4aeb   :  { %9755 = vmax.xlane.f32.xlu0 %v9754_v4 }
0x4b3e   :  { %v9393_v57 = vpop.xlane.xlu1 %9392 }
0x4b3f   :  { %16504 = vrcp.f32 %v9393_v57  ;;  %v9390_v27 = vpop.xlane.xlu0 %9389 }
0x4b40   :  { %16506 = vrcp.f32 %v9390_v27 }
0x4b42   :  { %v16153_v59 = vpop.permute.xlu1 %16152 }
0x4b43   :  { %v16155_v16 = vunpack.i.h.bf16 %v16153_v59  ;;  %v16154_v61 = vunpack.i.l.bf16 %v16153_v59  ;;  %v16148_v34 = vpop.permute.xlu0 %16147 }
0x4b44   :  { %v16150_v18 = vunpack.i.h.bf16 %v16148_v34  ;;  %v16149_v30 = vunpack.i.l.bf16 %v16148_v34  ;;  %v10151_v34 = vrot.slane %v17910_v22, 4 }
0x4b45   :  { %v15671_v46 = vpack.c.bf16 %v16155_v16, %v16154_v61 }
0x4b46   :  { %v9948_v5 = vpop.permute.xlu1 %9947  ;;  %v15657_v44 = vpack.c.bf16 %v16150_v18, %v16149_v30 }
0x4b47   :  { %15673 = vmatprep.subr.msk.bf16.mxu0 %vm16758_vm10, %v15671_v46  ;;  %15102 = vmatprep.mubr.msk.f32.mxu0 %vm189_vm9, %v9948_v5  ;;  %v9950_v21 = vpop.permute.xlu0 %9949 }
0x4b48   :  { %15658 = vmatprep.subr.bf16.mxu1 %v15657_v44  ;;  %15676 = vmatpush3.bf16.xpose.msk.msra.mxu0 %vm16758_vm10, %v15671_v46 }
0x4b49   :  { %v16505_v43 = vpop.eup %16504  ;;  %15660 = vmatpush3.bf16.msra.mxu1 %v15657_v44 }
0x4b4a   :  { %v16507_v20 = vpop.eup %16506  ;;  %v9397_v6 = vmul.f32 %v16505_v43, %v16501_v47 }
0x4b4b   :  { %v9396_v36 = vmul.f32 %v16507_v20, %v16503_v56 }
0x4b4d   :  { %15066 = vmatprep.mubr.msk.f32.mxu1 %vm101_vm6, %v9396_v36 }
0x4b4e   :  { %15067 = vmatmul.mubr.msk.f32.vlgmr.msra.gmra.mrb[70].mxu1 %vm101_vm6, %v9397_v6 }
0x4b4f   :  { %15103 = vmatmul.mubr.msk.f32.vlgmr.msra.gmra.mrb[80].mxu0 %vm189_vm9, %v9950_v21 }
0x4b77   :  { %v9753_v54 = vpop.xlane.xlu1 %9752 }
0x4b78   :  { %v9757_v17 = vsub.f32 %v9749_v11, %v9753_v54  ;;  %v9756_v23 = vpop.xlane.xlu0 %9755 }
0x4b79   :  { %v9758_v8 = vsub.f32 %v9750_v14, %v9756_v23 }
0x4b7a   :  { %v9759_v12 = vmul.f32 1.442695, %v9757_v17 }
0x4b7b   :  { %v9761_v55 = vmul.f32 1.442695, %v9758_v8 }
0x4b7c   :  { %16508 = vpow2.f32 %v9759_v12 }
0x4b7d   :  { %16510 = vpow2.f32 %v9761_v55 }
0x4b86   :  { %v16509_v63 = vpop.eup %16508 }
0x4b87   :  { %v16511_v25 = vpop.eup %16510  ;;  %v9763_v60 = vsel %vm101_vm6, %v16509_v63, 0.0 }
0x4b88   :  { %9764 = vadd.xlane.f32.xlu0 %v9763_v60  ;;  %v9766_v58 = vsel %vm101_vm6, %v16511_v25, 0.0 }
0x4b89   :  { %9767 = vadd.xlane.f32.xlu1 %v9766_v58 }
0x4b9a   :  { %9571 = vrot.lane.b32.xlu1 %v17905_v33, %s16633_s28 }
0x4b9e   :  { %16157 = vrot.lane.b32.xlu1 %v17945_v37, %s16629_s24  ;;  %9486 = vrot.lane.b32.xlu0 %v9485_v31, %s16633_s28 }
0x4c15   :  { %v9765_v45 = vpop.xlane.xlu0 %9764 }
0x4c16   :  { %v9768_v35 = vpop.xlane.xlu1 %9767  ;;  %16512 = vrcp.f32 %v9765_v45  ;;  %v13867_v45 = vld [vmem:[%s18520_s9 + $0xb] ss:$0 sm:$0xff] }
0x4c17   :  { %16514 = vrcp.f32 %v9768_v35 }
0x4c19   :  { %v9487_v50 = vpop.permute.xlu0 %9486 }
0x4c1a   :  { %v9572_v32 = vpop.permute.xlu1 %9571  ;;  %15069 = vmatprep.subr.msk.mxu1 %vm600_vm11, %v9487_v50 }
0x4c1b   :  { %15070 = vmatpush3.msk.msra.mxu1 %vm600_vm11, %v9487_v50 }
0x4c1c   :  { %15074 = vmatprep.subr.msk.mxu1 %vm600_vm11, %v9572_v32 }
0x4c1e   :  { %v16158_v62 = vpop.permute.xlu1 %16157 }
0x4c1f   :  { %v16160_v24 = vunpack.i.h.bf16 %v16158_v62  ;;  %v16159_v38 = vunpack.i.l.bf16 %v16158_v62 }
0x4c20   :  { %v16513_v0 = vpop.eup %16512 }
0x4c21   :  { %v15068_v33 = vpop.f32.mrb[70].mxu1  ;;  %v15667_v42 = vpack.c.bf16 %v16160_v24, %v16159_v38  ;;  %v16515_v2 = vpop.eup %16514  ;;  %v9771_v11 = vmul.f32 %v16513_v0, %v16509_v63 }
0x4c22   :  { %v9476_v7 = vpop.f32.mrb[71].mxu1  ;;  %v15104_v3 = vpop.f32.mrb[80].mxu0 }
0x4c23   :  { %v10039_v39 = vmul.f32 0.5, %v15104_v3  ;;  %15071 = vmatprep.mubr.msk.f32.mxu1 %vm189_vm9, %v9476_v7  ;;  %v10029_v49 = vpop.f32.mrb[81].mxu0  ;;  %v10285_v3 = vld [vmem:[%s18521_s7 + $0x40] sm:$0xff] }
0x4c24   :  { %v10038_v41 = vmul.f32 0.5, %v10029_v49  ;;  %15072 = vmatmul.mubr.msk.f32.vlgmr.msra.gmra.mrb[72].mxu1 %vm189_vm9, %v15068_v33 }
0x4c25   :  { %v10041_v47 = vadd.f32 %v17959_v29, %v10039_v39  ;;  %15075 = vmatpush3.msk.msra.mxu1 %vm600_vm11, %v9572_v32  ;;  %15076 = vmatprep.mubr.msk.f32.mxu1 %vm189_vm9, %v18002_v28  ;;  %v9772_v29 = vmul.f32 %v16515_v2, %v16511_v25  ;;  %v10286_v39 = vld [vmem:[%s18521_s7 + $0x48] sm:$0xff] }
0x4c26   :  { %v10040_v56 = vadd.f32 %v17965_v1, %v10038_v41  ;;  %15668 = vmatprep.subr.bf16.mxu1 %v15667_v42  ;;  %v15681_v49 = vpack.c.bf16 %v10286_v39, %v10285_v3  ;;  %v16166_v41 = vpack.i.bf16 %v10286_v39, %v10285_v3 }
0x4c27   :  { %v10045_v53 = vsel %vm101_vm6, %v10041_v47, -inf }
0x4c28   :  { %10046 = vmax.xlane.f32.xlu1 %v10045_v53  ;;  %v10042_v9 = vsel %vm101_vm6, %v10040_v56, -inf  ;;  %15682 = vmatprep.subr.bf16.mxu0 %v15681_v49 }
0x4c29   :  { %10043 = vmax.xlane.f32.xlu0 %v10042_v9  ;;  %15684 = vmatpush3.bf16.msra.mxu0 %v15681_v49 }
0x4c2c   :  { %15077 = vmatmul.mubr.msk.f32.vlgmr.msra.gmra.mrb[72].mxu1 %vm189_vm9, %v18000_v10 }
0x4c2d   :  { %15670 = vmatpush3.bf16.msra.mxu1 %v15667_v42  ;;  %15090 = vmatprep.mubr.msk.f32.mxu1 %vm101_vm6, %v9771_v11 }
0x4c30   :  { %15091 = vmatmul.mubr.msk.f32.vlgmr.msra.gmra.mrb[74].mxu1 %vm101_vm6, %v9772_v29 }
0x4c39   :  { %9860 = vrot.lane.b32.xlu1 %v17910_v22, %s16633_s28 }
0x4c3d   :  { %10152 = vrot.lane.b32.xlu1 %v10151_v34, %s16633_s28 }
0x4c41   :  { %10239 = vrot.lane.b32.xlu1 %v17924_v19, %s16633_s28 }
0x4cb5   :  { %v10047_v1 = vpop.xlane.xlu1 %10046 }
0x4cb6   :  { %v10049_v28 = vsub.f32 %v10041_v47, %v10047_v1  ;;  %v10044_v14 = vpop.xlane.xlu0 %10043 }
0x4cb7   :  { %v10048_v15 = vsub.f32 %v10040_v56, %v10044_v14 }
0x4cb8   :  { %v10052_v4 = vmul.f32 1.442695, %v10049_v28 }
0x4cb9   :  { %v10050_v57 = vmul.f32 1.442695, %v10048_v15  ;;  %v9861_v27 = vpop.permute.xlu1 %9860 }
0x4cba   :  { %16516 = vpow2.f32 %v10052_v4  ;;  %15093 = vmatprep.subr.msk.mxu1 %vm600_vm11, %v9861_v27 }
0x4cbb   :  { %15094 = vmatpush3.msk.msra.mxu1 %vm600_vm11, %v9861_v27  ;;  %16518 = vpow2.f32 %v10050_v57 }
0x4cbd   :  { %v10153_v22 = vpop.permute.xlu1 %10152 }
0x4cc1   :  { %v10240_v23 = vpop.permute.xlu1 %10239 }
0x4cc4   :  { %v16517_v10 = vpop.eup %16516 }
0x4cc5   :  { %v10057_v59 = vsel %vm101_vm6, %v16517_v10, 0.0  ;;  %v16519_v16 = vpop.eup %16518 }
0x4cc6   :  { %10058 = vadd.xlane.f32.xlu0 %v10057_v59  ;;  %v10054_v61 = vsel %vm101_vm6, %v16519_v16, 0.0 }
0x4cca   :  { %10055 = vadd.xlane.f32.xlu0 %v10054_v61  ;;  %v13868_v61 = vld [vmem:[%s18522_s8 + $0x4] ss:$0 sm:$0xff] }
0x4ce0   :  { %16162 = vrot.lane.b32.xlu0 %v17945_v37, %s16635_s29 }
0x4d03   :  { %v15092_v18 = vpop.f32.mrb[74].mxu1 }
0x4d04   :  { %v9851_v30 = vpop.f32.mrb[75].mxu1 }
0x4d05   :  { %15095 = vmatprep.mubr.msk.f32.mxu1 %vm189_vm9, %v9851_v30 }
0x4d06   :  { %15096 = vmatmul.mubr.msk.f32.vlgmr.msra.gmra.mrb[72].mxu1 %vm189_vm9, %v15092_v18 }
0x4d53   :  { %v10059_v46 = vpop.xlane.xlu0 %10058 }
0x4d54   :  { %16520 = vrcp.f32 %v10059_v46 }
0x4d57   :  { %v10056_v5 = vpop.xlane.xlu0 %10055 }
0x4d58   :  { %16522 = vrcp.f32 %v10056_v5 }
0x4d5b   :  { %v16163_v44 = vpop.permute.xlu0 %16162 }
0x4d5c   :  { %v16165_v43 = vunpack.i.h.bf16 %v16163_v44  ;;  %v16164_v37 = vunpack.i.l.bf16 %v16163_v44 }
0x4d5e   :  { %v15677_v20 = vpack.c.bf16 %v16165_v43, %v16164_v37  ;;  %v16521_v36 = vpop.eup %16520 }
0x4d5f   :  { %v10063_v21 = vmul.f32 %v16521_v36, %v16517_v10 }
0x4d60   :  { %15678 = vmatprep.subr.bf16.mxu1 %v15677_v20 }
0x4d61   :  { %15680 = vmatpush3.bf16.msra.mxu1 %v15677_v20 }
0x4d62   :  { %v16523_v6 = vpop.eup %16522  ;;  %15112 = vmatprep.subr.msk.mxu1 %vm600_vm11, %v10153_v22 }
0x4d63   :  { %v10062_v19 = vmul.f32 %v16523_v6, %v16519_v16 }
0x4d65   :  { %15109 = vmatprep.mubr.msk.f32.mxu1 %vm101_vm6, %v10062_v19 }
0x4d66   :  { %15110 = vmatmul.mubr.msk.f32.vlgmr.msra.gmra.mrb[76].mxu1 %vm101_vm6, %v10063_v21 }
0x4d67   :  { %15113 = vmatpush3.msk.msra.mxu1 %vm600_vm11, %v10153_v22 }
0x4e39   :  { %v15111_v54 = vpop.f32.mrb[76].mxu1 }
0x4e3a   :  { %v10142_v17 = vpop.f32.mrb[77].mxu1 }
0x4e3b   :  { %15114 = vmatprep.mubr.msk.f32.mxu1 %vm189_vm9, %v10142_v17 }
0x4e3c   :  { %15115 = vmatmul.mubr.msk.f32.vlgmr.msra.gmra.mrb[72].mxu1 %vm189_vm9, %v15111_v54 }
0x4f0f   :  { %v15116_v8 = vpop.f32.mrb[72].mxu1 }
0x4f10   :  { %v10243_v12 = vadd.f32 %v15116_v8, %v10240_v23  ;;  %v10228_v55 = vpop.f32.mrb[73].mxu1 }
0x4f11   :  { %v10242_v63 = vadd.f32 %v10240_v23, %v10228_v55 }
0x4f12   :  { %v10245_v25 = vadd.f32 %v10243_v12, %v17930_v26 }
0x4f13   :  { %v10244_v60 = vadd.f32 %v10242_v63, %v17928_v51 }
0x4f14   :  { %v10250_v58 = vsel %vm101_vm6, %v10245_v25, 0.0 }
0x4f15   :  { %10251 = vadd.xlane.f32.xlu1 %v10250_v58  ;;  %v10247_v31 = vsel %vm101_vm6, %v10244_v60, 0.0 }
0x4f16   :  { %10248 = vadd.xlane.f32.xlu0 %v10247_v31 }
0x4f26   :  { %10280 = vrot.lane.b32.xlu1 %v13867_v45, %s16625_s1 }
0x4f2a   :  { %10382 = vrot.lane.b32.xlu1 %v13868_v61, %s16628_s23 }
0x4fa2   :  { %v10252_v35 = vpop.xlane.xlu1 %10251 }
0x4fa3   :  { %v10254_v50 = vmul.f32 0.0625, %v10252_v35  ;;  %v10249_v32 = vpop.xlane.xlu0 %10248  ;;  %v18115_v35 = vld [vmem:[%s18515_s5 + $0x78] sm:$0xff] }
0x4fa4   :  { %v10253_v62 = vmul.f32 0.0625, %v10249_v32 }
0x4fa5   :  { %v10256_v24 = vsub.f32 %v10245_v25, %v10254_v50  ;;  %v13875_v50 = vld [vmem:[%s18520_s9 + $0xc] ss:$0 sm:$0xff] }
0x4fa6   :  { %v10255_v26 = vsub.f32 %v10244_v60, %v10253_v62  ;;  %v10281_v15 = vpop.permute.xlu1 %10280 }
0x4fa7   :  { %v10258_v33 = vmul.f32 %v10256_v24, %v10256_v24 }
0x4fa8   :  { %v10257_v38 = vmul.f32 %v10255_v26, %v10255_v26 }
0x4fa9   :  { %v10262_v7 = vsel %vm101_vm6, %v10258_v33, 0.0 }
0x4faa   :  { %v10259_v51 = vsel %vm101_vm6, %v10257_v38, 0.0  ;;  %v10383_v43 = vpop.permute.xlu1 %10382 }
0x4fab   :  { %10260 = vadd.xlane.f32.xlu0 %v10259_v51 }
0x4faf   :  { %10263 = vadd.xlane.f32.xlu0 %v10262_v7 }
0x4fc5   :  { %16167 = vrot.lane.b32.xlu0 %v16166_v41, %s16628_s23 }
0x5038   :  { %v10261_v42 = vpop.xlane.xlu0 %10260 }
0x5039   :  { %v10265_v47 = vmul.f32 0.0625, %v10261_v42 }
0x503b   :  { %v10267_v56 = vadd.f32 1e-05, %v10265_v47 }
0x503c   :  { %v10264_v53 = vpop.xlane.xlu0 %10263 }
0x503d   :  { %16524 = vrsqrt.f32 %v10267_v56  ;;  %v10266_v0 = vmul.f32 0.0625, %v10264_v53 }
0x503f   :  { %v10268_v9 = vadd.f32 1e-05, %v10266_v0  ;;  %v18134_v0 = vld [vmem:[%s18518_s6 + $0x7] ss:$0 sm:$0xff] }
0x5040   :  { %v16168_v2 = vpop.permute.xlu0 %16167 }
0x5041   :  { %16526 = vrsqrt.f32 %v10268_v9  ;;  %v16170_v11 = vunpack.i.h.bf16 %v16168_v2  ;;  %v16169_v29 = vunpack.i.l.bf16 %v16168_v2 }
0x5043   :  { %v15685_v28 = vpack.c.bf16 %v16170_v11, %v16169_v29 }
0x5045   :  { %15687 = vmatprep.subr.msk.bf16.mxu0 %vm16909_vm13, %v15685_v28 }
0x5047   :  { %v16525_v1 = vpop.eup %16524 }
0x5048   :  { %v10271_v14 = vmul.f32 %v16525_v1, %v10255_v26 }
0x504a   :  { %v10277_v4 = vmul.f32 %v13867_v45, %v10271_v14 }
0x504b   :  { %v16527_v57 = vpop.eup %16526 }
0x504c   :  { %v10272_v27 = vmul.f32 %v16527_v57, %v10256_v24  ;;  %v10283_v10 = vadd.f32 %v10281_v15, %v10277_v4 }
0x504e   :  { %v10278_v59 = vmul.f32 %v13867_v45, %v10272_v27  ;;  %15121 = vmatprep.mubr.msk.f32.mxu0 %vm101_vm6, %v10283_v10  ;;  %v18110_v45 = vld [vmem:[%s18515_s5 + $0x70] sm:$0xff] }
0x504f   :  { %v15691_v32 = vpack.c.bf16 %v18115_v35, %v18110_v45 }
0x5050   :  { %v10284_v16 = vadd.f32 %v10281_v15, %v10278_v59 }
0x5051   :  { %15692 = vmatprep.subr.bf16.mxu1 %v15691_v32 }
0x5052   :  { %15122 = vmatmul.mubr.msk.f32.vlgmr.msra.gmra.mrb[82].mxu0 %vm101_vm6, %v10284_v16  ;;  %15694 = vmatpush3.bf16.msra.mxu1 %v15691_v32 }
0x5053   :  { %15690 = vmatpush3.bf16.xpose.msk.msra.mxu0 %vm16909_vm13, %v15685_v28 }
0x5125   :  { %v15123_v34 = vpop.f32.mrb[82].mxu0 }
0x5126   :  { %v10370_v18 = vadd.f32 %v15123_v34, %v13868_v61  ;;  %v10364_v30 = vpop.f32.mrb[83].mxu0  ;;  %v18165_v34 = vld [vmem:[%s18523_s3] sm:$0xff] }
0x5127   :  { %v10365_v46 = vadd.f32 %v13868_v61, %v10364_v30 }
0x5128   :  { %v10374_v44 = vmax.f32 %v10370_v18, 0.0 }
0x5129   :  { %v10373_v5 = vmax.f32 %v10365_v46, 0.0 }
0x512b   :  { %15128 = vmatprep.mubr.msk.f32.mxu0 %vm1495_vm12, %v10373_v5 }
0x512c   :  { %15129 = vmatmul.mubr.msk.f32.vlgmr.msra.gmra.mrb[84].mxu0 %vm1495_vm12, %v10374_v44 }
0x51ff   :  { %v15130_v37 = vpop.f32.mrb[84].mxu0 }
0x5200   :  { %v10467_v20 = vadd.f32 %v15130_v37, %v10383_v43  ;;  %v10461_v22 = vpop.f32.mrb[85].mxu0 }
0x5201   :  { %v10462_v36 = vadd.f32 %v10461_v22, %v10383_v43 }
0x5202   :  { %v10471_v6 = vadd.f32 %v10467_v20, %v10284_v16  ;;  %v18159_v16 = vld [vmem:[%s18523_s3 + $0x8] sm:$0xff] }
0x5203   :  { %v10470_v19 = vadd.f32 %v10462_v36, %v10283_v10 }
0x5204   :  { %v10476_v21 = vsel %vm101_vm6, %v10471_v6, 0.0 }
0x5205   :  { %10477 = vadd.xlane.f32.xlu0 %v10476_v21  ;;  %v10473_v54 = vsel %vm101_vm6, %v10470_v19, 0.0 }
0x5206   :  { %10474 = vadd.xlane.f32.xlu1 %v10473_v54 }
0x5292   :  { %v10478_v17 = vpop.xlane.xlu0 %10477 }
0x5293   :  { %v10480_v23 = vmul.f32 0.0625, %v10478_v17  ;;  %v10475_v8 = vpop.xlane.xlu1 %10474 }
0x5294   :  { %v10479_v12 = vmul.f32 0.0625, %v10475_v8 }
0x5295   :  { %v10482_v55 = vsub.f32 %v10471_v6, %v10480_v23 }
0x5296   :  { %v10481_v63 = vsub.f32 %v10470_v19, %v10479_v12 }
0x5297   :  { %v10484_v25 = vmul.f32 %v10482_v55, %v10482_v55 }
0x5298   :  { %v10483_v60 = vmul.f32 %v10481_v63, %v10481_v63 }
0x5299   :  { %v10488_v58 = vsel %vm101_vm6, %v10484_v25, 0.0 }
0x529a   :  { %10489 = vadd.xlane.f32.xlu1 %v10488_v58  ;;  %v10485_v31 = vsel %vm101_vm6, %v10483_v60, 0.0 }
0x529b   :  { %10486 = vadd.xlane.f32.xlu0 %v10485_v31 }
0x52b1   :  { %10506 = vrot.lane.b32.xlu0 %v13875_v50, %s16625_s1 }
0x5327   :  { %v10490_v62 = vpop.xlane.xlu1 %10489 }
0x5328   :  { %v10492_v24 = vmul.f32 0.0625, %v10490_v62  ;;  %v10487_v26 = vpop.xlane.xlu0 %10486 }
0x5329   :  { %v10491_v38 = vmul.f32 0.0625, %v10487_v26 }
0x532a   :  { %v10494_v51 = vadd.f32 1e-05, %v10492_v24 }
0x532b   :  { %v10493_v33 = vadd.f32 1e-05, %v10491_v38 }
0x532c   :  { %16528 = vrsqrt.f32 %v10494_v51  ;;  %v10507_v41 = vpop.permute.xlu0 %10506 }
0x532d   :  { %16530 = vrsqrt.f32 %v10493_v33 }
0x5336   :  { %v16529_v7 = vpop.eup %16528 }
0x5337   :  { %v16531_v3 = vpop.eup %16530  ;;  %v10498_v39 = vmul.f32 %v16529_v7, %v10482_v55 }
0x5338   :  { %v10497_v49 = vmul.f32 %v16531_v3, %v10481_v63 }
0x5339   :  { %v10504_v42 = vmul.f32 %v13875_v50, %v10498_v39 }
0x533a   :  { %v10503_v47 = vmul.f32 %v13875_v50, %v10497_v49 }
0x533b   :  { %v18125_v53 = vadd.f32 %v10507_v41, %v10504_v42 }
0x533c   :  { %v18123_v56 = vadd.f32 %v10507_v41, %v10503_v47 }
0x533e   :  { %15135 = vmatprep.mubr.msk.f32.mxu1 %vm101_vm6, %v18123_v56 }
0x533f   :  { %15136 = vmatmul.mubr.msk.f32.vlgmr.msra.gmra.mrb[78].mxu1 %vm101_vm6, %v18125_v53 }
0x5412   :  { %v15137_v9 = vpop.f32.mrb[78].mxu1 }
0x5413   :  { %v18137_v2 = vadd.f32 %v15137_v9, %v18134_v0  ;;  %v10590_v11 = vpop.f32.mrb[79].mxu1 }
0x5414   :  { %v18140_v29 = vadd.f32 %v18134_v0, %v10590_v11 }
0x5416   :  { %15142 = vmatprep.mubr.msk.f32.mxu1 %vm189_vm9, %v18140_v29  ;;  %v18146_v1 = vpack.i.bf16 %v18137_v2, %v18140_v29 }
0x5418   :  { %16172 = vrot.lane.b32.xlu1 %v18146_v1, %s16625_s1 }
0x548a   :  { %v16173_v28 = vpop.permute.xlu1 %16172 }
0x548b   :  { %v16175_v14 = vunpack.i.h.bf16 %v16173_v28  ;;  %v16174_v15 = vunpack.i.l.bf16 %v16173_v28 }
0x548d   :  { %v15695_v4 = vpack.c.bf16 %v16175_v14, %v16174_v15 }
0x548f   :  { %15697 = vmatprep.subr.msk.bf16.mxu1 %vm16758_vm10, %v15695_v4 }
0x5490   :  { %15700 = vmatpush3.bf16.xpose.msk.msra.mxu1 %vm16758_vm10, %v15695_v4 }
0x5497   :  { %15143 = vmatmul.mubr.msk.f32.vlgmr.msra.gmra.mrb[80].mxu1 %vm189_vm9, %v18137_v2 }
0x556a   :  { %v15144_v57 = vpop.f32.mrb[80].mxu1 }
0x556b   :  { %v10689_v27 = vmul.f32 0.5, %v15144_v57  ;;  %v10679_v10 = vpop.f32.mrb[81].mxu1 }
0x556c   :  { %v10688_v59 = vmul.f32 0.5, %v10679_v10 }
0x556d   :  { %v10691_v61 = vadd.f32 %v18159_v16, %v10689_v27 }
0x556e   :  { %v10690_v18 = vadd.f32 %v18165_v34, %v10688_v59 }
0x556f   :  { %v10695_v30 = vsel %vm101_vm6, %v10691_v61, -inf }
0x5570   :  { %10696 = vmax.xlane.f32.xlu0 %v10695_v30  ;;  %v10692_v46 = vsel %vm101_vm6, %v10690_v18, -inf }
0x5571   :  { %10693 = vmax.xlane.f32.xlu1 %v10692_v46 }
0x55fd   :  { %v10697_v5 = vpop.xlane.xlu0 %10696 }
0x55fe   :  { %v10699_v44 = vsub.f32 %v10691_v61, %v10697_v5  ;;  %v10694_v43 = vpop.xlane.xlu1 %10693 }
0x55ff   :  { %v10698_v37 = vsub.f32 %v10690_v18, %v10694_v43  ;;  %v11006_v18 = vrot.slane %v18110_v45, 4 }
0x5600   :  { %v10702_v20 = vmul.f32 1.442695, %v10699_v44 }
0x5601   :  { %v10700_v22 = vmul.f32 1.442695, %v10698_v37 }
0x5602   :  { %16532 = vpow2.f32 %v10702_v20 }
0x5603   :  { %16534 = vpow2.f32 %v10700_v22 }
0x560c   :  { %v16533_v36 = vpop.eup %16532 }
0x560d   :  { %v16535_v6 = vpop.eup %16534  ;;  %v10707_v19 = vsel %vm101_vm6, %v16533_v36, 0.0 }
0x560e   :  { %10708 = vadd.xlane.f32.xlu1 %v10707_v19  ;;  %v10704_v21 = vsel %vm101_vm6, %v16535_v6, 0.0 }
0x560f   :  { %10705 = vadd.xlane.f32.xlu0 %v10704_v21 }
0x561f   :  { %16182 = vrot.lane.b32.xlu1 %v18146_v1, %s16626_s21 }
0x5623   :  { %10801 = vrot.lane.b32.xlu1 %v18140_v29, %s16627_s22 }
0x5625   :  { %16177 = vrot.lane.b32.xlu0 %v18146_v1, %s16628_s23 }
0x5627   :  { %16187 = vrot.lane.b32.xlu1 %v18146_v1, %s16629_s24 }
0x5629   :  { %10803 = vrot.lane.b32.xlu0 %v18137_v2, %s16627_s22 }
0x562b   :  { %11179 = vrot.lane.b32.xlu1 %v18137_v2, %s16630_s25 }
0x562d   :  { %11177 = vrot.lane.b32.xlu0 %v18140_v29, %s16630_s25 }
0x569b   :  { %v10709_v54 = vpop.xlane.xlu1 %10708 }
0x569c   :  { %16536 = vrcp.f32 %v10709_v54  ;;  %v10706_v17 = vpop.xlane.xlu0 %10705 }
0x569d   :  { %16538 = vrcp.f32 %v10706_v17 }
0x569f   :  { %v16183_v23 = vpop.permute.xlu1 %16182 }
0x56a0   :  { %v16178_v8 = vpop.permute.xlu0 %16177  ;;  %v16185_v12 = vunpack.i.h.bf16 %v16183_v23  ;;  %v16184_v55 = vunpack.i.l.bf16 %v16183_v23 }
0x56a1   :  { %v16180_v63 = vunpack.i.h.bf16 %v16178_v8  ;;  %v16179_v25 = vunpack.i.l.bf16 %v16178_v8 }
0x56a2   :  { %v15705_v31 = vpack.c.bf16 %v16185_v12, %v16184_v55 }
0x56a3   :  { %v15701_v60 = vpack.c.bf16 %v16180_v63, %v16179_v25  ;;  %v10802_v58 = vpop.permute.xlu1 %10801 }
0x56a4   :  { %v10804_v7 = vpop.permute.xlu0 %10803 }
0x56a5   :  { %15702 = vmatprep.subr.bf16.mxu0 %v15701_v60 }
0x56a6   :  { %v16537_v50 = vpop.eup %16536  ;;  %15704 = vmatpush3.bf16.msra.mxu0 %v15701_v60 }
0x56a7   :  { %v16539_v32 = vpop.eup %16538  ;;  %v16188_v62 = vpop.permute.xlu1 %16187  ;;  %15707 = vmatprep.subr.msk.bf16.mxu0 %vm16758_vm10, %v15705_v31  ;;  %v10713_v26 = vmul.f32 %v16537_v50, %v16533_v36 }
0x56a8   :  { %v10712_v24 = vmul.f32 %v16539_v32, %v16535_v6  ;;  %v16190_v38 = vunpack.i.h.bf16 %v16188_v62  ;;  %v16189_v51 = vunpack.i.l.bf16 %v16188_v62  ;;  %v11178_v3 = vpop.permute.xlu0 %11177 }
0x56aa   :  { %15149 = vmatprep.mubr.msk.f32.mxu0 %vm101_vm6, %v10712_v24  ;;  %v15715_v33 = vpack.c.bf16 %v16190_v38, %v16189_v51 }
0x56ab   :  { %15150 = vmatmul.mubr.msk.f32.vlgmr.msra.gmra.mrb[86].mxu0 %vm101_vm6, %v10713_v26  ;;  %v11180_v39 = vpop.permute.xlu1 %11179 }
0x56ac   :  { %15156 = vmatprep.mubr.msk.f32.mxu0 %vm189_vm9, %v10802_v58 }
0x56af   :  { %15710 = vmatpush3.bf16.xpose.msk.msra.mxu0 %vm16758_vm10, %v15705_v31 }
0x56b0   :  { %15717 = vmatprep.subr.msk.bf16.mxu0 %vm16758_vm10, %v15715_v33 }
0x56b6   :  { %15157 = vmatmul.mubr.msk.f32.vlgmr.msra.gmra.mrb[88].mxu0 %vm189_vm9, %v10804_v7 }
0x56b7   :  { %15720 = vmatpush3.bf16.xpose.msk.msra.mxu0 %vm16758_vm10, %v15715_v33  ;;  %15180 = vmatprep.mubr.msk.f32.mxu0 %vm189_vm9, %v11178_v3 }
0x56be   :  { %15181 = vmatmul.mubr.msk.f32.vlgmr.msra.gmra.mrb[90].mxu0 %vm189_vm9, %v11180_v39 }
0x577e   :  { %v18200_v49 = vpop.f32.mrb[86].mxu0 }
0x577f   :  { %v18202_v41 = vpop.f32.mrb[87].mxu0 }
0x5789   :  { %v15158_v42 = vpop.f32.mrb[88].mxu0 }
0x578a   :  { %v10893_v47 = vmul.f32 0.5, %v15158_v42  ;;  %v10883_v9 = vpop.f32.mrb[89].mxu0 }
0x578b   :  { %v10892_v11 = vmul.f32 0.5, %v10883_v9 }
0x578c   :  { %v10895_v28 = vadd.f32 %v18159_v16, %v10893_v47 }
0x578d   :  { %v10894_v14 = vadd.f32 %v18165_v34, %v10892_v11 }
0x578e   :  { %v10899_v15 = vsel %vm101_vm6, %v10895_v28, -inf }
0x578f   :  { %10900 = vmax.xlane.f32.xlu1 %v10899_v15  ;;  %v10896_v4 = vsel %vm101_vm6, %v10894_v14, -inf }
0x5790   :  { %10897 = vmax.xlane.f32.xlu0 %v10896_v4 }
0x5791   :  { %v15182_v57 = vpop.f32.mrb[90].mxu0 }
0x5792   :  { %v11259_v27 = vpop.f32.mrb[91].mxu0  ;;  %v11269_v10 = vmul.f32 0.5, %v15182_v57 }
0x5793   :  { %v11268_v63 = vmul.f32 0.5, %v11259_v27 }
0x5794   :  { %v11271_v59 = vadd.f32 %v18159_v16, %v11269_v10 }
0x5795   :  { %v11270_v25 = vadd.f32 %v18165_v34, %v11268_v63 }
0x5796   :  { %v11275_v61 = vsel %vm101_vm6, %v11271_v59, -inf }
0x5797   :  { %v11272_v60 = vsel %vm101_vm6, %v11270_v25, -inf }
0x57a0   :  { %16192 = vrot.lane.b32.xlu1 %v18146_v1, %s16631_s26 }
0x57a4   :  { %11469 = vrot.lane.b32.xlu1 %v18140_v29, %s16632_s27 }
0x57a8   :  { %11471 = vrot.lane.b32.xlu1 %v18137_v2, %s16632_s27 }
0x57cc   :  { %11276 = vmax.xlane.f32.xlu1 %v11275_v61 }
0x57dd   :  { %11007 = vrot.lane.b32.xlu1 %v11006_v18, %s16633_s28 }
0x57e1   :  { %16202 = vrot.lane.b32.xlu1 %v18146_v1, %s16634_s0 }
0x581c   :  { %v10901_v30 = vpop.xlane.xlu1 %10900 }
0x581d   :  { %v10903_v46 = vsub.f32 %v10895_v28, %v10901_v30  ;;  %v10898_v5 = vpop.xlane.xlu0 %10897 }
0x581e   :  { %v10902_v29 = vsub.f32 %v10894_v14, %v10898_v5 }
0x581f   :  { %v10906_v44 = vmul.f32 1.442695, %v10903_v46 }
0x5820   :  { %v10904_v43 = vmul.f32 1.442695, %v10902_v29  ;;  %v16193_v2 = vpop.permute.xlu1 %16192 }
0x5821   :  { %v16195_v37 = vunpack.i.h.bf16 %v16193_v2  ;;  %v16194_v20 = vunpack.i.l.bf16 %v16193_v2 }
0x5822   :  { %16540 = vpow2.f32 %v10904_v43 }
0x5823   :  { %v15711_v22 = vpack.c.bf16 %v16195_v37, %v16194_v20  ;;  %16542 = vpow2.f32 %v10906_v44 }
0x5824   :  { %v11470_v36 = vpop.permute.xlu1 %11469 }
0x5825   :  { %15712 = vmatprep.subr.bf16.mxu1 %v15711_v22  ;;  %15199 = vmatprep.mubr.msk.f32.mxu0 %vm189_vm9, %v11470_v36 }
0x5826   :  { %15714 = vmatpush3.bf16.msra.mxu1 %v15711_v22 }
0x5828   :  { %v11472_v17 = vpop.permute.xlu1 %11471 }
0x582c   :  { %v16541_v6 = vpop.eup %16540 }
0x582d   :  { %v10908_v19 = vsel %vm101_vm6, %v16541_v6, 0.0  ;;  %v16543_v21 = vpop.eup %16542 }
0x582e   :  { %10909 = vadd.xlane.f32.xlu0 %v10908_v19  ;;  %v10911_v54 = vsel %vm101_vm6, %v16543_v21, 0.0 }
0x5832   :  { %10912 = vadd.xlane.f32.xlu0 %v10911_v54 }
0x5848   :  { %16197 = vrot.lane.b32.xlu0 %v18146_v1, %s16635_s29 }
0x5859   :  { %v11277_v23 = vpop.xlane.xlu1 %11276 }
0x585a   :  { %v11279_v8 = vsub.f32 %v11271_v59, %v11277_v23  ;;  %v11673_v23 = vrot.slane %v18115_v35, 4 }
0x585c   :  { %v11282_v12 = vmul.f32 1.442695, %v11279_v8 }
0x585d   :  { %v11008_v55 = vpop.permute.xlu1 %11007 }
0x585e   :  { %16544 = vpow2.f32 %v11282_v12  ;;  %15166 = vmatprep.subr.msk.mxu1 %vm600_vm11, %v11008_v55 }
0x5861   :  { %v16203_v4 = vpop.permute.xlu1 %16202 }
0x5862   :  { %v16205_v57 = vunpack.i.h.bf16 %v16203_v4  ;;  %v16204_v27 = vunpack.i.l.bf16 %v16203_v4 }
0x5864   :  { %v15721_v61 = vpack.c.bf16 %v16205_v57, %v16204_v27 }
0x5867   :  { %11273 = vmax.xlane.f32.xlu0 %v11272_v60 }
0x5868   :  { %v16545_v58 = vpop.eup %16544 }
0x5869   :  { %v11287_v31 = vsel %vm101_vm6, %v16545_v58, 0.0 }
0x586b   :  { %11288 = vadd.xlane.f32.xlu0 %v11287_v31 }
0x58bb   :  { %v10910_v50 = vpop.xlane.xlu0 %10909 }
0x58bc   :  { %16546 = vrcp.f32 %v10910_v50 }
0x58bf   :  { %v10913_v32 = vpop.xlane.xlu0 %10912 }
0x58c0   :  { %16548 = vrcp.f32 %v10913_v32 }
0x58c3   :  { %v16198_v62 = vpop.permute.xlu0 %16197 }
0x58c4   :  { %v16200_v24 = vunpack.i.h.bf16 %v16198_v62  ;;  %v16199_v26 = vunpack.i.l.bf16 %v16198_v62 }
0x58c6   :  { %v16547_v38 = vpop.eup %16546  ;;  %v15725_v51 = vpack.c.bf16 %v16200_v24, %v16199_v26 }
0x58c7   :  { %v10916_v33 = vmul.f32 %v16547_v38, %v16541_v6 }
0x58c8   :  { %15727 = vmatprep.subr.msk.bf16.mxu0 %vm16758_vm10, %v15725_v51 }
0x58c9   :  { %15163 = vmatprep.mubr.msk.f32.mxu1 %vm101_vm6, %v10916_v33  ;;  %15730 = vmatpush3.bf16.xpose.msk.msra.mxu0 %vm16758_vm10, %v15725_v51 }
0x58ca   :  { %v16549_v7 = vpop.eup %16548 }
0x58cb   :  { %v10917_v3 = vmul.f32 %v16549_v7, %v16543_v21 }
0x58cd   :  { %15164 = vmatmul.mubr.msk.f32.vlgmr.msra.gmra.mrb[82].mxu1 %vm101_vm6, %v10917_v3 }
0x58ce   :  { %15167 = vmatpush3.msk.msra.mxu1 %vm600_vm11, %v11008_v55 }
0x58d0   :  { %15200 = vmatmul.mubr.msk.f32.vlgmr.msra.gmra.mrb[92].mxu0 %vm189_vm9, %v11472_v17 }
0x58f4   :  { %v11274_v39 = vpop.xlane.xlu0 %11273 }
0x58f5   :  { %v11278_v42 = vsub.f32 %v11270_v25, %v11274_v39 }
0x58f7   :  { %v11280_v47 = vmul.f32 1.442695, %v11278_v42 }
0x58f8   :  { %v11289_v28 = vpop.xlane.xlu0 %11288 }
0x58f9   :  { %16550 = vpow2.f32 %v11280_v47 }
0x5903   :  { %v16551_v9 = vpop.eup %16550 }
0x5904   :  { %v11284_v11 = vsel %vm101_vm6, %v16551_v9, 0.0 }
0x5905   :  { %11285 = vadd.xlane.f32.xlu0 %v11284_v11 }
0x591b   :  { %11092 = vrot.lane.b32.xlu0 %v18110_v45, %s16633_s28 }
0x5992   :  { %v11286_v14 = vpop.xlane.xlu0 %11285 }
0x5993   :  { %16552 = vrcp.f32 %v11286_v14 }
0x5994   :  { %16554 = vrcp.f32 %v11289_v28 }
0x5996   :  { %v11093_v15 = vpop.permute.xlu0 %11092 }
0x5997   :  { %15171 = vmatprep.subr.msk.mxu1 %vm600_vm11, %v11093_v15 }
0x599d   :  { %v16553_v29 = vpop.eup %16552 }
0x599e   :  { %v16555_v37 = vpop.eup %16554  ;;  %v11292_v20 = vmul.f32 %v16553_v29, %v16551_v9 }
0x59a0   :  { %v15165_v10 = vpop.f32.mrb[82].mxu1 }
0x59a1   :  { %v10996_v59 = vpop.f32.mrb[83].mxu1 }
0x59a2   :  { %15168 = vmatprep.mubr.msk.f32.mxu1 %vm189_vm9, %v10996_v59 }
0x59a3   :  { %15169 = vmatmul.mubr.msk.f32.vlgmr.msra.gmra.mrb[84].mxu1 %vm189_vm9, %v15165_v10  ;;  %v15201_v18 = vpop.f32.mrb[92].mxu0 }
0x59a4   :  { %15172 = vmatpush3.msk.msra.mxu1 %vm600_vm11, %v11093_v15  ;;  %v11561_v45 = vmul.f32 0.5, %v15201_v18  ;;  %15173 = vmatprep.mubr.msk.f32.mxu1 %vm189_vm9, %v18202_v41  ;;  %v11551_v30 = vpop.f32.mrb[93].mxu0  ;;  %v11293_v41 = vmul.f32 %v16555_v37, %v16545_v58 }
0x59a5   :  { %15722 = vmatprep.subr.bf16.mxu1 %v15721_v61  ;;  %v11560_v46 = vmul.f32 0.5, %v11551_v30 }
0x59a6   :  { %v11563_v5 = vadd.f32 %v18159_v16, %v11561_v45  ;;  %v13915_v45 = vld [vmem:[%s18520_s9 + $0xd] ss:$0 sm:$0xff] }
0x59a7   :  { %v11562_v44 = vadd.f32 %v18165_v34, %v11560_v46  ;;  %v18302_v46 = vld [vmem:[%s18518_s6 + $0x8] ss:$0 sm:$0xff] }
0x59a8   :  { %v11567_v43 = vsel %vm101_vm6, %v11563_v5, -inf }
0x59a9   :  { %11568 = vmax.xlane.f32.xlu0 %v11567_v43  ;;  %v11564_v2 = vsel %vm101_vm6, %v11562_v44, -inf }
0x59aa   :  { %11565 = vmax.xlane.f32.xlu1 %v11564_v2 }
0x59ab   :  { %15174 = vmatmul.mubr.msk.f32.vlgmr.msra.gmra.mrb[84].mxu1 %vm189_vm9, %v18200_v49 }
0x59ac   :  { %15724 = vmatpush3.bf16.msra.mxu1 %v15721_v61  ;;  %15187 = vmatprep.mubr.msk.f32.mxu1 %vm101_vm6, %v11292_v20  ;;  %v18288_v61 = vld [vmem:[%s18515_s5 + $0x88] sm:$0xff] }
0x59af   :  { %15188 = vmatmul.mubr.msk.f32.vlgmr.msra.gmra.mrb[86].mxu1 %vm101_vm6, %v11293_v41 }
0x5a36   :  { %v11569_v16 = vpop.xlane.xlu0 %11568 }
0x5a37   :  { %v11571_v22 = vsub.f32 %v11563_v5, %v11569_v16  ;;  %v11566_v34 = vpop.xlane.xlu1 %11565 }
0x5a38   :  { %v11570_v36 = vsub.f32 %v11562_v44, %v11566_v34 }
0x5a39   :  { %v11574_v6 = vmul.f32 1.442695, %v11571_v22 }
0x5a3a   :  { %v11572_v19 = vmul.f32 1.442695, %v11570_v36 }
0x5a3b   :  { %16556 = vpow2.f32 %v11574_v6 }
0x5a3c   :  { %16558 = vpow2.f32 %v11572_v19 }
0x5a45   :  { %v16557_v21 = vpop.eup %16556 }
0x5a46   :  { %v16559_v54 = vpop.eup %16558  ;;  %v11579_v17 = vsel %vm101_vm6, %v16557_v21, 0.0 }
0x5a47   :  { %11580 = vadd.xlane.f32.xlu1 %v11579_v17  ;;  %v11576_v49 = vsel %vm101_vm6, %v16559_v54, 0.0 }
0x5a48   :  { %11577 = vadd.xlane.f32.xlu0 %v11576_v49 }
0x5a58   :  { %16207 = vrot.lane.b32.xlu1 %v18146_v1, %s16636_s30 }
0x5a5c   :  { %11674 = vrot.lane.b32.xlu1 %v11673_v23, %s16633_s28 }
0x5a5e   :  { %11382 = vrot.lane.b32.xlu0 %v18115_v35, %s16633_s28 }
0x5a62   :  { %11762 = vrot.lane.b32.xlu0 %v18134_v0, %s16633_s28 }
0x5a82   :  { %v15189_v8 = vpop.f32.mrb[86].mxu1 }
0x5a83   :  { %v11372_v12 = vpop.f32.mrb[87].mxu1 }
0x5a84   :  { %15192 = vmatprep.mubr.msk.f32.mxu1 %vm189_vm9, %v11372_v12 }
0x5ad4   :  { %v11581_v55 = vpop.xlane.xlu1 %11580 }
0x5ad5   :  { %16560 = vrcp.f32 %v11581_v55  ;;  %v11578_v63 = vpop.xlane.xlu0 %11577 }
0x5ad6   :  { %16562 = vrcp.f32 %v11578_v63 }
0x5ad8   :  { %v16208_v25 = vpop.permute.xlu1 %16207 }
0x5ad9   :  { %v16210_v1 = vunpack.i.h.bf16 %v16208_v25  ;;  %v16209_v60 = vunpack.i.l.bf16 %v16208_v25  ;;  %v11383_v58 = vpop.permute.xlu0 %11382 }
0x5ada   :  { %15190 = vmatprep.subr.msk.mxu1 %vm600_vm11, %v11383_v58 }
0x5adb   :  { %v15731_v31 = vpack.c.bf16 %v16210_v1, %v16209_v60  ;;  %15191 = vmatpush3.msk.msra.mxu1 %vm600_vm11, %v11383_v58 }
0x5adc   :  { %15193 = vmatmul.mubr.msk.f32.vlgmr.msra.gmra.mrb[84].mxu1 %vm189_vm9, %v15189_v8  ;;  %v11675_v35 = vpop.permute.xlu1 %11674 }
0x5add   :  { %15732 = vmatprep.subr.bf16.mxu1 %v15731_v31  ;;  %v11763_v38 = vpop.permute.xlu0 %11762 }
0x5ade   :  { %15734 = vmatpush3.bf16.msra.mxu1 %v15731_v31 }
0x5adf   :  { %v16561_v0 = vpop.eup %16560  ;;  %15209 = vmatprep.subr.msk.mxu1 %vm600_vm11, %v11675_v35 }
0x5ae0   :  { %v16563_v50 = vpop.eup %16562  ;;  %v11585_v62 = vmul.f32 %v16561_v0, %v16557_v21 }
0x5ae1   :  { %v11584_v32 = vmul.f32 %v16563_v50, %v16559_v54 }
0x5ae3   :  { %15206 = vmatprep.mubr.msk.f32.mxu1 %vm101_vm6, %v11584_v32 }
0x5ae4   :  { %15207 = vmatmul.mubr.msk.f32.vlgmr.msra.gmra.mrb[88].mxu1 %vm101_vm6, %v11585_v62  ;;  %v18337_v62 = vld [vmem:[%s18519_s2 + $0x8] sm:$0xff] }
0x5ae5   :  { %15210 = vmatpush3.msk.msra.mxu1 %vm600_vm11, %v11675_v35 }
0x5bb7   :  { %v15208_v24 = vpop.f32.mrb[88].mxu1 }
0x5bb8   :  { %v11664_v26 = vpop.f32.mrb[89].mxu1 }
0x5bb9   :  { %15211 = vmatprep.mubr.msk.f32.mxu1 %vm189_vm9, %v11664_v26  ;;  %v18343_v26 = vld [vmem:[%s18519_s2] sm:$0xff] }
0x5bba   :  { %15212 = vmatmul.mubr.msk.f32.vlgmr.msra.gmra.mrb[84].mxu1 %vm189_vm9, %v15208_v24 }
0x5c8d   :  { %v15213_v51 = vpop.f32.mrb[84].mxu1 }
0x5c8e   :  { %v11766_v33 = vadd.f32 %v15213_v51, %v11763_v38  ;;  %v11750_v7 = vpop.f32.mrb[85].mxu1 }
0x5c8f   :  { %v11765_v3 = vadd.f32 %v11763_v38, %v11750_v7 }
0x5c90   :  { %v11768_v39 = vadd.f32 %v11766_v33, %v18125_v53 }
0x5c91   :  { %v11767_v42 = vadd.f32 %v11765_v3, %v18123_v56  ;;  %v18283_v56 = vld [vmem:[%s18515_s5 + $0x80] sm:$0xff] }
0x5c92   :  { %v11773_v47 = vsel %vm101_vm6, %v11768_v39, 0.0  ;;  %v16211_v18 = vpack.i.bf16 %v18288_v61, %v18283_v56  ;;  %v15735_v30 = vpack.c.bf16 %v18288_v61, %v18283_v56 }
0x5c93   :  { %11774 = vadd.xlane.f32.xlu0 %v11773_v47  ;;  %v11770_v9 = vsel %vm101_vm6, %v11767_v42, 0.0 }
0x5c94   :  { %11771 = vadd.xlane.f32.xlu1 %v11770_v9  ;;  %15736 = vmatprep.subr.bf16.mxu0 %v15735_v30 }
0x5c95   :  { %15738 = vmatpush3.bf16.msra.mxu0 %v15735_v30 }
0x5d20   :  { %v11775_v11 = vpop.xlane.xlu0 %11774 }
0x5d21   :  { %v11777_v28 = vmul.f32 0.0625, %v11775_v11  ;;  %v11772_v14 = vpop.xlane.xlu1 %11771 }
0x5d22   :  { %v11776_v15 = vmul.f32 0.0625, %v11772_v14 }
0x5d23   :  { %v11779_v4 = vsub.f32 %v11768_v39, %v11777_v28 }
0x5d24   :  { %v11778_v57 = vsub.f32 %v11767_v42, %v11776_v15 }
0x5d25   :  { %v11781_v27 = vmul.f32 %v11779_v4, %v11779_v4 }
0x5d26   :  { %v11780_v10 = vmul.f32 %v11778_v57, %v11778_v57 }
0x5d27   :  { %v11785_v59 = vsel %vm101_vm6, %v11781_v27, 0.0 }
0x5d28   :  { %11786 = vadd.xlane.f32.xlu1 %v11785_v59  ;;  %v11782_v53 = vsel %vm101_vm6, %v11780_v10, 0.0 }
0x5d29   :  { %11783 = vadd.xlane.f32.xlu0 %v11782_v53 }
0x5d39   :  { %16212 = vrot.lane.b32.xlu1 %v16211_v18, %s16625_s1 }
0x5d3d   :  { %11905 = vrot.lane.b32.xlu1 %v18302_v46, %s16625_s1 }
0x5d3f   :  { %11803 = vrot.lane.b32.xlu0 %v13915_v45, %s16625_s1 }
0x5db5   :  { %v11787_v5 = vpop.xlane.xlu1 %11786 }
0x5db6   :  { %v11789_v29 = vmul.f32 0.0625, %v11787_v5  ;;  %v11784_v44 = vpop.xlane.xlu0 %11783 }
0x5db7   :  { %v11788_v43 = vmul.f32 0.0625, %v11784_v44 }
0x5db8   :  { %v11791_v2 = vadd.f32 1e-05, %v11789_v29 }
0x5db9   :  { %v11790_v37 = vadd.f32 1e-05, %v11788_v43  ;;  %v16213_v20 = vpop.permute.xlu1 %16212 }
0x5dba   :  { %16564 = vrsqrt.f32 %v11791_v2  ;;  %v16215_v41 = vunpack.i.h.bf16 %v16213_v20  ;;  %v16214_v16 = vunpack.i.l.bf16 %v16213_v20  ;;  %v11804_v21 = vpop.permute.xlu0 %11803 }
0x5dbb   :  { %16566 = vrsqrt.f32 %v11790_v37 }
0x5dbc   :  { %v15739_v22 = vpack.c.bf16 %v16215_v41, %v16214_v16 }
0x5dbd   :  { %v11906_v63 = vpop.permute.xlu1 %11905 }
0x5dbe   :  { %15740 = vmatprep.subr.bf16.mxu0 %v15739_v22 }
0x5dc4   :  { %v16565_v34 = vpop.eup %16564 }
0x5dc5   :  { %v16567_v36 = vpop.eup %16566  ;;  %v11795_v6 = vmul.f32 %v16565_v34, %v11779_v4 }
0x5dc6   :  { %v11794_v19 = vmul.f32 %v16567_v36, %v11778_v57 }
0x5dc7   :  { %v11801_v54 = vmul.f32 %v13915_v45, %v11795_v6 }
0x5dc8   :  { %v11800_v17 = vmul.f32 %v13915_v45, %v11794_v19 }
0x5dc9   :  { %v18308_v23 = vadd.f32 %v11804_v21, %v11801_v54 }
0x5dca   :  { %v18306_v49 = vadd.f32 %v11804_v21, %v11800_v17 }
0x5dcc   :  { %15218 = vmatprep.mubr.msk.f32.mxu0 %vm101_vm6, %v18306_v49 }
0x5dcd   :  { %15219 = vmatmul.mubr.msk.f32.vlgmr.msra.gmra.mrb[94].mxu0 %vm101_vm6, %v18308_v23 }
0x5dce   :  { %15742 = vmatpush3.bf16.msra.mxu0 %v15739_v22  ;;  %15225 = vmatprep.mubr.msk.f32.mxu0 %vm101_vm6, %v17550_v13 }
0x5dd1   :  { %15226 = vmatmul.mubr.msk.f32.vlgmr.msra.gmra.mrb[96].mxu0 %vm101_vm6, %v17558_v48 }
0x5ea0   :  { %v15220_v8 = vpop.f32.mrb[94].mxu0 }
0x5ea1   :  { %v11887_v12 = vpop.f32.mrb[95].mxu0  ;;  %v18330_v13 = vadd.f32 %v15220_v8, %v18302_v46 }
0x5ea2   :  { %v18319_v55 = vadd.f32 %v18302_v46, %v11887_v12 }
0x5ea4   :  { %15232 = vmatprep.mubr.msk.f32.mxu1 %vm189_vm9, %v18319_v55  ;;  %v15227_v25 = vpop.f32.mrb[96].mxu0 }
0x5ea5   :  { %v11980_v1 = vadd.f32 %v15227_v25, %v11906_v63  ;;  %v11974_v60 = vpop.f32.mrb[97].mxu0 }
0x5ea6   :  { %v11975_v58 = vadd.f32 %v11974_v60, %v11906_v63 }
0x5ea8   :  { %v15743_v31 = vpack.c.bf16 %v11980_v1, %v11975_v58  ;;  %v18323_v35 = vpack.i.bf16 %v11980_v1, %v11975_v58 }
0x5eaa   :  { %15745 = vmatprep.subr.msk.bf16.mxu1 %vm16758_vm10, %v15743_v31 }
0x5eab   :  { %15748 = vmatpush3.bf16.xpose.msk.msra.mxu1 %vm16758_vm10, %v15743_v31 }
0x5eb2   :  { %15233 = vmatmul.mubr.msk.f32.vlgmr.msra.gmra.mrb[90].mxu1 %vm189_vm9, %v18330_v13 }
0x5f85   :  { %v15234_v48 = vpop.f32.mrb[90].mxu1 }
0x5f86   :  { %v12071_v0 = vmul.f32 0.5, %v15234_v48  ;;  %v12061_v50 = vpop.f32.mrb[91].mxu1 }
0x5f87   :  { %v12070_v32 = vmul.f32 0.5, %v12061_v50 }
0x5f88   :  { %v12073_v24 = vadd.f32 %v18337_v62, %v12071_v0 }
0x5f89   :  { %v12072_v38 = vadd.f32 %v18343_v26, %v12070_v32 }
0x5f8a   :  { %v12077_v51 = vsel %vm101_vm6, %v12073_v24, -inf }
0x5f8b   :  { %12078 = vmax.xlane.f32.xlu1 %v12077_v51  ;;  %v12074_v33 = vsel %vm101_vm6, %v12072_v38, -inf }
0x5f8c   :  { %12075 = vmax.xlane.f32.xlu0 %v12074_v33 }
0x5f9c   :  { %16217 = vrot.lane.b32.xlu1 %v18323_v35, %s16625_s1 }
0x5fa0   :  { %12183 = vrot.lane.b32.xlu1 %v18319_v55, %s16627_s22 }
0x5fa4   :  { %12185 = vrot.lane.b32.xlu1 %v18330_v13, %s16627_s22 }
0x5fa8   :  { %12558 = vrot.lane.b32.xlu1 %v18319_v55, %s16630_s25 }
0x6018   :  { %v12079_v7 = vpop.xlane.xlu1 %12078 }
0x6019   :  { %v12081_v3 = vsub.f32 %v12073_v24, %v12079_v7  ;;  %v12076_v39 = vpop.xlane.xlu0 %12075 }
0x601a   :  { %v12080_v42 = vsub.f32 %v12072_v38, %v12076_v39 }
0x601b   :  { %v12084_v47 = vmul.f32 1.442695, %v12081_v3 }
0x601c   :  { %v12082_v9 = vmul.f32 1.442695, %v12080_v42  ;;  %v16218_v11 = vpop.permute.xlu1 %16217 }
0x601d   :  { %16568 = vpow2.f32 %v12084_v47  ;;  %v16220_v28 = vunpack.i.h.bf16 %v16218_v11  ;;  %v16219_v14 = vunpack.i.l.bf16 %v16218_v11 }
0x601e   :  { %16570 = vpow2.f32 %v12082_v9 }
0x601f   :  { %v15749_v15 = vpack.c.bf16 %v16220_v28, %v16219_v14 }
0x6020   :  { %v12184_v2 = vpop.permute.xlu1 %12183 }
0x6021   :  { %15750 = vmatprep.subr.bf16.mxu0 %v15749_v15 }
0x6022   :  { %15752 = vmatpush3.bf16.msra.mxu0 %v15749_v15 }
0x6024   :  { %v12186_v34 = vpop.permute.xlu1 %12185 }
0x6027   :  { %v16569_v4 = vpop.eup %16568 }
0x6028   :  { %v12089_v57 = vsel %vm101_vm6, %v16569_v4, 0.0  ;;  %v16571_v27 = vpop.eup %16570  ;;  %v12559_v36 = vpop.permute.xlu1 %12558 }
0x6029   :  { %12090 = vadd.xlane.f32.xlu0 %v12089_v57  ;;  %v12086_v10 = vsel %vm101_vm6, %v16571_v27, 0.0 }
0x602d   :  { %12087 = vadd.xlane.f32.xlu0 %v12086_v10 }
0x6043   :  { %16222 = vrot.lane.b32.xlu0 %v18323_v35, %s16627_s22 }
0x6047   :  { %16227 = vrot.lane.b32.xlu0 %v18323_v35, %s16630_s25 }
0x604b   :  { %12560 = vrot.lane.b32.xlu0 %v18330_v13, %s16630_s25 }
0x60b6   :  { %v12091_v59 = vpop.xlane.xlu0 %12090 }
0x60b7   :  { %16572 = vrcp.f32 %v12091_v59 }
0x60ba   :  { %v12088_v53 = vpop.xlane.xlu0 %12087 }
0x60bb   :  { %16574 = vrcp.f32 %v12088_v53 }
0x60be   :  { %v16223_v18 = vpop.permute.xlu0 %16222 }
0x60bf   :  { %v16225_v45 = vunpack.i.h.bf16 %v16223_v18  ;;  %v16224_v30 = vunpack.i.l.bf16 %v16223_v18 }
0x60c1   :  { %v15753_v5 = vpack.c.bf16 %v16225_v45, %v16224_v30  ;;  %v16573_v44 = vpop.eup %16572 }
0x60c2   :  { %v16228_v29 = vpop.permute.xlu0 %16227  ;;  %v12095_v16 = vmul.f32 %v16573_v44, %v16569_v4 }
0x60c3   :  { %15755 = vmatprep.subr.msk.bf16.mxu0 %vm16758_vm10, %v15753_v5  ;;  %v16230_v37 = vunpack.i.h.bf16 %v16228_v29  ;;  %v16229_v20 = vunpack.i.l.bf16 %v16228_v29 }
0x60c5   :  { %v16575_v43 = vpop.eup %16574  ;;  %v15763_v22 = vpack.c.bf16 %v16230_v37, %v16229_v20 }
0x60c6   :  { %v12094_v41 = vmul.f32 %v16575_v43, %v16571_v27  ;;  %v12561_v6 = vpop.permute.xlu0 %12560 }
0x60c8   :  { %15239 = vmatprep.mubr.msk.f32.mxu0 %vm101_vm6, %v12094_v41 }
0x60c9   :  { %15240 = vmatmul.mubr.msk.f32.vlgmr.msra.gmra.mrb[98].mxu0 %vm101_vm6, %v12095_v16 }
0x60ca   :  { %15758 = vmatpush3.bf16.xpose.msk.msra.mxu0 %vm16758_vm10, %v15753_v5  ;;  %15246 = vmatprep.mubr.msk.f32.mxu0 %vm189_vm9, %v12184_v2 }
0x60cb   :  { %15765 = vmatprep.subr.msk.bf16.mxu0 %vm16758_vm10, %v15763_v22 }
0x60d1   :  { %15247 = vmatmul.mubr.msk.f32.vlgmr.msra.gmra.mrb[100].mxu0 %vm189_vm9, %v12186_v34 }
0x60d2   :  { %15768 = vmatpush3.bf16.xpose.msk.msra.mxu0 %vm16758_vm10, %v15763_v22  ;;  %15270 = vmatprep.mubr.msk.f32.mxu0 %vm189_vm9, %v12559_v36 }
0x60d9   :  { %15271 = vmatmul.mubr.msk.f32.vlgmr.msra.gmra.mrb[102].mxu0 %vm189_vm9, %v12561_v6  ;;  %v12387_v6 = vrot.slane %v18283_v56, 4 }
0x619c   :  { %v18378_v19 = vpop.f32.mrb[98].mxu0 }
0x619d   :  { %v18380_v21 = vpop.f32.mrb[99].mxu0 }
0x61a4   :  { %v15248_v54 = vpop.f32.mrb[100].mxu0 }
0x61a5   :  { %v12275_v17 = vmul.f32 0.5, %v15248_v54  ;;  %v12265_v8 = vpop.f32.mrb[101].mxu0 }
0x61a6   :  { %v12274_v12 = vmul.f32 0.5, %v12265_v8 }
0x61a7   :  { %v12277_v63 = vadd.f32 %v18337_v62, %v12275_v17 }
0x61a8   :  { %v12276_v25 = vadd.f32 %v18343_v26, %v12274_v12 }
0x61a9   :  { %v12281_v1 = vsel %vm101_vm6, %v12277_v63, -inf }
0x61aa   :  { %12282 = vmax.xlane.f32.xlu0 %v12281_v1  ;;  %v12278_v60 = vsel %vm101_vm6, %v12276_v25, -inf }
0x61ab   :  { %12279 = vmax.xlane.f32.xlu1 %v12278_v60 }
0x61ac   :  { %v15272_v58 = vpop.f32.mrb[102].mxu0 }
0x61ad   :  { %v12640_v31 = vpop.f32.mrb[103].mxu0  ;;  %v12650_v42 = vmul.f32 0.5, %v15272_v58 }
0x61ae   :  { %v12649_v39 = vmul.f32 0.5, %v12640_v31 }
0x61af   :  { %v12652_v9 = vadd.f32 %v18337_v62, %v12650_v42 }
0x61b0   :  { %v12651_v47 = vadd.f32 %v18343_v26, %v12649_v39 }
0x61b1   :  { %v12656_v28 = vsel %vm101_vm6, %v12652_v9, -inf }
0x61b2   :  { %v12653_v11 = vsel %vm101_vm6, %v12651_v47, -inf }
0x6237   :  { %v12283_v48 = vpop.xlane.xlu0 %12282 }
0x6238   :  { %v12285_v0 = vsub.f32 %v12277_v63, %v12283_v48  ;;  %v12280_v50 = vpop.xlane.xlu1 %12279 }
0x6239   :  { %v12284_v32 = vsub.f32 %v12276_v25, %v12280_v50 }
0x623a   :  { %v12288_v24 = vmul.f32 1.442695, %v12285_v0 }
0x623b   :  { %v12286_v38 = vmul.f32 1.442695, %v12284_v32 }
0x623c   :  { %16576 = vpow2.f32 %v12288_v24 }
0x623d   :  { %16578 = vpow2.f32 %v12286_v38 }
0x6246   :  { %v16577_v51 = vpop.eup %16576 }
0x6247   :  { %v16579_v33 = vpop.eup %16578  ;;  %v12293_v7 = vsel %vm101_vm6, %v16577_v51, 0.0 }
0x6248   :  { %12294 = vadd.xlane.f32.xlu1 %v12293_v7  ;;  %v12290_v3 = vsel %vm101_vm6, %v16579_v33, 0.0 }
0x6249   :  { %12291 = vadd.xlane.f32.xlu0 %v12290_v3 }
0x6259   :  { %16237 = vrot.lane.b32.xlu1 %v18323_v35, %s16632_s27 }
0x625d   :  { %12849 = vrot.lane.b32.xlu1 %v18319_v55, %s16632_s27 }
0x625f   :  { %16232 = vrot.lane.b32.xlu0 %v18323_v35, %s16626_s21 }
0x6263   :  { %12851 = vrot.lane.b32.xlu0 %v18330_v13, %s16632_s27 }
0x6281   :  { %12654 = vmax.xlane.f32.xlu1 %v12653_v11 }
0x6282   :  { %12657 = vmax.xlane.f32.xlu0 %v12656_v28 }
0x62d5   :  { %v12295_v14 = vpop.xlane.xlu1 %12294 }
0x62d6   :  { %16580 = vrcp.f32 %v12295_v14  ;;  %v12292_v55 = vpop.xlane.xlu0 %12291 }
0x62d7   :  { %16582 = vrcp.f32 %v12292_v55 }
0x62d9   :  { %v16238_v15 = vpop.permute.xlu1 %16237 }
0x62da   :  { %v16240_v4 = vunpack.i.h.bf16 %v16238_v15  ;;  %v16239_v57 = vunpack.i.l.bf16 %v16238_v15  ;;  %v16233_v13 = vpop.permute.xlu0 %16232  ;;  %v13053_v15 = vrot.slane %v18288_v61, 4 }
0x62db   :  { %v16235_v27 = vunpack.i.h.bf16 %v16233_v13  ;;  %v16234_v10 = vunpack.i.l.bf16 %v16233_v13 }
0x62dc   :  { %v15773_v59 = vpack.c.bf16 %v16240_v4, %v16239_v57 }
0x62dd   :  { %v15759_v53 = vpack.c.bf16 %v16235_v27, %v16234_v10  ;;  %v12850_v18 = vpop.permute.xlu1 %12849 }
0x62de   :  { %15775 = vmatprep.subr.msk.bf16.mxu0 %vm16758_vm10, %v15773_v59  ;;  %15289 = vmatprep.mubr.msk.f32.mxu0 %vm189_vm9, %v12850_v18  ;;  %v12852_v44 = vpop.permute.xlu0 %12851 }
0x62df   :  { %15760 = vmatprep.subr.bf16.mxu1 %v15759_v53  ;;  %15778 = vmatpush3.bf16.xpose.msk.msra.mxu0 %vm16758_vm10, %v15773_v59 }
0x62e0   :  { %v16581_v45 = vpop.eup %16580  ;;  %15762 = vmatpush3.bf16.msra.mxu1 %v15759_v53 }
0x62e1   :  { %v16583_v30 = vpop.eup %16582  ;;  %v12299_v29 = vmul.f32 %v16581_v45, %v16577_v51 }
0x62e2   :  { %v12298_v5 = vmul.f32 %v16583_v30, %v16579_v33 }
0x62e4   :  { %15253 = vmatprep.mubr.msk.f32.mxu1 %vm101_vm6, %v12298_v5 }
0x62e5   :  { %15254 = vmatmul.mubr.msk.f32.vlgmr.msra.gmra.mrb[92].mxu1 %vm101_vm6, %v12299_v29 }
0x62e6   :  { %15290 = vmatmul.mubr.msk.f32.vlgmr.msra.gmra.mrb[104].mxu0 %vm189_vm9, %v12852_v44 }
0x630e   :  { %v12655_v43 = vpop.xlane.xlu1 %12654 }
0x630f   :  { %v12659_v2 = vsub.f32 %v12651_v47, %v12655_v43  ;;  %v12658_v37 = vpop.xlane.xlu0 %12657 }
0x6310   :  { %v12660_v20 = vsub.f32 %v12652_v9, %v12658_v37 }
0x6311   :  { %v12661_v41 = vmul.f32 1.442695, %v12659_v2 }
0x6312   :  { %v12663_v16 = vmul.f32 1.442695, %v12660_v20 }
0x6313   :  { %16584 = vpow2.f32 %v12661_v41 }
0x6314   :  { %16586 = vpow2.f32 %v12663_v16 }
0x631d   :  { %v16585_v40 = vpop.eup %16584 }
0x631e   :  { %v16587_v22 = vpop.eup %16586  ;;  %v12665_v34 = vsel %vm101_vm6, %v16585_v40, 0.0 }
0x631f   :  { %12666 = vadd.xlane.f32.xlu0 %v12665_v34  ;;  %v12668_v36 = vsel %vm101_vm6, %v16587_v22, 0.0  ;;  %v13957_v34 = vld [vmem:[%s18520_s9 + $0xe] ss:$0 sm:$0xff] }
0x6320   :  { %12669 = vadd.xlane.f32.xlu1 %v12668_v36 }
0x6331   :  { %12473 = vrot.lane.b32.xlu1 %v18283_v56, %s16633_s28 }
0x6335   :  { %16242 = vrot.lane.b32.xlu1 %v18323_v35, %s16629_s24  ;;  %12388 = vrot.lane.b32.xlu0 %v12387_v6, %s16633_s28 }
0x63ac   :  { %v12667_v54 = vpop.xlane.xlu0 %12666 }
0x63ad   :  { %v12670_v17 = vpop.xlane.xlu1 %12669  ;;  %16588 = vrcp.f32 %v12667_v54 }
0x63ae   :  { %16590 = vrcp.f32 %v12670_v17 }
0x63b0   :  { %v12389_v8 = vpop.permute.xlu0 %12388 }
0x63b1   :  { %v12474_v12 = vpop.permute.xlu1 %12473  ;;  %15256 = vmatprep.subr.msk.mxu1 %vm600_vm11, %v12389_v8 }
0x63b2   :  { %15257 = vmatpush3.msk.msra.mxu1 %vm600_vm11, %v12389_v8 }
0x63b3   :  { %15261 = vmatprep.subr.msk.mxu1 %vm600_vm11, %v12474_v12 }
0x63b5   :  { %v16243_v63 = vpop.permute.xlu1 %16242 }
0x63b6   :  { %v16245_v25 = vunpack.i.h.bf16 %v16243_v63  ;;  %v16244_v1 = vunpack.i.l.bf16 %v16243_v63 }
0x63b7   :  { %v16589_v51 = vpop.eup %16588 }
0x63b8   :  { %v15255_v56 = vpop.f32.mrb[92].mxu1  ;;  %v15769_v0 = vpack.c.bf16 %v16245_v25, %v16244_v1  ;;  %v16591_v7 = vpop.eup %16590  ;;  %v12673_v3 = vmul.f32 %v16589_v51, %v16585_v40  ;;  %v13187_v1 = vld [vmem:[%s18521_s7 + $0x50] sm:$0xff] }
0x63b9   :  { %v12378_v60 = vpop.f32.mrb[93].mxu1  ;;  %v15291_v58 = vpop.f32.mrb[104].mxu0 }
0x63ba   :  { %v12941_v31 = vmul.f32 0.5, %v15291_v58  ;;  %15258 = vmatprep.mubr.msk.f32.mxu1 %vm189_vm9, %v12378_v60  ;;  %v12931_v48 = vpop.f32.mrb[105].mxu0 }
0x63bb   :  { %v12940_v50 = vmul.f32 0.5, %v12931_v48  ;;  %15259 = vmatmul.mubr.msk.f32.vlgmr.msra.gmra.mrb[94].mxu1 %vm189_vm9, %v15255_v56  ;;  %v13188_v56 = vld [vmem:[%s18521_s7 + $0x58] sm:$0xff] }
0x63bc   :  { %v12943_v32 = vadd.f32 %v18337_v62, %v12941_v31  ;;  %15262 = vmatpush3.msk.msra.mxu1 %vm600_vm11, %v12474_v12  ;;  %15263 = vmatprep.mubr.msk.f32.mxu1 %vm189_vm9, %v18380_v21  ;;  %v12674_v62 = vmul.f32 %v16591_v7, %v16587_v22  ;;  %v15783_v60 = vpack.c.bf16 %v13188_v56, %v13187_v1 }
0x63bd   :  { %v12942_v24 = vadd.f32 %v18343_v26, %v12940_v50  ;;  %15770 = vmatprep.subr.bf16.mxu1 %v15769_v0  ;;  %v16251_v58 = vpack.i.bf16 %v13188_v56, %v13187_v1 }
0x63be   :  { %v12947_v38 = vsel %vm101_vm6, %v12943_v32, -inf  ;;  %15784 = vmatprep.subr.bf16.mxu0 %v15783_v60 }
0x63bf   :  { %12948 = vmax.xlane.f32.xlu1 %v12947_v38  ;;  %v12944_v33 = vsel %vm101_vm6, %v12942_v24, -inf  ;;  %15786 = vmatpush3.bf16.msra.mxu0 %v15783_v60 }
0x63c0   :  { %12945 = vmax.xlane.f32.xlu0 %v12944_v33 }
0x63c3   :  { %15264 = vmatmul.mubr.msk.f32.vlgmr.msra.gmra.mrb[94].mxu1 %vm189_vm9, %v18378_v19 }
0x63c4   :  { %15772 = vmatpush3.bf16.msra.mxu1 %v15769_v0  ;;  %15277 = vmatprep.mubr.msk.f32.mxu1 %vm101_vm6, %v12673_v3 }
0x63c7   :  { %15278 = vmatmul.mubr.msk.f32.vlgmr.msra.gmra.mrb[96].mxu1 %vm101_vm6, %v12674_v62 }
0x63d0   :  { %12762 = vrot.lane.b32.xlu1 %v18288_v61, %s16633_s28 }
0x63d4   :  { %13054 = vrot.lane.b32.xlu1 %v13053_v15, %s16633_s28 }
0x63d8   :  { %13141 = vrot.lane.b32.xlu1 %v18302_v46, %s16633_s28 }
0x644c   :  { %v12949_v26 = vpop.xlane.xlu1 %12948 }
0x644d   :  { %v12951_v21 = vsub.f32 %v12943_v32, %v12949_v26  ;;  %v12946_v39 = vpop.xlane.xlu0 %12945 }
0x644e   :  { %v12950_v42 = vsub.f32 %v12942_v24, %v12946_v39 }
0x644f   :  { %v12954_v47 = vmul.f32 1.442695, %v12951_v21 }
0x6450   :  { %v12952_v9 = vmul.f32 1.442695, %v12950_v42  ;;  %v12763_v11 = vpop.permute.xlu1 %12762 }
0x6451   :  { %16592 = vpow2.f32 %v12954_v47  ;;  %15280 = vmatprep.subr.msk.mxu1 %vm600_vm11, %v12763_v11 }
0x6452   :  { %15281 = vmatpush3.msk.msra.mxu1 %vm600_vm11, %v12763_v11  ;;  %16594 = vpow2.f32 %v12952_v9 }
0x6454   :  { %v13055_v61 = vpop.permute.xlu1 %13054 }
0x6458   :  { %v13142_v44 = vpop.permute.xlu1 %13141 }
0x645b   :  { %v16593_v19 = vpop.eup %16592 }
0x645c   :  { %v12959_v28 = vsel %vm101_vm6, %v16593_v19, 0.0  ;;  %v16595_v14 = vpop.eup %16594 }
0x645d   :  { %12960 = vadd.xlane.f32.xlu0 %v12959_v28  ;;  %v12956_v55 = vsel %vm101_vm6, %v16595_v14, 0.0 }
0x6461   :  { %12957 = vadd.xlane.f32.xlu0 %v12956_v55 }
0x6477   :  { %16247 = vrot.lane.b32.xlu0 %v18323_v35, %s16635_s29 }
0x649a   :  { %v15279_v4 = vpop.f32.mrb[96].mxu1 }
0x649b   :  { %v12753_v57 = vpop.f32.mrb[97].mxu1 }
0x649c   :  { %15282 = vmatprep.mubr.msk.f32.mxu1 %vm189_vm9, %v12753_v57 }
0x649d   :  { %15283 = vmatmul.mubr.msk.f32.vlgmr.msra.gmra.mrb[94].mxu1 %vm189_vm9, %v15279_v4 }
0x64ea   :  { %v12961_v13 = vpop.xlane.xlu0 %12960 }
0x64eb   :  { %16596 = vrcp.f32 %v12961_v13 }
0x64ee   :  { %v12958_v27 = vpop.xlane.xlu0 %12957 }
0x64ef   :  { %16598 = vrcp.f32 %v12958_v27 }
0x64f2   :  { %v16248_v10 = vpop.permute.xlu0 %16247 }
0x64f3   :  { %v16250_v59 = vunpack.i.h.bf16 %v16248_v10  ;;  %v16249_v35 = vunpack.i.l.bf16 %v16248_v10 }
0x64f5   :  { %v15779_v53 = vpack.c.bf16 %v16250_v59, %v16249_v35  ;;  %v16597_v18 = vpop.eup %16596 }
0x64f6   :  { %v12965_v30 = vmul.f32 %v16597_v18, %v16593_v19  ;;  %v13958_v19 = vld [vmem:[%s18522_s8 + $0x5] ss:$0 sm:$0xff] }
0x64f7   :  { %15780 = vmatprep.subr.bf16.mxu1 %v15779_v53 }
0x64f8   :  { %15782 = vmatpush3.bf16.msra.mxu1 %v15779_v53 }
0x64f9   :  { %v16599_v45 = vpop.eup %16598  ;;  %15299 = vmatprep.subr.msk.mxu1 %vm600_vm11, %v13055_v61 }
0x64fa   :  { %v12964_v46 = vmul.f32 %v16599_v45, %v16595_v14 }
0x64fc   :  { %15296 = vmatprep.mubr.msk.f32.mxu1 %vm101_vm6, %v12964_v46 }
0x64fd   :  { %15297 = vmatmul.mubr.msk.f32.vlgmr.msra.gmra.mrb[98].mxu1 %vm101_vm6, %v12965_v30 }
0x64fe   :  { %15300 = vmatpush3.msk.msra.mxu1 %vm600_vm11, %v13055_v61 }
0x65d0   :  { %v15298_v5 = vpop.f32.mrb[98].mxu1 }
0x65d1   :  { %v13044_v29 = vpop.f32.mrb[99].mxu1 }
0x65d2   :  { %15301 = vmatprep.mubr.msk.f32.mxu1 %vm189_vm9, %v13044_v29 }
0x65d3   :  { %15302 = vmatmul.mubr.msk.f32.vlgmr.msra.gmra.mrb[94].mxu1 %vm189_vm9, %v15298_v5 }
0x66a6   :  { %v15303_v43 = vpop.f32.mrb[94].mxu1 }
0x66a7   :  { %v13145_v2 = vadd.f32 %v15303_v43, %v13142_v44  ;;  %v13130_v37 = vpop.f32.mrb[95].mxu1 }
0x66a8   :  { %v13144_v20 = vadd.f32 %v13142_v44, %v13130_v37 }
0x66a9   :  { %v13147_v41 = vadd.f32 %v13145_v2, %v18308_v23 }
0x66aa   :  { %v13146_v16 = vadd.f32 %v13144_v20, %v18306_v49 }
0x66ab   :  { %v13152_v40 = vsel %vm101_vm6, %v13147_v41, 0.0 }
0x66ac   :  { %13153 = vadd.xlane.f32.xlu1 %v13152_v40  ;;  %v13149_v22 = vsel %vm101_vm6, %v13146_v16, 0.0 }
0x66ad   :  { %13150 = vadd.xlane.f32.xlu0 %v13149_v22 }
0x66bd   :  { %13182 = vrot.lane.b32.xlu1 %v13957_v34, %s16625_s1 }
0x66c1   :  { %13284 = vrot.lane.b32.xlu1 %v13958_v19, %s16628_s23 }
0x6739   :  { %v13154_v36 = vpop.xlane.xlu1 %13153 }
0x673a   :  { %v13156_v6 = vmul.f32 0.0625, %v13154_v36  ;;  %v13151_v54 = vpop.xlane.xlu0 %13150 }
0x673b   :  { %v13155_v17 = vmul.f32 0.0625, %v13151_v54 }
0x673c   :  { %v13158_v8 = vsub.f32 %v13147_v41, %v13156_v6  ;;  %v13965_v41 = vld [vmem:[%s18520_s9 + $0xf] ss:$0 sm:$0xff] }
0x673d   :  { %v13157_v23 = vsub.f32 %v13146_v16, %v13155_v17  ;;  %v13183_v26 = vpop.permute.xlu1 %13182 }
0x673e   :  { %v13160_v63 = vmul.f32 %v13158_v8, %v13158_v8 }
0x673f   :  { %v13159_v12 = vmul.f32 %v13157_v23, %v13157_v23 }
0x6740   :  { %v13164_v25 = vsel %vm101_vm6, %v13160_v63, 0.0 }
0x6741   :  { %v13161_v49 = vsel %vm101_vm6, %v13159_v12, 0.0  ;;  %v13285_v13 = vpop.permute.xlu1 %13284 }
0x6742   :  { %13162 = vadd.xlane.f32.xlu0 %v13161_v49 }
0x6746   :  { %13165 = vadd.xlane.f32.xlu0 %v13164_v25 }
0x675c   :  { %16252 = vrot.lane.b32.xlu0 %v16251_v58, %s16628_s23 }
0x67cf   :  { %v13163_v31 = vpop.xlane.xlu0 %13162 }
0x67d0   :  { %v13167_v48 = vmul.f32 0.0625, %v13163_v31 }
0x67d2   :  { %v13169_v0 = vadd.f32 1e-05, %v13167_v48 }
0x67d3   :  { %v13166_v50 = vpop.xlane.xlu0 %13165 }
0x67d4   :  { %16600 = vrsqrt.f32 %v13169_v0  ;;  %v13168_v32 = vmul.f32 0.0625, %v13166_v50 }
0x67d6   :  { %v13170_v24 = vadd.f32 1e-05, %v13168_v32 }
0x67d7   :  { %v16253_v38 = vpop.permute.xlu0 %16252 }
0x67d8   :  { %16602 = vrsqrt.f32 %v13170_v24  ;;  %v16255_v51 = vunpack.i.h.bf16 %v16253_v38  ;;  %v16254_v33 = vunpack.i.l.bf16 %v16253_v38 }
0x67da   :  { %v15787_v3 = vpack.c.bf16 %v16255_v51, %v16254_v33 }
0x67dc   :  { %15789 = vmatprep.subr.msk.bf16.mxu0 %vm16909_vm13, %v15787_v3 }
0x67de   :  { %v16601_v7 = vpop.eup %16600 }
0x67df   :  { %v13173_v62 = vmul.f32 %v16601_v7, %v13157_v23  ;;  %v13966_v7 = vld [vmem:[%s18520_s9 + $0x10] ss:$0 sm:$0xff] }
0x67e1   :  { %v13179_v21 = vmul.f32 %v13957_v34, %v13173_v62  ;;  %v13453_v62 = vld [vmem:[%s18524_s10 + $0x8] sm:$0xff] }
0x67e2   :  { %v16603_v39 = vpop.eup %16602 }
0x67e3   :  { %v13174_v42 = vmul.f32 %v16603_v39, %v13158_v8  ;;  %v13185_v47 = vadd.f32 %v13183_v26, %v13179_v21  ;;  %v17_v21 = vstv %s18525_s11 }
0x67e4   :  { %18 = vst [vmem:[#allocation2] sm:$0x1] %v17_v21 }
0x67e5   :  { %v13180_v9 = vmul.f32 %v13957_v34, %v13174_v42  ;;  %15308 = vmatprep.mubr.msk.f32.mxu0 %vm101_vm6, %v13185_v47 }
0x67e7   :  { %v13186_v11 = vadd.f32 %v13183_v26, %v13180_v9 }
0x67e9   :  { %15309 = vmatmul.mubr.msk.f32.vlgmr.msra.gmra.mrb[106].mxu0 %vm101_vm6, %v13186_v11 }
0x67ea   :  { %15792 = vmatpush3.bf16.xpose.msk.msra.mxu0 %vm16909_vm13, %v15787_v3  ;;  %v13452_v3 = vld [vmem:[%s18524_s10] sm:$0xff] }
0x67eb   :  { %v15793_v26 = vpack.c.bf16 %v13453_v62, %v13452_v3 }
0x67ed   :  { %15794 = vmatprep.subr.bf16.mxu1 %v15793_v26 }
0x67ee   :  { %15796 = vmatpush3.bf16.msra.mxu1 %v15793_v26 }
0x68bc   :  { %v15310_v28 = vpop.f32.mrb[106].mxu0 }
0x68bd   :  { %v13272_v14 = vadd.f32 %v15310_v28, %v13958_v19  ;;  %v13266_v55 = vpop.f32.mrb[107].mxu0 }
0x68be   :  { %v13267_v15 = vadd.f32 %v13958_v19, %v13266_v55 }
0x68bf   :  { %v13276_v57 = vmax.f32 %v13272_v14, 0.0 }
0x68c0   :  { %v13275_v4 = vmax.f32 %v13267_v15, 0.0 }
0x68c2   :  { %15315 = vmatprep.mubr.msk.f32.mxu0 %vm1495_vm12, %v13275_v4 }
0x68c3   :  { %15316 = vmatmul.mubr.msk.f32.vlgmr.msra.gmra.mrb[108].mxu0 %vm1495_vm12, %v13276_v57 }
0x6996   :  { %v15317_v27 = vpop.f32.mrb[108].mxu0 }
0x6997   :  { %v13369_v52 = vadd.f32 %v15317_v27, %v13285_v13  ;;  %v13363_v10 = vpop.f32.mrb[109].mxu0 }
0x6998   :  { %v13364_v59 = vadd.f32 %v13363_v10, %v13285_v13  ;;  %v13967_v10 = vld [vmem:[#allocation2] ss:$0 sm:$0xff] }
0x6999   :  { %v13373_v35 = vadd.f32 %v13369_v52, %v13186_v11 }
0x699a   :  { %v13372_v53 = vadd.f32 %v13364_v59, %v13185_v47 }
0x699b   :  { %v13378_v61 = vsel %vm101_vm6, %v13373_v35, 0.0 }
0x699c   :  { %13379 = vadd.xlane.f32.xlu0 %v13378_v61  ;;  %v13375_v18 = vsel %vm101_vm6, %v13372_v53, 0.0 }
0x699d   :  { %13376 = vadd.xlane.f32.xlu1 %v13375_v18 }
0x6a29   :  { %v13380_v45 = vpop.xlane.xlu0 %13379 }
0x6a2a   :  { %v13382_v46 = vmul.f32 0.0625, %v13380_v45  ;;  %v13377_v30 = vpop.xlane.xlu1 %13376 }
0x6a2b   :  { %v13381_v5 = vmul.f32 0.0625, %v13377_v30 }
0x6a2c   :  { %v13384_v29 = vsub.f32 %v13373_v35, %v13382_v46 }
0x6a2d   :  { %v13383_v44 = vsub.f32 %v13372_v53, %v13381_v5 }
0x6a2e   :  { %v13386_v43 = vmul.f32 %v13384_v29, %v13384_v29 }
0x6a2f   :  { %v13385_v2 = vmul.f32 %v13383_v44, %v13383_v44 }
0x6a30   :  { %v13390_v37 = vsel %vm101_vm6, %v13386_v43, 0.0 }
0x6a31   :  { %13391 = vadd.xlane.f32.xlu1 %v13390_v37  ;;  %v13387_v20 = vsel %vm101_vm6, %v13385_v2, 0.0 }
0x6a32   :  { %13388 = vadd.xlane.f32.xlu0 %v13387_v20 }
0x6a48   :  { %13408 = vrot.lane.b32.xlu0 %v13965_v41, %s16625_s1 }
0x6abe   :  { %v13392_v16 = vpop.xlane.xlu1 %13391 }
0x6abf   :  { %v13394_v40 = vmul.f32 0.0625, %v13392_v16  ;;  %v13389_v22 = vpop.xlane.xlu0 %13388 }
0x6ac0   :  { %v13393_v34 = vmul.f32 0.0625, %v13389_v22 }
0x6ac1   :  { %v13396_v36 = vadd.f32 1e-05, %v13394_v40 }
0x6ac2   :  { %v13395_v6 = vadd.f32 1e-05, %v13393_v34 }
0x6ac3   :  { %16604 = vrsqrt.f32 %v13396_v36  ;;  %v13409_v12 = vpop.permute.xlu0 %13408 }
0x6ac4   :  { %16606 = vrsqrt.f32 %v13395_v6 }
0x6acd   :  { %v16605_v54 = vpop.eup %16604 }
0x6ace   :  { %v16607_v17 = vpop.eup %16606  ;;  %v13400_v8 = vmul.f32 %v16605_v54, %v13384_v29 }
0x6acf   :  { %v13399_v23 = vmul.f32 %v16607_v17, %v13383_v44 }
0x6ad0   :  { %v13406_v63 = vmul.f32 %v13965_v41, %v13400_v8 }
0x6ad1   :  { %v13405_v49 = vmul.f32 %v13965_v41, %v13399_v23 }
0x6ad2   :  { %v13412_v1 = vadd.f32 %v13409_v12, %v13406_v63 }
0x6ad3   :  { %v13411_v25 = vadd.f32 %v13409_v12, %v13405_v49 }
0x6ad4   :  { %v13417_v60 = vsel %vm101_vm6, %v13412_v1, 0.0 }
0x6ad5   :  { %v13414_v56 = vsel %vm101_vm6, %v13411_v25, 0.0 }
0x6ad6   :  { %13415 = vadd.xlane.f32.xlu1 %v13414_v56 }
0x6ada   :  { %13418 = vadd.xlane.f32.xlu1 %v13417_v60 }
0x6b63   :  { %v13416_v58 = vpop.xlane.xlu1 %13415 }
0x6b64   :  { %v13420_v31 = vmul.f32 0.0625, %v13416_v58 }
0x6b66   :  { %v13422_v50 = vsub.f32 %v13411_v25, %v13420_v31 }
0x6b67   :  { %v13419_v48 = vpop.xlane.xlu1 %13418 }
0x6b68   :  { %v13421_v0 = vmul.f32 0.0625, %v13419_v48  ;;  %v13424_v51 = vmul.f32 %v13422_v50, %v13422_v50 }
0x6b6a   :  { %v13423_v32 = vsub.f32 %v13412_v1, %v13421_v0  ;;  %v13426_v33 = vsel %vm101_vm6, %v13424_v51, 0.0 }
0x6b6c   :  { %v13425_v24 = vmul.f32 %v13423_v32, %v13423_v32 }
0x6b6e   :  { %v13429_v38 = vsel %vm101_vm6, %v13425_v24, 0.0 }
0x6b6f   :  { %13430 = vadd.xlane.f32.xlu1 %v13429_v38 }
0x6b73   :  { %13427 = vadd.xlane.f32.xlu1 %v13426_v33 }
0x6b84   :  { %13447 = vrot.lane.b32.xlu1 %v13966_v7, %s16625_s1 }
0x6bfc   :  { %v13431_v39 = vpop.xlane.xlu1 %13430 }
0x6bfd   :  { %v13433_v42 = vmul.f32 0.0625, %v13431_v39 }
0x6bff   :  { %v13435_v47 = vadd.f32 1e-05, %v13433_v42 }
0x6c00   :  { %v13428_v9 = vpop.xlane.xlu1 %13427 }
0x6c01   :  { %16608 = vrsqrt.f32 %v13435_v47  ;;  %v13432_v11 = vmul.f32 0.0625, %v13428_v9 }
0x6c03   :  { %v13434_v19 = vadd.f32 1e-05, %v13432_v11 }
0x6c04   :  { %v13448_v13 = vpop.permute.xlu1 %13447 }
0x6c05   :  { %16610 = vrsqrt.f32 %v13434_v19 }
0x6c0b   :  { %v16609_v28 = vpop.eup %16608 }
0x6c0c   :  { %v13439_v14 = vmul.f32 %v16609_v28, %v13423_v32 }
0x6c0e   :  { %v13445_v4 = vmul.f32 %v13966_v7, %v13439_v14 }
0x6c0f   :  { %v16611_v55 = vpop.eup %16610 }
0x6c10   :  { %v13438_v15 = vmul.f32 %v16611_v55, %v13422_v50  ;;  %v13451_v52 = vadd.f32 %v13448_v13, %v13445_v4 }
0x6c12   :  { %v13444_v57 = vmul.f32 %v13966_v7, %v13438_v15 }
0x6c14   :  { %v13450_v27 = vadd.f32 %v13448_v13, %v13444_v57 }
0x6c16   :  { %15322 = vmatprep.mubr.msk.f32.mxu1 %vm101_vm6, %v13450_v27 }
0x6c17   :  { %15323 = vmatmul.mubr.msk.f32.vlgmr.msra.gmra.mrb[100].mxu1 %vm101_vm6, %v13451_v52 }
0x6cea   :  { %v15324_v59 = vpop.f32.mrb[100].mxu1 }
0x6ceb   :  { %v13539_v35 = vadd.f32 %v15324_v59, %v13967_v10  ;;  %v13533_v53 = vpop.f32.mrb[101].mxu1 }
0x6cec   :  { %v13534_v61 = vadd.f32 %v13967_v10, %v13533_v53 }
0x6ced   :  { %v13543_v18 = vmax.f32 %v13539_v35, 0.0 }
0x6cee   :  { %v13542_v45 = vmax.f32 %v13534_v61, 0.0 }
0x6cef   :  { %13546 = vst.msk [vmem:[%s18526_s12 + $0x8] sm:$0xff] %vm13544_vm14, %v13543_v18 }
0x6cf0   :  { %13545 = vst.msk [vmem:[%s18526_s12] sm:$0xff] %vm13544_vm14, %v13542_v45 }

</bundles_post_ra>
